<compile_context>
chip_gen: v6e
topology: v6e:2x2x1
jax: 0.10.0
libtpu: 0.0.40
codegen_flags: <defaults>
</compile_context>

<pallas_src>
import numpy as np
import jax
import jax.numpy as jnp
from jax import lax
from jax.experimental import pallas as pl
from jax.experimental.pallas import tpu as pltpu

START_TAG = "START"
STOP_TAG = "STOP"

TAGS = ["O",
        "B_nr", "M_nr", "E_nr",
        "B_ns", "M_ns", "E_ns",
        "B_nt", "M_nt", "E_nt",
        START_TAG, STOP_TAG]
TAG_TO_IX = {t: i for i, t in enumerate(TAGS)}

# Small, module-consistent shapes.
B = 2            # batch_size
T = 8            # sentence length (lengths=None path: all sentences full length)
VOCAB = 50       # vocab_size
EMB = 16         # embedding_dim
HIDDEN = 32      # hidden_dim (bidirectional -> H = 16 per direction)
H = HIDDEN // 2
D2 = 2 * H       # 32  (fused [fwd | bwd] hidden width)
G8 = 8 * H       # 128 (fused gate width, exactly one vreg of lanes)
TAG = len(TAGS)  # 12
START_IDX = TAG_TO_IX[START_TAG]
STOP_IDX = TAG_TO_IX[STOP_TAG]
NEG = -10000.0

# ---- row offsets inside the single packed parameter slab (128 lanes wide) ----
R_EMB = 0                      # (VOCAB, EMB)       embedding table
R_WIHF = R_EMB + VOCAB         # (EMB, G8)          input proj, fwd gate cols
R_WIHB = R_WIHF + EMB          # (EMB, G8)          input proj, bwd gate cols
R_WHH = R_WIHB + EMB           # (D2, G8)           block-diagonal recurrent W
R_BGATE = R_WHH + D2           # (1, G8)            summed gate biases
R_H0 = R_BGATE + 1             # (B, D2)            initial h = [hf | hb]
R_C0 = R_H0 + B                # (B, D2)            initial c = [cf | cb]
R_WTAGF = R_C0 + B             # (D2, TAG)          hidden2tag, fwd rows live
R_WTAGB = R_WTAGF + D2         # (D2, TAG)          hidden2tag, bwd rows live
R_BTAG = R_WTAGB + D2          # (1, TAG)
R_TRANS = R_BTAG + 1           # (TAG, TAG)         transitions[to, from]
N_ROWS = R_TRANS + TAG         # 196
PAD_ROWS = ((N_ROWS + 7) // 8) * 8  # 200


def apply_transition_constraints(trans, t2i):
    """Numpy replica of BiLSTM_CRF.init_transitions (trans[to, from])."""
    trans[t2i[START_TAG], :] = NEG
    trans[:, t2i[STOP_TAG]] = NEG
    tag_list = ["nr", "ns", "nt"]
    for tag in tag_list:
        trans[t2i["O"], t2i["M_" + tag]] = NEG
        trans[t2i["O"], t2i["B_" + tag]] = NEG
        trans[t2i[STOP_TAG], t2i["M_" + tag]] = NEG
        trans[t2i[STOP_TAG], t2i["B_" + tag]] = NEG
    for to in tag_list:
        for fr in tag_list:
            trans[t2i["B_" + to], t2i["B_" + fr]] = NEG
            trans[t2i["B_" + to], t2i["M_" + fr]] = NEG
    for to in tag_list:
        trans[t2i["M_" + to], t2i["O"]] = NEG
        trans[t2i["M_" + to], t2i[START_TAG]] = NEG
        trans[t2i["M_" + to], t2i["E_" + to]] = NEG
        for fr in tag_list:
            if fr == to:
                continue
            trans[t2i["M_" + to], t2i["B_" + fr]] = NEG
            trans[t2i["M_" + to], t2i["M_" + fr]] = NEG
            trans[t2i["M_" + to], t2i["E_" + fr]] = NEG
    for to in tag_list:
        trans[t2i["E_" + to], t2i["O"]] = NEG
        trans[t2i["E_" + to], t2i[START_TAG]] = NEG
        trans[t2i["E_" + to], t2i["E_" + to]] = NEG
        for fr in tag_list:
            if fr == to:
                continue
            trans[t2i["E_" + to], t2i["B_" + fr]] = NEG
            trans[t2i["E_" + to], t2i["M_" + fr]] = NEG
            trans[t2i["E_" + to], t2i["E_" + fr]] = NEG
    return trans


# -----------------------------------------------------------------------------
# Fused kernel: embedding -> BiLSTM -> hidden2tag -> Viterbi decode.
# -----------------------------------------------------------------------------
def bilstm_crf_kernel(ids_ref, p_ref, score_ref, path_ref, xproj_scr):
    # ---- parameter slices from the single packed slab (static offsets) ------
    emb = p_ref[R_EMB:R_EMB + VOCAB, 0:EMB]                       # (VOCAB, EMB)
    wih_f = p_ref[R_WIHF:R_WIHF + EMB, :]                         # (EMB, 8H)
    wih_b = p_ref[R_WIHB:R_WIHB + EMB, :]                         # (EMB, 8H)
    whh = p_ref[R_WHH:R_WHH + D2, :]                              # (2H, 8H)
    bgate = p_ref[R_BGATE:R_BGATE + 1, :]                         # (1, 8H)
    h0 = p_ref[R_H0:R_H0 + B, 0:D2]                               # (B, 2H)
    c0 = p_ref[R_C0:R_C0 + B, 0:D2]                               # (B, 2H)
    wtag_f = p_ref[R_WTAGF:R_WTAGF + D2, 0:TAG]                   # (2H, TAG)
    wtag_b = p_ref[R_WTAGB:R_WTAGB + D2, 0:TAG]                   # (2H, TAG)
    btag = p_ref[R_BTAG:R_BTAG + 1, 0:TAG]                        # (1, TAG)
    trans = p_ref[R_TRANS:R_TRANS + TAG, 0:TAG]                   # (to, from)

    # ---- embedding lookup as one-hot matmuls (forward + time-reversed) ------
    ids = ids_ref[...]                                            # (T*B, 2) i32
    iota_v = lax.broadcasted_iota(jnp.int32, (T * B, VOCAB), 1)
    oh_f = (iota_v == ids[:, 0:1]).astype(jnp.float32)            # tokens at t
    oh_r = (iota_v == ids[:, 1:2]).astype(jnp.float32)            # tokens at T-1-t
    x_f = jnp.dot(oh_f, emb, preferred_element_type=jnp.float32)  # (T*B, EMB)
    x_r = jnp.dot(oh_r, emb, preferred_element_type=jnp.float32)

    # ---- hoisted input projection: fwd gate cols use x_t, bwd cols x_{T-1-t}
    xproj_scr[...] = (jnp.dot(x_f, wih_f, preferred_element_type=jnp.float32)
                      + jnp.dot(x_r, wih_b, preferred_element_type=jnp.float32)
                      + bgate)                                    # (T*B, 8H)

    # ---- fused fwd+bwd recurrence: one (B,2H)x(2H,8H) matmul per step -------
    # Gate columns are packed [i | f | g | o], each 2H wide ([fwd H | bwd H]).
    h = h0
    c = c0
    hs = []                           # hs[s][:, :H] = hf(t=s), [:, H:] = hb(t=T-1-s)
    for s in range(T):
        g = xproj_scr[s * B:(s + 1) * B, :] + jnp.dot(
            h, whh, preferred_element_type=jnp.float32)           # (B, 8H)
        sg = jax.nn.sigmoid(g)                                    # one EUP push
        tg = jnp.tanh(g)                                          # one EUP push
        c = sg[:, D2:2 * D2] * c + sg[:, 0:D2] * tg[:, 2 * D2:3 * D2]
        h = sg[:, 3 * D2:4 * D2] * jnp.tanh(c)                    # one EUP push
        hs.append(h)

    # ---- hidden2tag: two matmuls over stacked h's (handles time reversal) ---
    cat_f = jnp.concatenate(hs, axis=0)         # row block t: [hf(t) | hb(T-1-t)]
    cat_r = jnp.concatenate(hs[::-1], axis=0)   # row block t: [hf(T-1-t) | hb(t)]
    feats = (jnp.dot(cat_f, wtag_f, preferred_element_type=jnp.float32)
             + jnp.dot(cat_r, wtag_b, preferred_element_type=jnp.float32)
             + btag)                                              # (T*B, TAG)

    # ---- Viterbi DP, vectorized over batch, everything kept in vregs --------
    iota_tag = lax.broadcasted_iota(jnp.int32, (B, TAG), 1)
    iota_from = lax.broadcasted_iota(jnp.int32, (B, TAG, TAG), 2)
    fv = jnp.where(iota_tag == START_IDX, 0.0, NEG).astype(jnp.float32)
    bps = []
    for t in range(T):
        nxt = fv[:, None, :] + trans[None, :, :]                  # (B, to, from)
        vit = jnp.max(nxt, axis=2)                                # (B, to)
        bp = jnp.min(jnp.where(nxt == vit[:, :, None], iota_from, TAG),
                     axis=2).astype(jnp.int32)                    # argmax(from)
        bps.append(bp)
        fv = vit + feats[t * B:(t + 1) * B, :]

    terminal = fv + trans[STOP_IDX:STOP_IDX + 1, :]               # (B, TAG)
    best_val = jnp.max(terminal, axis=1, keepdims=True)           # (B, 1)
    best = jnp.min(jnp.where(terminal == best_val, iota_tag, TAG),
                   axis=1, keepdims=True).astype(jnp.int32)       # (B, 1)

    # ---- backtracking (in-register backpointers, unrolled) ------------------
    iota_t = lax.broadcasted_iota(jnp.int32, (B, T), 1)
    path = jnp.where(iota_t == T - 1, best,
                     jnp.full((B, T), -1, dtype=jnp.int32))
    cur = best
    for t in range(T - 1, 0, -1):
        cur = jnp.sum(jnp.where(iota_tag == cur, bps[t], 0),
                      axis=1, keepdims=True).astype(jnp.int32)
        path = jnp.where(iota_t == t - 1, cur, path)
    # backpointer at t == 0 points back to START (popped by the torch reference).

    score_ref[...] = best_val
    path_ref[...] = path


def bilstm_crf_forward(sentences, param_slab):
    """sentences: (B, T) int32 token ids.  Returns (scores (B,), paths (B, T))."""
    ids_f = jnp.transpose(sentences.astype(jnp.int32)).reshape(T * B, 1)
    ids_r = jnp.transpose(sentences[:, ::-1].astype(jnp.int32)).reshape(T * B, 1)
    ids = jnp.concatenate([ids_f, ids_r], axis=1)                 # (T*B, 2)

    vmem = pl.BlockSpec(memory_space=pltpu.MemorySpace.VMEM)
    scores, paths = pl.pallas_call(
        bilstm_crf_kernel,
        out_shape=(jax.ShapeDtypeStruct((B, 1), jnp.float32),
                   jax.ShapeDtypeStruct((B, T), jnp.int32)),
        in_specs=[vmem, vmem],
        out_specs=(vmem, vmem),
        scratch_shapes=[
            pltpu.VMEM((T * B, G8), jnp.float32),  # hoisted fused input proj
        ],
        cost_estimate=pl.CostEstimate(flops=400_000,
                                      transcendentals=5_000,
                                      bytes_accessed=110_000),
    )(ids, param_slab)

    return scores[:, 0], paths


def make_params():
    key = jax.random.PRNGKey(0)
    ks = jax.random.split(key, 16)
    scale = 1.0 / np.sqrt(H)

    def u(k, shape):
        return jax.random.uniform(k, shape, jnp.float32, -scale, scale)

    emb_table = np.asarray(jax.random.normal(ks[0], (VOCAB, EMB), jnp.float32))
    wih_f = np.asarray(u(ks[1], (4 * H, EMB)))
    whh_f = np.asarray(u(ks[2], (4 * H, H)))
    b_f = np.asarray(u(ks[3], (4 * H,)) + u(ks[4], (4 * H,)))   # bias_ih + bias_hh
    wih_b = np.asarray(u(ks[5], (4 * H, EMB)))
    whh_b = np.asarray(u(ks[6], (4 * H, H)))
    b_b = np.asarray(u(ks[7], (4 * H,)) + u(ks[8], (4 * H,)))
    wtag = np.asarray(u(ks[9], (TAG, 2 * H)))
    btag = np.asarray(u(ks[10], (TAG,)))

    # NOTE: init_hidden() in the torch module draws fresh torch.randn every
    # forward; here we use a fixed deterministic (h0, c0).
    h0 = np.asarray(jax.random.normal(ks[11], (2, B, H), jnp.float32))
    c0 = np.asarray(jax.random.normal(ks[12], (2, B, H), jnp.float32))

    trans = np.array(jax.random.normal(ks[13], (TAG, TAG), jnp.float32))
    trans = apply_transition_constraints(trans, TAG_TO_IX)

    # ---- gate-type-major packing: columns [i | f | g | o], each [fwd H | bwd H]
    wih_f_pad = np.zeros((EMB, G8), np.float32)
    wih_b_pad = np.zeros((EMB, G8), np.float32)
    whh_bd = np.zeros((D2, G8), np.float32)      # block-diagonal recurrent W
    bgate = np.zeros((1, G8), np.float32)
    for g in range(4):                            # torch gate order: i, f, g, o
        col_f = g * D2
        col_b = g * D2 + H
        wih_f_pad[:, col_f:col_f + H] = wih_f[g * H:(g + 1) * H, :].T
        wih_b_pad[:, col_b:col_b + H] = wih_b[g * H:(g + 1) * H, :].T
        whh_bd[0:H, col_f:col_f + H] = whh_f[g * H:(g + 1) * H, :].T
        whh_bd[H:D2, col_b:col_b + H] = whh_b[g * H:(g + 1) * H, :].T
        bgate[0, col_f:col_f + H] = b_f[g * H:(g + 1) * H]
        bgate[0, col_b:col_b + H] = b_b[g * H:(g + 1) * H]

    # hidden2tag split so the fwd half uses forward-time-ordered h's and the
    # bwd half uses reversed-order h's (the kernel feeds both stacks).
    wtag_f_pad = np.zeros((D2, TAG), np.float32)
    wtag_b_pad = np.zeros((D2, TAG), np.float32)
    wtag_f_pad[0:H, :] = wtag[:, 0:H].T
    wtag_b_pad[H:D2, :] = wtag[:, H:2 * H].T

    h0_packed = np.concatenate([h0[0], h0[1]], axis=1)   # (B, 2H) = [hf | hb]
    c0_packed = np.concatenate([c0[0], c0[1]], axis=1)

    # ---- single packed, 128-lane-wide parameter slab -> one entry DMA -------
    slab = np.zeros((PAD_ROWS, 128), np.float32)
    slab[R_EMB:R_EMB + VOCAB, 0:EMB] = emb_table
    slab[R_WIHF:R_WIHF + EMB, :] = wih_f_pad
    slab[R_WIHB:R_WIHB + EMB, :] = wih_b_pad
    slab[R_WHH:R_WHH + D2, :] = whh_bd
    slab[R_BGATE, :] = bgate[0]
    slab[R_H0:R_H0 + B, 0:D2] = h0_packed
    slab[R_C0:R_C0 + B, 0:D2] = c0_packed
    slab[R_WTAGF:R_WTAGF + D2, 0:TAG] = wtag_f_pad
    slab[R_WTAGB:R_WTAGB + D2, 0:TAG] = wtag_b_pad
    slab[R_BTAG, 0:TAG] = btag
    slab[R_TRANS:R_TRANS + TAG, 0:TAG] = trans

    return jnp.asarray(slab), ks[14]


if __name__ == "__main__":
    param_slab, sent_key = make_params()
    sentences = jax.random.randint(sent_key, (B, T), 0, VOCAB, dtype=jnp.int32)

    fwd = jax.jit(bilstm_crf_forward)
    scores, paths = fwd(sentences, param_slab)
    scores = jax.block_until_ready(scores)
    paths = jax.block_until_ready(paths)

    # TODO(synk): LSTM dropout=0.5 has no effect with num_layers=1, so omitted.
    print("KERNEL_OK")
</pallas_src>

<mosaic_0001>
module attributes {stable_mosaic.version = 11 : i64} {
  func.func @bilstm_crf_kernel(%arg0: memref<16x2xi32, #tpu.memory_space<vmem>>, %arg1: memref<200x128xf32, #tpu.memory_space<vmem>>, %arg2: memref<2x1xf32, #tpu.memory_space<vmem>>, %arg3: memref<2x8xi32, #tpu.memory_space<vmem>>, %arg4: memref<16x128xf32, #tpu.memory_space<vmem>>) attributes {dimension_semantics = [], scalar_prefetch = 0 : i64, scratch_operands = 1 : i64, tpu.core_type = #tpu.core_type<tc>} {
    %c0 = arith.constant 0 : index
    %c0_0 = arith.constant 0 : index
    %0 = vector.load %arg1[%c0, %c0_0] : memref<200x128xf32, #tpu.memory_space<vmem>>, vector<50x16xf32>
    %c50 = arith.constant 50 : index
    %c0_1 = arith.constant 0 : index
    %1 = vector.load %arg1[%c50, %c0_1] : memref<200x128xf32, #tpu.memory_space<vmem>>, vector<16x128xf32>
    %c66 = arith.constant 66 : index
    %c0_2 = arith.constant 0 : index
    %2 = vector.load %arg1[%c66, %c0_2] : memref<200x128xf32, #tpu.memory_space<vmem>>, vector<16x128xf32>
    %c82 = arith.constant 82 : index
    %c0_3 = arith.constant 0 : index
    %3 = vector.load %arg1[%c82, %c0_3] : memref<200x128xf32, #tpu.memory_space<vmem>>, vector<32x128xf32>
    %c114 = arith.constant 114 : index
    %c0_4 = arith.constant 0 : index
    %4 = vector.load %arg1[%c114, %c0_4] : memref<200x128xf32, #tpu.memory_space<vmem>>, vector<1x128xf32>
    %c115 = arith.constant 115 : index
    %c0_5 = arith.constant 0 : index
    %5 = vector.load %arg1[%c115, %c0_5] : memref<200x128xf32, #tpu.memory_space<vmem>>, vector<2x32xf32>
    %c117 = arith.constant 117 : index
    %c0_6 = arith.constant 0 : index
    %6 = vector.load %arg1[%c117, %c0_6] : memref<200x128xf32, #tpu.memory_space<vmem>>, vector<2x32xf32>
    %c119 = arith.constant 119 : index
    %c0_7 = arith.constant 0 : index
    %7 = vector.load %arg1[%c119, %c0_7] : memref<200x128xf32, #tpu.memory_space<vmem>>, vector<32x12xf32>
    %c151 = arith.constant 151 : index
    %c0_8 = arith.constant 0 : index
    %8 = vector.load %arg1[%c151, %c0_8] : memref<200x128xf32, #tpu.memory_space<vmem>>, vector<32x12xf32>
    %c183 = arith.constant 183 : index
    %c0_9 = arith.constant 0 : index
    %9 = vector.load %arg1[%c183, %c0_9] : memref<200x128xf32, #tpu.memory_space<vmem>>, vector<1x12xf32>
    %c184 = arith.constant 184 : index
    %c0_10 = arith.constant 0 : index
    %10 = vector.load %arg1[%c184, %c0_10] : memref<200x128xf32, #tpu.memory_space<vmem>>, vector<12x12xf32>
    %c0_11 = arith.constant 0 : index
    %c0_12 = arith.constant 0 : index
    %11 = vector.load %arg0[%c0_11, %c0_12] : memref<16x2xi32, #tpu.memory_space<vmem>>, vector<16x2xi32>
    %12 = tpu.iota {dimensions = array<i32: 1>} : vector<16x50xi32>
    %13 = vector.extract_strided_slice %11 {offsets = [0, 0], sizes = [16, 1], strides = [1, 1]} : vector<16x2xi32> to vector<16x1xi32>
    %14 = vector.broadcast %13 : vector<16x1xi32> to vector<16x50xi32>
    %15 = arith.cmpi eq, %12, %14 : vector<16x50xi32>
    %16 = arith.extui %15 : vector<16x50xi1> to vector<16x50xi32>
    %17 = arith.sitofp %16 : vector<16x50xi32> to vector<16x50xf32>
    %18 = vector.extract_strided_slice %11 {offsets = [0, 1], sizes = [16, 1], strides = [1, 1]} : vector<16x2xi32> to vector<16x1xi32>
    %19 = vector.broadcast %18 : vector<16x1xi32> to vector<16x50xi32>
    %20 = arith.cmpi eq, %12, %19 : vector<16x50xi32>
    %21 = arith.extui %20 : vector<16x50xi1> to vector<16x50xi32>
    %22 = arith.sitofp %21 : vector<16x50xi32> to vector<16x50xf32>
    %cst = arith.constant dense<0.000000e+00> : vector<16x16xf32>
    %23 = tpu.matmul %17, %0, %cst {dimension_numbers = #tpu.dot_dimension_numbers<[1], [0], [0], [1], [0, 0, 1, 1], [], []>} : vector<16x50xf32>, vector<50x16xf32>, vector<16x16xf32> -> vector<16x16xf32>
    %cst_13 = arith.constant dense<0.000000e+00> : vector<16x16xf32>
    %24 = tpu.matmul %22, %0, %cst_13 {dimension_numbers = #tpu.dot_dimension_numbers<[1], [0], [0], [1], [0, 0, 1, 1], [], []>} : vector<16x50xf32>, vector<50x16xf32>, vector<16x16xf32> -> vector<16x16xf32>
    %cst_14 = arith.constant dense<0.000000e+00> : vector<16x128xf32>
    %25 = tpu.matmul %23, %1, %cst_14 {dimension_numbers = #tpu.dot_dimension_numbers<[1], [0], [0], [1], [0, 0, 1, 1], [], []>} : vector<16x16xf32>, vector<16x128xf32>, vector<16x128xf32> -> vector<16x128xf32>
    %cst_15 = arith.constant dense<0.000000e+00> : vector<16x128xf32>
    %26 = tpu.matmul %24, %2, %cst_15 {dimension_numbers = #tpu.dot_dimension_numbers<[1], [0], [0], [1], [0, 0, 1, 1], [], []>} : vector<16x16xf32>, vector<16x128xf32>, vector<16x128xf32> -> vector<16x128xf32>
    %27 = arith.addf %25, %26 : vector<16x128xf32>
    %28 = vector.broadcast %4 : vector<1x128xf32> to vector<16x128xf32>
    %29 = arith.addf %27, %28 : vector<16x128xf32>
    %c0_16 = arith.constant 0 : index
    %c0_17 = arith.constant 0 : index
    %30 = vector.load %arg4[%c0_16, %c0_17] : memref<16x128xf32, #tpu.memory_space<vmem>>, vector<16x128xf32>
    tpu.vector_store %arg4[%c0_16, %c0_17], %29 {strides = array<i32>} : memref<16x128xf32, #tpu.memory_space<vmem>>, vector<16x128xf32>,
    %c0_18 = arith.constant 0 : index
    %c0_19 = arith.constant 0 : index
    %31 = vector.load %arg4[%c0_18, %c0_19] : memref<16x128xf32, #tpu.memory_space<vmem>>, vector<2x128xf32>
    %cst_20 = arith.constant dense<0.000000e+00> : vector<2x128xf32>
    %32 = tpu.matmul %5, %3, %cst_20 {dimension_numbers = #tpu.dot_dimension_numbers<[1], [0], [0], [1], [0, 0, 1, 1], [], []>} : vector<2x32xf32>, vector<32x128xf32>, vector<2x128xf32> -> vector<2x128xf32>
    %33 = arith.addf %31, %32 : vector<2x128xf32>
    %34 = arith.negf %33 : vector<2x128xf32>
    %35 = math.exp %34 : vector<2x128xf32>
    %cst_21 = arith.constant 1.000000e+00 : f32
    %36 = vector.broadcast %cst_21 : f32 to vector<2x128xf32>
    %37 = arith.addf %36, %35 : vector<2x128xf32>
    %38 = arith.divf %36, %37 : vector<2x128xf32>
    %39 = math.tanh %33 : vector<2x128xf32>
    %40 = vector.extract_strided_slice %38 {offsets = [0, 32], sizes = [2, 32], strides = [1, 1]} : vector<2x128xf32> to vector<2x32xf32>
    %41 = arith.mulf %40, %6 : vector<2x32xf32>
    %42 = vector.extract_strided_slice %38 {offsets = [0, 0], sizes = [2, 32], strides = [1, 1]} : vector<2x128xf32> to vector<2x32xf32>
    %43 = vector.extract_strided_slice %39 {offsets = [0, 64], sizes = [2, 32], strides = [1, 1]} : vector<2x128xf32> to vector<2x32xf32>
    %44 = arith.mulf %42, %43 : vector<2x32xf32>
    %45 = arith.addf %41, %44 : vector<2x32xf32>
    %46 = vector.extract_strided_slice %38 {offsets = [0, 96], sizes = [2, 32], strides = [1, 1]} : vector<2x128xf32> to vector<2x32xf32>
    %47 = math.tanh %45 : vector<2x32xf32>
    %48 = arith.mulf %46, %47 : vector<2x32xf32>
    %c2 = arith.constant 2 : index
    %c0_22 = arith.constant 0 : index
    %49 = vector.load %arg4[%c2, %c0_22] : memref<16x128xf32, #tpu.memory_space<vmem>>, vector<2x128xf32>
    %cst_23 = arith.constant dense<0.000000e+00> : vector<2x128xf32>
    %50 = tpu.matmul %48, %3, %cst_23 {dimension_numbers = #tpu.dot_dimension_numbers<[1], [0], [0], [1], [0, 0, 1, 1], [], []>} : vector<2x32xf32>, vector<32x128xf32>, vector<2x128xf32> -> vector<2x128xf32>
    %51 = arith.addf %49, %50 : vector<2x128xf32>
    %52 = arith.negf %51 : vector<2x128xf32>
    %53 = math.exp %52 : vector<2x128xf32>
    %cst_24 = arith.constant 1.000000e+00 : f32
    %54 = vector.broadcast %cst_24 : f32 to vector<2x128xf32>
    %55 = arith.addf %54, %53 : vector<2x128xf32>
    %56 = arith.divf %54, %55 : vector<2x128xf32>
    %57 = math.tanh %51 : vector<2x128xf32>
    %58 = vector.extract_strided_slice %56 {offsets = [0, 32], sizes = [2, 32], strides = [1, 1]} : vector<2x128xf32> to vector<2x32xf32>
    %59 = arith.mulf %58, %45 : vector<2x32xf32>
    %60 = vector.extract_strided_slice %56 {offsets = [0, 0], sizes = [2, 32], strides = [1, 1]} : vector<2x128xf32> to vector<2x32xf32>
    %61 = vector.extract_strided_slice %57 {offsets = [0, 64], sizes = [2, 32], strides = [1, 1]} : vector<2x128xf32> to vector<2x32xf32>
    %62 = arith.mulf %60, %61 : vector<2x32xf32>
    %63 = arith.addf %59, %62 : vector<2x32xf32>
    %64 = vector.extract_strided_slice %56 {offsets = [0, 96], sizes = [2, 32], strides = [1, 1]} : vector<2x128xf32> to vector<2x32xf32>
    %65 = math.tanh %63 : vector<2x32xf32>
    %66 = arith.mulf %64, %65 : vector<2x32xf32>
    %c4 = arith.constant 4 : index
    %c0_25 = arith.constant 0 : index
    %67 = vector.load %arg4[%c4, %c0_25] : memref<16x128xf32, #tpu.memory_space<vmem>>, vector<2x128xf32>
    %cst_26 = arith.constant dense<0.000000e+00> : vector<2x128xf32>
    %68 = tpu.matmul %66, %3, %cst_26 {dimension_numbers = #tpu.dot_dimension_numbers<[1], [0], [0], [1], [0, 0, 1, 1], [], []>} : vector<2x32xf32>, vector<32x128xf32>, vector<2x128xf32> -> vector<2x128xf32>
    %69 = arith.addf %67, %68 : vector<2x128xf32>
    %70 = arith.negf %69 : vector<2x128xf32>
    %71 = math.exp %70 : vector<2x128xf32>
    %cst_27 = arith.constant 1.000000e+00 : f32
    %72 = vector.broadcast %cst_27 : f32 to vector<2x128xf32>
    %73 = arith.addf %72, %71 : vector<2x128xf32>
    %74 = arith.divf %72, %73 : vector<2x128xf32>
    %75 = math.tanh %69 : vector<2x128xf32>
    %76 = vector.extract_strided_slice %74 {offsets = [0, 32], sizes = [2, 32], strides = [1, 1]} : vector<2x128xf32> to vector<2x32xf32>
    %77 = arith.mulf %76, %63 : vector<2x32xf32>
    %78 = vector.extract_strided_slice %74 {offsets = [0, 0], sizes = [2, 32], strides = [1, 1]} : vector<2x128xf32> to vector<2x32xf32>
    %79 = vector.extract_strided_slice %75 {offsets = [0, 64], sizes = [2, 32], strides = [1, 1]} : vector<2x128xf32> to vector<2x32xf32>
    %80 = arith.mulf %78, %79 : vector<2x32xf32>
    %81 = arith.addf %77, %80 : vector<2x32xf32>
    %82 = vector.extract_strided_slice %74 {offsets = [0, 96], sizes = [2, 32], strides = [1, 1]} : vector<2x128xf32> to vector<2x32xf32>
    %83 = math.tanh %81 : vector<2x32xf32>
    %84 = arith.mulf %82, %83 : vector<2x32xf32>
    %c6 = arith.constant 6 : index
    %c0_28 = arith.constant 0 : index
    %85 = vector.load %arg4[%c6, %c0_28] : memref<16x128xf32, #tpu.memory_space<vmem>>, vector<2x128xf32>
    %cst_29 = arith.constant dense<0.000000e+00> : vector<2x128xf32>
    %86 = tpu.matmul %84, %3, %cst_29 {dimension_numbers = #tpu.dot_dimension_numbers<[1], [0], [0], [1], [0, 0, 1, 1], [], []>} : vector<2x32xf32>, vector<32x128xf32>, vector<2x128xf32> -> vector<2x128xf32>
    %87 = arith.addf %85, %86 : vector<2x128xf32>
    %88 = arith.negf %87 : vector<2x128xf32>
    %89 = math.exp %88 : vector<2x128xf32>
    %cst_30 = arith.constant 1.000000e+00 : f32
    %90 = vector.broadcast %cst_30 : f32 to vector<2x128xf32>
    %91 = arith.addf %90, %89 : vector<2x128xf32>
    %92 = arith.divf %90, %91 : vector<2x128xf32>
    %93 = math.tanh %87 : vector<2x128xf32>
    %94 = vector.extract_strided_slice %92 {offsets = [0, 32], sizes = [2, 32], strides = [1, 1]} : vector<2x128xf32> to vector<2x32xf32>
    %95 = arith.mulf %94, %81 : vector<2x32xf32>
    %96 = vector.extract_strided_slice %92 {offsets = [0, 0], sizes = [2, 32], strides = [1, 1]} : vector<2x128xf32> to vector<2x32xf32>
    %97 = vector.extract_strided_slice %93 {offsets = [0, 64], sizes = [2, 32], strides = [1, 1]} : vector<2x128xf32> to vector<2x32xf32>
    %98 = arith.mulf %96, %97 : vector<2x32xf32>
    %99 = arith.addf %95, %98 : vector<2x32xf32>
    %100 = vector.extract_strided_slice %92 {offsets = [0, 96], sizes = [2, 32], strides = [1, 1]} : vector<2x128xf32> to vector<2x32xf32>
    %101 = math.tanh %99 : vector<2x32xf32>
    %102 = arith.mulf %100, %101 : vector<2x32xf32>
    %c8 = arith.constant 8 : index
    %c0_31 = arith.constant 0 : index
    %103 = vector.load %arg4[%c8, %c0_31] : memref<16x128xf32, #tpu.memory_space<vmem>>, vector<2x128xf32>
    %cst_32 = arith.constant dense<0.000000e+00> : vector<2x128xf32>
    %104 = tpu.matmul %102, %3, %cst_32 {dimension_numbers = #tpu.dot_dimension_numbers<[1], [0], [0], [1], [0, 0, 1, 1], [], []>} : vector<2x32xf32>, vector<32x128xf32>, vector<2x128xf32> -> vector<2x128xf32>
    %105 = arith.addf %103, %104 : vector<2x128xf32>
    %106 = arith.negf %105 : vector<2x128xf32>
    %107 = math.exp %106 : vector<2x128xf32>
    %cst_33 = arith.constant 1.000000e+00 : f32
    %108 = vector.broadcast %cst_33 : f32 to vector<2x128xf32>
    %109 = arith.addf %108, %107 : vector<2x128xf32>
    %110 = arith.divf %108, %109 : vector<2x128xf32>
    %111 = math.tanh %105 : vector<2x128xf32>
    %112 = vector.extract_strided_slice %110 {offsets = [0, 32], sizes = [2, 32], strides = [1, 1]} : vector<2x128xf32> to vector<2x32xf32>
    %113 = arith.mulf %112, %99 : vector<2x32xf32>
    %114 = vector.extract_strided_slice %110 {offsets = [0, 0], sizes = [2, 32], strides = [1, 1]} : vector<2x128xf32> to vector<2x32xf32>
    %115 = vector.extract_strided_slice %111 {offsets = [0, 64], sizes = [2, 32], strides = [1, 1]} : vector<2x128xf32> to vector<2x32xf32>
    %116 = arith.mulf %114, %115 : vector<2x32xf32>
    %117 = arith.addf %113, %116 : vector<2x32xf32>
    %118 = vector.extract_strided_slice %110 {offsets = [0, 96], sizes = [2, 32], strides = [1, 1]} : vector<2x128xf32> to vector<2x32xf32>
    %119 = math.tanh %117 : vector<2x32xf32>
    %120 = arith.mulf %118, %119 : vector<2x32xf32>
    %c10 = arith.constant 10 : index
    %c0_34 = arith.constant 0 : index
    %121 = vector.load %arg4[%c10, %c0_34] : memref<16x128xf32, #tpu.memory_space<vmem>>, vector<2x128xf32>
    %cst_35 = arith.constant dense<0.000000e+00> : vector<2x128xf32>
    %122 = tpu.matmul %120, %3, %cst_35 {dimension_numbers = #tpu.dot_dimension_numbers<[1], [0], [0], [1], [0, 0, 1, 1], [], []>} : vector<2x32xf32>, vector<32x128xf32>, vector<2x128xf32> -> vector<2x128xf32>
    %123 = arith.addf %121, %122 : vector<2x128xf32>
    %124 = arith.negf %123 : vector<2x128xf32>
    %125 = math.exp %124 : vector<2x128xf32>
    %cst_36 = arith.constant 1.000000e+00 : f32
    %126 = vector.broadcast %cst_36 : f32 to vector<2x128xf32>
    %127 = arith.addf %126, %125 : vector<2x128xf32>
    %128 = arith.divf %126, %127 : vector<2x128xf32>
    %129 = math.tanh %123 : vector<2x128xf32>
    %130 = vector.extract_strided_slice %128 {offsets = [0, 32], sizes = [2, 32], strides = [1, 1]} : vector<2x128xf32> to vector<2x32xf32>
    %131 = arith.mulf %130, %117 : vector<2x32xf32>
    %132 = vector.extract_strided_slice %128 {offsets = [0, 0], sizes = [2, 32], strides = [1, 1]} : vector<2x128xf32> to vector<2x32xf32>
    %133 = vector.extract_strided_slice %129 {offsets = [0, 64], sizes = [2, 32], strides = [1, 1]} : vector<2x128xf32> to vector<2x32xf32>
    %134 = arith.mulf %132, %133 : vector<2x32xf32>
    %135 = arith.addf %131, %134 : vector<2x32xf32>
    %136 = vector.extract_strided_slice %128 {offsets = [0, 96], sizes = [2, 32], strides = [1, 1]} : vector<2x128xf32> to vector<2x32xf32>
    %137 = math.tanh %135 : vector<2x32xf32>
    %138 = arith.mulf %136, %137 : vector<2x32xf32>
    %c12 = arith.constant 12 : index
    %c0_37 = arith.constant 0 : index
    %139 = vector.load %arg4[%c12, %c0_37] : memref<16x128xf32, #tpu.memory_space<vmem>>, vector<2x128xf32>
    %cst_38 = arith.constant dense<0.000000e+00> : vector<2x128xf32>
    %140 = tpu.matmul %138, %3, %cst_38 {dimension_numbers = #tpu.dot_dimension_numbers<[1], [0], [0], [1], [0, 0, 1, 1], [], []>} : vector<2x32xf32>, vector<32x128xf32>, vector<2x128xf32> -> vector<2x128xf32>
    %141 = arith.addf %139, %140 : vector<2x128xf32>
    %142 = arith.negf %141 : vector<2x128xf32>
    %143 = math.exp %142 : vector<2x128xf32>
    %cst_39 = arith.constant 1.000000e+00 : f32
    %144 = vector.broadcast %cst_39 : f32 to vector<2x128xf32>
    %145 = arith.addf %144, %143 : vector<2x128xf32>
    %146 = arith.divf %144, %145 : vector<2x128xf32>
    %147 = math.tanh %141 : vector<2x128xf32>
    %148 = vector.extract_strided_slice %146 {offsets = [0, 32], sizes = [2, 32], strides = [1, 1]} : vector<2x128xf32> to vector<2x32xf32>
    %149 = arith.mulf %148, %135 : vector<2x32xf32>
    %150 = vector.extract_strided_slice %146 {offsets = [0, 0], sizes = [2, 32], strides = [1, 1]} : vector<2x128xf32> to vector<2x32xf32>
    %151 = vector.extract_strided_slice %147 {offsets = [0, 64], sizes = [2, 32], strides = [1, 1]} : vector<2x128xf32> to vector<2x32xf32>
    %152 = arith.mulf %150, %151 : vector<2x32xf32>
    %153 = arith.addf %149, %152 : vector<2x32xf32>
    %154 = vector.extract_strided_slice %146 {offsets = [0, 96], sizes = [2, 32], strides = [1, 1]} : vector<2x128xf32> to vector<2x32xf32>
    %155 = math.tanh %153 : vector<2x32xf32>
    %156 = arith.mulf %154, %155 : vector<2x32xf32>
    %c14 = arith.constant 14 : index
    %c0_40 = arith.constant 0 : index
    %157 = vector.load %arg4[%c14, %c0_40] : memref<16x128xf32, #tpu.memory_space<vmem>>, vector<2x128xf32>
    %cst_41 = arith.constant dense<0.000000e+00> : vector<2x128xf32>
    %158 = tpu.matmul %156, %3, %cst_41 {dimension_numbers = #tpu.dot_dimension_numbers<[1], [0], [0], [1], [0, 0, 1, 1], [], []>} : vector<2x32xf32>, vector<32x128xf32>, vector<2x128xf32> -> vector<2x128xf32>
    %159 = arith.addf %157, %158 : vector<2x128xf32>
    %160 = arith.negf %159 : vector<2x128xf32>
    %161 = math.exp %160 : vector<2x128xf32>
    %cst_42 = arith.constant 1.000000e+00 : f32
    %162 = vector.broadcast %cst_42 : f32 to vector<2x128xf32>
    %163 = arith.addf %162, %161 : vector<2x128xf32>
    %164 = arith.divf %162, %163 : vector<2x128xf32>
    %165 = math.tanh %159 : vector<2x128xf32>
    %166 = vector.extract_strided_slice %164 {offsets = [0, 32], sizes = [2, 32], strides = [1, 1]} : vector<2x128xf32> to vector<2x32xf32>
    %167 = arith.mulf %166, %153 : vector<2x32xf32>
    %168 = vector.extract_strided_slice %164 {offsets = [0, 0], sizes = [2, 32], strides = [1, 1]} : vector<2x128xf32> to vector<2x32xf32>
    %169 = vector.extract_strided_slice %165 {offsets = [0, 64], sizes = [2, 32], strides = [1, 1]} : vector<2x128xf32> to vector<2x32xf32>
    %170 = arith.mulf %168, %169 : vector<2x32xf32>
    %171 = arith.addf %167, %170 : vector<2x32xf32>
    %172 = vector.extract_strided_slice %164 {offsets = [0, 96], sizes = [2, 32], strides = [1, 1]} : vector<2x128xf32> to vector<2x32xf32>
    %173 = math.tanh %171 : vector<2x32xf32>
    %174 = arith.mulf %172, %173 : vector<2x32xf32>
    %175 = tpu.concatenate %48, %66, %84, %102, %120, %138, %156, %174 in 0 : vector<2x32xf32>, vector<2x32xf32>, vector<2x32xf32>, vector<2x32xf32>, vector<2x32xf32>, vector<2x32xf32>, vector<2x32xf32>, vector<2x32xf32> -> vector<16x32xf32>
    %176 = tpu.concatenate %174, %156, %138, %120, %102, %84, %66, %48 in 0 : vector<2x32xf32>, vector<2x32xf32>, vector<2x32xf32>, vector<2x32xf32>, vector<2x32xf32>, vector<2x32xf32>, vector<2x32xf32>, vector<2x32xf32> -> vector<16x32xf32>
    %cst_43 = arith.constant dense<0.000000e+00> : vector<16x12xf32>
    %177 = tpu.matmul %175, %7, %cst_43 {dimension_numbers = #tpu.dot_dimension_numbers<[1], [0], [0], [1], [0, 0, 1, 1], [], []>} : vector<16x32xf32>, vector<32x12xf32>, vector<16x12xf32> -> vector<16x12xf32>
    %cst_44 = arith.constant dense<0.000000e+00> : vector<16x12xf32>
    %178 = tpu.matmul %176, %8, %cst_44 {dimension_numbers = #tpu.dot_dimension_numbers<[1], [0], [0], [1], [0, 0, 1, 1], [], []>} : vector<16x32xf32>, vector<32x12xf32>, vector<16x12xf32> -> vector<16x12xf32>
    %179 = arith.addf %177, %178 : vector<16x12xf32>
    %180 = vector.broadcast %9 : vector<1x12xf32> to vector<16x12xf32>
    %181 = arith.addf %179, %180 : vector<16x12xf32>
    %182 = tpu.iota {dimensions = array<i32: 1>} : vector<2x12xi32>
    %183 = tpu.iota {dimensions = array<i32: 2>} : vector<2x12x12xi32>
    %c10_i32 = arith.constant 10 : i32
    %184 = vector.broadcast %c10_i32 : i32 to vector<2x12xi32>
    %185 = arith.cmpi eq, %182, %184 : vector<2x12xi32>
    %cst_45 = arith.constant 0.000000e+00 : f32
    %cst_46 = arith.constant -1.000000e+04 : f32
    %186 = vector.broadcast %cst_45 : f32 to vector<2x12xf32>
    %187 = vector.broadcast %cst_46 : f32 to vector<2x12xf32>
    %188 = arith.select %185, %186, %187 : vector<2x12xi1>, vector<2x12xf32>
    %189 = vector.shape_cast %188 : vector<2x12xf32> to vector<2x1x12xf32>
    %190 = vector.shape_cast %10 : vector<12x12xf32> to vector<1x12x12xf32>
    %191 = vector.broadcast %189 : vector<2x1x12xf32> to vector<2x12x12xf32>
    %192 = vector.broadcast %190 : vector<1x12x12xf32> to vector<2x12x12xf32>
    %193 = arith.addf %191, %192 : vector<2x12x12xf32>
    %cst_47 = arith.constant dense<0xFF800000> : vector<2x12xf32>
    %194 = vector.multi_reduction <maximumf>, %193, %cst_47 [2] : vector<2x12x12xf32> to vector<2x12xf32>
    %195 = vector.extract_strided_slice %181 {offsets = [0, 0], sizes = [2, 12], strides = [1, 1]} : vector<16x12xf32> to vector<2x12xf32>
    %196 = arith.addf %194, %195 : vector<2x12xf32>
    %197 = vector.shape_cast %196 : vector<2x12xf32> to vector<2x1x12xf32>
    %198 = vector.shape_cast %10 : vector<12x12xf32> to vector<1x12x12xf32>
    %199 = vector.broadcast %197 : vector<2x1x12xf32> to vector<2x12x12xf32>
    %200 = vector.broadcast %198 : vector<1x12x12xf32> to vector<2x12x12xf32>
    %201 = arith.addf %199, %200 : vector<2x12x12xf32>
    %cst_48 = arith.constant dense<0xFF800000> : vector<2x12xf32>
    %202 = vector.multi_reduction <maximumf>, %201, %cst_48 [2] : vector<2x12x12xf32> to vector<2x12xf32>
    %203 = vector.shape_cast %202 : vector<2x12xf32> to vector<2x12x1xf32>
    %204 = vector.broadcast %203 : vector<2x12x1xf32> to vector<2x12x12xf32>
    %205 = arith.cmpf oeq, %201, %204 : vector<2x12x12xf32>
    %c12_i32 = arith.constant 12 : i32
    %206 = vector.broadcast %c12_i32 : i32 to vector<2x12x12xi32>
    %207 = arith.select %205, %183, %206 : vector<2x12x12xi1>, vector<2x12x12xi32>
    %cst_49 = arith.constant dense<2147483647> : vector<2x12xi32>
    %208 = vector.multi_reduction <minsi>, %207, %cst_49 [2] : vector<2x12x12xi32> to vector<2x12xi32>
    %209 = vector.extract_strided_slice %181 {offsets = [2, 0], sizes = [2, 12], strides = [1, 1]} : vector<16x12xf32> to vector<2x12xf32>
    %210 = arith.addf %202, %209 : vector<2x12xf32>
    %211 = vector.shape_cast %210 : vector<2x12xf32> to vector<2x1x12xf32>
    %212 = vector.shape_cast %10 : vector<12x12xf32> to vector<1x12x12xf32>
    %213 = vector.broadcast %211 : vector<2x1x12xf32> to vector<2x12x12xf32>
    %214 = vector.broadcast %212 : vector<1x12x12xf32> to vector<2x12x12xf32>
    %215 = arith.addf %213, %214 : vector<2x12x12xf32>
    %cst_50 = arith.constant dense<0xFF800000> : vector<2x12xf32>
    %216 = vector.multi_reduction <maximumf>, %215, %cst_50 [2] : vector<2x12x12xf32> to vector<2x12xf32>
    %217 = vector.shape_cast %216 : vector<2x12xf32> to vector<2x12x1xf32>
    %218 = vector.broadcast %217 : vector<2x12x1xf32> to vector<2x12x12xf32>
    %219 = arith.cmpf oeq, %215, %218 : vector<2x12x12xf32>
    %c12_i32_51 = arith.constant 12 : i32
    %220 = vector.broadcast %c12_i32_51 : i32 to vector<2x12x12xi32>
    %221 = arith.select %219, %183, %220 : vector<2x12x12xi1>, vector<2x12x12xi32>
    %cst_52 = arith.constant dense<2147483647> : vector<2x12xi32>
    %222 = vector.multi_reduction <minsi>, %221, %cst_52 [2] : vector<2x12x12xi32> to vector<2x12xi32>
    %223 = vector.extract_strided_slice %181 {offsets = [4, 0], sizes = [2, 12], strides = [1, 1]} : vector<16x12xf32> to vector<2x12xf32>
    %224 = arith.addf %216, %223 : vector<2x12xf32>
    %225 = vector.shape_cast %224 : vector<2x12xf32> to vector<2x1x12xf32>
    %226 = vector.shape_cast %10 : vector<12x12xf32> to vector<1x12x12xf32>
    %227 = vector.broadcast %225 : vector<2x1x12xf32> to vector<2x12x12xf32>
    %228 = vector.broadcast %226 : vector<1x12x12xf32> to vector<2x12x12xf32>
    %229 = arith.addf %227, %228 : vector<2x12x12xf32>
    %cst_53 = arith.constant dense<0xFF800000> : vector<2x12xf32>
    %230 = vector.multi_reduction <maximumf>, %229, %cst_53 [2] : vector<2x12x12xf32> to vector<2x12xf32>
    %231 = vector.shape_cast %230 : vector<2x12xf32> to vector<2x12x1xf32>
    %232 = vector.broadcast %231 : vector<2x12x1xf32> to vector<2x12x12xf32>
    %233 = arith.cmpf oeq, %229, %232 : vector<2x12x12xf32>
    %c12_i32_54 = arith.constant 12 : i32
    %234 = vector.broadcast %c12_i32_54 : i32 to vector<2x12x12xi32>
    %235 = arith.select %233, %183, %234 : vector<2x12x12xi1>, vector<2x12x12xi32>
    %cst_55 = arith.constant dense<2147483647> : vector<2x12xi32>
    %236 = vector.multi_reduction <minsi>, %235, %cst_55 [2] : vector<2x12x12xi32> to vector<2x12xi32>
    %237 = vector.extract_strided_slice %181 {offsets = [6, 0], sizes = [2, 12], strides = [1, 1]} : vector<16x12xf32> to vector<2x12xf32>
    %238 = arith.addf %230, %237 : vector<2x12xf32>
    %239 = vector.shape_cast %238 : vector<2x12xf32> to vector<2x1x12xf32>
    %240 = vector.shape_cast %10 : vector<12x12xf32> to vector<1x12x12xf32>
    %241 = vector.broadcast %239 : vector<2x1x12xf32> to vector<2x12x12xf32>
    %242 = vector.broadcast %240 : vector<1x12x12xf32> to vector<2x12x12xf32>
    %243 = arith.addf %241, %242 : vector<2x12x12xf32>
    %cst_56 = arith.constant dense<0xFF800000> : vector<2x12xf32>
    %244 = vector.multi_reduction <maximumf>, %243, %cst_56 [2] : vector<2x12x12xf32> to vector<2x12xf32>
    %245 = vector.shape_cast %244 : vector<2x12xf32> to vector<2x12x1xf32>
    %246 = vector.broadcast %245 : vector<2x12x1xf32> to vector<2x12x12xf32>
    %247 = arith.cmpf oeq, %243, %246 : vector<2x12x12xf32>
    %c12_i32_57 = arith.constant 12 : i32
    %248 = vector.broadcast %c12_i32_57 : i32 to vector<2x12x12xi32>
    %249 = arith.select %247, %183, %248 : vector<2x12x12xi1>, vector<2x12x12xi32>
    %cst_58 = arith.constant dense<2147483647> : vector<2x12xi32>
    %250 = vector.multi_reduction <minsi>, %249, %cst_58 [2] : vector<2x12x12xi32> to vector<2x12xi32>
    %251 = vector.extract_strided_slice %181 {offsets = [8, 0], sizes = [2, 12], strides = [1, 1]} : vector<16x12xf32> to vector<2x12xf32>
    %252 = arith.addf %244, %251 : vector<2x12xf32>
    %253 = vector.shape_cast %252 : vector<2x12xf32> to vector<2x1x12xf32>
    %254 = vector.shape_cast %10 : vector<12x12xf32> to vector<1x12x12xf32>
    %255 = vector.broadcast %253 : vector<2x1x12xf32> to vector<2x12x12xf32>
    %256 = vector.broadcast %254 : vector<1x12x12xf32> to vector<2x12x12xf32>
    %257 = arith.addf %255, %256 : vector<2x12x12xf32>
    %cst_59 = arith.constant dense<0xFF800000> : vector<2x12xf32>
    %258 = vector.multi_reduction <maximumf>, %257, %cst_59 [2] : vector<2x12x12xf32> to vector<2x12xf32>
    %259 = vector.shape_cast %258 : vector<2x12xf32> to vector<2x12x1xf32>
    %260 = vector.broadcast %259 : vector<2x12x1xf32> to vector<2x12x12xf32>
    %261 = arith.cmpf oeq, %257, %260 : vector<2x12x12xf32>
    %c12_i32_60 = arith.constant 12 : i32
    %262 = vector.broadcast %c12_i32_60 : i32 to vector<2x12x12xi32>
    %263 = arith.select %261, %183, %262 : vector<2x12x12xi1>, vector<2x12x12xi32>
    %cst_61 = arith.constant dense<2147483647> : vector<2x12xi32>
    %264 = vector.multi_reduction <minsi>, %263, %cst_61 [2] : vector<2x12x12xi32> to vector<2x12xi32>
    %265 = vector.extract_strided_slice %181 {offsets = [10, 0], sizes = [2, 12], strides = [1, 1]} : vector<16x12xf32> to vector<2x12xf32>
    %266 = arith.addf %258, %265 : vector<2x12xf32>
    %267 = vector.shape_cast %266 : vector<2x12xf32> to vector<2x1x12xf32>
    %268 = vector.shape_cast %10 : vector<12x12xf32> to vector<1x12x12xf32>
    %269 = vector.broadcast %267 : vector<2x1x12xf32> to vector<2x12x12xf32>
    %270 = vector.broadcast %268 : vector<1x12x12xf32> to vector<2x12x12xf32>
    %271 = arith.addf %269, %270 : vector<2x12x12xf32>
    %cst_62 = arith.constant dense<0xFF800000> : vector<2x12xf32>
    %272 = vector.multi_reduction <maximumf>, %271, %cst_62 [2] : vector<2x12x12xf32> to vector<2x12xf32>
    %273 = vector.shape_cast %272 : vector<2x12xf32> to vector<2x12x1xf32>
    %274 = vector.broadcast %273 : vector<2x12x1xf32> to vector<2x12x12xf32>
    %275 = arith.cmpf oeq, %271, %274 : vector<2x12x12xf32>
    %c12_i32_63 = arith.constant 12 : i32
    %276 = vector.broadcast %c12_i32_63 : i32 to vector<2x12x12xi32>
    %277 = arith.select %275, %183, %276 : vector<2x12x12xi1>, vector<2x12x12xi32>
    %cst_64 = arith.constant dense<2147483647> : vector<2x12xi32>
    %278 = vector.multi_reduction <minsi>, %277, %cst_64 [2] : vector<2x12x12xi32> to vector<2x12xi32>
    %279 = vector.extract_strided_slice %181 {offsets = [12, 0], sizes = [2, 12], strides = [1, 1]} : vector<16x12xf32> to vector<2x12xf32>
    %280 = arith.addf %272, %279 : vector<2x12xf32>
    %281 = vector.shape_cast %280 : vector<2x12xf32> to vector<2x1x12xf32>
    %282 = vector.shape_cast %10 : vector<12x12xf32> to vector<1x12x12xf32>
    %283 = vector.broadcast %281 : vector<2x1x12xf32> to vector<2x12x12xf32>
    %284 = vector.broadcast %282 : vector<1x12x12xf32> to vector<2x12x12xf32>
    %285 = arith.addf %283, %284 : vector<2x12x12xf32>
    %cst_65 = arith.constant dense<0xFF800000> : vector<2x12xf32>
    %286 = vector.multi_reduction <maximumf>, %285, %cst_65 [2] : vector<2x12x12xf32> to vector<2x12xf32>
    %287 = vector.shape_cast %286 : vector<2x12xf32> to vector<2x12x1xf32>
    %288 = vector.broadcast %287 : vector<2x12x1xf32> to vector<2x12x12xf32>
    %289 = arith.cmpf oeq, %285, %288 : vector<2x12x12xf32>
    %c12_i32_66 = arith.constant 12 : i32
    %290 = vector.broadcast %c12_i32_66 : i32 to vector<2x12x12xi32>
    %291 = arith.select %289, %183, %290 : vector<2x12x12xi1>, vector<2x12x12xi32>
    %cst_67 = arith.constant dense<2147483647> : vector<2x12xi32>
    %292 = vector.multi_reduction <minsi>, %291, %cst_67 [2] : vector<2x12x12xi32> to vector<2x12xi32>
    %293 = vector.extract_strided_slice %181 {offsets = [14, 0], sizes = [2, 12], strides = [1, 1]} : vector<16x12xf32> to vector<2x12xf32>
    %294 = arith.addf %286, %293 : vector<2x12xf32>
    %295 = vector.extract_strided_slice %10 {offsets = [11, 0], sizes = [1, 12], strides = [1, 1]} : vector<12x12xf32> to vector<1x12xf32>
    %296 = vector.broadcast %295 : vector<1x12xf32> to vector<2x12xf32>
    %297 = arith.addf %294, %296 : vector<2x12xf32>
    %cst_68 = arith.constant dense<0xFF800000> : vector<2xf32>
    %298 = vector.multi_reduction <maximumf>, %297, %cst_68 [1] : vector<2x12xf32> to vector<2xf32>
    %299 = vector.shape_cast %298 : vector<2xf32> to vector<2x1xf32>
    %300 = vector.broadcast %299 : vector<2x1xf32> to vector<2x12xf32>
    %301 = arith.cmpf oeq, %297, %300 : vector<2x12xf32>
    %c12_i32_69 = arith.constant 12 : i32
    %302 = vector.broadcast %c12_i32_69 : i32 to vector<2x12xi32>
    %303 = arith.select %301, %182, %302 : vector<2x12xi1>, vector<2x12xi32>
    %cst_70 = arith.constant dense<2147483647> : vector<2xi32>
    %304 = vector.multi_reduction <minsi>, %303, %cst_70 [1] : vector<2x12xi32> to vector<2xi32>
    %305 = vector.shape_cast %304 : vector<2xi32> to vector<2x1xi32>
    %306 = tpu.iota {dimensions = array<i32: 1>} : vector<2x8xi32>
    %c7_i32 = arith.constant 7 : i32
    %307 = vector.broadcast %c7_i32 : i32 to vector<2x8xi32>
    %308 = arith.cmpi eq, %306, %307 : vector<2x8xi32>
    %c-1_i32 = arith.constant -1 : i32
    %309 = vector.broadcast %c-1_i32 : i32 to vector<2x8xi32>
    %310 = vector.shape_cast %305 : vector<2x1xi32> to vector<2x1xi32>
    %311 = vector.broadcast %310 : vector<2x1xi32> to vector<2x8xi32>
    %312 = arith.select %308, %311, %309 : vector<2x8xi1>, vector<2x8xi32>
    %313 = vector.broadcast %305 : vector<2x1xi32> to vector<2x12xi32>
    %314 = arith.cmpi eq, %182, %313 : vector<2x12xi32>
    %c0_i32 = arith.constant 0 : i32
    %315 = vector.broadcast %c0_i32 : i32 to vector<2x12xi32>
    %316 = arith.select %314, %292, %315 : vector<2x12xi1>, vector<2x12xi32>
    %cst_71 = arith.constant dense<0> : vector<2xi32>
    %317 = vector.multi_reduction <add>, %316, %cst_71 [1] : vector<2x12xi32> to vector<2xi32>
    %318 = vector.shape_cast %317 : vector<2xi32> to vector<2x1xi32>
    %c6_i32 = arith.constant 6 : i32
    %319 = vector.broadcast %c6_i32 : i32 to vector<2x8xi32>
    %320 = arith.cmpi eq, %306, %319 : vector<2x8xi32>
    %321 = vector.shape_cast %318 : vector<2x1xi32> to vector<2x1xi32>
    %322 = vector.broadcast %321 : vector<2x1xi32> to vector<2x8xi32>
    %323 = arith.select %320, %322, %312 : vector<2x8xi1>, vector<2x8xi32>
    %324 = vector.broadcast %318 : vector<2x1xi32> to vector<2x12xi32>
    %325 = arith.cmpi eq, %182, %324 : vector<2x12xi32>
    %c0_i32_72 = arith.constant 0 : i32
    %326 = vector.broadcast %c0_i32_72 : i32 to vector<2x12xi32>
    %327 = arith.select %325, %278, %326 : vector<2x12xi1>, vector<2x12xi32>
    %cst_73 = arith.constant dense<0> : vector<2xi32>
    %328 = vector.multi_reduction <add>, %327, %cst_73 [1] : vector<2x12xi32> to vector<2xi32>
    %329 = vector.shape_cast %328 : vector<2xi32> to vector<2x1xi32>
    %c5_i32 = arith.constant 5 : i32
    %330 = vector.broadcast %c5_i32 : i32 to vector<2x8xi32>
    %331 = arith.cmpi eq, %306, %330 : vector<2x8xi32>
    %332 = vector.shape_cast %329 : vector<2x1xi32> to vector<2x1xi32>
    %333 = vector.broadcast %332 : vector<2x1xi32> to vector<2x8xi32>
    %334 = arith.select %331, %333, %323 : vector<2x8xi1>, vector<2x8xi32>
    %335 = vector.broadcast %329 : vector<2x1xi32> to vector<2x12xi32>
    %336 = arith.cmpi eq, %182, %335 : vector<2x12xi32>
    %c0_i32_74 = arith.constant 0 : i32
    %337 = vector.broadcast %c0_i32_74 : i32 to vector<2x12xi32>
    %338 = arith.select %336, %264, %337 : vector<2x12xi1>, vector<2x12xi32>
    %cst_75 = arith.constant dense<0> : vector<2xi32>
    %339 = vector.multi_reduction <add>, %338, %cst_75 [1] : vector<2x12xi32> to vector<2xi32>
    %340 = vector.shape_cast %339 : vector<2xi32> to vector<2x1xi32>
    %c4_i32 = arith.constant 4 : i32
    %341 = vector.broadcast %c4_i32 : i32 to vector<2x8xi32>
    %342 = arith.cmpi eq, %306, %341 : vector<2x8xi32>
    %343 = vector.shape_cast %340 : vector<2x1xi32> to vector<2x1xi32>
    %344 = vector.broadcast %343 : vector<2x1xi32> to vector<2x8xi32>
    %345 = arith.select %342, %344, %334 : vector<2x8xi1>, vector<2x8xi32>
    %346 = vector.broadcast %340 : vector<2x1xi32> to vector<2x12xi32>
    %347 = arith.cmpi eq, %182, %346 : vector<2x12xi32>
    %c0_i32_76 = arith.constant 0 : i32
    %348 = vector.broadcast %c0_i32_76 : i32 to vector<2x12xi32>
    %349 = arith.select %347, %250, %348 : vector<2x12xi1>, vector<2x12xi32>
    %cst_77 = arith.constant dense<0> : vector<2xi32>
    %350 = vector.multi_reduction <add>, %349, %cst_77 [1] : vector<2x12xi32> to vector<2xi32>
    %351 = vector.shape_cast %350 : vector<2xi32> to vector<2x1xi32>
    %c3_i32 = arith.constant 3 : i32
    %352 = vector.broadcast %c3_i32 : i32 to vector<2x8xi32>
    %353 = arith.cmpi eq, %306, %352 : vector<2x8xi32>
    %354 = vector.shape_cast %351 : vector<2x1xi32> to vector<2x1xi32>
    %355 = vector.broadcast %354 : vector<2x1xi32> to vector<2x8xi32>
    %356 = arith.select %353, %355, %345 : vector<2x8xi1>, vector<2x8xi32>
    %357 = vector.broadcast %351 : vector<2x1xi32> to vector<2x12xi32>
    %358 = arith.cmpi eq, %182, %357 : vector<2x12xi32>
    %c0_i32_78 = arith.constant 0 : i32
    %359 = vector.broadcast %c0_i32_78 : i32 to vector<2x12xi32>
    %360 = arith.select %358, %236, %359 : vector<2x12xi1>, vector<2x12xi32>
    %cst_79 = arith.constant dense<0> : vector<2xi32>
    %361 = vector.multi_reduction <add>, %360, %cst_79 [1] : vector<2x12xi32> to vector<2xi32>
    %362 = vector.shape_cast %361 : vector<2xi32> to vector<2x1xi32>
    %c2_i32 = arith.constant 2 : i32
    %363 = vector.broadcast %c2_i32 : i32 to vector<2x8xi32>
    %364 = arith.cmpi eq, %306, %363 : vector<2x8xi32>
    %365 = vector.shape_cast %362 : vector<2x1xi32> to vector<2x1xi32>
    %366 = vector.broadcast %365 : vector<2x1xi32> to vector<2x8xi32>
    %367 = arith.select %364, %366, %356 : vector<2x8xi1>, vector<2x8xi32>
    %368 = vector.broadcast %362 : vector<2x1xi32> to vector<2x12xi32>
    %369 = arith.cmpi eq, %182, %368 : vector<2x12xi32>
    %c0_i32_80 = arith.constant 0 : i32
    %370 = vector.broadcast %c0_i32_80 : i32 to vector<2x12xi32>
    %371 = arith.select %369, %222, %370 : vector<2x12xi1>, vector<2x12xi32>
    %cst_81 = arith.constant dense<0> : vector<2xi32>
    %372 = vector.multi_reduction <add>, %371, %cst_81 [1] : vector<2x12xi32> to vector<2xi32>
    %373 = vector.shape_cast %372 : vector<2xi32> to vector<2x1xi32>
    %c1_i32 = arith.constant 1 : i32
    %374 = vector.broadcast %c1_i32 : i32 to vector<2x8xi32>
    %375 = arith.cmpi eq, %306, %374 : vector<2x8xi32>
    %376 = vector.shape_cast %373 : vector<2x1xi32> to vector<2x1xi32>
    %377 = vector.broadcast %376 : vector<2x1xi32> to vector<2x8xi32>
    %378 = arith.select %375, %377, %367 : vector<2x8xi1>, vector<2x8xi32>
    %379 = vector.broadcast %373 : vector<2x1xi32> to vector<2x12xi32>
    %380 = arith.cmpi eq, %182, %379 : vector<2x12xi32>
    %c0_i32_82 = arith.constant 0 : i32
    %381 = vector.broadcast %c0_i32_82 : i32 to vector<2x12xi32>
    %382 = arith.select %380, %208, %381 : vector<2x12xi1>, vector<2x12xi32>
    %cst_83 = arith.constant dense<0> : vector<2xi32>
    %383 = vector.multi_reduction <add>, %382, %cst_83 [1] : vector<2x12xi32> to vector<2xi32>
    %384 = vector.shape_cast %383 : vector<2xi32> to vector<2x1xi32>
    %c0_i32_84 = arith.constant 0 : i32
    %385 = vector.broadcast %c0_i32_84 : i32 to vector<2x8xi32>
    %386 = arith.cmpi eq, %306, %385 : vector<2x8xi32>
    %387 = vector.shape_cast %384 : vector<2x1xi32> to vector<2x1xi32>
    %388 = vector.broadcast %387 : vector<2x1xi32> to vector<2x8xi32>
    %389 = arith.select %386, %388, %378 : vector<2x8xi1>, vector<2x8xi32>
    %c0_85 = arith.constant 0 : index
    %c0_86 = arith.constant 0 : index
    %390 = vector.load %arg2[%c0_85, %c0_86] : memref<2x1xf32, #tpu.memory_space<vmem>>, vector<2x1xf32>
    tpu.vector_store %arg2[%c0_85, %c0_86], %299 {strides = array<i32>} : memref<2x1xf32, #tpu.memory_space<vmem>>, vector<2x1xf32>,
    %c0_87 = arith.constant 0 : index
    %c0_88 = arith.constant 0 : index
    %391 = vector.load %arg3[%c0_87, %c0_88] : memref<2x8xi32, #tpu.memory_space<vmem>>, vector<2x8xi32>
    tpu.vector_store %arg3[%c0_87, %c0_88], %389 {strides = array<i32>} : memref<2x8xi32, #tpu.memory_space<vmem>>, vector<2x8xi32>,
    return
  }
}

</mosaic_0001>

<bundles_post_ra>
// kernel: bilstm_crf_forward.1
= control target key start
LH: loop header
LB: loop body
LE: loop exit
PB: predicated region body
PF: predicated region fallthrough
CT: control target
= control target key end

     0   :  { %9 = vsyncpa [#allocation4], 0  ;;  %s17930_s0 = inlined_call_operand.vmem [shape: s32[16,2], index: 0, kind: input, shape index: {}]   ;;  %s17931_s1 = inlined_call_operand.hbm [shape: f32[200,128], index: 1, kind: input, shape index: {}]   ;;  %s17932_s2 = inlined_call_operand.vmem [shape: f32[2,1], index: 2, kind: output, shape index: {0}]   ;;  %s17933_s3 = inlined_call_operand.hbm [shape: s32[2,8], index: 3, kind: output, shape index: {1}]  }
   0x1   :  { %10 = vsyncpa [#allocation5], 0  ;;  %s10780_s12 = smov [#allocation3]  }
   0x2   :  { %s18_s13 = sshll.u32 %s10780_s12, 4  ;;  %s19_s13 = int_to_ptr.vmem [resolvable:$true] %s18_s13 }
   0x3   :  { %s10744_s14 = scalar_lea.vmem %s19_s13, 3200  ;;  %p10749_p1 = scmp.lt.s32.totalorder %s19_s13, %s19_s13 }
   0x4   :  { %p10745_p0 = scmp.ne.s32.totalorder %s19_s13, %s10744_s14  ;;  %p10750_p2 = scmp.lt.s32.totalorder %s10744_s14, %s10744_s14 }
   0x6   :  { %p10751_p3 = por %p10750_p2, %p10749_p1 }
   0x8   :  { %p10752_p4 = pnand %p10751_p3, %p10745_p0 }
   0xa   :  { %10755 = shalt.err (!%p10752_p4)
}
   0xb   :  { %s10781_s15 = smov 128   ;;  %s10782_s16 = smov 8  }
   0xc   :  { %24 = dma.hbm_to_vmem [thread:$0]  %s17931_s1, 3200, %s19_s13, [#allocation4], %s10781_s15, %s10781_s15, %s10782_s16  }
   0xd   :  { %10776 = dma.done.wait [#allocation4], 3200  }
   0xe   :  { %10777 = vsyncadd [#allocation4], 4294964096  ;;  %v10783_v0 = vmov 0   ;;  %vm92_vm0 = vcmask 1041408   ;;  %v57_v1 = vld [vmem:[%s17930_s0] sm:$0xff]  ;;  %v58_v2 = vld [vmem:[%s17930_s0 + $0x8] sm:$0xff]  ;;  %v59_v11 = vlaneseq }
   0xf   :  { %10666 = vset.pattern.permute.xlu0 %v10783_v0  ;;  %10668 = vset.pattern.permute.xlu1 %v10783_v0  ;;  %v34_v3 = vld [vmem:[#allocation3 + $0x30] sm:$0x3]  ;;  %v33_v4 = vld [vmem:[#allocation3 + $0x28] sm:$0xff]  ;;  %v10784_v5 = vmov 1   ;;  %v32_v6 = vld [vmem:[#allocation3 + $0x20] sm:$0xff]  ;;  %vm85_vm1 = vcmask 408576  }
  0x10   :  { %62 = vperm.xlu0 %10666, %v57_v1   ;;  %65 = vperm.xlu1 %10668, %v58_v2   ;;  %v31_v7 = vld [vmem:[#allocation3 + $0x18] sm:$0xff]  ;;  %v30_v8 = vld [vmem:[#allocation3 + $0x10] sm:$0xff]  ;;  %v29_v9 = vld [vmem:[#allocation3 + $0x8] sm:$0xff]  ;;  %v10826_v12 = vand.u32 127, %v59_v11  ;;  %v10785_v15 = vmov 0.0   ;;  %s10786_s0 = smov 32  }
  0x11   :  { %10496 = vmatprep.subr.msk.mxu0 %vm92_vm0, %v34_v3  ;;  %10513 = vmatprep.subr.msk.mxu1 %vm92_vm0, %v34_v3  ;;  %v28_v10 = vld [vmem:[#allocation3] sm:$0xff]  ;;  %v35_v23 = vld [vmem:[#allocation3 + $0x32] sm:$0xff]  ;;  %v38_v24 = vld [vmem:[#allocation3 + $0x4a] sm:$0xff]  ;;  %vm252_vm6 = vcmask 130048   ;;  %vm10787_vm7 = vmmov 0   ;;  %vm424_vm8 = vcmask 261120  }
  0x12   :  { %10497 = vmatpush3.msk.msra.mxu0 %vm92_vm0, %v34_v3  ;;  %10514 = vmatpush3.msk.msra.mxu1 %vm92_vm0, %v34_v3  ;;  %18544 = vst [vmem:[#allocation9_spill] sm:$0xff] %v10826_v12  ;;  %v36_v22 = vld [vmem:[#allocation3 + $0x3a] sm:$0xff]  ;;  %v37_v25 = vld [vmem:[#allocation3 + $0x42] sm:$0xff]  ;;  %v45_v26 = vld [vmem:[#allocation3 + $0x75] sm:$0x3]  ;;  %s10788_s1 = smov 64  }
  0x13   :  { %10498 = vmatprep.subr.mxu0 %v33_v4  ;;  %10515 = vmatprep.subr.mxu1 %v33_v4  ;;  %v10841_v29 = vld [vmem:[#allocation3 + $0x6a] sm:$0xff]  ;;  %v10846_v31 = vld [vmem:[#allocation3 + $0x62] sm:$0xff]  ;;  %v10851_v33 = vld [vmem:[#allocation3 + $0x5a] sm:$0xff]  ;;  %vm1248_vm9 = vcmask 1043456   ;;  %vm1250_vm10 = vcmask 1045504   ;;  %vm1449_vm11 = vcmp.eq.s32.totalorder %v10826_v12, 10 }
  0x14   :  { %10667 = vset.pattern.permute.xlu0 %v10784_v5  ;;  %10669 = vset.pattern.permute.xlu1 %v10784_v5  ;;  %v10860_v34 = vld [vmem:[#allocation3 + $0x52] sm:$0xff]  ;;  %vm1488_vm12 = vcmask 97280   ;;  %vm1492_vm13 = vcmask 93184   ;;  %vm1940_vm14 = vcmask 130112   ;;  %vm2149_vm15 = vcmask 1041409  }
  0x15   :  { %74 = vperm.xlu0 %10667, %v57_v1   ;;  %77 = vperm.xlu1 %10669, %v58_v2   ;;  %v44_v35 = vld [vmem:[#allocation3 + $0x73] sm:$0x3]  ;;  %v10396_v37 = vld [vmem:[#allocation3 + $0x72] ss:$0 sm:$0xff] }
  0x16   :  { %10499 = vmatpush3.msra.mxu0 %v33_v4  ;;  %10516 = vmatpush3.msra.mxu1 %v33_v4 }
  0x17   :  { %10500 = vmatprep.subr.mxu0 %v32_v6  ;;  %10517 = vmatprep.subr.mxu1 %v32_v6 }
  0x18   :  { %10501 = vmatpush3.msra.mxu0 %v32_v6  ;;  %10518 = vmatpush3.msra.mxu1 %v32_v6 }
  0x19   :  { %10502 = vmatprep.subr.mxu0 %v31_v7  ;;  %10519 = vmatprep.subr.mxu1 %v31_v7 }
  0x1a   :  { %10503 = vmatpush3.msra.mxu0 %v31_v7  ;;  %10520 = vmatpush3.msra.mxu1 %v31_v7 }
  0x1b   :  { %10504 = vmatprep.subr.mxu0 %v30_v8  ;;  %10521 = vmatprep.subr.mxu1 %v30_v8 }
  0x1c   :  { %10505 = vmatpush3.msra.mxu0 %v30_v8  ;;  %10522 = vmatpush3.msra.mxu1 %v30_v8 }
  0x1d   :  { %10506 = vmatprep.subr.mxu0 %v29_v9  ;;  %10523 = vmatprep.subr.mxu1 %v29_v9 }
  0x1e   :  { %10507 = vmatpush3.msra.mxu0 %v29_v9  ;;  %10524 = vmatpush3.msra.mxu1 %v29_v9 }
  0x1f   :  { %10508 = vmatprep.subr.mxu0 %v28_v10  ;;  %10525 = vmatprep.subr.mxu1 %v28_v10 }
  0x20   :  { %10509 = vmatpush3.msra.mxu0 %v28_v10  ;;  %10526 = vmatpush3.msra.mxu1 %v28_v10 }
  0x21   :  { %10670 = vset.pattern.permute.xlu1 %v10783_v0  ;;  %10671 = vset.pattern.permute.xlu0 %v10783_v0 }
  0x22   :  { %10537 = vmatprep.subr.mxu1 %v36_v22  ;;  %10530 = vmatprep.subr.mxu0 %v38_v24 }
  0x23   :  { %507 = vrot.lane.b32.xlu0 %v45_v26, %s10786_s0 }
  0x8b   :  { %v63_v13 = vpop.permute.xlu0 %62  ;;  %v66_v14 = vpop.permute.xlu1 %65 }
  0x8c   :  { %vm68_vm2 = vcmp.eq.s32.totalorder %v10826_v12, %v66_v14  ;;  %vm67_vm3 = vcmp.eq.s32.totalorder %v10826_v12, %v63_v13 }
  0x8d   :  { %v10383_v16 = vsel %vm68_vm2, 1.0, %v10785_v15  ;;  %v10382_v17 = vsel %vm67_vm3, 1.0, %v10785_v15  ;;  %vm2155_vm2 = vcmask 1044484   ;;  %vm2157_vm3 = vcmask 1045509  }
  0x8e   :  { %10510 = vmatprep.mubr.msk.f32.mxu0 %vm85_vm1, %v10382_v17 }
  0x8f   :  { %10511 = vmatmul.mubr.msk.f32.vlgmr.msra.gmra.mxu0 %vm85_vm1, %v10383_v16 }
  0x90   :  { %v75_v18 = vpop.permute.xlu0 %74  ;;  %v78_v19 = vpop.permute.xlu1 %77  ;;  %10531 = vmatpush3.msra.mxu0 %v38_v24 }
  0x91   :  { %vm80_vm4 = vcmp.eq.s32.totalorder %v10826_v12, %v78_v19  ;;  %vm79_vm5 = vcmp.eq.s32.totalorder %v10826_v12, %v75_v18  ;;  %10532 = vmatprep.subr.mxu0 %v37_v25 }
  0x92   :  { %v10385_v20 = vsel %vm80_vm4, 1.0, %v10785_v15  ;;  %v10384_v21 = vsel %vm79_vm5, 1.0, %v10785_v15  ;;  %10533 = vmatpush3.msra.mxu0 %v37_v25  ;;  %vm2159_vm4 = vcmask 1046534   ;;  %vm2161_vm5 = vcmask 1047559  }
  0x93   :  { %10527 = vmatprep.mubr.msk.f32.mxu1 %vm85_vm1, %v10384_v21  ;;  %10544 = vmatprep.subr.mxu0 %v10785_v15 }
  0x94   :  { %10528 = vmatmul.mubr.msk.f32.vlgmr.msra.gmra.mxu1 %vm85_vm1, %v10385_v20  ;;  %vm2153_vm1 = vcmask 1043459  }
  0x95   :  { %10538 = vmatpush3.msra.mxu1 %v36_v22  ;;  %v508_v56 = vpop.permute.xlu0 %507 }
  0x96   :  { %10539 = vmatprep.subr.mxu1 %v35_v23 }
  0x97   :  { %10540 = vmatpush3.msra.mxu1 %v35_v23 }
  0x98   :  { %10555 = vmatprep.subr.mxu1 %v10785_v15 }
 0x14f   :  { %v10512_v27 = vpop.f32.mrf.mxu0 }
 0x151   :  { %v162_v28 = vpop.f32.mrf.mxu0 }
 0x152   :  { %10541 = vmatprep.mubr.msk.f32.mxu1 %vm252_vm6, %v162_v28 }
 0x153   :  { %10542 = vmatmul.mubr.msk.f32.vlgmr.msra.gmra.mxu1 %vm252_vm6, %v10512_v27 }
 0x154   :  { %v10529_v30 = vpop.f32.mrf.mxu1  ;;  %10556 = vmatpush3.msra.mxu1 %v10841_v29  ;;  %10563 = vmatprep.mubr.msk.f32.mxu1 %vm10787_vm7, %v10785_v15 }
 0x155   :  { %10557 = vmatprep.subr.mxu1 %v10785_v15 }
 0x156   :  { %v243_v32 = vpop.f32.mrf.mxu1  ;;  %10558 = vmatpush3.msra.mxu1 %v10846_v31 }
 0x157   :  { %10534 = vmatprep.mubr.msk.f32.mxu0 %vm252_vm6, %v243_v32  ;;  %10559 = vmatprep.subr.mxu1 %v10785_v15 }
 0x158   :  { %10535 = vmatmul.mubr.msk.f32.vlgmr.msra.gmra.mxu0 %vm252_vm6, %v10529_v30  ;;  %10560 = vmatpush3.msra.mxu1 %v10851_v33 }
 0x159   :  { %10545 = vmatpush3.msra.mxu0 %v10841_v29  ;;  %10552 = vmatprep.mubr.msk.f32.mxu0 %vm10787_vm7, %v10785_v15 }
 0x15a   :  { %10546 = vmatprep.subr.mxu0 %v10785_v15  ;;  %10561 = vmatprep.subr.mxu1 %v10785_v15 }
 0x15b   :  { %10547 = vmatpush3.msra.mxu0 %v10846_v31  ;;  %10562 = vmatpush3.msra.mxu1 %v10860_v34 }
 0x15c   :  { %10548 = vmatprep.subr.mxu0 %v10785_v15  ;;  %10577 = vmatprep.subr.mxu1 %v10785_v15 }
 0x15d   :  { %10549 = vmatpush3.msra.mxu0 %v10851_v33 }
 0x15e   :  { %10550 = vmatprep.subr.mxu0 %v10785_v15 }
 0x15f   :  { %10551 = vmatpush3.msra.mxu0 %v10860_v34 }
 0x160   :  { %10553 = vmatmul.mubr.msk.f32.vlgmr.msra.gmra.mxu0 %vm424_vm8, %v44_v35  ;;  %10566 = vmatprep.subr.mxu0 %v10785_v15 }
 0x161   :  { %10567 = vmatpush3.msra.mxu0 %v10841_v29  ;;  %10574 = vmatprep.mubr.msk.f32.mxu0 %vm10787_vm7, %v10785_v15 }
 0x162   :  { %10568 = vmatprep.subr.mxu0 %v10785_v15 }
 0x163   :  { %10569 = vmatpush3.msra.mxu0 %v10846_v31 }
 0x164   :  { %10570 = vmatprep.subr.mxu0 %v10785_v15 }
 0x165   :  { %10571 = vmatpush3.msra.mxu0 %v10851_v33 }
 0x166   :  { %10572 = vmatprep.subr.mxu0 %v10785_v15 }
 0x167   :  { %10573 = vmatpush3.msra.mxu0 %v10860_v34 }
 0x168   :  { %10588 = vmatprep.subr.mxu0 %v10785_v15 }
 0x213   :  { %v10543_v36 = vpop.f32.mrf.mxu1 }
 0x215   :  { %v406_v40 = vpop.f32.mrf.mxu1 }
 0x218   :  { %v10536_v38 = vpop.f32.mrf.mxu0 }
 0x219   :  { %v412_v39 = vadd.f32 %v10543_v36, %v10536_v38 }
 0x21a   :  { %v325_v41 = vpop.f32.mrf.mxu0 }
 0x21b   :  { %v420_v42 = vadd.f32 %v10396_v37, %v412_v39  ;;  %v407_v43 = vadd.f32 %v406_v40, %v325_v41 }
 0x21d   :  { %422 = vst [vmem:[#allocation2 + $0x8] sm:$0xff] %v420_v42  ;;  %v419_v44 = vadd.f32 %v10396_v37, %v407_v43 }
 0x21f   :  { %421 = vst [vmem:[#allocation2] sm:$0xff] %v419_v44 }
 0x220   :  { %v494_v45 = vpop.f32.mrf.mxu0 }
 0x222   :  { %v10554_v46 = vpop.f32.mrf.mxu0 }
 0x226   :  { %v423_v47 = vld [vmem:[#allocation2] sm:$0x3]  ;;  %v527_v0 = vld [vmem:[#allocation2 + $0x2] sm:$0x3]  ;;  %v628_v21 = vld [vmem:[#allocation2 + $0x4] sm:$0x3] }
 0x227   :  { %v498_v48 = vadd.f32 %v494_v45, %v423_v47  ;;  %v729_v47 = vld [vmem:[#allocation2 + $0x6] sm:$0x3] }
 0x229   :  { %10672 = vtanh.f32 %v498_v48  ;;  %v10398_v50 = vmul.f32 -1.442695, %v498_v48 }
 0x22b   :  { %10674 = vpow2.f32 %v10398_v50 }
 0x236   :  { %v10673_v49 = vpop.eup %10672 }
 0x237   :  { %512 = vrot.lane.b32.xlu1 %v10673_v49, %s10788_s1 }
 0x238   :  { %v10675_v51 = vpop.eup %10674 }
 0x239   :  { %v502_v52 = vadd.f32 1.0, %v10675_v51 }
 0x23b   :  { %10676 = vrcp.f32 %v502_v52 }
 0x248   :  { %v10677_v53 = vpop.eup %10676 }
 0x249   :  { %v510_v57 = vmul.f32 %v10677_v53, %v508_v56 }
 0x2a9   :  { %v513_v54 = vpop.permute.xlu1 %512 }
 0x2aa   :  { %v515_v55 = vmul.f32 %v10677_v53, %v513_v54 }
 0x2ac   :  { %517 = vrot.lane.b32.xlu1 %v515_v55, %s10786_s0 }
 0x31e   :  { %v518_v58 = vpop.permute.xlu1 %517 }
 0x31f   :  { %v520_v59 = vadd.f32 %v518_v58, %v510_v57 }
 0x321   :  { %10678 = vtanh.f32 %v520_v59 }
 0x32e   :  { %v10679_v60 = vpop.eup %10678 }
 0x32f   :  { %523 = vrot.lane.b32.xlu0 %v10679_v60, %s10788_s1 }
 0x3a1   :  { %v524_v61 = vpop.permute.xlu0 %523 }
 0x3a2   :  { %v10885_v62 = vmul.f32 %v10677_v53, %v524_v61 }
 0x3a4   :  { %529 = vrot.lane.b32.xlu1 %v10885_v62, %s10786_s0 }
 0x416   :  { %v530_v63 = vpop.permute.xlu1 %529 }
 0x417   :  { %10564 = vmatmul.mubr.msk.f32.vlgmr.msra.gmra.mxu1 %vm424_vm8, %v530_v63 }
 0x418   :  { %10578 = vmatpush3.msra.mxu1 %v10841_v29  ;;  %10585 = vmatprep.mubr.msk.f32.mxu1 %vm10787_vm7, %v10785_v15 }
 0x419   :  { %10579 = vmatprep.subr.mxu1 %v10785_v15 }
 0x41a   :  { %10580 = vmatpush3.msra.mxu1 %v10846_v31 }
 0x41b   :  { %10581 = vmatprep.subr.mxu1 %v10785_v15 }
 0x41c   :  { %10582 = vmatpush3.msra.mxu1 %v10851_v33 }
 0x41d   :  { %10583 = vmatprep.subr.mxu1 %v10785_v15 }
 0x41e   :  { %10584 = vmatpush3.msra.mxu1 %v10860_v34 }
 0x41f   :  { %10599 = vmatprep.subr.mxu1 %v10785_v15 }
 0x4d7   :  { %v599_v1 = vpop.f32.mrf.mxu1 }
 0x4d8   :  { %v603_v2 = vadd.f32 %v599_v1, %v527_v0 }
 0x4d9   :  { %v10565_v3 = vpop.f32.mrf.mxu1 }
 0x4da   :  { %10680 = vtanh.f32 %v603_v2  ;;  %v10400_v5 = vmul.f32 -1.442695, %v603_v2 }
 0x4dc   :  { %10682 = vpow2.f32 %v10400_v5 }
 0x4e7   :  { %v10681_v4 = vpop.eup %10680 }
 0x4e8   :  { %613 = vrot.lane.b32.xlu0 %v10681_v4, %s10788_s1 }
 0x4e9   :  { %v10683_v6 = vpop.eup %10682 }
 0x4ea   :  { %v607_v7 = vadd.f32 1.0, %v10683_v6 }
 0x4ec   :  { %10684 = vrcp.f32 %v607_v7 }
 0x4f9   :  { %v10685_v8 = vpop.eup %10684 }
 0x4fa   :  { %v611_v13 = vmul.f32 %v10685_v8, %v520_v59 }
 0x55a   :  { %v614_v9 = vpop.permute.xlu0 %613 }
 0x55b   :  { %v616_v10 = vmul.f32 %v10685_v8, %v614_v9 }
 0x55d   :  { %618 = vrot.lane.b32.xlu1 %v616_v10, %s10786_s0 }
 0x5cf   :  { %v619_v14 = vpop.permute.xlu1 %618 }
 0x5d0   :  { %v621_v16 = vadd.f32 %v619_v14, %v611_v13 }
 0x5d2   :  { %10686 = vtanh.f32 %v621_v16 }
 0x5df   :  { %v10687_v17 = vpop.eup %10686 }
 0x5e0   :  { %624 = vrot.lane.b32.xlu0 %v10687_v17, %s10788_s1 }
 0x652   :  { %v625_v18 = vpop.permute.xlu0 %624 }
 0x653   :  { %v10903_v19 = vmul.f32 %v10685_v8, %v625_v18  ;;  %v830_v8 = vld [vmem:[#allocation2 + $0x8] sm:$0x3] }
 0x655   :  { %630 = vrot.lane.b32.xlu1 %v10903_v19, %s10786_s0  ;;  %v1234_v40 = vrot.slane %v10903_v19, 6  ;;  %v1263_v2 = vrot.slane %v10903_v19, 4 }
 0x657   :  { %v1247_v44 = vsel %vm92_vm0, %v10885_v62, %v1234_v40 }
 0x6c7   :  { %v631_v20 = vpop.permute.xlu1 %630 }
 0x6c8   :  { %10575 = vmatmul.mubr.msk.f32.vlgmr.msra.gmra.mxu0 %vm424_vm8, %v631_v20 }
 0x6c9   :  { %10589 = vmatpush3.msra.mxu0 %v10841_v29  ;;  %10596 = vmatprep.mubr.msk.f32.mxu0 %vm10787_vm7, %v10785_v15 }
 0x6ca   :  { %10590 = vmatprep.subr.mxu0 %v10785_v15 }
 0x6cb   :  { %10591 = vmatpush3.msra.mxu0 %v10846_v31 }
 0x6cc   :  { %10592 = vmatprep.subr.mxu0 %v10785_v15 }
 0x6cd   :  { %10593 = vmatpush3.msra.mxu0 %v10851_v33 }
 0x6ce   :  { %10594 = vmatprep.subr.mxu0 %v10785_v15 }
 0x6cf   :  { %10595 = vmatpush3.msra.mxu0 %v10860_v34 }
 0x6d0   :  { %10610 = vmatprep.subr.mxu0 %v10785_v15 }
 0x788   :  { %v700_v22 = vpop.f32.mrf.mxu0 }
 0x789   :  { %v704_v23 = vadd.f32 %v700_v22, %v628_v21 }
 0x78a   :  { %v10576_v24 = vpop.f32.mrf.mxu0 }
 0x78b   :  { %10688 = vtanh.f32 %v704_v23  ;;  %v10402_v26 = vmul.f32 -1.442695, %v704_v23 }
 0x78d   :  { %10690 = vpow2.f32 %v10402_v26 }
 0x798   :  { %v10689_v25 = vpop.eup %10688 }
 0x799   :  { %714 = vrot.lane.b32.xlu0 %v10689_v25, %s10788_s1 }
 0x79a   :  { %v10691_v27 = vpop.eup %10690 }
 0x79b   :  { %v708_v28 = vadd.f32 1.0, %v10691_v27 }
 0x79d   :  { %10692 = vrcp.f32 %v708_v28 }
 0x7aa   :  { %v10693_v30 = vpop.eup %10692 }
 0x7ab   :  { %v712_v36 = vmul.f32 %v10693_v30, %v621_v16 }
 0x80b   :  { %v715_v32 = vpop.permute.xlu0 %714 }
 0x80c   :  { %v717_v35 = vmul.f32 %v10693_v30, %v715_v32 }
 0x80e   :  { %719 = vrot.lane.b32.xlu1 %v717_v35, %s10786_s0 }
 0x880   :  { %v720_v37 = vpop.permute.xlu1 %719 }
 0x881   :  { %v722_v38 = vadd.f32 %v720_v37, %v712_v36 }
 0x883   :  { %10694 = vtanh.f32 %v722_v38 }
 0x890   :  { %v10695_v39 = vpop.eup %10694 }
 0x891   :  { %725 = vrot.lane.b32.xlu0 %v10695_v39, %s10788_s1 }
 0x903   :  { %v726_v41 = vpop.permute.xlu0 %725 }
 0x904   :  { %v728_v42 = vmul.f32 %v10693_v30, %v726_v41  ;;  %v931_v30 = vld [vmem:[#allocation2 + $0xa] sm:$0x3] }
 0x906   :  { %v1236_v43 = vrot.slane %v728_v42, 4  ;;  %731 = vrot.lane.b32.xlu1 %v728_v42, %s10786_s0  ;;  %v1261_v0 = vrot.slane %v728_v42, 6 }
 0x908   :  { %v1249_v45 = vsel %vm1248_vm9, %v1247_v44, %v1236_v43 }
 0x978   :  { %v732_v46 = vpop.permute.xlu1 %731 }
 0x979   :  { %10586 = vmatmul.mubr.msk.f32.vlgmr.msra.gmra.mxu1 %vm424_vm8, %v732_v46  ;;  %v1032_v46 = vld [vmem:[#allocation2 + $0xc] sm:$0x3] }
 0x97a   :  { %10600 = vmatpush3.msra.mxu1 %v10841_v29  ;;  %10607 = vmatprep.mubr.msk.f32.mxu1 %vm10787_vm7, %v10785_v15 }
 0x97b   :  { %10601 = vmatprep.subr.mxu1 %v10785_v15 }
 0x97c   :  { %10602 = vmatpush3.msra.mxu1 %v10846_v31 }
 0x97d   :  { %10603 = vmatprep.subr.mxu1 %v10785_v15 }
 0x97e   :  { %10604 = vmatpush3.msra.mxu1 %v10851_v33 }
 0x97f   :  { %10605 = vmatprep.subr.mxu1 %v10785_v15 }
 0x980   :  { %10606 = vmatpush3.msra.mxu1 %v10860_v34 }
 0x981   :  { %10621 = vmatprep.subr.mxu1 %v10785_v15 }
 0xa39   :  { %v801_v48 = vpop.f32.mrf.mxu1 }
 0xa3a   :  { %v805_v49 = vadd.f32 %v801_v48, %v729_v47 }
 0xa3b   :  { %v10587_v50 = vpop.f32.mrf.mxu1 }
 0xa3c   :  { %10696 = vtanh.f32 %v805_v49  ;;  %v10404_v52 = vmul.f32 -1.442695, %v805_v49 }
 0xa3e   :  { %10698 = vpow2.f32 %v10404_v52 }
 0xa49   :  { %v10697_v51 = vpop.eup %10696 }
 0xa4a   :  { %815 = vrot.lane.b32.xlu0 %v10697_v51, %s10788_s1 }
 0xa4b   :  { %v10699_v53 = vpop.eup %10698 }
 0xa4c   :  { %v809_v54 = vadd.f32 1.0, %v10699_v53 }
 0xa4e   :  { %10700 = vrcp.f32 %v809_v54 }
 0xa5b   :  { %v10701_v55 = vpop.eup %10700 }
 0xa5c   :  { %v813_v58 = vmul.f32 %v10701_v55, %v722_v38 }
 0xabc   :  { %v816_v56 = vpop.permute.xlu0 %815 }
 0xabd   :  { %v818_v57 = vmul.f32 %v10701_v55, %v816_v56 }
 0xabf   :  { %820 = vrot.lane.b32.xlu1 %v818_v57, %s10786_s0  ;;  %v10789_v57 = vmov 1966171168  }
 0xb31   :  { %v821_v59 = vpop.permute.xlu1 %820 }
 0xb32   :  { %v823_v60 = vadd.f32 %v821_v59, %v813_v58  ;;  %v1453_v58 = vunpack.c.l.s4 %v10789_v57 }
 0xb34   :  { %10702 = vtanh.f32 %v823_v60  ;;  %v1454_v59 = vunpack.c.0.s8 %v1453_v58 }
 0xb41   :  { %v10703_v61 = vpop.eup %10702 }
 0xb42   :  { %826 = vrot.lane.b32.xlu0 %v10703_v61, %s10788_s1 }
 0xbb4   :  { %v827_v63 = vpop.permute.xlu0 %826 }
 0xbb5   :  { %v829_v1 = vmul.f32 %v10701_v55, %v827_v63  ;;  %v10790_v63 = vmov -10000.0  }
 0xbb7   :  { %832 = vrot.lane.b32.xlu1 %v829_v1, %s10786_s0  ;;  %v1238_v3 = vrot.slane %v829_v1, 2  ;;  %v1270_v4 = vsel %vm92_vm0, %v829_v1, %v1261_v0  ;;  %v1450_v0 = vsel %vm1449_vm11, 0.0, %v10790_v63 }
 0xbb8   :  { %v10944_v5 = vsel %vm1248_vm9, %v1270_v4, %v1263_v2 }
 0xbb9   :  { %v10947_v6 = vsel %vm1250_vm10, %v1249_v45, %v1238_v3 }
 0xc29   :  { %v833_v7 = vpop.permute.xlu1 %832 }
 0xc2a   :  { %10597 = vmatmul.mubr.msk.f32.vlgmr.msra.gmra.mxu0 %vm424_vm8, %v833_v7 }
 0xc2b   :  { %10611 = vmatpush3.msra.mxu0 %v10841_v29  ;;  %10618 = vmatprep.mubr.msk.f32.mxu0 %vm10787_vm7, %v10785_v15 }
 0xc2c   :  { %10612 = vmatprep.subr.mxu0 %v10785_v15 }
 0xc2d   :  { %10613 = vmatpush3.msra.mxu0 %v10846_v31 }
 0xc2e   :  { %10614 = vmatprep.subr.mxu0 %v10785_v15 }
 0xc2f   :  { %10615 = vmatpush3.msra.mxu0 %v10851_v33 }
 0xc30   :  { %10616 = vmatprep.subr.mxu0 %v10785_v15 }
 0xc31   :  { %10617 = vmatpush3.msra.mxu0 %v10860_v34 }
 0xcea   :  { %v902_v9 = vpop.f32.mrf.mxu0 }
 0xceb   :  { %v906_v10 = vadd.f32 %v902_v9, %v830_v8 }
 0xcec   :  { %v10598_v13 = vpop.f32.mrf.mxu0 }
 0xced   :  { %10704 = vtanh.f32 %v906_v10  ;;  %v10406_v16 = vmul.f32 -1.442695, %v906_v10 }
 0xcef   :  { %10706 = vpow2.f32 %v10406_v16 }
 0xcfa   :  { %v10705_v14 = vpop.eup %10704 }
 0xcfb   :  { %916 = vrot.lane.b32.xlu0 %v10705_v14, %s10788_s1  ;;  %v1265_v14 = vrot.slane %v10885_v62, 2 }
 0xcfc   :  { %v10707_v17 = vpop.eup %10706 }
 0xcfd   :  { %v910_v18 = vadd.f32 1.0, %v10707_v17  ;;  %v1272_v16 = vsel %vm1250_vm10, %v10944_v5, %v1265_v14  ;;  %v56_v17 = vld [vmem:[#allocation3 + $0xc0] sm:$0xf] }
 0xcff   :  { %10708 = vrcp.f32 %v910_v18 }
 0xd0c   :  { %v10709_v19 = vpop.eup %10708 }
 0xd0d   :  { %v914_v22 = vmul.f32 %v10709_v19, %v823_v60  ;;  %v10989_v60 = vshrl.u32 %v59_v11, 7 }
 0xd0f   :  { %v1457_v61 = vsub.s32 %v1454_v59, %v10989_v60  ;;  %v10994_v3 = vsub.s32 0, %v10989_v60 }
 0xd11   :  { %v1458_v1 = vrot.slane %v1450_v0, %v1457_v61  ;;  %18545 = vst [vmem:[#allocation10_spill] sm:$0xff] %v10994_v3 }
 0xd13   :  { %v1466_v2 = vrot.slane %v1458_v1, %v1457_v61  ;;  %v1459_v18 = vcombine.high %v1458_v1, %v1458_v1 }
 0xd15   :  { %v1477_v4 = vrot.slane %v1466_v2, %v10994_v3 }
 0xd6d   :  { %v917_v20 = vpop.permute.xlu0 %916 }
 0xd6e   :  { %v919_v21 = vmul.f32 %v10709_v19, %v917_v20  ;;  %v1473_v20 = vrot.slane %v1459_v18, %v1457_v61 }
 0xd70   :  { %921 = vrot.lane.b32.xlu1 %v919_v21, %s10786_s0 }
 0xde2   :  { %v922_v23 = vpop.permute.xlu1 %921 }
 0xde3   :  { %v924_v24 = vadd.f32 %v922_v23, %v914_v22  ;;  %v1481_v22 = vrot.slane %v1473_v20, %v10994_v3 }
 0xde5   :  { %10710 = vtanh.f32 %v924_v24 }
 0xdf2   :  { %v10711_v25 = vpop.eup %10710 }
 0xdf3   :  { %927 = vrot.lane.b32.xlu0 %v10711_v25, %s10788_s1 }
 0xe65   :  { %v928_v26 = vpop.permute.xlu0 %927 }
 0xe66   :  { %v10962_v27 = vmul.f32 %v10709_v19, %v928_v26  ;;  %v1485_v19 = vadd.f32 %v1477_v4, %v56_v17 }
 0xe68   :  { %933 = vrot.lane.b32.xlu1 %v10962_v27, %s10786_s0  ;;  %v1493_v21 = vsel %vm1492_vm13, %v1485_v19, -inf }
 0xeda   :  { %v934_v28 = vpop.permute.xlu1 %933 }
 0xedb   :  { %10608 = vmatmul.mubr.msk.f32.vlgmr.msra.gmra.mxu1 %vm424_vm8, %v934_v28 }
 0xedc   :  { %10622 = vmatpush3.msra.mxu1 %v10841_v29  ;;  %10629 = vmatprep.mubr.msk.f32.mxu1 %vm10787_vm7, %v10785_v15 }
 0xedd   :  { %10623 = vmatprep.subr.mxu1 %v10785_v15 }
 0xede   :  { %10624 = vmatpush3.msra.mxu1 %v10846_v31 }
 0xedf   :  { %10625 = vmatprep.subr.mxu1 %v10785_v15 }
 0xee0   :  { %10626 = vmatpush3.msra.mxu1 %v10851_v33 }
 0xee1   :  { %10627 = vmatprep.subr.mxu1 %v10785_v15 }
 0xee2   :  { %10628 = vmatpush3.msra.mxu1 %v10860_v34 }
 0xf9b   :  { %v1003_v32 = vpop.f32.mrf.mxu1 }
 0xf9c   :  { %v1007_v35 = vadd.f32 %v1003_v32, %v931_v30  ;;  %v11021_v32 = vsub.s32 1, %v10989_v60 }
 0xf9d   :  { %v10609_v36 = vpop.f32.mrf.mxu1 }
 0xf9e   :  { %10712 = vtanh.f32 %v1007_v35  ;;  %v10408_v37 = vmul.f32 -1.442695, %v1007_v35  ;;  %18546 = vst [vmem:[#allocation11_spill] sm:$0xff] %v11021_v32  ;;  %v11025_v36 = vsub.s32 2, %v10989_v60 }
 0xfa0   :  { %10714 = vpow2.f32 %v10408_v37  ;;  %18547 = vst [vmem:[#allocation12_spill] sm:$0xff] %v11025_v36  ;;  %v11029_v37 = vsub.s32 3, %v10989_v60 }
 0xfa2   :  { %18548 = vst [vmem:[#allocation13_spill] sm:$0xff] %v11029_v37 }
 0xfab   :  { %v10713_v29 = vpop.eup %10712 }
 0xfac   :  { %1017 = vrot.lane.b32.xlu0 %v10713_v29, %s10788_s1 }
 0xfad   :  { %v10715_v38 = vpop.eup %10714 }
 0xfae   :  { %v1011_v31 = vadd.f32 1.0, %v10715_v38 }
 0xfb0   :  { %10716 = vrcp.f32 %v1011_v31  ;;  %v11033_v31 = vsub.s32 4, %v10989_v60 }
 0xfb2   :  { %18549 = vst [vmem:[#allocation14_spill] sm:$0xff] %v11033_v31 }
 0xfbd   :  { %v10717_v39 = vpop.eup %10716 }
 0xfbe   :  { %v1015_v15 = vmul.f32 %v10717_v39, %v924_v24 }
0x101e   :  { %v1018_v40 = vpop.permute.xlu0 %1017 }
0x101f   :  { %v1020_v33 = vmul.f32 %v10717_v39, %v1018_v40  ;;  %v11037_v40 = vsub.s32 5, %v10989_v60 }
0x1021   :  { %1022 = vrot.lane.b32.xlu1 %v1020_v33, %s10786_s0  ;;  %18550 = vst [vmem:[#allocation15_spill] sm:$0xff] %v11037_v40 }
0x1093   :  { %v1023_v34 = vpop.permute.xlu1 %1022 }
0x1094   :  { %v1025_v41 = vadd.f32 %v1023_v34, %v1015_v15  ;;  %v11041_v15 = vsub.s32 6, %v10989_v60 }
0x1096   :  { %10718 = vtanh.f32 %v1025_v41  ;;  %18551 = vst [vmem:[#allocation16_spill] sm:$0xff] %v11041_v15 }
0x10a3   :  { %v10719_v42 = vpop.eup %10718 }
0x10a4   :  { %1028 = vrot.lane.b32.xlu0 %v10719_v42, %s10788_s1 }
0x1116   :  { %v1029_v43 = vpop.permute.xlu0 %1028 }
0x1117   :  { %v10979_v44 = vmul.f32 %v10717_v39, %v1029_v43 }
0x1119   :  { %1034 = vrot.lane.b32.xlu1 %v10979_v44, %s10786_s0  ;;  %v1240_v62 = vrot.slane %v10979_v44, 6 }
0x111b   :  { %v1252_v28 = vsel %vm92_vm0, %v10962_v27, %v1240_v62 }
0x118b   :  { %v1035_v45 = vpop.permute.xlu1 %1034 }
0x118c   :  { %10619 = vmatmul.mubr.msk.f32.vlgmr.msra.gmra.mxu0 %vm424_vm8, %v1035_v45  ;;  %v1626_v45 = vrot.slane %v56_v17, %v10994_v3 }
0x124c   :  { %v1104_v47 = vpop.f32.mrf.mxu0 }
0x124d   :  { %v1108_v48 = vadd.f32 %v1104_v47, %v1032_v46  ;;  %v1637_v46 = vrot.slane %v56_v17, %v11021_v32 }
0x124e   :  { %v10620_v49 = vpop.f32.mrf.mxu0 }
0x124f   :  { %10720 = vtanh.f32 %v1108_v48  ;;  %v10410_v51 = vmul.f32 -1.442695, %v1108_v48 }
0x1251   :  { %10722 = vpow2.f32 %v10410_v51  ;;  %v1659_v51 = vrot.slane %v56_v17, %v11029_v37 }
0x125c   :  { %v10721_v50 = vpop.eup %10720 }
0x125d   :  { %1118 = vrot.lane.b32.xlu0 %v10721_v50, %s10788_s1  ;;  %v1648_v50 = vrot.slane %v56_v17, %v11025_v36 }
0x125e   :  { %v10723_v52 = vpop.eup %10722 }
0x125f   :  { %v1112_v53 = vadd.f32 1.0, %v10723_v52  ;;  %v1487_v52 = vadd.f32 %v1481_v22, %v56_v17 }
0x1261   :  { %10724 = vrcp.f32 %v1112_v53  ;;  %v1499_v53 = vsel %vm1492_vm13, %v1487_v52, -inf  ;;  %v49_v52 = vld [vmem:[#allocation3 + $0x8f] sm:$0xff] }
0x1262   :  { %10643 = vmatprep.subr.mxu1 %v49_v52 }
0x126e   :  { %v10725_v54 = vpop.eup %10724 }
0x126f   :  { %v1116_v11 = vmul.f32 %v10725_v54, %v1025_v41  ;;  %v11045_v41 = vsub.s32 7, %v10989_v60 }
0x1271   :  { %18552 = vst [vmem:[#allocation17_spill] sm:$0xff] %v11045_v41 }
0x12cf   :  { %v1119_v55 = vpop.permute.xlu0 %1118 }
0x12d0   :  { %v1121_v56 = vmul.f32 %v10725_v54, %v1119_v55 }
0x12d2   :  { %1123 = vrot.lane.b32.xlu1 %v1121_v56, %s10786_s0 }
0x12d6   :  { %1360 = vrot.lane.b32.xlu1 %v10947_v6, %s10786_s0  ;;  %v55_v6 = vld [vmem:[#allocation3 + $0xb8] sm:$0xff] }
0x12d7   :  { %v1484_v7 = vadd.f32 %v1477_v4, %v55_v6  ;;  %v1486_v23 = vadd.f32 %v1481_v22, %v55_v6  ;;  %v1538_v35 = vrot.slane %v55_v6, %v10994_v3  ;;  %v1549_v29 = vrot.slane %v55_v6, %v11021_v32 }
0x12d8   :  { %v1560_v38 = vrot.slane %v55_v6, %v11025_v36  ;;  %v1571_v39 = vrot.slane %v55_v6, %v11029_v37  ;;  %v1582_v33 = vrot.slane %v55_v6, %v11033_v31  ;;  %v1593_v34 = vrot.slane %v55_v6, %v11037_v40 }
0x12d9   :  { %v1489_v8 = vsel %vm1488_vm12, %v1484_v7, -inf  ;;  %v1496_v24 = vsel %vm1488_vm12, %v1486_v23, -inf  ;;  %v1604_v42 = vrot.slane %v55_v6, %v11041_v15  ;;  %v1615_v43 = vrot.slane %v55_v6, %v11045_v41 }
0x12fa   :  { %1490 = vmax.xlane.f32.xlu1 %v1489_v8 }
0x1344   :  { %v1124_v9 = vpop.permute.xlu1 %1123 }
0x1345   :  { %v10998_v10 = vadd.f32 %v1124_v9, %v1116_v11 }
0x1347   :  { %10726 = vtanh.f32 %v10998_v10 }
0x1348   :  { %v1361_v47 = vpop.permute.xlu1 %1360 }
0x1354   :  { %v10727_v13 = vpop.eup %10726 }
0x1355   :  { %1129 = vrot.lane.b32.xlu0 %v10727_v13, %s10788_s1 }
0x1359   :  { %1277 = vrot.lane.b32.xlu0 %v1272_v16, %s10786_s0 }
0x1378   :  { %1494 = vmax.xlane.f32.xlu0 %v1493_v21 }
0x137c   :  { %1497 = vmax.xlane.f32.xlu0 %v1496_v24 }
0x1383   :  { %v11051_v48 = vpop.xlane.xlu1 %1490 }
0x1392   :  { %1544 = vbcast.lane.b32.xlu0 %v1538_v35, 264 }
0x1396   :  { %1555 = vbcast.lane.b32.xlu0 %v1549_v29, 264 }
0x139a   :  { %1566 = vbcast.lane.b32.xlu0 %v1560_v38, 264 }
0x139e   :  { %1577 = vbcast.lane.b32.xlu0 %v1571_v39, 264 }
0x13a2   :  { %1588 = vbcast.lane.b32.xlu0 %v1582_v33, 264 }
0x13a6   :  { %1599 = vbcast.lane.b32.xlu0 %v1593_v34, 264 }
0x13aa   :  { %1610 = vbcast.lane.b32.xlu0 %v1604_v42, 264 }
0x13ae   :  { %1621 = vbcast.lane.b32.xlu0 %v1615_v43, 264 }
0x13b2   :  { %1632 = vbcast.lane.b32.xlu0 %v1626_v45, 264 }
0x13b6   :  { %1643 = vbcast.lane.b32.xlu0 %v1637_v46, 264 }
0x13ba   :  { %1654 = vbcast.lane.b32.xlu0 %v1648_v50, 264 }
0x13be   :  { %1665 = vbcast.lane.b32.xlu0 %v1659_v51, 264 }
0x13c2   :  { %2369 = vbcast.lane.b32.xlu0 %v10826_v12, 264 }
0x13c6   :  { %9992 = vbcast.lane.b32.xlu0 %v1659_v51, 264 }
0x13c7   :  { %v1130_v25 = vpop.permute.xlu0 %1129 }
0x13c8   :  { %v11010_v5 = vmul.f32 %v10725_v54, %v1130_v25  ;;  %v1133_v54 = vld [vmem:[#allocation2 + $0xe] sm:$0x3] }
0x13ca   :  { %v1242_v26 = vrot.slane %v11010_v5, 4  ;;  %1135 = vrot.lane.b32.xlu1 %v11010_v5, %s10786_s0 }
0x13cb   :  { %v11061_v59 = vpop.permute.xlu0 %1277 }
0x13cc   :  { %v11018_v30 = vsel %vm1248_vm9, %v1252_v28, %v1242_v26 }
0x13ee   :  { %1500 = vmax.xlane.f32.xlu1 %v1499_v53  ;;  %v53_v53 = vld [vmem:[#allocation3 + $0xaf] sm:$0xff] }
0x13ef   :  { %10632 = vmatprep.subr.mxu0 %v53_v53 }
0x13f0   :  { %10633 = vmatpush3.msra.mxu0 %v53_v53 }
0x13ff   :  { %1540 = vbcast.lane.b32.xlu1 %v1538_v35, 256 }
0x1401   :  { %v11063_v61 = vpop.xlane.xlu0 %1494 }
0x1403   :  { %1551 = vbcast.lane.b32.xlu1 %v1549_v29, 256 }
0x1405   :  { %v11065_v63 = vpop.xlane.xlu0 %1497 }
0x1407   :  { %1562 = vbcast.lane.b32.xlu1 %v1560_v38, 256 }
0x1409   :  { %v11067_v0 = vpop.permute.xlu0 %1544 }
0x140a   :  { %18553 = vst [vmem:[#allocation18_spill] sm:$0xff] %v11067_v0 }
0x140b   :  { %1573 = vbcast.lane.b32.xlu1 %v1571_v39, 256 }
0x140d   :  { %v11069_v1 = vpop.permute.xlu0 %1555 }
0x140e   :  { %18554 = vst [vmem:[#allocation19_spill] sm:$0xff] %v11069_v1 }
0x140f   :  { %1584 = vbcast.lane.b32.xlu1 %v1582_v33, 256 }
0x1411   :  { %v11071_v2 = vpop.permute.xlu0 %1566 }
0x1412   :  { %18555 = vst [vmem:[#allocation20_spill] sm:$0xff] %v11071_v2 }
0x1413   :  { %1595 = vbcast.lane.b32.xlu1 %v1593_v34, 256 }
0x1415   :  { %v11073_v4 = vpop.permute.xlu0 %1577 }
0x1416   :  { %18556 = vst [vmem:[#allocation21_spill] sm:$0xff] %v11073_v4 }
0x1417   :  { %1606 = vbcast.lane.b32.xlu1 %v1604_v42, 256 }
0x1419   :  { %v11075_v6 = vpop.permute.xlu0 %1588 }
0x141a   :  { %18557 = vst [vmem:[#allocation22_spill] sm:$0xff] %v11075_v6 }
0x141b   :  { %1617 = vbcast.lane.b32.xlu1 %v1615_v43, 256 }
0x141d   :  { %v11077_v7 = vpop.permute.xlu0 %1599 }
0x141e   :  { %18558 = vst [vmem:[#allocation23_spill] sm:$0xff] %v11077_v7 }
0x141f   :  { %1628 = vbcast.lane.b32.xlu1 %v1626_v45, 256 }
0x1421   :  { %v11079_v8 = vpop.permute.xlu0 %1610 }
0x1422   :  { %18559 = vst [vmem:[#allocation24_spill] sm:$0xff] %v11079_v8 }
0x1423   :  { %1639 = vbcast.lane.b32.xlu1 %v1637_v46, 256 }
0x1425   :  { %v11081_v11 = vpop.permute.xlu0 %1621 }
0x1426   :  { %18560 = vst [vmem:[#allocation25_spill] sm:$0xff] %v11081_v11 }
0x1427   :  { %1650 = vbcast.lane.b32.xlu1 %v1648_v50, 256 }
0x1429   :  { %v11083_v13 = vpop.permute.xlu0 %1632 }
0x142a   :  { %18561 = vst [vmem:[#allocation26_spill] sm:$0xff] %v11083_v13 }
0x142b   :  { %1661 = vbcast.lane.b32.xlu1 %v1659_v51, 256 }
0x142d   :  { %v11085_v14 = vpop.permute.xlu0 %1643 }
0x142e   :  { %18562 = vst [vmem:[#allocation27_spill] sm:$0xff] %v11085_v14 }
0x142f   :  { %2365 = vbcast.lane.b32.xlu1 %v10826_v12, 256 }
0x1431   :  { %v11087_v16 = vpop.permute.xlu0 %1654 }
0x1432   :  { %18563 = vst [vmem:[#allocation28_spill] sm:$0xff] %v11087_v16 }
0x1433   :  { %9988 = vbcast.lane.b32.xlu1 %v1659_v51, 256 }
0x1435   :  { %v11089_v18 = vpop.permute.xlu0 %1665 }
0x1436   :  { %18564 = vst [vmem:[#allocation29_spill] sm:$0xff] %v11089_v18 }
0x1439   :  { %v11091_v20 = vpop.permute.xlu0 %2369 }
0x143a   :  { %18565 = vst [vmem:[#allocation30_spill] sm:$0xff] %v11091_v20 }
0x143c   :  { %v1136_v49 = vpop.permute.xlu1 %1135 }
0x143d   :  { %10630 = vmatmul.mubr.msk.f32.vlgmr.msra.gmra.mxu1 %vm424_vm8, %v1136_v49  ;;  %v11093_v21 = vpop.permute.xlu0 %9992 }
0x143e   :  { %10651 = vmatprep.mubr.msk.f32.mxu1 %vm424_vm8, %v1361_v47  ;;  %18566 = vst [vmem:[#allocation31_spill] sm:$0xff] %v11093_v21  ;;  %10644 = vmatpush3.msra.mxu1 %v49_v52 }
0x1477   :  { %v11096_v62 = vpop.xlane.xlu1 %1500 }
0x147b   :  { %v11098_v25 = vpop.permute.xlu1 %1540 }
0x147c   :  { %18567 = vst [vmem:[#allocation32_spill] sm:$0xff] %v11098_v25 }
0x147f   :  { %v11100_v26 = vpop.permute.xlu1 %1551 }
0x1480   :  { %18568 = vst [vmem:[#allocation33_spill] sm:$0xff] %v11100_v26 }
0x1483   :  { %v11102_v28 = vpop.permute.xlu1 %1562 }
0x1484   :  { %18569 = vst [vmem:[#allocation34_spill] sm:$0xff] %v11102_v28 }
0x1487   :  { %v11104_v35 = vpop.permute.xlu1 %1573 }
0x1488   :  { %18570 = vst [vmem:[#allocation35_spill] sm:$0xff] %v11104_v35 }
0x148b   :  { %v11106_v29 = vpop.permute.xlu1 %1584 }
0x148c   :  { %18571 = vst [vmem:[#allocation36_spill] sm:$0xff] %v11106_v29 }
0x148f   :  { %v11108_v38 = vpop.permute.xlu1 %1595 }
0x1490   :  { %18572 = vst [vmem:[#allocation37_spill] sm:$0xff] %v11108_v38 }
0x1493   :  { %v11110_v39 = vpop.permute.xlu1 %1606 }
0x1494   :  { %18573 = vst [vmem:[#allocation38_spill] sm:$0xff] %v11110_v39 }
0x1497   :  { %v11112_v33 = vpop.permute.xlu1 %1617 }
0x1498   :  { %18574 = vst [vmem:[#allocation39_spill] sm:$0xff] %v11112_v33 }
0x149b   :  { %v11114_v34 = vpop.permute.xlu1 %1628 }
0x149c   :  { %18575 = vst [vmem:[#allocation40_spill] sm:$0xff] %v11114_v34 }
0x149f   :  { %v11116_v42 = vpop.permute.xlu1 %1639 }
0x14a0   :  { %18576 = vst [vmem:[#allocation41_spill] sm:$0xff] %v11116_v42 }
0x14a3   :  { %v11118_v43 = vpop.permute.xlu1 %1650 }
0x14a4   :  { %18577 = vst [vmem:[#allocation42_spill] sm:$0xff] %v11118_v43 }
0x14a7   :  { %v11120_v45 = vpop.permute.xlu1 %1661 }
0x14a8   :  { %18578 = vst [vmem:[#allocation43_spill] sm:$0xff] %v11120_v45 }
0x14ab   :  { %v11122_v46 = vpop.permute.xlu1 %2365 }
0x14ac   :  { %18579 = vst [vmem:[#allocation44_spill] sm:$0xff] %v11122_v46 }
0x14af   :  { %v11124_v47 = vpop.permute.xlu1 %9988 }
0x14b0   :  { %18580 = vst [vmem:[#allocation45_spill] sm:$0xff] %v11124_v47 }
0x14fd   :  { %v1205_v55 = vpop.f32.mrf.mxu1 }
0x14fe   :  { %v1209_v56 = vadd.f32 %v1205_v55, %v1133_v54  ;;  %v48_v54 = vld [vmem:[#allocation3 + $0x87] sm:$0xff] }
0x14ff   :  { %v10631_v57 = vpop.f32.mrf.mxu1  ;;  %v52_v55 = vld [vmem:[#allocation3 + $0xa7] sm:$0xff]  ;;  %10645 = vmatprep.subr.mxu1 %v48_v54 }
0x1500   :  { %10728 = vtanh.f32 %v1209_v56  ;;  %v10412_v9 = vmul.f32 -1.442695, %v1209_v56  ;;  %v47_v56 = vld [vmem:[#allocation3 + $0x7f] sm:$0xff]  ;;  %10634 = vmatprep.subr.mxu0 %v52_v55  ;;  %10646 = vmatpush3.msra.mxu1 %v48_v54 }
0x1501   :  { %v51_v57 = vld [vmem:[#allocation3 + $0x9f] sm:$0xff]  ;;  %10635 = vmatpush3.msra.mxu0 %v52_v55  ;;  %10647 = vmatprep.subr.mxu1 %v47_v56 }
0x1502   :  { %10730 = vpow2.f32 %v10412_v9  ;;  %v50_v9 = vld [vmem:[#allocation3 + $0x97] sm:$0xff]  ;;  %10636 = vmatprep.subr.mxu0 %v51_v57  ;;  %10648 = vmatpush3.msra.mxu1 %v47_v56 }
0x1503   :  { %10637 = vmatpush3.msra.mxu0 %v51_v57 }
0x1504   :  { %10638 = vmatprep.subr.mxu0 %v50_v9 }
0x1505   :  { %10639 = vmatpush3.msra.mxu0 %v50_v9 }
0x150d   :  { %v10729_v58 = vpop.eup %10728 }
0x150e   :  { %1219 = vrot.lane.b32.xlu0 %v10729_v58, %s10788_s1  ;;  %v46_v58 = vld [vmem:[#allocation3 + $0x77] sm:$0xff] }
0x150f   :  { %v10731_v17 = vpop.eup %10730  ;;  %10649 = vmatprep.subr.mxu1 %v46_v58 }
0x1510   :  { %v1213_v19 = vadd.f32 1.0, %v10731_v17  ;;  %10650 = vmatpush3.msra.mxu1 %v46_v58 }
0x1512   :  { %10732 = vrcp.f32 %v1213_v19  ;;  %v1255_v19 = vrot.slane %v11010_v5, 6 }
0x151f   :  { %v10733_v22 = vpop.eup %10732 }
0x1520   :  { %v1217_v49 = vmul.f32 %v10733_v22, %v10998_v10 }
0x1580   :  { %v1220_v23 = vpop.permute.xlu0 %1219 }
0x1581   :  { %v1222_v24 = vmul.f32 %v10733_v22, %v1220_v23 }
0x1583   :  { %1224 = vrot.lane.b32.xlu1 %v1222_v24, %s10786_s0  ;;  %v1257_v24 = vrot.slane %v10979_v44, 4  ;;  %v10417_v44 = vld [vmem:[#allocation3 + $0xb7] ss:$0 sm:$0xff] }
0x15f5   :  { %v1225_v50 = vpop.permute.xlu1 %1224 }
0x15f6   :  { %v1227_v51 = vadd.f32 %v1225_v50, %v1217_v49  ;;  %v1259_v50 = vrot.slane %v10962_v27, 2 }
0x15f8   :  { %10734 = vtanh.f32 %v1227_v51 }
0x1605   :  { %v10735_v10 = vpop.eup %10734 }
0x1606   :  { %1230 = vrot.lane.b32.xlu0 %v10735_v10, %s10788_s1 }
0x1678   :  { %v1231_v17 = vpop.permute.xlu0 %1230 }
0x1679   :  { %v1233_v23 = vmul.f32 %v10733_v22, %v1231_v17 }
0x167b   :  { %v1245_v49 = vrot.slane %v1233_v23, 2  ;;  %v1267_v51 = vsel %vm92_vm0, %v1233_v23, %v1255_v19  ;;  %vm2151_vm0 = vcmask 1042434  }
0x167c   :  { %v1268_v52 = vsel %vm1248_vm9, %v1267_v51, %v1257_v24 }
0x167d   :  { %v1269_v53 = vsel %vm1250_vm10, %v1268_v52, %v1259_v50  ;;  %v1254_v54 = vsel %vm1250_vm10, %v11018_v30, %v1245_v49 }
0x167e   :  { %1275 = vrot.lane.b32.xlu1 %v1269_v53, %s10786_s0  ;;  %1362 = vrot.lane.b32.xlu0 %v1254_v54, %s10786_s0 }
0x16f0   :  { %v1276_v5 = vpop.permute.xlu1 %1275  ;;  %v1363_v22 = vpop.permute.xlu0 %1362 }
0x16f1   :  { %10640 = vmatprep.mubr.msk.f32.mxu0 %vm424_vm8, %v1276_v5  ;;  %10652 = vmatmul.mubr.msk.f32.vlgmr.msra.gmra.mxu1 %vm424_vm8, %v1363_v22 }
0x16f2   :  { %10641 = vmatmul.mubr.msk.f32.vlgmr.msra.gmra.mxu0 %vm424_vm8, %v11061_v59 }
0x17b1   :  { %v10653_v27 = vpop.f32.mrf.mxu1 }
0x17b2   :  { %v10642_v55 = vpop.f32.mrf.mxu0 }
0x17b3   :  { %v1440_v56 = vadd.f32 %v10653_v27, %v10642_v55  ;;  %v1434_v19 = vpop.f32.mrf.mxu1 }
0x17b4   :  { %v1349_v23 = vpop.f32.mrf.mxu0 }
0x17b5   :  { %v1448_v57 = vadd.f32 %v10417_v44, %v1440_v56  ;;  %v1435_v24 = vadd.f32 %v1434_v19, %v1349_v23 }
0x17b7   :  { %v6409_v30 = vrot.slane %v1448_v57, %v10994_v3  ;;  %v7591_v58 = vrot.slane %v1448_v57, %v11025_v36  ;;  %v6420_v9 = vrot.slane %v1448_v57, %v11021_v32  ;;  %v7602_v10 = vrot.slane %v1448_v57, %v11029_v37 }
0x17b8   :  { %v8773_v59 = vrot.slane %v1448_v57, %v11033_v31  ;;  %v8784_v17 = vrot.slane %v1448_v57, %v11037_v40  ;;  %v9955_v49 = vrot.slane %v1448_v57, %v11041_v15  ;;  %v1447_v50 = vadd.f32 %v10417_v44, %v1435_v24 }
0x17b9   :  { %6415 = vbcast.lane.b32.xlu0 %v6409_v30, 264  ;;  %6411 = vbcast.lane.b32.xlu1 %v6409_v30, 256  ;;  %v9966_v51 = vrot.slane %v1448_v57, %v11045_v41 }
0x17ba   :  { %v1506_v52 = vrot.slane %v1447_v50, %v10994_v3  ;;  %v1517_v53 = vrot.slane %v1447_v50, %v11021_v32  ;;  %v2862_v54 = vrot.slane %v1447_v50, %v11025_v36  ;;  %v4044_v5 = vrot.slane %v1447_v50, %v11033_v31 }
0x17bb   :  { %v5226_v22 = vrot.slane %v1447_v50, %v11041_v15  ;;  %v2873_v27 = vrot.slane %v1447_v50, %v11029_v37  ;;  %v4055_v44 = vrot.slane %v1447_v50, %v11037_v40  ;;  %v5237_v55 = vrot.slane %v1447_v50, %v11045_v41 }
0x17bd   :  { %7593 = vbcast.lane.b32.xlu0 %v7591_v58, 256  ;;  %6422 = vbcast.lane.b32.xlu1 %v6420_v9, 256 }
0x17c1   :  { %7608 = vbcast.lane.b32.xlu0 %v7602_v10, 264  ;;  %6426 = vbcast.lane.b32.xlu1 %v6420_v9, 264 }
0x17c5   :  { %8775 = vbcast.lane.b32.xlu0 %v8773_v59, 256  ;;  %7597 = vbcast.lane.b32.xlu1 %v7591_v58, 264 }
0x17c9   :  { %8790 = vbcast.lane.b32.xlu0 %v8784_v17, 264  ;;  %7604 = vbcast.lane.b32.xlu1 %v7602_v10, 256 }
0x17cd   :  { %9957 = vbcast.lane.b32.xlu0 %v9955_v49, 256  ;;  %8779 = vbcast.lane.b32.xlu1 %v8773_v59, 264 }
0x17d1   :  { %9972 = vbcast.lane.b32.xlu0 %v9966_v51, 264  ;;  %8786 = vbcast.lane.b32.xlu1 %v8784_v17, 256 }
0x17d5   :  { %9961 = vbcast.lane.b32.xlu1 %v9955_v49, 264  ;;  %1508 = vbcast.lane.b32.xlu0 %v1506_v52, 256 }
0x17d9   :  { %9968 = vbcast.lane.b32.xlu1 %v9966_v51, 256  ;;  %1523 = vbcast.lane.b32.xlu0 %v1517_v53, 264 }
0x17dd   :  { %1512 = vbcast.lane.b32.xlu1 %v1506_v52, 264  ;;  %2868 = vbcast.lane.b32.xlu0 %v2862_v54, 264 }
0x17e1   :  { %1519 = vbcast.lane.b32.xlu1 %v1517_v53, 256  ;;  %4050 = vbcast.lane.b32.xlu0 %v4044_v5, 264 }
0x17e5   :  { %2864 = vbcast.lane.b32.xlu1 %v2862_v54, 256  ;;  %5232 = vbcast.lane.b32.xlu0 %v5226_v22, 264 }
0x17e9   :  { %2875 = vbcast.lane.b32.xlu1 %v2873_v27, 256 }
0x17ed   :  { %2879 = vbcast.lane.b32.xlu1 %v2873_v27, 264 }
0x17f1   :  { %4046 = vbcast.lane.b32.xlu1 %v4044_v5, 256 }
0x17f5   :  { %4057 = vbcast.lane.b32.xlu1 %v4055_v44, 256 }
0x17f9   :  { %4061 = vbcast.lane.b32.xlu1 %v4055_v44, 264 }
0x17fd   :  { %5228 = vbcast.lane.b32.xlu1 %v5226_v22, 256 }
0x1801   :  { %5239 = vbcast.lane.b32.xlu1 %v5237_v55, 256 }
0x1805   :  { %5243 = vbcast.lane.b32.xlu1 %v5237_v55, 264 }
0x182b   :  { %v11158_v56 = vpop.permute.xlu0 %6415  ;;  %v11160_v57 = vpop.permute.xlu1 %6411 }
0x182c   :  { %18581 = vst [vmem:[#allocation46_spill] sm:$0xff] %v11158_v56  ;;  %18582 = vst [vmem:[#allocation47_spill] sm:$0xff] %v11160_v57 }
0x182f   :  { %v11162_v30 = vpop.permute.xlu0 %7593  ;;  %v11164_v58 = vpop.permute.xlu1 %6422 }
0x1830   :  { %18583 = vst [vmem:[#allocation48_spill] sm:$0xff] %v11162_v30  ;;  %18584 = vst [vmem:[#allocation49_spill] sm:$0xff] %v11164_v58 }
0x1833   :  { %v11166_v9 = vpop.permute.xlu0 %7608  ;;  %v11168_v10 = vpop.permute.xlu1 %6426 }
0x1834   :  { %18585 = vst [vmem:[#allocation50_spill] sm:$0xff] %v11166_v9  ;;  %18586 = vst [vmem:[#allocation51_spill] sm:$0xff] %v11168_v10 }
0x1837   :  { %v11170_v59 = vpop.permute.xlu0 %8775  ;;  %v11172_v17 = vpop.permute.xlu1 %7597 }
0x1838   :  { %18587 = vst [vmem:[#allocation52_spill] sm:$0xff] %v11170_v59  ;;  %18588 = vst [vmem:[#allocation53_spill] sm:$0xff] %v11172_v17 }
0x183b   :  { %v11174_v19 = vpop.permute.xlu0 %8790  ;;  %v11176_v23 = vpop.permute.xlu1 %7604 }
0x183c   :  { %18589 = vst [vmem:[#allocation54_spill] sm:$0xff] %v11174_v19  ;;  %18590 = vst [vmem:[#allocation55_spill] sm:$0xff] %v11176_v23 }
0x183f   :  { %v11178_v24 = vpop.permute.xlu0 %9957  ;;  %v11180_v49 = vpop.permute.xlu1 %8779 }
0x1840   :  { %18591 = vst [vmem:[#allocation56_spill] sm:$0xff] %v11178_v24  ;;  %18592 = vst [vmem:[#allocation57_spill] sm:$0xff] %v11180_v49 }
0x1843   :  { %v11182_v50 = vpop.permute.xlu0 %9972  ;;  %v11184_v51 = vpop.permute.xlu1 %8786 }
0x1844   :  { %18593 = vst [vmem:[#allocation58_spill] sm:$0xff] %v11182_v50  ;;  %18594 = vst [vmem:[#allocation59_spill] sm:$0xff] %v11184_v51 }
0x1847   :  { %v11186_v52 = vpop.permute.xlu1 %9961  ;;  %v1509_v53 = vpop.permute.xlu0 %1508 }
0x1848   :  { %18595 = vst [vmem:[#allocation60_spill] sm:$0xff] %v11186_v52  ;;  %v1529_v54 = vadd.f32 %v1509_v53, %v11051_v48 }
0x184a   :  { %v11190_v5 = vadd.f32 %v11098_v25, %v1529_v54  ;;  %v11196_v27 = vadd.f32 %v11100_v26, %v1529_v54  ;;  %v11209_v53 = vadd.f32 %v11102_v28, %v1529_v54  ;;  %v11225_v24 = vadd.f32 %v11106_v29, %v1529_v54 }
0x184b   :  { %v11192_v22 = vpop.permute.xlu1 %9968  ;;  %v11233_v21 = vadd.f32 %v11108_v38, %v1529_v54  ;;  %v11241_v51 = vadd.f32 %v11110_v39, %v1529_v54  ;;  %v11249_v19 = vadd.f32 %v11112_v33, %v1529_v54  ;;  %v11257_v23 = vadd.f32 %v11114_v34, %v1529_v54  ;;  %v1524_v10 = vpop.permute.xlu0 %1523 }
0x184c   :  { %18596 = vst [vmem:[#allocation61_spill] sm:$0xff] %v11190_v5  ;;  %18597 = vst [vmem:[#allocation62_spill] sm:$0xff] %v11192_v22  ;;  %1788 = vperm.xlu1 %10670, %v11190_v5   ;;  %v11265_v9 = vadd.f32 %v11116_v42, %v1529_v54  ;;  %v11273_v58 = vadd.f32 %v11118_v43, %v1529_v54 }
0x184d   :  { %18598 = vst [vmem:[#allocation63_spill] sm:$0xff] %v11196_v27  ;;  %18601 = vst [vmem:[#allocation66_spill] sm:$0xff] %v11209_v53 }
0x184e   :  { %18605 = vst [vmem:[#allocation70_spill] sm:$0xff] %v11225_v24  ;;  %18607 = vst [vmem:[#allocation72_spill] sm:$0xff] %v11233_v21 }
0x184f   :  { %v1513_v44 = vpop.permute.xlu1 %1512  ;;  %18609 = vst [vmem:[#allocation74_spill] sm:$0xff] %v11241_v51  ;;  %18611 = vst [vmem:[#allocation76_spill] sm:$0xff] %v11249_v19 }
0x1850   :  { %v1530_v55 = vadd.f32 %v1513_v44, %v11063_v61  ;;  %1794 = vperm.xlu1 %10670, %v11196_v27   ;;  %v11217_v61 = vadd.f32 %v11104_v35, %v1529_v54 }
0x1852   :  { %v11201_v47 = vadd.f32 %v11067_v0, %v1530_v55  ;;  %v11204_v48 = vadd.f32 %v11069_v1, %v1530_v55  ;;  %v11212_v22 = vadd.f32 %v11071_v2, %v1530_v55  ;;  %18603 = vst [vmem:[#allocation68_spill] sm:$0xff] %v11217_v61  ;;  %v11220_v44 = vadd.f32 %v11073_v4, %v1530_v55 }
0x1853   :  { %v11228_v50 = vadd.f32 %v11075_v6, %v1530_v55  ;;  %v11236_v52 = vadd.f32 %v11077_v7, %v1530_v55  ;;  %v11244_v59 = vadd.f32 %v11079_v8, %v1530_v55  ;;  %v11252_v49 = vadd.f32 %v11081_v11, %v1530_v55  ;;  %v1520_v56 = vpop.permute.xlu1 %1519 }
0x1854   :  { %18599 = vst [vmem:[#allocation64_spill] sm:$0xff] %v11201_v47  ;;  %18600 = vst [vmem:[#allocation65_spill] sm:$0xff] %v11204_v48  ;;  %1791 = vperm.xlu0 %10671, %v11201_v47   ;;  %1797 = vperm.xlu1 %10670, %v11204_v48   ;;  %v11260_v30 = vadd.f32 %v11083_v13, %v1530_v55  ;;  %v11268_v17 = vadd.f32 %v11085_v14, %v1530_v55 }
0x1855   :  { %18602 = vst [vmem:[#allocation67_spill] sm:$0xff] %v11212_v22  ;;  %18604 = vst [vmem:[#allocation69_spill] sm:$0xff] %v11220_v44  ;;  %v11276_v57 = vadd.f32 %v11087_v16, %v1530_v55 }
0x1856   :  { %18606 = vst [vmem:[#allocation71_spill] sm:$0xff] %v11228_v50  ;;  %18608 = vst [vmem:[#allocation73_spill] sm:$0xff] %v11236_v52 }
0x1857   :  { %18610 = vst [vmem:[#allocation75_spill] sm:$0xff] %v11244_v59  ;;  %18612 = vst [vmem:[#allocation77_spill] sm:$0xff] %v11252_v49  ;;  %v11336_v47 = vpop.permute.xlu1 %2864 }
0x1858   :  { %1800 = vperm.xlu0 %10671, %v11209_v53   ;;  %1803 = vperm.xlu1 %10670, %v11212_v22   ;;  %18625 = vst [vmem:[#allocation90_spill] sm:$0xff] %v11336_v47  ;;  %v11402_v47 = vpop.permute.xlu0 %2868 }
0x1859   :  { %18639 = vst [vmem:[#allocation104_spill] sm:$0xff] %v11402_v47 }
0x185c   :  { %1806 = vperm.xlu0 %10671, %v11217_v61   ;;  %1809 = vperm.xlu1 %10670, %v11220_v44  }
0x1860   :  { %1812 = vperm.xlu0 %10671, %v11225_v24   ;;  %1815 = vperm.xlu1 %10670, %v11228_v50   ;;  %v11286_v50 = vadd.f32 %v11089_v18, %v1530_v55 }
0x1864   :  { %1818 = vperm.xlu0 %10671, %v11233_v21   ;;  %1821 = vperm.xlu1 %10670, %v11236_v52   ;;  %v11283_v52 = vadd.f32 %v11120_v45, %v1529_v54 }
0x1868   :  { %1824 = vperm.xlu0 %10671, %v11241_v51   ;;  %1827 = vperm.xlu1 %10670, %v11244_v59   ;;  %v1531_v59 = vadd.f32 %v1520_v56, %v11065_v63 }
0x186a   :  { %v11291_v44 = vadd.f32 %v11098_v25, %v1531_v59  ;;  %v11299_v63 = vadd.f32 %v11100_v26, %v1531_v59  ;;  %v11307_v56 = vadd.f32 %v11102_v28, %v1531_v59  ;;  %v11315_v54 = vadd.f32 %v11104_v35, %v1531_v59 }
0x186c   :  { %1830 = vperm.xlu0 %10671, %v11249_v19   ;;  %1833 = vperm.xlu1 %10670, %v11252_v49   ;;  %v1532_v49 = vadd.f32 %v1524_v10, %v11096_v62  ;;  %18613 = vst [vmem:[#allocation78_spill] sm:$0xff] %v11291_v44  ;;  %18615 = vst [vmem:[#allocation80_spill] sm:$0xff] %v11299_v63 }
0x186d   :  { %18617 = vst [vmem:[#allocation82_spill] sm:$0xff] %v11307_v56  ;;  %18619 = vst [vmem:[#allocation84_spill] sm:$0xff] %v11315_v54 }
0x186e   :  { %v11294_v22 = vadd.f32 %v11067_v0, %v1532_v49  ;;  %v11302_v62 = vadd.f32 %v11069_v1, %v1532_v49  ;;  %v11310_v10 = vadd.f32 %v11071_v2, %v1532_v49  ;;  %v11318_v55 = vadd.f32 %v11073_v4, %v1532_v49 }
0x186f   :  { %v11334_v48 = vadd.f32 %v11077_v7, %v1532_v49  ;;  %v11344_v5 = vadd.f32 %v11079_v8, %v1532_v49  ;;  %v11390_v28 = vadd.f32 %v11089_v18, %v1532_v49  ;;  %v11445_v8 = vsub.s32 %v10826_v12, %v10989_v60 }
0x1870   :  { %1836 = vperm.xlu0 %10671, %v11257_v23   ;;  %1839 = vperm.xlu1 %10670, %v11260_v30   ;;  %18614 = vst [vmem:[#allocation79_spill] sm:$0xff] %v11294_v22  ;;  %18616 = vst [vmem:[#allocation81_spill] sm:$0xff] %v11302_v62 }
0x1871   :  { %18618 = vst [vmem:[#allocation83_spill] sm:$0xff] %v11310_v10  ;;  %18620 = vst [vmem:[#allocation85_spill] sm:$0xff] %v11318_v55 }
0x1872   :  { %18624 = vst [vmem:[#allocation89_spill] sm:$0xff] %v11334_v48  ;;  %18627 = vst [vmem:[#allocation92_spill] sm:$0xff] %v11344_v5 }
0x1873   :  { %18634 = vst [vmem:[#allocation99_spill] sm:$0xff] %v11390_v28 }
0x1874   :  { %1842 = vperm.xlu0 %10671, %v11265_v9   ;;  %1845 = vperm.xlu1 %10670, %v11268_v17  }
0x1878   :  { %1848 = vperm.xlu0 %10671, %v11273_v58   ;;  %1851 = vperm.xlu1 %10670, %v11276_v57  }
0x187c   :  { %1854 = vperm.xlu0 %10671, %v11283_v52   ;;  %1857 = vperm.xlu1 %10670, %v11286_v50  }
0x1880   :  { %1860 = vperm.xlu0 %10671, %v11291_v44   ;;  %1863 = vperm.xlu1 %10670, %v11294_v22   ;;  %v11326_v22 = vadd.f32 %v11075_v6, %v1532_v49 }
0x1882   :  { %18622 = vst [vmem:[#allocation87_spill] sm:$0xff] %v11326_v22 }
0x1884   :  { %1866 = vperm.xlu0 %10671, %v11299_v63   ;;  %1869 = vperm.xlu1 %10670, %v11302_v62   ;;  %v11323_v62 = vadd.f32 %v11106_v29, %v1531_v59  ;;  %v11354_v29 = vadd.f32 %v11081_v11, %v1532_v49  ;;  %v1935_v63 = vadd.s32 4294967288, %v10826_v12 }
0x1886   :  { %18621 = vst [vmem:[#allocation86_spill] sm:$0xff] %v11323_v62  ;;  %18630 = vst [vmem:[#allocation95_spill] sm:$0xff] %v11354_v29  ;;  %v11448_v19 = vsub.s32 %v1935_v63, %v10989_v60 }
0x1888   :  { %1872 = vperm.xlu0 %10671, %v11307_v56   ;;  %1875 = vperm.xlu1 %10670, %v11310_v10   ;;  %v11331_v10 = vadd.f32 %v11108_v38, %v1531_v59  ;;  %v11351_v38 = vadd.f32 %v11112_v33, %v1531_v59  ;;  %v11382_v33 = vadd.f32 %v11087_v16, %v1532_v49 }
0x188a   :  { %18623 = vst [vmem:[#allocation88_spill] sm:$0xff] %v11331_v10  ;;  %18629 = vst [vmem:[#allocation94_spill] sm:$0xff] %v11351_v38 }
0x188c   :  { %1878 = vperm.xlu0 %10671, %v11315_v54   ;;  %1881 = vperm.xlu1 %10670, %v11318_v55   ;;  %v11341_v55 = vadd.f32 %v11110_v39, %v1531_v59  ;;  %v11362_v39 = vadd.f32 %v11083_v13, %v1532_v49 }
0x188e   :  { %18626 = vst [vmem:[#allocation91_spill] sm:$0xff] %v11341_v55 }
0x1890   :  { %1884 = vperm.xlu0 %10671, %v11323_v62   ;;  %1887 = vperm.xlu1 %10670, %v11326_v22   ;;  %v11348_v22 = vpop.permute.xlu1 %2875 }
0x1891   :  { %18628 = vst [vmem:[#allocation93_spill] sm:$0xff] %v11348_v22  ;;  %v11372_v22 = vadd.f32 %v11085_v14, %v1532_v49 }
0x1894   :  { %1890 = vperm.xlu0 %10671, %v11331_v10   ;;  %1893 = vperm.xlu1 %10670, %v11334_v48   ;;  %v11359_v48 = vadd.f32 %v11114_v34, %v1531_v59  ;;  %v11364_v35 = vpop.permute.xlu1 %2879  ;;  %v11379_v34 = vadd.f32 %v11118_v43, %v1531_v59 }
0x1895   :  { %18631 = vst [vmem:[#allocation96_spill] sm:$0xff] %v11364_v35 }
0x1898   :  { %1896 = vperm.xlu0 %10671, %v11341_v55   ;;  %1899 = vperm.xlu1 %10670, %v11344_v5   ;;  %v11369_v5 = vadd.f32 %v11116_v42, %v1531_v59  ;;  %v11387_v42 = vadd.f32 %v11120_v45, %v1531_v59  ;;  %v11406_v59 = vpop.permute.xlu0 %4050 }
0x1899   :  { %18641 = vst [vmem:[#allocation106_spill] sm:$0xff] %v11406_v59 }
0x189a   :  { %18633 = vst [vmem:[#allocation98_spill] sm:$0xff] %v11387_v42 }
0x189c   :  { %1902 = vperm.xlu0 %10671, %v11351_v38   ;;  %1905 = vperm.xlu1 %10670, %v11354_v29   ;;  %v11376_v29 = vpop.permute.xlu1 %4046  ;;  %v11410_v45 = vpop.permute.xlu0 %5232 }
0x189d   :  { %18632 = vst [vmem:[#allocation97_spill] sm:$0xff] %v11376_v29  ;;  %18642 = vst [vmem:[#allocation107_spill] sm:$0xff] %v11410_v45 }
0x18a0   :  { %1908 = vperm.xlu0 %10671, %v11359_v48   ;;  %1911 = vperm.xlu1 %10670, %v11362_v39   ;;  %v11392_v26 = vpop.permute.xlu1 %4057 }
0x18a1   :  { %18635 = vst [vmem:[#allocation100_spill] sm:$0xff] %v11392_v26 }
0x18a4   :  { %1914 = vperm.xlu0 %10671, %v11369_v5   ;;  %1917 = vperm.xlu1 %10670, %v11372_v22   ;;  %v11396_v29 = vpop.permute.xlu1 %4061 }
0x18a5   :  { %18636 = vst [vmem:[#allocation101_spill] sm:$0xff] %v11396_v29 }
0x18a8   :  { %1920 = vperm.xlu0 %10671, %v11379_v34   ;;  %1923 = vperm.xlu1 %10670, %v11382_v33   ;;  %v11398_v43 = vpop.permute.xlu1 %5228 }
0x18a9   :  { %18637 = vst [vmem:[#allocation102_spill] sm:$0xff] %v11398_v43 }
0x18ac   :  { %1926 = vperm.xlu0 %10671, %v11387_v42   ;;  %1929 = vperm.xlu1 %10670, %v11390_v28   ;;  %v11400_v25 = vpop.permute.xlu1 %5239 }
0x18ad   :  { %18638 = vst [vmem:[#allocation103_spill] sm:$0xff] %v11400_v25 }
0x18b0   :  { %v11404_v38 = vpop.permute.xlu1 %5243 }
0x18b1   :  { %18640 = vst [vmem:[#allocation105_spill] sm:$0xff] %v11404_v38 }
0x18c7   :  { %v11408_v49 = vpop.permute.xlu1 %1788 }
0x18c8   :  { %v1934_v53 = vrot.slane %v11408_v49, %v11445_v8 }
0x18cb   :  { %v11412_v26 = vpop.permute.xlu1 %1794 }
0x18cc   :  { %v1945_v0 = vrot.slane %v11412_v26, %v11445_v8 }
0x18cf   :  { %v11414_v55 = vpop.permute.xlu1 %1797  ;;  %v11416_v10 = vpop.permute.xlu0 %1791 }
0x18d3   :  { %v11418_v29 = vpop.permute.xlu1 %1803  ;;  %v11420_v43 = vpop.permute.xlu0 %1800 }
0x18d4   :  { %v1958_v2 = vrot.slane %v11418_v29, %v11448_v19  ;;  %v1954_v31 = vrot.slane %v11420_v43, %v11445_v8 }
0x18d6   :  { %v1959_v27 = vsel %vm1940_vm14, %v1958_v2, %v1954_v31 }
0x18d7   :  { %v11422_v25 = vpop.permute.xlu1 %1809  ;;  %v11424_v18 = vpop.permute.xlu0 %1806 }
0x18db   :  { %v11426_v38 = vpop.permute.xlu1 %1815  ;;  %v11428_v59 = vpop.permute.xlu0 %1812 }
0x18dc   :  { %v1976_v47 = vrot.slane %v11426_v38, %v11448_v19  ;;  %v1972_v49 = vrot.slane %v11428_v59, %v11445_v8 }
0x18df   :  { %v11430_v35 = vpop.permute.xlu1 %1821  ;;  %v11432_v45 = vpop.permute.xlu0 %1818 }
0x18e0   :  { %v1985_v31 = vrot.slane %v11430_v35, %v11448_v19  ;;  %v1981_v2 = vrot.slane %v11432_v45, %v11445_v8 }
0x18e3   :  { %v11434_v62 = vpop.permute.xlu1 %1827  ;;  %v11436_v16 = vpop.permute.xlu0 %1824 }
0x18e7   :  { %v11438_v54 = vpop.permute.xlu1 %1833  ;;  %v11440_v14 = vpop.permute.xlu0 %1830 }
0x18eb   :  { %v1840_v56 = vpop.permute.xlu1 %1839  ;;  %v1837_v13 = vpop.permute.xlu0 %1836 }
0x18ec   :  { %v2012_v15 = vrot.slane %v1840_v56, %v11448_v19  ;;  %v2008_v21 = vrot.slane %v1837_v13, %v11445_v8 }
0x18ef   :  { %v1846_v11 = vpop.permute.xlu1 %1845  ;;  %v1843_v44 = vpop.permute.xlu0 %1842 }
0x18f0   :  { %v2021_v7 = vrot.slane %v1846_v11, %v11448_v19  ;;  %v2017_v41 = vrot.slane %v1843_v44, %v11445_v8  ;;  %v2013_v11 = vsel %vm1940_vm14, %v2012_v15, %v2008_v21 }
0x18f2   :  { %v2022_v12 = vsel %vm1940_vm14, %v2021_v7, %v2017_v41 }
0x18f3   :  { %v1852_v51 = vpop.permute.xlu1 %1851  ;;  %v1849_v6 = vpop.permute.xlu0 %1848  ;;  %v2163_v13 = vsel %vm2149_vm15, %v2022_v12, %v2013_v11 }
0x18f4   :  { %v2030_v4 = vrot.slane %v1852_v51, %v11448_v19  ;;  %v2026_v40 = vrot.slane %v1849_v6, %v11445_v8 }
0x18f6   :  { %v2031_v60 = vsel %vm1940_vm14, %v2030_v4, %v2026_v40 }
0x18f7   :  { %v1858_v63 = vpop.permute.xlu1 %1857  ;;  %v1855_v24 = vpop.permute.xlu0 %1854  ;;  %v2164_v51 = vsel %vm2151_vm0, %v2031_v60, %v2163_v13 }
0x18f8   :  { %v2039_v44 = vrot.slane %v1858_v63, %v11448_v19  ;;  %v2035_v56 = vrot.slane %v1855_v24, %v11445_v8 }
0x18fa   :  { %v2040_v6 = vsel %vm1940_vm14, %v2039_v44, %v2035_v56 }
0x18fb   :  { %v11464_v41 = vpop.permute.xlu1 %1863  ;;  %v11466_v40 = vpop.permute.xlu0 %1860  ;;  %v2165_v4 = vsel %vm2153_vm1, %v2040_v6, %v2164_v51 }
0x18fc   :  { %v2183_v15 = vsel %vm1492_vm13, %v2165_v4, -inf  ;;  %v1949_v4 = vrot.slane %v11414_v55, %v11448_v19  ;;  %v1967_v55 = vrot.slane %v11422_v25, %v11448_v19  ;;  %v2048_v35 = vrot.slane %v11464_v41, %v11448_v19 }
0x18fd   :  { %2184 = vmax.xlane.f32.xlu1 %v2183_v15  ;;  %v1939_v15 = vrot.slane %v11416_v10, %v11448_v19  ;;  %v1963_v10 = vrot.slane %v11424_v18, %v11445_v8  ;;  %v2044_v45 = vrot.slane %v11466_v40, %v11445_v8  ;;  %v1986_v40 = vsel %vm1940_vm14, %v1985_v31, %v1981_v2 }
0x18fe   :  { %v1950_v29 = vsel %vm1940_vm14, %v1949_v4, %v1945_v0  ;;  %v1994_v4 = vrot.slane %v11434_v62, %v11448_v19 }
0x18ff   :  { %v11470_v7 = vpop.permute.xlu1 %1869  ;;  %v11472_v21 = vpop.permute.xlu0 %1866  ;;  %v1941_v43 = vsel %vm1940_vm14, %v1939_v15, %v1934_v53  ;;  %v1968_v28 = vsel %vm1940_vm14, %v1967_v55, %v1963_v10  ;;  %v1977_v53 = vsel %vm1940_vm14, %v1976_v47, %v1972_v49  ;;  %v1990_v15 = vrot.slane %v11436_v16, %v11445_v8 }
0x1900   :  { %v2150_v25 = vsel %vm2149_vm15, %v1950_v29, %v1941_v43  ;;  %v2057_v47 = vrot.slane %v11470_v7, %v11448_v19  ;;  %v2053_v62 = vrot.slane %v11472_v21, %v11445_v8 }
0x1901   :  { %v2152_v18 = vsel %vm2151_vm0, %v1959_v27, %v2150_v25  ;;  %v2003_v27 = vrot.slane %v11438_v54, %v11448_v19  ;;  %v1995_v43 = vsel %vm1940_vm14, %v1994_v4, %v1990_v15 }
0x1902   :  { %v2154_v0 = vsel %vm2153_vm1, %v1968_v28, %v2152_v18  ;;  %v1999_v28 = vrot.slane %v11440_v14, %v11445_v8 }
0x1903   :  { %v11474_v24 = vpop.permute.xlu1 %1875  ;;  %v11476_v12 = vpop.permute.xlu0 %1872  ;;  %v2156_v41 = vsel %vm2155_vm2, %v1977_v53, %v2154_v0  ;;  %v2049_v0 = vsel %vm1940_vm14, %v2048_v35, %v2044_v45 }
0x1904   :  { %v2066_v16 = vrot.slane %v11474_v24, %v11448_v19  ;;  %v2062_v54 = vrot.slane %v11476_v12, %v11445_v8  ;;  %v2004_v18 = vsel %vm1940_vm14, %v2003_v27, %v1999_v28 }
0x1907   :  { %v11478_v63 = vpop.permute.xlu1 %1881  ;;  %v11480_v60 = vpop.permute.xlu0 %1878 }
0x1908   :  { %v2075_v49 = vrot.slane %v11478_v63, %v11448_v19  ;;  %v2071_v25 = vrot.slane %v11480_v60, %v11445_v8 }
0x190b   :  { %v11482_v11 = vpop.permute.xlu1 %1887  ;;  %v11484_v44 = vpop.permute.xlu0 %1884 }
0x190c   :  { %v2084_v31 = vrot.slane %v11482_v11, %v11448_v19  ;;  %v2080_v2 = vrot.slane %v11484_v44, %v11445_v8  ;;  %v2076_v11 = vsel %vm1940_vm14, %v2075_v49, %v2071_v25 }
0x190f   :  { %v11486_v56 = vpop.permute.xlu1 %1893  ;;  %v11488_v13 = vpop.permute.xlu0 %1890 }
0x1910   :  { %v2093_v63 = vrot.slane %v11486_v56, %v11448_v19  ;;  %v2089_v4 = vrot.slane %v11488_v13, %v11445_v8 }
0x1913   :  { %v11490_v6 = vpop.permute.xlu1 %1899  ;;  %v11492_v51 = vpop.permute.xlu0 %1896 }
0x1914   :  { %v2102_v44 = vrot.slane %v11490_v6, %v11448_v19  ;;  %v2098_v56 = vrot.slane %v11492_v51, %v11445_v8  ;;  %v2158_v51 = vsel %vm2157_vm3, %v1986_v40, %v2156_v41 }
0x1917   :  { %v11502_v61 = vpop.permute.xlu1 %1905  ;;  %v11504_v1 = vpop.permute.xlu0 %1902 }
0x1918   :  { %v2111_v45 = vrot.slane %v11502_v61, %v11448_v19  ;;  %v2107_v13 = vrot.slane %v11504_v1, %v11445_v8  ;;  %v2160_v1 = vsel %vm2159_vm4, %v1995_v43, %v2158_v51 }
0x191b   :  { %v1912_v42 = vpop.permute.xlu1 %1911  ;;  %v1909_v26 = vpop.permute.xlu0 %1908 }
0x191c   :  { %v2120_v7 = vrot.slane %v1912_v42, %v11448_v19  ;;  %v2116_v21 = vrot.slane %v1909_v26, %v11445_v8  ;;  %v2058_v42 = vsel %vm1940_vm14, %v2057_v47, %v2053_v62  ;;  %v2067_v26 = vsel %vm1940_vm14, %v2066_v16, %v2062_v54 }
0x191d   :  { %v2166_v16 = vsel %vm2149_vm15, %v2058_v42, %v2049_v0  ;;  %v2085_v54 = vsel %vm1940_vm14, %v2084_v31, %v2080_v2 }
0x191e   :  { %v2121_v15 = vsel %vm1940_vm14, %v2120_v7, %v2116_v21  ;;  %v2162_v7 = vsel %vm2161_vm5, %v2004_v18, %v2160_v1  ;;  %v18654_v1 = vld [vmem:[#allocation20_spill] sm:$0xff] }
0x191f   :  { %v1918_v38 = vpop.permute.xlu1 %1917  ;;  %v1915_v59 = vpop.permute.xlu0 %1914  ;;  %v2180_v40 = vsel %vm1488_vm12, %v2162_v7, -inf  ;;  %v18656_v7 = vld [vmem:[#allocation70_spill] sm:$0xff] }
0x1920   :  { %v2129_v14 = vrot.slane %v1918_v38, %v11448_v19  ;;  %v2125_v55 = vrot.slane %v1915_v59, %v11445_v8 }
0x1922   :  { %v2130_v53 = vsel %vm1940_vm14, %v2129_v14, %v2125_v55  ;;  %v2167_v14 = vsel %vm2151_vm0, %v2067_v26, %v2166_v16  ;;  %v2094_v55 = vsel %vm1940_vm14, %v2093_v63, %v2089_v4 }
0x1923   :  { %v1924_v10 = vpop.permute.xlu1 %1923  ;;  %v1921_v29 = vpop.permute.xlu0 %1920  ;;  %v2173_v35 = vsel %vm2149_vm15, %v2130_v53, %v2121_v15  ;;  %v18643_v15 = vld [vmem:[#allocation99_spill] sm:$0xff] }
0x1924   :  { %v2138_v24 = vrot.slane %v1924_v10, %v11448_v19  ;;  %v2134_v12 = vrot.slane %v1921_v29, %v11445_v8  ;;  %v2168_v10 = vsel %vm2153_vm1, %v2076_v11, %v2167_v14  ;;  %v2103_v29 = vsel %vm1940_vm14, %v2102_v44, %v2098_v56  ;;  %v18646_v56 = vld [vmem:[#allocation63_spill] sm:$0xff]  ;;  %v18652_v14 = vld [vmem:[#allocation68_spill] sm:$0xff] }
0x1925   :  { %v2169_v21 = vsel %vm2155_vm2, %v2085_v54, %v2168_v10  ;;  %v18650_v54 = vld [vmem:[#allocation19_spill] sm:$0xff] }
0x1926   :  { %v2139_v60 = vsel %vm1940_vm14, %v2138_v24, %v2134_v12  ;;  %v2112_v24 = vsel %vm1940_vm14, %v2111_v45, %v2107_v13  ;;  %v2170_v41 = vsel %vm2157_vm3, %v2094_v55, %v2169_v21  ;;  %v18647_v45 = vld [vmem:[#allocation18_spill] sm:$0xff]  ;;  %v18657_v21 = vld [vmem:[#allocation15_spill] sm:$0xff] }
0x1927   :  { %v1930_v38 = vpop.permute.xlu1 %1929  ;;  %v1927_v59 = vpop.permute.xlu0 %1926  ;;  %v2174_v62 = vsel %vm2151_vm0, %v2139_v60, %v2173_v35  ;;  %v2171_v12 = vsel %vm2159_vm4, %v2103_v29, %v2170_v41  ;;  %v18653_v55 = vld [vmem:[#allocation14_spill] sm:$0xff]  ;;  %v18658_v41 = vld [vmem:[#allocation21_spill] sm:$0xff] }
0x1928   :  { %v2147_v27 = vrot.slane %v1930_v38, %v11448_v19  ;;  %v2143_v28 = vrot.slane %v1927_v59, %v11445_v8  ;;  %v2172_v43 = vsel %vm2161_vm5, %v2112_v24, %v2171_v12 }
0x1929   :  { %v2186_v49 = vsel %vm1488_vm12, %v2172_v43, -inf  ;;  %v18660_v43 = vld [vmem:[#allocation72_spill] sm:$0xff] }
0x192a   :  { %v2148_v47 = vsel %vm1940_vm14, %v2147_v27, %v2143_v28  ;;  %v18644_v27 = vld [vmem:[#allocation98_spill] sm:$0xff] }
0x192b   :  { %v2175_v6 = vsel %vm2153_vm1, %v2148_v47, %v2174_v62  ;;  %v18649_v62 = vld [vmem:[#allocation66_spill] sm:$0xff] }
0x192c   :  { %v2189_v61 = vsel %vm1492_vm13, %v2175_v6, -inf }
0x192d   :  { %2190 = vmax.xlane.f32.xlu0 %v2189_v61 }
0x1931   :  { %2181 = vmax.xlane.f32.xlu0 %v2180_v40 }
0x1935   :  { %2187 = vmax.xlane.f32.xlu0 %v2186_v49  ;;  %v18661_v49 = vld [vmem:[#allocation16_spill] sm:$0xff] }
0x1986   :  { %v2185_v25 = vpop.xlane.xlu1 %2184 }
0x1987   :  { %v2231_v0 = vrot.slane %v2185_v25, %v10994_v3  ;;  %v2235_v18 = vrot.slane %v2185_v25, %v11021_v32  ;;  %v2239_v53 = vrot.slane %v2185_v25, %v11025_v36 }
0x1989   :  { %vm2333_vm6 = vcmp.eq.f32.partialorder %v11260_v30, %v2231_v0  ;;  %vm2332_vm7 = vcmp.eq.f32.partialorder %v11257_v23, %v2231_v0  ;;  %vm2335_vm8 = vcmp.eq.f32.partialorder %v11268_v17, %v2235_v18  ;;  %vm2334_vm9 = vcmp.eq.f32.partialorder %v11265_v9, %v2235_v18  ;;  %v18662_v0 = vld [vmem:[#allocation22_spill] sm:$0xff] }
0x198a   :  { %v2388_v42 = vsel %vm2333_vm6, %v11091_v20, 12  ;;  %v2387_v26 = vsel %vm2332_vm7, %v11122_v46, 12  ;;  %v2390_v31 = vsel %vm2335_vm8, %v11091_v20, 12  ;;  %v2389_v2 = vsel %vm2334_vm9, %v11122_v46, 12 }
0x198b   :  { %2471 = vperm.xlu1 %10670, %v2388_v42   ;;  %2468 = vperm.xlu0 %10671, %v2387_v26   ;;  %vm2337_vm10 = vcmp.eq.f32.partialorder %v11276_v57, %v2239_v53  ;;  %vm2336_vm11 = vcmp.eq.f32.partialorder %v11273_v58, %v2239_v53  ;;  %v2243_v30 = vrot.slane %v2185_v25, %v11029_v37  ;;  %v18664_v26 = vld [vmem:[#allocation74_spill] sm:$0xff]  ;;  %v18665_v53 = vld [vmem:[#allocation17_spill] sm:$0xff] }
0x198c   :  { %v2392_v23 = vsel %vm2337_vm10, %v11091_v20, 12  ;;  %v2391_v17 = vsel %vm2336_vm11, %v11122_v46, 12 }
0x198d   :  { %vm2339_vm6 = vcmp.eq.f32.partialorder %v11286_v50, %v2243_v30  ;;  %vm2338_vm7 = vcmp.eq.f32.partialorder %v11283_v52, %v2243_v30  ;;  %v18666_v30 = vld [vmem:[#allocation23_spill] sm:$0xff] }
0x198e   :  { %v2394_v9 = vsel %vm2339_vm6, %v11091_v20, 12  ;;  %v2393_v63 = vsel %vm2338_vm7, %v11122_v46, 12 }
0x198f   :  { %2477 = vperm.xlu1 %10670, %v2390_v31   ;;  %2474 = vperm.xlu0 %10671, %v2389_v2  }
0x1993   :  { %2483 = vperm.xlu1 %10670, %v2392_v23   ;;  %2480 = vperm.xlu0 %10671, %v2391_v17  }
0x1997   :  { %2489 = vperm.xlu1 %10670, %v2394_v9   ;;  %2486 = vperm.xlu0 %10671, %v2393_v63   ;;  %v18668_v9 = vld [vmem:[#allocation76_spill] sm:$0xff] }
0x19b6   :  { %v11630_v57 = vpop.xlane.xlu0 %2190 }
0x19b7   :  { %v2279_v58 = vrot.slane %v11630_v57, %v10994_v3  ;;  %v2283_v60 = vrot.slane %v11630_v57, %v11021_v32  ;;  %v2287_v38 = vrot.slane %v11630_v57, %v11025_v36 }
0x19b9   :  { %vm2357_vm8 = vcmp.eq.f32.partialorder %v11362_v39, %v2279_v58  ;;  %vm2356_vm9 = vcmp.eq.f32.partialorder %v11359_v48, %v2279_v58  ;;  %vm2359_vm10 = vcmp.eq.f32.partialorder %v11372_v22, %v2283_v60  ;;  %vm2358_vm11 = vcmp.eq.f32.partialorder %v11369_v5, %v2283_v60  ;;  %v18669_v58 = vld [vmem:[#allocation24_spill] sm:$0xff] }
0x19ba   :  { %v2412_v50 = vsel %vm2357_vm8, %v11091_v20, 12  ;;  %v2411_v52 = vsel %vm2356_vm9, %v11122_v46, 12  ;;  %v2414_v59 = vsel %vm2359_vm10, %v11091_v20, 12  ;;  %v2413_v4 = vsel %vm2358_vm11, %v11122_v46, 12  ;;  %v11650_v48 = vpop.xlane.xlu0 %2181 }
0x19bb   :  { %2543 = vperm.xlu1 %10670, %v2412_v50   ;;  %2540 = vperm.xlu0 %10671, %v2411_v52   ;;  %vm2361_vm6 = vcmp.eq.f32.partialorder %v11382_v33, %v2287_v38  ;;  %vm2360_vm7 = vcmp.eq.f32.partialorder %v11379_v34, %v2287_v38  ;;  %v2291_v39 = vrot.slane %v11630_v57, %v11029_v37  ;;  %v18645_v34 = vld [vmem:[#allocation104_spill] sm:$0xff]  ;;  %v18671_v52 = vld [vmem:[#allocation78_spill] sm:$0xff] }
0x19bc   :  { %v2416_v5 = vsel %vm2361_vm6, %v11091_v20, 12  ;;  %v2415_v22 = vsel %vm2360_vm7, %v11122_v46, 12  ;;  %v11658_v33 = vrot.slane %v11650_v48, %v11021_v32  ;;  %v11661_v28 = vadd.f32 %v18645_v34, %v2185_v25 }
0x19bd   :  { %vm2363_vm8 = vcmp.eq.f32.partialorder %v18643_v15, %v2291_v39  ;;  %vm2362_vm9 = vcmp.eq.f32.partialorder %v18644_v27, %v2291_v39  ;;  %v11669_v35 = vrot.slane %v11650_v48, %v11025_v36  ;;  %v11681_v16 = vrot.slane %v11650_v48, %v11029_v37  ;;  %v18675_v15 = vld [vmem:[#allocation26_spill] sm:$0xff] }
0x19be   :  { %v2418_v11 = vsel %vm2363_vm8, %v11091_v20, 12  ;;  %v2417_v44 = vsel %vm2362_vm9, %v11122_v46, 12  ;;  %vm2318_vm10 = vcmp.eq.f32.partialorder %v18646_v56, %v11658_v33  ;;  %v11673_v13 = vadd.f32 %v11661_v28, %v18647_v45  ;;  %v11731_v2 = vpop.xlane.xlu0 %2187  ;;  %v18678_v56 = vld [vmem:[#allocation27_spill] sm:$0xff] }
0x19bf   :  { %2549 = vperm.xlu1 %10670, %v2414_v59   ;;  %2546 = vperm.xlu0 %10671, %v2413_v4   ;;  %v2373_v47 = vsel %vm2318_vm10, %v11122_v46, 12  ;;  %vm2320_vm11 = vcmp.eq.f32.partialorder %v18649_v62, %v11669_v35  ;;  %v11685_v6 = vadd.f32 %v11661_v28, %v18650_v54  ;;  %vm2322_vm6 = vcmp.eq.f32.partialorder %v18652_v14, %v11681_v16  ;;  %v18672_v59 = vld [vmem:[#allocation25_spill] sm:$0xff] }
0x19c0   :  { %18648 = vst [vmem:[#allocation99_spill] sm:$0xff] %v11673_v13  ;;  %v2375_v51 = vsel %vm2320_vm11, %v11122_v46, 12  ;;  %v11693_v61 = vrot.slane %v11650_v48, %v18653_v55  ;;  %v11697_v10 = vadd.f32 %v11661_v28, %v18654_v1  ;;  %v2377_v29 = vsel %vm2322_vm6, %v11122_v46, 12 }
0x19c1   :  { %18651 = vst [vmem:[#allocation98_spill] sm:$0xff] %v11685_v6  ;;  %v11705_v24 = vrot.slane %v11650_v48, %v18657_v21  ;;  %v11709_v40 = vadd.f32 %v11661_v28, %v18658_v41  ;;  %v11717_v25 = vrot.slane %v11650_v48, %v18661_v49  ;;  %v11721_v18 = vadd.f32 %v11661_v28, %v18662_v0 }
0x19c2   :  { %18655 = vst [vmem:[#allocation104_spill] sm:$0xff] %v11697_v10  ;;  %vm2324_vm7 = vcmp.eq.f32.partialorder %v18656_v7, %v11693_v61  ;;  %v11729_v31 = vrot.slane %v11650_v48, %v18665_v53  ;;  %v11735_v23 = vadd.f32 %v11661_v28, %v18666_v30  ;;  %v11743_v63 = vrot.slane %v11731_v2, %v10994_v3 }
0x19c3   :  { %2555 = vperm.xlu1 %10670, %v2416_v5   ;;  %2552 = vperm.xlu0 %10671, %v2415_v22   ;;  %18659 = vst [vmem:[#allocation63_spill] sm:$0xff] %v11709_v40  ;;  %v2379_v12 = vsel %vm2324_vm7, %v11122_v46, 12  ;;  %vm2326_vm8 = vcmp.eq.f32.partialorder %v18660_v43, %v11705_v24  ;;  %18663 = vst [vmem:[#allocation66_spill] sm:$0xff] %v11721_v18  ;;  %vm2328_vm9 = vcmp.eq.f32.partialorder %v18664_v26, %v11717_v25  ;;  %v18674_v5 = vld [vmem:[#allocation80_spill] sm:$0xff]  ;;  %v18683_v43 = vld [vmem:[#allocation86_spill] sm:$0xff] }
0x19c4   :  { %v2381_v42 = vsel %vm2326_vm8, %v11122_v46, 12  ;;  %18667 = vst [vmem:[#allocation68_spill] sm:$0xff] %v11735_v23  ;;  %v2383_v17 = vsel %vm2328_vm9, %v11122_v46, 12  ;;  %vm2330_vm10 = vcmp.eq.f32.partialorder %v18668_v9, %v11729_v31  ;;  %v11747_v60 = vadd.f32 %v11661_v28, %v18669_v58  ;;  %v18684_v26 = vld [vmem:[#allocation96_spill] sm:$0xff]  ;;  %v18685_v9 = vld [vmem:[#allocation29_spill] sm:$0xff] }
0x19c5   :  { %v2385_v50 = vsel %vm2330_vm10, %v11122_v46, 12  ;;  %vm2340_vm11 = vcmp.eq.f32.partialorder %v18671_v52, %v11743_v63  ;;  %v11755_v38 = vrot.slane %v11731_v2, %v11021_v32  ;;  %v11759_v4 = vadd.f32 %v11661_v28, %v18672_v59 }
0x19c6   :  { %18670 = vst [vmem:[#allocation70_spill] sm:$0xff] %v11747_v60  ;;  %v2395_v39 = vsel %vm2340_vm11, %v11122_v46, 12  ;;  %v11767_v22 = vrot.slane %v11731_v2, %v11025_v36  ;;  %v11771_v27 = vadd.f32 %v11661_v28, %v18675_v15  ;;  %v11791_v14 = vrot.slane %v11731_v2, %v18653_v55 }
0x19c7   :  { %2561 = vperm.xlu1 %10670, %v2418_v11   ;;  %2558 = vperm.xlu0 %10671, %v2417_v44   ;;  %18673 = vst [vmem:[#allocation72_spill] sm:$0xff] %v11759_v4  ;;  %vm2342_vm6 = vcmp.eq.f32.partialorder %v18674_v5, %v11755_v38  ;;  %v18677_v11 = vld [vmem:[#allocation82_spill] sm:$0xff]  ;;  %v11779_v44 = vrot.slane %v11731_v2, %v11029_v37 }
0x19c8   :  { %18676 = vst [vmem:[#allocation74_spill] sm:$0xff] %v11771_v27  ;;  %v2397_v34 = vsel %vm2342_vm6, %v11122_v46, 12  ;;  %vm2344_vm7 = vcmp.eq.f32.partialorder %v18677_v11, %v11767_v22  ;;  %vm2348_vm9 = vcmp.eq.f32.partialorder %v18683_v43, %v11791_v14  ;;  %v11817_v5 = vrot.slane %v11731_v2, %v18661_v49  ;;  %v18692_v43 = vld [vmem:[#allocation90_spill] sm:$0xff]  ;;  %v18721_v49 = vld [vmem:[#allocation61_spill] sm:$0xff] }
0x19c9   :  { %v2399_v62 = vsel %vm2344_vm7, %v11122_v46, 12  ;;  %v2403_v52 = vsel %vm2348_vm9, %v11122_v46, 12  ;;  %v11828_v11 = vrot.slane %v11731_v2, %v18665_v53  ;;  %v18719_v53 = vld [vmem:[#allocation40_spill] sm:$0xff] }
0x19cb   :  { %2989 = vperm.xlu1 %10670, %v11673_v13   ;;  %2426 = vperm.xlu0 %10671, %v2373_v47   ;;  %v11783_v47 = vadd.f32 %v11661_v28, %v18678_v56 }
0x19cd   :  { %18679 = vst [vmem:[#allocation76_spill] sm:$0xff] %v11783_v47 }
0x19cf   :  { %2995 = vperm.xlu1 %10670, %v11685_v6   ;;  %2432 = vperm.xlu0 %10671, %v2375_v51   ;;  %v18680_v51 = vld [vmem:[#allocation84_spill] sm:$0xff]  ;;  %v18713_v6 = vld [vmem:[#allocation38_spill] sm:$0xff] }
0x19d0   :  { %vm2346_vm8 = vcmp.eq.f32.partialorder %v18680_v51, %v11779_v44 }
0x19d3   :  { %3001 = vperm.xlu1 %10670, %v11697_v10   ;;  %2438 = vperm.xlu0 %10671, %v2377_v29   ;;  %v18681_v29 = vld [vmem:[#allocation28_spill] sm:$0xff] }
0x19d4   :  { %v11795_v7 = vadd.f32 %v11661_v28, %v18681_v29 }
0x19d6   :  { %18682 = vst [vmem:[#allocation78_spill] sm:$0xff] %v11795_v7 }
0x19d7   :  { %3007 = vperm.xlu1 %10670, %v11709_v40   ;;  %2444 = vperm.xlu0 %10671, %v2379_v12   ;;  %v2401_v12 = vsel %vm2346_vm8, %v11122_v46, 12  ;;  %v18710_v40 = vld [vmem:[#allocation37_spill] sm:$0xff] }
0x19db   :  { %3013 = vperm.xlu1 %10670, %v11721_v18   ;;  %2450 = vperm.xlu0 %10671, %v2381_v42   ;;  %v11803_v42 = vrot.slane %v11731_v2, %v18657_v21  ;;  %v18725_v21 = vld [vmem:[#allocation42_spill] sm:$0xff] }
0x19df   :  { %3019 = vperm.xlu1 %10670, %v11735_v23   ;;  %2456 = vperm.xlu0 %10671, %v2383_v17   ;;  %v2888_v17 = vadd.f32 %v18684_v26, %v11630_v57  ;;  %v2885_v26 = vadd.f32 %v18692_v43, %v11650_v48  ;;  %v18707_v23 = vld [vmem:[#allocation36_spill] sm:$0xff] }
0x19e1   :  { %v11880_v18 = vadd.f32 %v2885_v26, %v18707_v23  ;;  %v11888_v10 = vadd.f32 %v2885_v26, %v18710_v40 }
0x19e3   :  { %3025 = vperm.xlu1 %10670, %v11747_v60   ;;  %2462 = vperm.xlu0 %10671, %v2385_v50   ;;  %v11809_v50 = vadd.f32 %v11661_v28, %v18685_v9  ;;  %v18689_v28 = vld [vmem:[#allocation91_spill] sm:$0xff]  ;;  %18708 = vst [vmem:[#allocation112_spill] sm:$0xff] %v11880_v18  ;;  %18711 = vst [vmem:[#allocation114_spill] sm:$0xff] %v11888_v10 }
0x19e4   :  { %vm2352_vm11 = vcmp.eq.f32.partialorder %v18689_v28, %v11817_v5  ;;  %v18695_v28 = vld [vmem:[#allocation32_spill] sm:$0xff] }
0x19e5   :  { %18686 = vst [vmem:[#allocation80_spill] sm:$0xff] %v11809_v50  ;;  %v2407_v51 = vsel %vm2352_vm11, %v11122_v46, 12 }
0x19e7   :  { %3031 = vperm.xlu1 %10670, %v11759_v4   ;;  %2492 = vperm.xlu0 %10671, %v2395_v39   ;;  %v18687_v39 = vld [vmem:[#allocation88_spill] sm:$0xff]  ;;  %v18704_v4 = vld [vmem:[#allocation35_spill] sm:$0xff] }
0x19e8   :  { %vm2350_vm10 = vcmp.eq.f32.partialorder %v18687_v39, %v11803_v42  ;;  %v11872_v60 = vadd.f32 %v2885_v26, %v18704_v4 }
0x19e9   :  { %v2405_v57 = vsel %vm2350_vm10, %v11122_v46, 12 }
0x19ea   :  { %18705 = vst [vmem:[#allocation110_spill] sm:$0xff] %v11872_v60 }
0x19eb   :  { %3037 = vperm.xlu1 %10670, %v11771_v27   ;;  %2498 = vperm.xlu0 %10671, %v2397_v34   ;;  %v11820_v34 = vadd.f32 %v2888_v17, %v18647_v45 }
0x19ed   :  { %18688 = vst [vmem:[#allocation82_spill] sm:$0xff] %v11820_v34 }
0x19ef   :  { %3043 = vperm.xlu1 %10670, %v11783_v47   ;;  %2504 = vperm.xlu0 %10671, %v2399_v62   ;;  %v11831_v62 = vadd.f32 %v2888_v17, %v18650_v54 }
0x19f1   :  { %18690 = vst [vmem:[#allocation84_spill] sm:$0xff] %v11831_v62 }
0x19f3   :  { %3049 = vperm.xlu1 %10670, %v11795_v7   ;;  %2510 = vperm.xlu0 %10671, %v2401_v12   ;;  %v18691_v12 = vld [vmem:[#allocation94_spill] sm:$0xff] }
0x19f4   :  { %vm2354_vm6 = vcmp.eq.f32.partialorder %v18691_v12, %v11828_v11  ;;  %v18698_v12 = vld [vmem:[#allocation33_spill] sm:$0xff] }
0x19f5   :  { %v2409_v39 = vsel %vm2354_vm6, %v11122_v46, 12  ;;  %v11856_v43 = vadd.f32 %v2885_v26, %v18698_v12 }
0x19f7   :  { %3055 = vperm.xlu1 %10670, %v11809_v50   ;;  %2516 = vperm.xlu0 %10671, %v2403_v52   ;;  %v11840_v52 = vadd.f32 %v2888_v17, %v18654_v1  ;;  %18699 = vst [vmem:[#allocation94_spill] sm:$0xff] %v11856_v43 }
0x19f9   :  { %18693 = vst [vmem:[#allocation86_spill] sm:$0xff] %v11840_v52 }
0x19fb   :  { %3061 = vperm.xlu1 %10670, %v11820_v34   ;;  %2522 = vperm.xlu0 %10671, %v2405_v57   ;;  %v11845_v57 = vadd.f32 %v2888_v17, %v18658_v41 }
0x19fd   :  { %18694 = vst [vmem:[#allocation96_spill] sm:$0xff] %v11845_v57 }
0x19ff   :  { %3067 = vperm.xlu1 %10670, %v11831_v62   ;;  %2528 = vperm.xlu0 %10671, %v2407_v51   ;;  %v11848_v62 = vadd.f32 %v2885_v26, %v18695_v28  ;;  %v11853_v51 = vadd.f32 %v2888_v17, %v18662_v0 }
0x1a01   :  { %18696 = vst [vmem:[#allocation88_spill] sm:$0xff] %v11848_v62  ;;  %18697 = vst [vmem:[#allocation91_spill] sm:$0xff] %v11853_v51 }
0x1a03   :  { %3073 = vperm.xlu1 %10670, %v11840_v52   ;;  %2534 = vperm.xlu0 %10671, %v2409_v39   ;;  %v11861_v39 = vadd.f32 %v2888_v17, %v18666_v30  ;;  %v18701_v52 = vld [vmem:[#allocation34_spill] sm:$0xff]  ;;  %v11915_v30 = vadd.f32 %v2888_v17, %v18685_v9 }
0x1a04   :  { %v11864_v34 = vadd.f32 %v2885_v26, %v18701_v52 }
0x1a05   :  { %18700 = vst [vmem:[#allocation90_spill] sm:$0xff] %v11861_v39  ;;  %18718 = vst [vmem:[#allocation119_spill] sm:$0xff] %v11915_v30 }
0x1a06   :  { %18702 = vst [vmem:[#allocation108_spill] sm:$0xff] %v11864_v34 }
0x1a07   :  { %3079 = vperm.xlu1 %10670, %v11845_v57   ;;  %2986 = vperm.xlu0 %10671, %v11848_v62   ;;  %v11869_v57 = vadd.f32 %v2888_v17, %v18669_v58  ;;  %v11902_v62 = vpop.permute.xlu0 %2468 }
0x1a09   :  { %18703 = vst [vmem:[#allocation109_spill] sm:$0xff] %v11869_v57 }
0x1a0b   :  { %3085 = vperm.xlu1 %10670, %v11853_v51   ;;  %2992 = vperm.xlu0 %10671, %v11856_v43   ;;  %v11877_v51 = vadd.f32 %v2888_v17, %v18672_v59  ;;  %v11896_v43 = vadd.f32 %v2885_v26, %v18713_v6  ;;  %v18716_v59 = vld [vmem:[#allocation39_spill] sm:$0xff] }
0x1a0c   :  { %v11908_v58 = vadd.f32 %v2885_v26, %v18716_v59 }
0x1a0d   :  { %18706 = vst [vmem:[#allocation111_spill] sm:$0xff] %v11877_v51  ;;  %18714 = vst [vmem:[#allocation116_spill] sm:$0xff] %v11896_v43 }
0x1a0e   :  { %18717 = vst [vmem:[#allocation118_spill] sm:$0xff] %v11908_v58 }
0x1a0f   :  { %3091 = vperm.xlu1 %10670, %v11861_v39   ;;  %2998 = vperm.xlu0 %10671, %v11864_v34   ;;  %v11885_v39 = vadd.f32 %v2888_v17, %v18675_v15  ;;  %v11905_v15 = vadd.f32 %v2888_v17, %v18681_v29  ;;  %v11922_v29 = vpop.permute.xlu0 %2474 }
0x1a11   :  { %18709 = vst [vmem:[#allocation113_spill] sm:$0xff] %v11885_v39  ;;  %18715 = vst [vmem:[#allocation117_spill] sm:$0xff] %v11905_v15 }
0x1a13   :  { %3097 = vperm.xlu1 %10670, %v11869_v57   ;;  %3004 = vperm.xlu0 %10671, %v11872_v60   ;;  %v11893_v57 = vadd.f32 %v2888_v17, %v18678_v56  ;;  %v2199_v56 = vrot.slane %v11650_v48, %v10994_v3  ;;  %v18724_v17 = vld [vmem:[#allocation64_spill] sm:$0xff]  ;;  %v11935_v41 = vpop.permute.xlu0 %2480 }
0x1a15   :  { %18712 = vst [vmem:[#allocation115_spill] sm:$0xff] %v11893_v57  ;;  %vm2316_vm7 = vcmp.eq.f32.partialorder %v18721_v49, %v2199_v56  ;;  %vm2317_vm8 = vcmp.eq.f32.partialorder %v18724_v17, %v2199_v56  ;;  %v18727_v49 = vld [vmem:[#allocation65_spill] sm:$0xff]  ;;  %v18729_v56 = vld [vmem:[#allocation43_spill] sm:$0xff] }
0x1a16   :  { %v2371_v48 = vsel %vm2316_vm7, %v11122_v46, 12  ;;  %v2372_v1 = vsel %vm2317_vm8, %v11091_v20, 12  ;;  %vm2319_vm9 = vcmp.eq.f32.partialorder %v18727_v49, %v11658_v33  ;;  %v11949_v17 = vadd.f32 %v2885_v26, %v18729_v56 }
0x1a17   :  { %3103 = vperm.xlu1 %10670, %v11877_v51   ;;  %3010 = vperm.xlu0 %10671, %v11880_v18   ;;  %v11900_v51 = vpop.permute.xlu1 %2471  ;;  %v11938_v18 = vadd.f32 %v2885_v26, %v18725_v21  ;;  %v11953_v54 = vpop.permute.xlu0 %2486  ;;  %v2374_v34 = vsel %vm2319_vm9, %v11091_v20, 12 }
0x1a18   :  { %18730 = vst [vmem:[#allocation65_spill] sm:$0xff] %v11949_v17 }
0x1a19   :  { %18726 = vst [vmem:[#allocation64_spill] sm:$0xff] %v11938_v18 }
0x1a1b   :  { %3109 = vperm.xlu1 %10670, %v11885_v39   ;;  %3016 = vperm.xlu0 %10671, %v11888_v10   ;;  %v11920_v0 = vpop.permute.xlu1 %2477 }
0x1a1f   :  { %3115 = vperm.xlu1 %10670, %v11893_v57   ;;  %3022 = vperm.xlu0 %10671, %v11896_v43   ;;  %v11918_v43 = vadd.f32 %v2885_v26, %v18719_v53  ;;  %v11933_v9 = vpop.permute.xlu1 %2483 }
0x1a21   :  { %18720 = vst [vmem:[#allocation120_spill] sm:$0xff] %v11918_v43 }
0x1a23   :  { %3121 = vperm.xlu1 %10670, %v11905_v15   ;;  %3028 = vperm.xlu0 %10671, %v11908_v58   ;;  %v18722_v58 = vld [vmem:[#allocation41_spill] sm:$0xff]  ;;  %v11951_v60 = vpop.permute.xlu1 %2489 }
0x1a24   :  { %v11928_v10 = vadd.f32 %v2885_v26, %v18722_v58 }
0x1a26   :  { %18723 = vst [vmem:[#allocation61_spill] sm:$0xff] %v11928_v10 }
0x1a27   :  { %3127 = vperm.xlu1 %10670, %v11915_v30   ;;  %3034 = vperm.xlu0 %10671, %v11918_v43  }
0x1a2b   :  { %2420 = vperm.xlu1 %10670, %v2371_v48   ;;  %3040 = vperm.xlu0 %10671, %v11928_v10   ;;  %v18728_v48 = vld [vmem:[#allocation93_spill] sm:$0xff] }
0x1a2c   :  { %v11946_v55 = vadd.f32 %v18728_v48, %v11731_v2 }
0x1a2e   :  { %v11961_v33 = vadd.f32 %v11946_v55, %v18695_v28  ;;  %v11973_v48 = vadd.f32 %v11946_v55, %v18698_v12  ;;  %v12081_v45 = vadd.f32 %v11946_v55, %v18725_v21  ;;  %v12093_v13 = vadd.f32 %v11946_v55, %v18729_v56 }
0x1a2f   :  { %2423 = vperm.xlu1 %10670, %v2372_v1   ;;  %3046 = vperm.xlu0 %10671, %v11938_v18   ;;  %v18731_v1 = vld [vmem:[#allocation67_spill] sm:$0xff] }
0x1a30   :  { %vm2321_vm10 = vcmp.eq.f32.partialorder %v18731_v1, %v11669_v35  ;;  %18732 = vst [vmem:[#allocation93_spill] sm:$0xff] %v11961_v33  ;;  %18734 = vst [vmem:[#allocation67_spill] sm:$0xff] %v11973_v48 }
0x1a31   :  { %v2376_v49 = vsel %vm2321_vm10, %v11091_v20, 12 }
0x1a33   :  { %2429 = vperm.xlu1 %10670, %v2374_v34   ;;  %3052 = vperm.xlu0 %10671, %v11949_v17   ;;  %v18733_v34 = vld [vmem:[#allocation69_spill] sm:$0xff] }
0x1a34   :  { %vm2323_vm11 = vcmp.eq.f32.partialorder %v18733_v34, %v11681_v16 }
0x1a35   :  { %v2378_v28 = vsel %vm2323_vm11, %v11091_v20, 12 }
0x1a36   :  { %v11963_v2 = vpop.permute.xlu1 %2543  ;;  %v11965_v26 = vpop.permute.xlu0 %2540 }
0x1a37   :  { %2435 = vperm.xlu1 %10670, %v2376_v49   ;;  %3058 = vperm.xlu0 %10671, %v11961_v33   ;;  %v18735_v49 = vld [vmem:[#allocation71_spill] sm:$0xff]  ;;  %v11985_v33 = vadd.f32 %v11946_v55, %v18701_v52 }
0x1a38   :  { %vm2325_vm6 = vcmp.eq.f32.partialorder %v18735_v49, %v11693_v61 }
0x1a39   :  { %18736 = vst [vmem:[#allocation69_spill] sm:$0xff] %v11985_v33  ;;  %v2380_v12 = vsel %vm2325_vm6, %v11091_v20, 12 }
0x1a3a   :  { %v11975_v35 = vpop.permute.xlu1 %2549  ;;  %v11977_v1 = vpop.permute.xlu0 %2546 }
0x1a3b   :  { %2441 = vperm.xlu1 %10670, %v2378_v28   ;;  %3064 = vperm.xlu0 %10671, %v11973_v48   ;;  %v18737_v28 = vld [vmem:[#allocation73_spill] sm:$0xff]  ;;  %v11997_v48 = vadd.f32 %v11946_v55, %v18704_v4 }
0x1a3c   :  { %vm2327_vm7 = vcmp.eq.f32.partialorder %v18737_v28, %v11705_v24 }
0x1a3d   :  { %18738 = vst [vmem:[#allocation71_spill] sm:$0xff] %v11997_v48  ;;  %v2382_v52 = vsel %vm2327_vm7, %v11091_v20, 12 }
0x1a3e   :  { %v11987_v16 = vpop.permute.xlu1 %2555  ;;  %v11989_v34 = vpop.permute.xlu0 %2552 }
0x1a3f   :  { %2447 = vperm.xlu1 %10670, %v2380_v12   ;;  %3070 = vperm.xlu0 %10671, %v11985_v33   ;;  %v18739_v12 = vld [vmem:[#allocation75_spill] sm:$0xff]  ;;  %v12009_v33 = vadd.f32 %v11946_v55, %v18707_v23 }
0x1a40   :  { %vm2329_vm8 = vcmp.eq.f32.partialorder %v18739_v12, %v11717_v25 }
0x1a41   :  { %18740 = vst [vmem:[#allocation73_spill] sm:$0xff] %v12009_v33  ;;  %v2384_v4 = vsel %vm2329_vm8, %v11091_v20, 12 }
0x1a42   :  { %v11999_v61 = vpop.permute.xlu1 %2561  ;;  %v12001_v49 = vpop.permute.xlu0 %2558 }
0x1a43   :  { %2453 = vperm.xlu1 %10670, %v2382_v52   ;;  %3076 = vperm.xlu0 %10671, %v11997_v48   ;;  %v18741_v52 = vld [vmem:[#allocation77_spill] sm:$0xff]  ;;  %v12021_v48 = vadd.f32 %v11946_v55, %v18710_v40 }
0x1a44   :  { %vm2331_vm9 = vcmp.eq.f32.partialorder %v18741_v52, %v11729_v31 }
0x1a45   :  { %18742 = vst [vmem:[#allocation75_spill] sm:$0xff] %v12021_v48  ;;  %v2386_v23 = vsel %vm2331_vm9, %v11091_v20, 12 }
0x1a46   :  { %v12011_v24 = vpop.permute.xlu1 %2989  ;;  %v12013_v28 = vpop.permute.xlu0 %2426 }
0x1a47   :  { %2459 = vperm.xlu1 %10670, %v2384_v4   ;;  %3082 = vperm.xlu0 %10671, %v12009_v33   ;;  %v18743_v4 = vld [vmem:[#allocation79_spill] sm:$0xff]  ;;  %v12033_v33 = vadd.f32 %v11946_v55, %v18713_v6 }
0x1a48   :  { %vm2341_vm10 = vcmp.eq.f32.partialorder %v18743_v4, %v11743_v63 }
0x1a49   :  { %18744 = vst [vmem:[#allocation77_spill] sm:$0xff] %v12033_v33  ;;  %v2396_v40 = vsel %vm2341_vm10, %v11091_v20, 12 }
0x1a4a   :  { %v12023_v25 = vpop.permute.xlu1 %2995  ;;  %v12025_v12 = vpop.permute.xlu0 %2432 }
0x1a4b   :  { %2465 = vperm.xlu1 %10670, %v2386_v23   ;;  %3088 = vperm.xlu0 %10671, %v12021_v48   ;;  %v18745_v23 = vld [vmem:[#allocation81_spill] sm:$0xff]  ;;  %v12045_v48 = vadd.f32 %v11946_v55, %v18716_v59 }
0x1a4c   :  { %vm2343_vm11 = vcmp.eq.f32.partialorder %v18745_v23, %v11755_v38 }
0x1a4d   :  { %18746 = vst [vmem:[#allocation79_spill] sm:$0xff] %v12045_v48  ;;  %v2398_v6 = vsel %vm2343_vm11, %v11091_v20, 12 }
0x1a4e   :  { %v12035_v31 = vpop.permute.xlu1 %3001  ;;  %v12037_v52 = vpop.permute.xlu0 %2438 }
0x1a4f   :  { %2495 = vperm.xlu1 %10670, %v2396_v40   ;;  %3094 = vperm.xlu0 %10671, %v12033_v33   ;;  %v18747_v40 = vld [vmem:[#allocation83_spill] sm:$0xff]  ;;  %v12057_v33 = vadd.f32 %v11946_v55, %v18719_v53 }
0x1a50   :  { %vm2345_vm6 = vcmp.eq.f32.partialorder %v18747_v40, %v11767_v22 }
0x1a51   :  { %18748 = vst [vmem:[#allocation81_spill] sm:$0xff] %v12057_v33  ;;  %v2400_v59 = vsel %vm2345_vm6, %v11091_v20, 12 }
0x1a52   :  { %v12047_v63 = vpop.permute.xlu1 %3007  ;;  %v12049_v4 = vpop.permute.xlu0 %2444 }
0x1a53   :  { %2501 = vperm.xlu1 %10670, %v2398_v6   ;;  %3100 = vperm.xlu0 %10671, %v12045_v48   ;;  %v18749_v6 = vld [vmem:[#allocation85_spill] sm:$0xff]  ;;  %v12069_v48 = vadd.f32 %v11946_v55, %v18722_v58  ;;  %v18758_v55 = vld [vmem:[#allocation95_spill] sm:$0xff] }
0x1a54   :  { %vm2347_vm7 = vcmp.eq.f32.partialorder %v18749_v6, %v11779_v44  ;;  %vm2355_vm11 = vcmp.eq.f32.partialorder %v18758_v55, %v11828_v11  ;;  %v2642_v11 = vrot.slane %v11900_v51, %v11448_v19  ;;  %v2638_v55 = vrot.slane %v11902_v62, %v11445_v8 }
0x1a55   :  { %18750 = vst [vmem:[#allocation83_spill] sm:$0xff] %v12069_v48  ;;  %v2402_v53 = vsel %vm2347_vm7, %v11091_v20, 12 }
0x1a56   :  { %v12059_v38 = vpop.permute.xlu1 %3013  ;;  %v12061_v23 = vpop.permute.xlu0 %2450 }
0x1a57   :  { %2507 = vperm.xlu1 %10670, %v2400_v59   ;;  %3106 = vperm.xlu0 %10671, %v12057_v33   ;;  %v18752_v59 = vld [vmem:[#allocation87_spill] sm:$0xff] }
0x1a58   :  { %vm2349_vm8 = vcmp.eq.f32.partialorder %v18752_v59, %v11791_v14  ;;  %18753 = vst [vmem:[#allocation87_spill] sm:$0xff] %v12081_v45 }
0x1a59   :  { %v2404_v58 = vsel %vm2349_vm8, %v11091_v20, 12 }
0x1a5a   :  { %v12071_v22 = vpop.permute.xlu1 %3019  ;;  %v12073_v40 = vpop.permute.xlu0 %2456 }
0x1a5b   :  { %18751 = vst [vmem:[#allocation85_spill] sm:$0xff] %v12073_v40  ;;  %2513 = vperm.xlu1 %10670, %v2402_v53   ;;  %3112 = vperm.xlu0 %10671, %v12069_v48   ;;  %v18754_v53 = vld [vmem:[#allocation89_spill] sm:$0xff]  ;;  %v2643_v48 = vsel %vm1940_vm14, %v2642_v11, %v2638_v55  ;;  %v2768_v11 = vrot.slane %v11987_v16, %v11448_v19 }
0x1a5c   :  { %vm2351_vm9 = vcmp.eq.f32.partialorder %v18754_v53, %v11803_v42  ;;  %18755 = vst [vmem:[#allocation89_spill] sm:$0xff] %v12093_v13  ;;  %v2764_v55 = vrot.slane %v11989_v34, %v11445_v8 }
0x1a5d   :  { %v2406_v21 = vsel %vm2351_vm9, %v11091_v20, 12 }
0x1a5e   :  { %v12083_v44 = vpop.permute.xlu1 %3025  ;;  %v12085_v6 = vpop.permute.xlu0 %2462  ;;  %v2769_v34 = vsel %vm1940_vm14, %v2768_v11, %v2764_v55 }
0x1a5f   :  { %2519 = vperm.xlu1 %10670, %v2404_v58   ;;  %3118 = vperm.xlu0 %10671, %v12081_v45   ;;  %v18757_v58 = vld [vmem:[#allocation92_spill] sm:$0xff] }
0x1a60   :  { %vm2353_vm10 = vcmp.eq.f32.partialorder %v18757_v58, %v11817_v5  ;;  %v2651_v5 = vrot.slane %v11920_v0, %v11448_v19  ;;  %v2647_v58 = vrot.slane %v11922_v29, %v11445_v8  ;;  %v2665_v0 = vrot.slane %v11953_v54, %v11445_v8 }
0x1a61   :  { %v2408_v42 = vsel %vm2353_vm10, %v11091_v20, 12 }
0x1a62   :  { %v12095_v14 = vpop.permute.xlu1 %3031  ;;  %v12097_v59 = vpop.permute.xlu0 %2492 }
0x1a63   :  { %18756 = vst [vmem:[#allocation121_spill] sm:$0xff] %v12097_v59  ;;  %2525 = vperm.xlu1 %10670, %v2406_v21   ;;  %3124 = vperm.xlu0 %10671, %v12093_v13   ;;  %v2410_v21 = vsel %vm2355_vm11, %v11091_v20, 12  ;;  %v2660_v13 = vrot.slane %v11933_v9, %v11448_v19  ;;  %v2652_v9 = vsel %vm1940_vm14, %v2651_v5, %v2647_v58 }
0x1a64   :  { %v2759_v5 = vrot.slane %v11975_v35, %v11448_v19  ;;  %v2755_v58 = vrot.slane %v11977_v1, %v11445_v8  ;;  %v2746_v35 = vrot.slane %v11965_v26, %v11445_v8  ;;  %v2777_v1 = vrot.slane %v11999_v61, %v11448_v19 }
0x1a66   :  { %v12103_v30 = vpop.permute.xlu1 %3037  ;;  %v12105_v45 = vpop.permute.xlu0 %2498 }
0x1a67   :  { %2531 = vperm.xlu1 %10670, %v2408_v42   ;;  %v2656_v42 = vrot.slane %v11935_v41, %v11445_v8  ;;  %v3208_v3 = vrot.slane %v12103_v30, %v11448_v19 }
0x1a69   :  { %v2661_v41 = vsel %vm1940_vm14, %v2660_v13, %v2656_v42 }
0x1a6a   :  { %v12110_v53 = vpop.permute.xlu1 %3043  ;;  %v12112_v56 = vpop.permute.xlu0 %2504 }
0x1a6b   :  { %2537 = vperm.xlu1 %10670, %v2410_v21   ;;  %v2669_v21 = vrot.slane %v11951_v60, %v11448_v19  ;;  %v2786_v60 = vsel %vm2149_vm15, %v2652_v9, %v2643_v48  ;;  %v2760_v9 = vsel %vm1940_vm14, %v2759_v5, %v2755_v58  ;;  %v3217_v20 = vrot.slane %v12110_v53, %v11448_v19 }
0x1a6c   :  { %v2787_v54 = vsel %vm2151_vm0, %v2661_v41, %v2786_v60 }
0x1a6d   :  { %v2670_v51 = vsel %vm1940_vm14, %v2669_v21, %v2665_v0  ;;  %v2773_v0 = vrot.slane %v12001_v49, %v11445_v8 }
0x1a6e   :  { %v12131_v15 = vpop.permute.xlu1 %3049  ;;  %v12133_v29 = vpop.permute.xlu0 %2510  ;;  %v2788_v33 = vsel %vm2153_vm1, %v2670_v51, %v2787_v54 }
0x1a6f   :  { %v12151_v13 = vsel %vm1492_vm13, %v2788_v33, 2147483647  ;;  %v2750_v33 = vrot.slane %v11963_v2, %v11448_v19  ;;  %v2778_v2 = vsel %vm1940_vm14, %v2777_v1, %v2773_v0  ;;  %v3226_v32 = vrot.slane %v12131_v15, %v11448_v19 }
0x1a70   :  { %18759 = vst [vmem:[#allocation92_spill] sm:$0xff] %v12151_v13  ;;  %v2816_v21 = vshra.s32 %v12151_v13, 16 }
0x1a71   :  { %v2751_v51 = vsel %vm1940_vm14, %v2750_v33, %v2746_v35 }
0x1a72   :  { %v12139_v57 = vpop.permute.xlu1 %3055  ;;  %v12141_v62 = vpop.permute.xlu0 %2516  ;;  %v12182_v60 = vcvt.s32.f32 %v2816_v21  ;;  %v2796_v26 = vsel %vm2149_vm15, %v2760_v9, %v2751_v51 }
0x1a73   :  { %v2797_v61 = vsel %vm2151_vm0, %v2769_v34, %v2796_v26  ;;  %v3235_v53 = vrot.slane %v12139_v57, %v11448_v19 }
0x1a74   :  { %18760 = vst [vmem:[#allocation95_spill] sm:$0xff] %v12182_v60  ;;  %v2798_v5 = vsel %vm2153_vm1, %v2778_v2, %v2797_v61 }
0x1a75   :  { %v12197_v55 = vsel %vm1492_vm13, %v2798_v5, 2147483647 }
0x1a76   :  { %v12146_v39 = vpop.permute.xlu1 %3061  ;;  %v12148_v17 = vpop.permute.xlu0 %2522  ;;  %18761 = vst [vmem:[#allocation122_spill] sm:$0xff] %v12197_v55  ;;  %v2846_v21 = vshra.s32 %v12197_v55, 16 }
0x1a77   :  { %v2719_v59 = vrot.slane %v12148_v17, %v11445_v8 }
0x1a78   :  { %v12204_v1 = vcvt.s32.f32 %v2846_v21 }
0x1a7a   :  { %v12157_v42 = vpop.permute.xlu1 %3067  ;;  %v12159_v48 = vpop.permute.xlu0 %2528  ;;  %18762 = vst [vmem:[#allocation123_spill] sm:$0xff] %v12204_v1 }
0x1a7e   :  { %v12175_v16 = vpop.permute.xlu1 %3073  ;;  %v12177_v41 = vpop.permute.xlu0 %2534 }
0x1a82   :  { %v12186_v54 = vpop.permute.xlu1 %3079  ;;  %2819 = vmin.xlane.f32.xlu0 %v12182_v60  ;;  %v12189_v49 = vpop.permute.xlu0 %2986 }
0x1a86   :  { %v12192_v58 = vpop.permute.xlu1 %3085  ;;  %v12194_v11 = vpop.permute.xlu0 %2992 }
0x1a8a   :  { %v12200_v33 = vpop.permute.xlu1 %3091  ;;  %v12202_v35 = vpop.permute.xlu0 %2998 }
0x1a8e   :  { %v12206_v0 = vpop.permute.xlu1 %3097  ;;  %v12208_v9 = vpop.permute.xlu0 %3004 }
0x1a8f   :  { %2849 = vmin.xlane.f32.xlu1 %v12204_v1 }
0x1a92   :  { %v12211_v34 = vpop.permute.xlu1 %3103  ;;  %v12213_v51 = vpop.permute.xlu0 %3010 }
0x1a96   :  { %v12215_v2 = vpop.permute.xlu1 %3109  ;;  %v12217_v26 = vpop.permute.xlu0 %3016 }
0x1a9a   :  { %v12219_v61 = vpop.permute.xlu1 %3115  ;;  %v12221_v5 = vpop.permute.xlu0 %3022 }
0x1a9e   :  { %v12223_v21 = vpop.permute.xlu1 %3121  ;;  %v12225_v50 = vpop.permute.xlu0 %3028 }
0x1a9f   :  { %18763 = vst [vmem:[#allocation124_spill] sm:$0xff] %v12223_v21  ;;  %v3150_v21 = vrot.slane %v12202_v35, %v11445_v8 }
0x1aa2   :  { %v12227_v37 = vpop.permute.xlu1 %3127  ;;  %v3035_v18 = vpop.permute.xlu0 %3034 }
0x1aa3   :  { %18764 = vst [vmem:[#allocation125_spill] sm:$0xff] %v12227_v37  ;;  %v3204_v43 = vrot.slane %v3035_v18, %v11445_v8 }
0x1aa5   :  { %v3209_v18 = vsel %vm1940_vm14, %v3208_v3, %v3204_v43 }
0x1aa6   :  { %v12229_v7 = vpop.permute.xlu1 %2420  ;;  %v3041_v36 = vpop.permute.xlu0 %3040 }
0x1aa7   :  { %v3213_v10 = vrot.slane %v3041_v36, %v11445_v8 }
0x1aa9   :  { %v3218_v1 = vsel %vm1940_vm14, %v3217_v20, %v3213_v10 }
0x1aaa   :  { %v12232_v47 = vpop.permute.xlu1 %2423  ;;  %v3047_v46 = vpop.permute.xlu0 %3046  ;;  %v3352_v13 = vsel %vm2149_vm15, %v3218_v1, %v3209_v18  ;;  %v3190_v18 = vrot.slane %v12083_v44, %v11448_v19 }
0x1aab   :  { %v3222_v27 = vrot.slane %v3047_v46, %v11445_v8 }
0x1aad   :  { %v3227_v36 = vsel %vm1940_vm14, %v3226_v32, %v3222_v27 }
0x1aae   :  { %v12244_v55 = vpop.permute.xlu1 %2429  ;;  %v3053_v60 = vpop.permute.xlu0 %3052  ;;  %v3353_v30 = vsel %vm2151_vm0, %v3227_v36, %v3352_v13 }
0x1aaf   :  { %v3231_v46 = vrot.slane %v3053_v60, %v11445_v8 }
0x1ab1   :  { %v3236_v15 = vsel %vm1940_vm14, %v3235_v53, %v3231_v46  ;;  %v3136_v53 = vrot.slane %v12011_v24, %v11448_v19  ;;  %v3145_v46 = vrot.slane %v12023_v25, %v11448_v19  ;;  %v3163_v24 = vrot.slane %v12047_v63, %v11448_v19 }
0x1ab2   :  { %v12253_v37 = vpop.permute.xlu1 %2435  ;;  %v12255_v20 = vpop.permute.xlu0 %3058  ;;  %v3354_v32 = vsel %vm2153_vm1, %v3236_v15, %v3353_v30  ;;  %v3154_v30 = vrot.slane %v12035_v31, %v11448_v19  ;;  %v3141_v25 = vrot.slane %v12194_v11, %v11445_v8  ;;  %v3172_v15 = vrot.slane %v12059_v38, %v11448_v19 }
0x1ab3   :  { %v3372_v10 = vsel %vm1492_vm13, %v3354_v32, -inf  ;;  %v3132_v11 = vrot.slane %v12189_v49, %v11445_v8  ;;  %v3159_v38 = vrot.slane %v12208_v9, %v11445_v8  ;;  %v3168_v63 = vrot.slane %v12213_v51, %v11445_v8 }
0x1ab4   :  { %3373 = vmax.xlane.f32.xlu1 %v3372_v10  ;;  %v3244_v51 = vrot.slane %v12146_v39, %v11448_v19  ;;  %v3253_v49 = vrot.slane %v12157_v42, %v11448_v19  ;;  %v3177_v39 = vrot.slane %v12217_v26, %v11445_v8  ;;  %v3262_v9 = vrot.slane %v12175_v16, %v11448_v19 }
0x1ab5   :  { %v3137_v31 = vsel %vm1940_vm14, %v3136_v53, %v3132_v11  ;;  %v3173_v35 = vsel %vm1940_vm14, %v3172_v15, %v3168_v63  ;;  %v2737_v53 = vrot.slane %v12177_v41, %v11445_v8  ;;  %v3280_v26 = vrot.slane %v12192_v58, %v11448_v19  ;;  %v18786_v41 = vld [vmem:[#allocation92_spill] sm:$0xff] }
0x1ab6   :  { %v12259_v27 = vpop.permute.xlu1 %2441  ;;  %v12261_v3 = vpop.permute.xlu0 %3064  ;;  %v2579_v63 = vrot.slane %v12244_v55, %v11448_v19  ;;  %v3298_v16 = vrot.slane %v12206_v0, %v11448_v19  ;;  %v3307_v11 = vrot.slane %v12211_v34, %v11448_v19  ;;  %v2570_v55 = vrot.slane %v12232_v47, %v11448_v19 }
0x1aba   :  { %v12263_v57 = vpop.permute.xlu1 %2447  ;;  %v12265_v43 = vpop.permute.xlu0 %3070 }
0x1abe   :  { %v12267_v60 = vpop.permute.xlu1 %2453  ;;  %v12269_v13 = vpop.permute.xlu0 %3076 }
0x1ac2   :  { %v12271_v1 = vpop.permute.xlu1 %2459  ;;  %v12273_v36 = vpop.permute.xlu0 %3082 }
0x1ac6   :  { %v12285_v32 = vpop.permute.xlu1 %2465  ;;  %v12287_v10 = vpop.permute.xlu0 %3088 }
0x1ac7   :  { %18765 = vst [vmem:[#allocation126_spill] sm:$0xff] %v12287_v10  ;;  %v3181_v10 = vrot.slane %v12071_v22, %v11448_v19  ;;  %v3199_v22 = vrot.slane %v12095_v14, %v11448_v19  ;;  %v3146_v14 = vsel %vm1940_vm14, %v3145_v46, %v3141_v25  ;;  %v3164_v46 = vsel %vm1940_vm14, %v3163_v24, %v3159_v38 }
0x1ac8   :  { %v3345_v25 = vsel %vm2149_vm15, %v3146_v14, %v3137_v31  ;;  %v3271_v24 = vrot.slane %v12186_v54, %v11448_v19  ;;  %v2588_v38 = vrot.slane %v12253_v37, %v11448_v19  ;;  %v3195_v14 = vrot.slane %v12225_v50, %v11445_v8 }
0x1ac9   :  { %v3182_v58 = vsel %vm1940_vm14, %v3181_v10, %v3177_v39  ;;  %v2597_v37 = vrot.slane %v12259_v27, %v11448_v19  ;;  %v18767_v50 = vrot.slane %v12013_v28, %v11445_v8  ;;  %v2606_v10 = vrot.slane %v12263_v57, %v11448_v19 }
0x1aca   :  { %v12321_v40 = vpop.permute.xlu1 %2495  ;;  %v12323_v44 = vpop.permute.xlu0 %3094  ;;  %v3316_v27 = vrot.slane %v12215_v2, %v11448_v19  ;;  %v3267_v28 = vrot.slane %v12269_v13, %v11445_v8  ;;  %v3325_v57 = vrot.slane %v12219_v61, %v11448_v19  ;;  %v18769_v13 = vrot.slane %v12037_v52, %v11445_v8 }
0x1acb   :  { %18766 = vst [vmem:[#allocation127_spill] sm:$0xff] %v12323_v44  ;;  %v3155_v44 = vsel %vm1940_vm14, %v3154_v30, %v3150_v21  ;;  %v3186_v21 = vrot.slane %v12221_v5, %v11445_v8  ;;  %v3289_v5 = vrot.slane %v12200_v33, %v11448_v19  ;;  %v2580_v47 = vsel %vm1940_vm14, %v2579_v63, %v18767_v50 }
0x1acc   :  { %v3346_v15 = vsel %vm2151_vm0, %v3155_v44, %v3345_v25  ;;  %v3200_v63 = vsel %vm1940_vm14, %v3199_v22, %v3195_v14  ;;  %v18771_v14 = vrot.slane %v12061_v23, %v11445_v8  ;;  %v3272_v52 = vsel %vm1940_vm14, %v3271_v24, %v3267_v28 }
0x1acd   :  { %v3347_v31 = vsel %vm2153_vm1, %v3164_v46, %v3346_v15  ;;  %v3191_v44 = vsel %vm1940_vm14, %v3190_v18, %v3186_v21  ;;  %v2566_v15 = vrot.slane %v12229_v7, %v11445_v8  ;;  %v3249_v18 = vrot.slane %v12261_v3, %v11445_v8 }
0x1ace   :  { %v12351_v30 = vpop.permute.xlu1 %2501  ;;  %v12353_v42 = vpop.permute.xlu0 %3100  ;;  %v3348_v54 = vsel %vm2155_vm2, %v3173_v35, %v3347_v31  ;;  %v3240_v35 = vrot.slane %v12255_v20, %v11445_v8  ;;  %v3258_v7 = vrot.slane %v12265_v43, %v11445_v8  ;;  %v2615_v20 = vrot.slane %v12267_v60, %v11448_v19 }
0x1acf   :  { %v18768_v3 = vrot.slane %v12025_v12, %v11445_v8  ;;  %v3349_v21 = vsel %vm2157_vm3, %v3182_v58, %v3348_v54  ;;  %v2571_v43 = vsel %vm1940_vm14, %v2570_v55, %v2566_v15  ;;  %v2598_v54 = vsel %vm1940_vm14, %v2597_v37, %v18769_v13 }
0x1ad0   :  { %v3350_v2 = vsel %vm2159_vm4, %v3191_v44, %v3349_v21  ;;  %v2779_v12 = vsel %vm2149_vm15, %v2580_v47, %v2571_v43  ;;  %v3254_v58 = vsel %vm1940_vm14, %v3253_v49, %v3249_v18  ;;  %v18770_v55 = vrot.slane %v12049_v4, %v11445_v8  ;;  %v18772_v4 = vld [vmem:[#allocation124_spill] sm:$0xff] }
0x1ad1   :  { %v2589_v39 = vsel %vm1940_vm14, %v2588_v38, %v18768_v3  ;;  %v3245_v38 = vsel %vm1940_vm14, %v3244_v51, %v3240_v35  ;;  %v3263_v44 = vsel %vm1940_vm14, %v3262_v9, %v3258_v7  ;;  %v2616_v51 = vsel %vm1940_vm14, %v2615_v20, %v18771_v14  ;;  %v18773_v7 = vld [vmem:[#allocation125_spill] sm:$0xff] }
0x1ad2   :  { %v12382_v46 = vpop.permute.xlu1 %2507  ;;  %v3107_v25 = vpop.permute.xlu0 %3106  ;;  %v2780_v61 = vsel %vm2151_vm0, %v2589_v39, %v2779_v12  ;;  %v2607_v22 = vsel %vm1940_vm14, %v2606_v10, %v18770_v55  ;;  %v2624_v15 = vrot.slane %v12271_v1, %v11448_v19  ;;  %v3276_v49 = vrot.slane %v12273_v36, %v11445_v8 }
0x1ad3   :  { %v3334_v37 = vrot.slane %v18772_v4, %v11448_v19  ;;  %v2781_v9 = vsel %vm2153_vm1, %v2598_v54, %v2780_v61  ;;  %v3355_v18 = vsel %vm2149_vm15, %v3254_v58, %v3245_v38  ;;  %v2633_v23 = vrot.slane %v12285_v32, %v11448_v19  ;;  %v18774_v32 = vld [vmem:[#allocation85_spill] sm:$0xff]  ;;  %v18777_v54 = vld [vmem:[#allocation126_spill] sm:$0xff] }
0x1ad4   :  { %v2782_v47 = vsel %vm2155_vm2, %v2607_v22, %v2781_v9  ;;  %v3356_v1 = vsel %vm2151_vm0, %v3263_v44, %v3355_v18  ;;  %v3312_v36 = vrot.slane %v3107_v25, %v11445_v8  ;;  %v3343_v20 = vrot.slane %v18773_v7, %v11448_v19  ;;  %v18778_v22 = vld [vmem:[#allocation127_spill] sm:$0xff]  ;;  %v18781_v9 = vld [vmem:[#allocation121_spill] sm:$0xff] }
0x1ad5   :  { %v2783_v3 = vsel %vm2157_vm3, %v2616_v51, %v2782_v47  ;;  %v3357_v39 = vsel %vm2153_vm1, %v3272_v52, %v3356_v1  ;;  %v3351_v28 = vsel %vm2161_vm5, %v3200_v63, %v3350_v2  ;;  %v18775_v21 = vrot.slane %v18774_v32, %v11445_v8 }
0x1ad6   :  { %v2514_v31 = vpop.permute.xlu1 %2513  ;;  %v3113_v60 = vpop.permute.xlu0 %3112  ;;  %v2687_v25 = vrot.slane %v12351_v30, %v11448_v19  ;;  %v18776_v38 = vrot.slane %v12085_v6, %v11445_v8  ;;  %v3285_v63 = vrot.slane %v18777_v54, %v11445_v8  ;;  %v2696_v2 = vrot.slane %v12382_v46, %v11448_v19 }
0x1ad7   :  { %v3321_v35 = vrot.slane %v3113_v60, %v11445_v8  ;;  %v2625_v43 = vsel %vm1940_vm14, %v2624_v15, %v18775_v21  ;;  %v3281_v60 = vsel %vm1940_vm14, %v3280_v26, %v3276_v49  ;;  %v2678_v30 = vrot.slane %v12321_v40, %v11448_v19 }
0x1ad8   :  { %v2634_v13 = vsel %vm1940_vm14, %v2633_v23, %v18776_v38  ;;  %v2705_v55 = vrot.slane %v2514_v31, %v11448_v19  ;;  %v3294_v44 = vrot.slane %v18778_v22, %v11445_v8  ;;  %v3303_v14 = vrot.slane %v12353_v42, %v11445_v8 }
0x1ad9   :  { %v3326_v12 = vsel %vm1940_vm14, %v3325_v57, %v3321_v35  ;;  %v3317_v57 = vsel %vm1940_vm14, %v3316_v27, %v3312_v36  ;;  %v18779_v52 = vrot.slane %v12105_v45, %v11445_v8  ;;  %v2784_v49 = vsel %vm2159_vm4, %v2625_v43, %v2783_v3 }
0x1ada   :  { %v2520_v50 = vpop.permute.xlu1 %2519  ;;  %v3119_v24 = vpop.permute.xlu0 %3118  ;;  %v3362_v51 = vsel %vm2149_vm15, %v3326_v12, %v3317_v57  ;;  %v3290_v42 = vsel %vm1940_vm14, %v3289_v5, %v3285_v63  ;;  %v18780_v35 = vrot.slane %v12112_v56, %v11445_v8  ;;  %v18782_v18 = vrot.slane %v18781_v9, %v11445_v8  ;;  %v18789_v57 = vld [vmem:[#allocation122_spill] sm:$0xff]  ;;  %v18800_v9 = vld [vmem:[#allocation12_spill] sm:$0xff] }
0x1adb   :  { %v3330_v10 = vrot.slane %v3119_v24, %v11445_v8  ;;  %v2714_v46 = vrot.slane %v2520_v50, %v11448_v19  ;;  %v2688_v40 = vsel %vm1940_vm14, %v2687_v25, %v18779_v52  ;;  %v18783_v50 = vrot.slane %v12133_v29, %v11445_v8 }
0x1adc   :  { %v2697_v45 = vsel %vm1940_vm14, %v2696_v2, %v18780_v35  ;;  %v2679_v23 = vsel %vm1940_vm14, %v2678_v30, %v18782_v18  ;;  %v3299_v56 = vsel %vm1940_vm14, %v3298_v16, %v3294_v44  ;;  %v18784_v1 = vrot.slane %v12141_v62, %v11445_v8  ;;  %v18791_v44 = vld [vmem:[#allocation123_spill] sm:$0xff]  ;;  %v18797_v35 = vld [vmem:[#allocation44_spill] sm:$0xff] }
0x1add   :  { %v3335_v58 = vsel %vm1940_vm14, %v3334_v37, %v3330_v10  ;;  %v2706_v33 = vsel %vm1940_vm14, %v2705_v55, %v18783_v50  ;;  %v2789_v47 = vsel %vm2149_vm15, %v2688_v40, %v2679_v23  ;;  %v2785_v29 = vsel %vm2161_vm5, %v2634_v13, %v2784_v49  ;;  %v18793_v40 = vld [vmem:[#allocation11_spill] sm:$0xff]  ;;  %v18796_v49 = vld [vmem:[#allocation30_spill] sm:$0xff] }
0x1ade   :  { %v2526_v61 = vpop.permute.xlu1 %2525  ;;  %v3125_v26 = vpop.permute.xlu0 %3124  ;;  %v3363_v15 = vsel %vm2151_vm0, %v3335_v58, %v3362_v51  ;;  %v2715_v36 = vsel %vm1940_vm14, %v2714_v46, %v18784_v1  ;;  %v3358_v10 = vsel %vm2155_vm2, %v3281_v60, %v3357_v39  ;;  %v2790_v7 = vsel %vm2151_vm0, %v2697_v45, %v2789_v47  ;;  %v18792_v51 = vld [vmem:[#allocation10_spill] sm:$0xff] }
0x1adf   :  { %v3339_v6 = vrot.slane %v3125_v26, %v11445_v8  ;;  %v2723_v27 = vrot.slane %v2526_v61, %v11448_v19  ;;  %v3308_v16 = vsel %vm1940_vm14, %v3307_v11, %v3303_v14  ;;  %v2791_v62 = vsel %vm2153_vm1, %v2706_v33, %v2790_v7  ;;  %v18788_v26 = vld [vmem:[#allocation95_spill] sm:$0xff]  ;;  %v18801_v33 = vld [vmem:[#allocation78_spill] sm:$0xff] }
0x1ae0   :  { %v3369_v32 = vsel %vm1488_vm12, %v3351_v28, -inf  ;;  %v3359_v21 = vsel %vm2157_vm3, %v3290_v42, %v3358_v10  ;;  %v2792_v17 = vsel %vm2155_vm2, %v2715_v36, %v2791_v62  ;;  %v12540_v11 = vsel %vm1488_vm12, %v2785_v29, 2147483647  ;;  %v18804_v36 = vld [vmem:[#allocation80_spill] sm:$0xff]  ;;  %v18805_v29 = vld [vmem:[#allocation65_spill] sm:$0xff] }
0x1ae1   :  { %v3344_v31 = vsel %vm1940_vm14, %v3343_v20, %v3339_v6  ;;  %v2724_v0 = vsel %vm1940_vm14, %v2723_v27, %v2719_v59  ;;  %v18785_v20 = vrot.slane %v12159_v48, %v11445_v8  ;;  %v3360_v34 = vsel %vm2159_vm4, %v3299_v56, %v3359_v21  ;;  %v18808_v21 = vld [vmem:[#allocation115_spill] sm:$0xff] }
0x1ae2   :  { %v2532_v4 = vpop.permute.xlu1 %2531  ;;  %v3364_v37 = vsel %vm2153_vm1, %v3344_v31, %v3363_v15  ;;  %v2793_v43 = vsel %vm2157_vm3, %v2724_v0, %v2792_v17  ;;  %v3361_v48 = vsel %vm2161_vm5, %v3308_v16, %v3360_v34  ;;  %v2801_v12 = vshra.s32 %v12540_v11, 16  ;;  %v18794_v31 = vld [vmem:[#allocation74_spill] sm:$0xff]  ;;  %v18795_v15 = vld [vmem:[#allocation120_spill] sm:$0xff]  ;;  %v18809_v17 = vld [vmem:[#allocation83_spill] sm:$0xff] }
0x1ae3   :  { %v2732_v5 = vrot.slane %v2532_v4, %v11448_v19  ;;  %v3378_v24 = vsel %vm1492_vm13, %v3364_v37, -inf  ;;  %v3375_v38 = vsel %vm1488_vm12, %v3361_v48, -inf  ;;  %v2845_v55 = vand.u32 65535, %v18789_v57  ;;  %v18798_v4 = vld [vmem:[#allocation76_spill] sm:$0xff]  ;;  %v18799_v37 = vld [vmem:[#allocation61_spill] sm:$0xff] }
0x1ae4   :  { %3379 = vmax.xlane.f32.xlu0 %v3378_v24  ;;  %v12558_v2 = vcvt.s32.f32 %v2801_v12  ;;  %v18803_v24 = vld [vmem:[#allocation13_spill] sm:$0xff] }
0x1ae5   :  { %v2733_v3 = vsel %vm1940_vm14, %v2732_v5, %v18785_v20  ;;  %v2847_v22 = vcvt.s32.f32 %v2845_v55  ;;  %v18802_v5 = vld [vmem:[#allocation64_spill] sm:$0xff]  ;;  %v18806_v20 = vld [vmem:[#allocation113_spill] sm:$0xff]  ;;  %v18815_v55 = vld [vmem:[#allocation99_spill] sm:$0xff] }
0x1ae6   :  { %v2538_v39 = vpop.permute.xlu1 %2537  ;;  %v2794_v60 = vsel %vm2159_vm4, %v2733_v3, %v2793_v43  ;;  %v18807_v3 = vld [vmem:[#allocation81_spill] sm:$0xff] }
0x1ae7   :  { %v2741_v59 = vrot.slane %v2538_v39, %v11448_v19  ;;  %v18810_v48 = vld [vmem:[#allocation117_spill] sm:$0xff] }
0x1ae8   :  { %3370 = vmax.xlane.f32.xlu0 %v3369_v32 }
0x1ae9   :  { %v2742_v28 = vsel %vm1940_vm14, %v2741_v59, %v2737_v53  ;;  %v2815_v53 = vand.u32 65535, %v18786_v41  ;;  %v18813_v41 = vld [vmem:[#allocation89_spill] sm:$0xff] }
0x1aea   :  { %v2795_v25 = vsel %vm2161_vm5, %v2742_v28, %v2794_v60  ;;  %v18811_v60 = vld [vmem:[#allocation87_spill] sm:$0xff] }
0x1aeb   :  { %v12553_v13 = vsel %vm1488_vm12, %v2795_v25, 2147483647  ;;  %v2817_v61 = vcvt.s32.f32 %v2815_v53 }
0x1aec   :  { %3376 = vmax.xlane.f32.xlu0 %v3375_v38  ;;  %v2831_v54 = vshra.s32 %v12553_v13, 16 }
0x1aee   :  { %v12556_v63 = vcvt.s32.f32 %v2831_v54  ;;  %v18812_v54 = vld [vmem:[#allocation119_spill] sm:$0xff] }
0x1af0   :  { %2834 = vmin.xlane.f32.xlu1 %v12556_v63  ;;  %2804 = vmin.xlane.f32.xlu0 %v12558_v2 }
0x1b0b   :  { %v12563_v58 = vpop.xlane.xlu0 %2819 }
0x1b0c   :  { %18787 = vst [vmem:[#allocation124_spill] sm:$0xff] %v12563_v58  ;;  %vm2821_vm6 = vcmp.eq.f32.partialorder %v18788_v26, %v12563_v58  ;;  %v18860_v58 = vld [vmem:[#allocation79_spill] sm:$0xff] }
0x1b0d   :  { %v2822_v30 = vsel %vm2821_vm6, %v2817_v61, inf  ;;  %v18814_v61 = vld [vmem:[#allocation106_spill] sm:$0xff] }
0x1b0e   :  { %2823 = vmin.xlane.f32.xlu0 %v2822_v30 }
0x1b18   :  { %v12568_v6 = vpop.xlane.xlu1 %2849 }
0x1b19   :  { %18790 = vst [vmem:[#allocation125_spill] sm:$0xff] %v12568_v6  ;;  %vm2851_vm7 = vcmp.eq.f32.partialorder %v18791_v44, %v12568_v6  ;;  %v18816_v44 = vld [vmem:[#allocation18_spill] sm:$0xff] }
0x1b1a   :  { %v2852_v14 = vsel %vm2851_vm7, %v2847_v22, inf }
0x1b1b   :  { %2853 = vmin.xlane.f32.xlu0 %v2852_v14 }
0x1b3d   :  { %v3374_v46 = vpop.xlane.xlu1 %3373 }
0x1b3e   :  { %v3420_v52 = vrot.slane %v3374_v46, %v18792_v51  ;;  %v3424_v27 = vrot.slane %v3374_v46, %v18793_v40  ;;  %v3428_v18 = vrot.slane %v3374_v46, %v18800_v9  ;;  %v3432_v56 = vrot.slane %v3374_v46, %v18803_v24 }
0x1b3f   :  { %v12623_v26 = vadd.f32 %v18814_v61, %v3374_v46 }
0x1b40   :  { %vm3522_vm8 = vcmp.eq.f32.partialorder %v18794_v31, %v3420_v52  ;;  %vm3521_vm9 = vcmp.eq.f32.partialorder %v18795_v15, %v3420_v52  ;;  %vm3524_vm10 = vcmp.eq.f32.partialorder %v18798_v4, %v3424_v27  ;;  %vm3523_vm11 = vcmp.eq.f32.partialorder %v18799_v37, %v3424_v27  ;;  %v18818_v52 = vld [vmem:[#allocation108_spill] sm:$0xff]  ;;  %v18819_v31 = vld [vmem:[#allocation19_spill] sm:$0xff]  ;;  %v18822_v4 = vld [vmem:[#allocation14_spill] sm:$0xff] }
0x1b41   :  { %v3570_v42 = vsel %vm3522_vm8, %v18796_v49, 12  ;;  %v3569_v45 = vsel %vm3521_vm9, %v18797_v35, 12  ;;  %v3572_v23 = vsel %vm3524_vm10, %v18796_v49, 12  ;;  %v3571_v50 = vsel %vm3523_vm11, %v18797_v35, 12 }
0x1b42   :  { %3653 = vperm.xlu1 %10670, %v3570_v42   ;;  %3650 = vperm.xlu0 %10671, %v3569_v45   ;;  %vm3526_vm6 = vcmp.eq.f32.partialorder %v18801_v33, %v3428_v18  ;;  %vm3525_vm7 = vcmp.eq.f32.partialorder %v18802_v5, %v3428_v18  ;;  %vm3528_vm8 = vcmp.eq.f32.partialorder %v18804_v36, %v3432_v56  ;;  %v18821_v45 = vld [vmem:[#allocation110_spill] sm:$0xff]  ;;  %v18823_v18 = vld [vmem:[#allocation20_spill] sm:$0xff]  ;;  %v18826_v5 = vld [vmem:[#allocation15_spill] sm:$0xff] }
0x1b43   :  { %v3574_v47 = vsel %vm3526_vm6, %v18796_v49, 12  ;;  %v3573_v1 = vsel %vm3525_vm7, %v18797_v35, 12  ;;  %vm3527_vm9 = vcmp.eq.f32.partialorder %v18805_v29, %v3432_v56  ;;  %v3576_v10 = vsel %vm3528_vm8, %v18796_v49, 12  ;;  %v18825_v33 = vld [vmem:[#allocation112_spill] sm:$0xff]  ;;  %v18829_v29 = vld [vmem:[#allocation114_spill] sm:$0xff] }
0x1b44   :  { %v3575_v7 = vsel %vm3527_vm9, %v18797_v35, 12  ;;  %v12635_v14 = vadd.f32 %v12623_v26, %v18816_v44  ;;  %v12647_v15 = vadd.f32 %v12623_v26, %v18819_v31 }
0x1b46   :  { %3659 = vperm.xlu1 %10670, %v3572_v23   ;;  %3656 = vperm.xlu0 %10671, %v3571_v50   ;;  %18817 = vst [vmem:[#allocation85_spill] sm:$0xff] %v12635_v14  ;;  %18820 = vst [vmem:[#allocation126_spill] sm:$0xff] %v12647_v15  ;;  %v12659_v23 = vadd.f32 %v12623_v26, %v18823_v18 }
0x1b48   :  { %18824 = vst [vmem:[#allocation127_spill] sm:$0xff] %v12659_v23 }
0x1b4a   :  { %3665 = vperm.xlu1 %10670, %v3574_v47   ;;  %3662 = vperm.xlu0 %10671, %v3573_v1   ;;  %v18827_v47 = vld [vmem:[#allocation21_spill] sm:$0xff] }
0x1b4b   :  { %v12671_v1 = vadd.f32 %v12623_v26, %v18827_v47 }
0x1b4d   :  { %18828 = vst [vmem:[#allocation121_spill] sm:$0xff] %v12671_v1 }
0x1b4e   :  { %3671 = vperm.xlu1 %10670, %v3576_v10   ;;  %3668 = vperm.xlu0 %10671, %v3575_v7   ;;  %v18830_v10 = vld [vmem:[#allocation16_spill] sm:$0xff] }
0x1b6d   :  { %v12592_v0 = vpop.xlane.xlu0 %3379 }
0x1b6e   :  { %v3468_v16 = vrot.slane %v12592_v0, %v18792_v51  ;;  %v3472_v62 = vrot.slane %v12592_v0, %v18793_v40  ;;  %v3476_v59 = vrot.slane %v12592_v0, %v18800_v9  ;;  %v3480_v28 = vrot.slane %v12592_v0, %v18803_v24 }
0x1b70   :  { %vm3546_vm10 = vcmp.eq.f32.partialorder %v18806_v20, %v3468_v16  ;;  %vm3545_vm11 = vcmp.eq.f32.partialorder %v18807_v3, %v3468_v16  ;;  %vm3548_vm6 = vcmp.eq.f32.partialorder %v18808_v21, %v3472_v62  ;;  %vm3547_vm7 = vcmp.eq.f32.partialorder %v18809_v17, %v3472_v62  ;;  %v18831_v16 = vld [vmem:[#allocation22_spill] sm:$0xff]  ;;  %v18833_v3 = vld [vmem:[#allocation116_spill] sm:$0xff]  ;;  %v18835_v17 = vld [vmem:[#allocation23_spill] sm:$0xff] }
0x1b71   :  { %v3594_v39 = vsel %vm3546_vm10, %v18796_v49, 12  ;;  %v3593_v32 = vsel %vm3545_vm11, %v18797_v35, 12  ;;  %v3596_v34 = vsel %vm3548_vm6, %v18796_v49, 12  ;;  %v3595_v43 = vsel %vm3547_vm7, %v18797_v35, 12  ;;  %v12612_v25 = vpop.xlane.xlu0 %3370 }
0x1b72   :  { %3725 = vperm.xlu1 %10670, %v3594_v39   ;;  %3722 = vperm.xlu0 %10671, %v3593_v32   ;;  %vm3550_vm8 = vcmp.eq.f32.partialorder %v18810_v48, %v3476_v59  ;;  %vm3549_vm9 = vcmp.eq.f32.partialorder %v18811_v60, %v3476_v59  ;;  %vm3552_vm10 = vcmp.eq.f32.partialorder %v18812_v54, %v3480_v28  ;;  %v18834_v39 = vld [vmem:[#allocation17_spill] sm:$0xff]  ;;  %v18838_v60 = vld [vmem:[#allocation24_spill] sm:$0xff] }
0x1b73   :  { %v3598_v12 = vsel %vm3550_vm8, %v18796_v49, 12  ;;  %v3597_v38 = vsel %vm3549_vm9, %v18797_v35, 12  ;;  %vm3551_vm11 = vcmp.eq.f32.partialorder %v18813_v41, %v3480_v28  ;;  %v12620_v53 = vrot.slane %v12612_v25, %v18792_v51  ;;  %v18841_v41 = vld [vmem:[#allocation25_spill] sm:$0xff] }
0x1b74   :  { %v3600_v30 = vsel %vm3552_vm10, %v18796_v49, 12  ;;  %v3599_v57 = vsel %vm3551_vm11, %v18797_v35, 12  ;;  %v12631_v22 = vrot.slane %v12612_v25, %v18800_v9  ;;  %v12643_v27 = vrot.slane %v12612_v25, %v18803_v24 }
0x1b75   :  { %vm3506_vm6 = vcmp.eq.f32.partialorder %v18815_v55, %v12620_v53  ;;  %v12655_v37 = vrot.slane %v12612_v25, %v18822_v4  ;;  %v12667_v56 = vrot.slane %v12612_v25, %v18826_v5  ;;  %v12679_v7 = vrot.slane %v12612_v25, %v18830_v10  ;;  %v12693_v21 = vpop.xlane.xlu0 %3376 }
0x1b76   :  { %3731 = vperm.xlu1 %10670, %v3596_v34   ;;  %3728 = vperm.xlu0 %10671, %v3595_v43   ;;  %v3554_v46 = vsel %vm3506_vm6, %v18796_v49, 12  ;;  %vm3509_vm7 = vcmp.eq.f32.partialorder %v18818_v52, %v12631_v22  ;;  %vm3511_vm8 = vcmp.eq.f32.partialorder %v18821_v45, %v12643_v27  ;;  %v12683_v62 = vadd.f32 %v12623_v26, %v18831_v16  ;;  %v18837_v43 = vld [vmem:[#allocation118_spill] sm:$0xff]  ;;  %v18846_v45 = vld [vmem:[#allocation69_spill] sm:$0xff] }
0x1b77   :  { %v3557_v42 = vsel %vm3509_vm7, %v18797_v35, 12  ;;  %v3559_v50 = vsel %vm3511_vm8, %v18797_v35, 12  ;;  %vm3513_vm9 = vcmp.eq.f32.partialorder %v18825_v33, %v12655_v37  ;;  %vm3515_vm10 = vcmp.eq.f32.partialorder %v18829_v29, %v12667_v56  ;;  %v18847_v33 = vld [vmem:[#allocation27_spill] sm:$0xff] }
0x1b78   :  { %v3561_v36 = vsel %vm3513_vm9, %v18797_v35, 12  ;;  %18832 = vst [vmem:[#allocation92_spill] sm:$0xff] %v12683_v62  ;;  %v3563_v20 = vsel %vm3515_vm10, %v18797_v35, 12  ;;  %vm3517_vm11 = vcmp.eq.f32.partialorder %v18833_v3, %v12679_v7  ;;  %v12691_v32 = vrot.slane %v12612_v25, %v18834_v39 }
0x1b79   :  { %v12697_v59 = vadd.f32 %v12623_v26, %v18835_v17  ;;  %v3565_v34 = vsel %vm3517_vm11, %v18797_v35, 12  ;;  %v12705_v48 = vrot.slane %v12693_v21, %v18792_v51  ;;  %v12709_v28 = vadd.f32 %v12623_v26, %v18838_v60 }
0x1b7a   :  { %3737 = vperm.xlu1 %10670, %v3598_v12   ;;  %3734 = vperm.xlu0 %10671, %v3597_v38   ;;  %vm3519_vm6 = vcmp.eq.f32.partialorder %v18837_v43, %v12691_v32  ;;  %v18840_v38 = vld [vmem:[#allocation93_spill] sm:$0xff]  ;;  %v12717_v54 = vrot.slane %v12693_v21, %v18793_v40  ;;  %v12721_v61 = vadd.f32 %v12623_v26, %v18841_v41 }
0x1b7b   :  { %18836 = vst [vmem:[#allocation95_spill] sm:$0xff] %v12697_v59  ;;  %18839 = vst [vmem:[#allocation122_spill] sm:$0xff] %v12709_v28  ;;  %v3567_v12 = vsel %vm3519_vm6, %v18797_v35, 12  ;;  %vm3529_vm7 = vcmp.eq.f32.partialorder %v18840_v38, %v12705_v48  ;;  %v12729_v55 = vrot.slane %v12693_v21, %v18800_v9  ;;  %v12753_v3 = vrot.slane %v12693_v21, %v18822_v4  ;;  %v18852_v38 = vld [vmem:[#allocation73_spill] sm:$0xff] }
0x1b7c   :  { %18842 = vst [vmem:[#allocation123_spill] sm:$0xff] %v12721_v61 }
0x1b7d   :  { %vm3533_vm9 = vcmp.eq.f32.partialorder %v18846_v45, %v12729_v55  ;;  %vm3537_vm11 = vcmp.eq.f32.partialorder %v18852_v38, %v12753_v3  ;;  %v18854_v45 = vld [vmem:[#allocation29_spill] sm:$0xff]  ;;  %v12779_v38 = vrot.slane %v12693_v21, %v18830_v10 }
0x1b7e   :  { %3743 = vperm.xlu1 %10670, %v3600_v30   ;;  %3740 = vperm.xlu0 %10671, %v3599_v57   ;;  %v3577_v30 = vsel %vm3529_vm7, %v18797_v35, 12  ;;  %v18843_v57 = vld [vmem:[#allocation67_spill] sm:$0xff]  ;;  %v3581_v29 = vsel %vm3533_vm9, %v18797_v35, 12 }
0x1b7f   :  { %vm3531_vm8 = vcmp.eq.f32.partialorder %v18843_v57, %v12717_v54  ;;  %v18853_v57 = vld [vmem:[#allocation101_spill] sm:$0xff] }
0x1b82   :  { %4171 = vperm.xlu1 %10670, %v12635_v14   ;;  %3605 = vperm.xlu0 %10671, %v3554_v46   ;;  %v18844_v46 = vld [vmem:[#allocation26_spill] sm:$0xff] }
0x1b83   :  { %v12733_v52 = vadd.f32 %v12623_v26, %v18844_v46 }
0x1b85   :  { %18845 = vst [vmem:[#allocation74_spill] sm:$0xff] %v12733_v52 }
0x1b86   :  { %4177 = vperm.xlu1 %10670, %v12647_v15   ;;  %3614 = vperm.xlu0 %10671, %v3557_v42   ;;  %v3579_v42 = vsel %vm3531_vm8, %v18797_v35, 12 }
0x1b8a   :  { %4183 = vperm.xlu1 %10670, %v12659_v23   ;;  %3620 = vperm.xlu0 %10671, %v3559_v50   ;;  %v12741_v50 = vrot.slane %v12693_v21, %v18803_v24 }
0x1b8e   :  { %4189 = vperm.xlu1 %10670, %v12671_v1   ;;  %3626 = vperm.xlu0 %10671, %v3561_v36   ;;  %v12745_v36 = vadd.f32 %v12623_v26, %v18847_v33  ;;  %v18873_v1 = vld [vmem:[#allocation35_spill] sm:$0xff] }
0x1b90   :  { %18848 = vst [vmem:[#allocation120_spill] sm:$0xff] %v12745_v36 }
0x1b92   :  { %4195 = vperm.xlu1 %10670, %v12683_v62   ;;  %3632 = vperm.xlu0 %10671, %v3563_v20   ;;  %v18849_v20 = vld [vmem:[#allocation71_spill] sm:$0xff] }
0x1b93   :  { %vm3535_vm10 = vcmp.eq.f32.partialorder %v18849_v20, %v12741_v50  ;;  %v3585_v20 = vsel %vm3537_vm11, %v18797_v35, 12 }
0x1b96   :  { %4201 = vperm.xlu1 %10670, %v12697_v59   ;;  %3638 = vperm.xlu0 %10671, %v3565_v34   ;;  %v18850_v34 = vld [vmem:[#allocation28_spill] sm:$0xff] }
0x1b97   :  { %v12757_v43 = vadd.f32 %v12623_v26, %v18850_v34 }
0x1b99   :  { %18851 = vst [vmem:[#allocation76_spill] sm:$0xff] %v12757_v43 }
0x1b9a   :  { %4207 = vperm.xlu1 %10670, %v12709_v28   ;;  %3644 = vperm.xlu0 %10671, %v3567_v12   ;;  %v3583_v12 = vsel %vm3535_vm10, %v18797_v35, 12 }
0x1b9e   :  { %4213 = vperm.xlu1 %10670, %v12721_v61   ;;  %3674 = vperm.xlu0 %10671, %v3577_v30   ;;  %v12765_v30 = vrot.slane %v12693_v21, %v18826_v5  ;;  %v18892_v5 = vld [vmem:[#allocation40_spill] sm:$0xff] }
0x1ba2   :  { %4219 = vperm.xlu1 %10670, %v12733_v52   ;;  %3680 = vperm.xlu0 %10671, %v3579_v42   ;;  %v4070_v42 = vadd.f32 %v18853_v57, %v12592_v0  ;;  %v12790_v57 = vrot.slane %v12693_v21, %v18834_v39 }
0x1ba4   :  { %v12782_v6 = vadd.f32 %v4070_v42, %v18816_v44  ;;  %vm3543_vm8 = vcmp.eq.f32.partialorder %v18860_v58, %v12790_v57  ;;  %v12809_v28 = vadd.f32 %v4070_v42, %v18827_v47  ;;  %v12818_v58 = vadd.f32 %v4070_v42, %v18831_v16  ;;  %v18886_v16 = vld [vmem:[#allocation38_spill] sm:$0xff]  ;;  %v18889_v47 = vld [vmem:[#allocation39_spill] sm:$0xff] }
0x1ba5   :  { %v3591_v61 = vsel %vm3543_vm8, %v18797_v35, 12  ;;  %v12847_v15 = vadd.f32 %v4070_v42, %v18841_v41  ;;  %v12866_v41 = vpop.xlane.xlu1 %2834  ;;  %v18898_v44 = vld [vmem:[#allocation42_spill] sm:$0xff] }
0x1ba6   :  { %4225 = vperm.xlu1 %10670, %v12745_v36   ;;  %3686 = vperm.xlu0 %10671, %v3581_v29   ;;  %v12771_v29 = vadd.f32 %v12623_v26, %v18854_v45  ;;  %18857 = vst [vmem:[#allocation78_spill] sm:$0xff] %v12782_v6  ;;  %v18858_v26 = vld [vmem:[#allocation77_spill] sm:$0xff]  ;;  %18863 = vst [vmem:[#allocation65_spill] sm:$0xff] %v12809_v28 }
0x1ba7   :  { %vm3541_vm7 = vcmp.eq.f32.partialorder %v18858_v26, %v12779_v38  ;;  %v12804_v26 = vadd.f32 %v4070_v42, %v18823_v18  ;;  %18866 = vst [vmem:[#allocation81_spill] sm:$0xff] %v12818_v58  ;;  %18876 = vst [vmem:[#allocation106_spill] sm:$0xff] %v12847_v15 }
0x1ba8   :  { %18855 = vst [vmem:[#allocation61_spill] sm:$0xff] %v12771_v29  ;;  %18883 = vst [vmem:[#allocation114_spill] sm:$0xff] %v12866_v41 }
0x1ba9   :  { %18862 = vst [vmem:[#allocation80_spill] sm:$0xff] %v12804_v26 }
0x1baa   :  { %4231 = vperm.xlu1 %10670, %v12757_v43   ;;  %3692 = vperm.xlu0 %10671, %v3583_v12   ;;  %v18856_v12 = vld [vmem:[#allocation75_spill] sm:$0xff] }
0x1bab   :  { %vm3539_vm6 = vcmp.eq.f32.partialorder %v18856_v12, %v12765_v30  ;;  %v3589_v12 = vsel %vm3541_vm7, %v18797_v35, 12 }
0x1bac   :  { %v3587_v0 = vsel %vm3539_vm6, %v18797_v35, 12 }
0x1bae   :  { %4237 = vperm.xlu1 %10670, %v12771_v29   ;;  %3698 = vperm.xlu0 %10671, %v3585_v20   ;;  %v12793_v20 = vadd.f32 %v4070_v42, %v18819_v31 }
0x1bb0   :  { %18859 = vst [vmem:[#allocation64_spill] sm:$0xff] %v12793_v20 }
0x1bb2   :  { %4243 = vperm.xlu1 %10670, %v12782_v6   ;;  %3704 = vperm.xlu0 %10671, %v3587_v0   ;;  %v18861_v0 = vld [vmem:[#allocation97_spill] sm:$0xff] }
0x1bb3   :  { %v12801_v6 = vadd.f32 %v18861_v0, %v12612_v25  ;;  %v18867_v0 = vld [vmem:[#allocation33_spill] sm:$0xff] }
0x1bb5   :  { %v12822_v59 = vadd.f32 %v12801_v6, %v18867_v0  ;;  %v12840_v23 = vadd.f32 %v12801_v6, %v18873_v1 }
0x1bb6   :  { %4249 = vperm.xlu1 %10670, %v12793_v20   ;;  %3710 = vperm.xlu0 %10671, %v3589_v12   ;;  %v18864_v20 = vld [vmem:[#allocation32_spill] sm:$0xff] }
0x1bb7   :  { %v12813_v12 = vadd.f32 %v12801_v6, %v18864_v20  ;;  %18868 = vst [vmem:[#allocation115_spill] sm:$0xff] %v12822_v59  ;;  %18874 = vst [vmem:[#allocation119_spill] sm:$0xff] %v12840_v23 }
0x1bb9   :  { %18865 = vst [vmem:[#allocation113_spill] sm:$0xff] %v12813_v12 }
0x1bba   :  { %4255 = vperm.xlu1 %10670, %v12804_v26   ;;  %3716 = vperm.xlu0 %10671, %v3591_v61   ;;  %v12827_v61 = vadd.f32 %v4070_v42, %v18835_v17  ;;  %v18870_v26 = vld [vmem:[#allocation34_spill] sm:$0xff] }
0x1bbb   :  { %v12831_v62 = vadd.f32 %v12801_v6, %v18870_v26 }
0x1bbc   :  { %18869 = vst [vmem:[#allocation83_spill] sm:$0xff] %v12827_v61 }
0x1bbd   :  { %18871 = vst [vmem:[#allocation117_spill] sm:$0xff] %v12831_v62 }
0x1bbe   :  { %4261 = vperm.xlu1 %10670, %v12809_v28   ;;  %4168 = vperm.xlu0 %10671, %v12813_v12   ;;  %v12836_v28 = vadd.f32 %v4070_v42, %v18838_v60  ;;  %v12858_v60 = vadd.f32 %v4070_v42, %v18844_v46  ;;  %v12879_v46 = vpop.permute.xlu1 %3653 }
0x1bbf   :  { %v3824_v29 = vrot.slane %v12879_v46, %v11448_v19 }
0x1bc0   :  { %18872 = vst [vmem:[#allocation87_spill] sm:$0xff] %v12836_v28  ;;  %18880 = vst [vmem:[#allocation110_spill] sm:$0xff] %v12858_v60 }
0x1bc2   :  { %4267 = vperm.xlu1 %10670, %v12818_v58   ;;  %4174 = vperm.xlu0 %10671, %v12822_v59   ;;  %v12844_v58 = vpop.xlane.xlu0 %2804  ;;  %v18877_v59 = vld [vmem:[#allocation36_spill] sm:$0xff] }
0x1bc3   :  { %18875 = vst [vmem:[#allocation89_spill] sm:$0xff] %v12844_v58 }
0x1bc6   :  { %4273 = vperm.xlu1 %10670, %v12827_v61   ;;  %4180 = vperm.xlu0 %10671, %v12831_v62   ;;  %v12851_v61 = vadd.f32 %v12801_v6, %v18877_v59  ;;  %v12855_v12 = vpop.xlane.xlu0 %2823 }
0x1bc7   :  { %18879 = vst [vmem:[#allocation108_spill] sm:$0xff] %v12855_v12  ;;  %v12875_v12 = vadd.f32 %v12801_v6, %v18886_v16 }
0x1bc8   :  { %18878 = vst [vmem:[#allocation99_spill] sm:$0xff] %v12851_v61 }
0x1bc9   :  { %18887 = vst [vmem:[#allocation93_spill] sm:$0xff] %v12875_v12 }
0x1bca   :  { %4279 = vperm.xlu1 %10670, %v12836_v28   ;;  %4186 = vperm.xlu0 %10671, %v12840_v23   ;;  %v18881_v28 = vld [vmem:[#allocation37_spill] sm:$0xff]  ;;  %v12868_v39 = vpop.xlane.xlu0 %2853  ;;  %v18897_v23 = vld [vmem:[#allocation94_spill] sm:$0xff] }
0x1bcb   :  { %v12862_v17 = vadd.f32 %v12801_v6, %v18881_v28  ;;  %18884 = vst [vmem:[#allocation116_spill] sm:$0xff] %v12868_v39  ;;  %v12888_v39 = vadd.f32 %v12801_v6, %v18889_v47 }
0x1bcd   :  { %18882 = vst [vmem:[#allocation112_spill] sm:$0xff] %v12862_v17  ;;  %18890 = vst [vmem:[#allocation69_spill] sm:$0xff] %v12888_v39 }
0x1bce   :  { %4285 = vperm.xlu1 %10670, %v12847_v15   ;;  %4192 = vperm.xlu0 %10671, %v12851_v61   ;;  %v12871_v15 = vadd.f32 %v4070_v42, %v18847_v33  ;;  %v12881_v10 = vpop.permute.xlu0 %3650  ;;  %v12893_v33 = vadd.f32 %v4070_v42, %v18854_v45  ;;  %v12899_v61 = vpop.permute.xlu1 %3659 }
0x1bd0   :  { %18885 = vst [vmem:[#allocation118_spill] sm:$0xff] %v12871_v15  ;;  %18891 = vst [vmem:[#allocation71_spill] sm:$0xff] %v12893_v33 }
0x1bd2   :  { %4291 = vperm.xlu1 %10670, %v12858_v60   ;;  %4198 = vperm.xlu0 %10671, %v12862_v17   ;;  %v12884_v17 = vadd.f32 %v4070_v42, %v18850_v34  ;;  %v12901_v18 = vpop.permute.xlu0 %3656  ;;  %v18894_v34 = vld [vmem:[#allocation88_spill] sm:$0xff]  ;;  %v18895_v42 = vld [vmem:[#allocation41_spill] sm:$0xff]  ;;  %v12916_v31 = vpop.permute.xlu1 %3665 }
0x1bd3   :  { %vm3505_vm9 = vcmp.eq.f32.partialorder %v18894_v34, %v12620_v53  ;;  %v12911_v45 = vadd.f32 %v12801_v6, %v18895_v42  ;;  %v12922_v53 = vadd.f32 %v12801_v6, %v18898_v44  ;;  %v18900_v34 = vld [vmem:[#allocation98_spill] sm:$0xff] }
0x1bd4   :  { %18888 = vst [vmem:[#allocation67_spill] sm:$0xff] %v12884_v17  ;;  %v3553_v4 = vsel %vm3505_vm9, %v18797_v35, 12 }
0x1bd5   :  { %18896 = vst [vmem:[#allocation101_spill] sm:$0xff] %v12911_v45  ;;  %18899 = vst [vmem:[#allocation75_spill] sm:$0xff] %v12922_v53 }
0x1bd6   :  { %4297 = vperm.xlu1 %10670, %v12871_v15   ;;  %4204 = vperm.xlu0 %10671, %v12875_v12   ;;  %v12897_v12 = vadd.f32 %v12801_v6, %v18892_v5  ;;  %v12918_v62 = vpop.permute.xlu0 %3662 }
0x1bd8   :  { %18893 = vst [vmem:[#allocation73_spill] sm:$0xff] %v12897_v12 }
0x1bda   :  { %4303 = vperm.xlu1 %10670, %v12884_v17   ;;  %4210 = vperm.xlu0 %10671, %v12888_v39   ;;  %v3392_v39 = vrot.slane %v12612_v25, %v18793_v40  ;;  %v12935_v17 = vpop.permute.xlu1 %3671  ;;  %v12937_v15 = vpop.permute.xlu0 %3668 }
0x1bdb   :  { %v3851_v24 = vrot.slane %v12935_v17, %v11448_v19 }
0x1bdc   :  { %vm3507_vm10 = vcmp.eq.f32.partialorder %v18897_v23, %v3392_v39  ;;  %vm3508_vm11 = vcmp.eq.f32.partialorder %v18900_v34, %v3392_v39  ;;  %v18902_v23 = vld [vmem:[#allocation43_spill] sm:$0xff] }
0x1bdd   :  { %v3555_v25 = vsel %vm3507_vm10, %v18797_v35, 12  ;;  %v3556_v60 = vsel %vm3508_vm11, %v18796_v49, 12 }
0x1bde   :  { %4309 = vperm.xlu1 %10670, %v12893_v33   ;;  %4216 = vperm.xlu0 %10671, %v12897_v12   ;;  %v12933_v33 = vadd.f32 %v12801_v6, %v18902_v23 }
0x1be0   :  { %18903 = vst [vmem:[#allocation77_spill] sm:$0xff] %v12933_v33 }
0x1be2   :  { %3602 = vperm.xlu1 %10670, %v3553_v4   ;;  %4222 = vperm.xlu0 %10671, %v12911_v45   ;;  %v18901_v4 = vld [vmem:[#allocation100_spill] sm:$0xff] }
0x1be3   :  { %v12929_v14 = vadd.f32 %v18901_v4, %v12693_v21 }
0x1be5   :  { %v12945_v39 = vadd.f32 %v12929_v14, %v18864_v20  ;;  %v12957_v4 = vadd.f32 %v12929_v14, %v18867_v0 }
0x1be6   :  { %3608 = vperm.xlu1 %10670, %v3555_v25   ;;  %4228 = vperm.xlu0 %10671, %v12922_v53   ;;  %v18904_v25 = vld [vmem:[#allocation104_spill] sm:$0xff] }
0x1be7   :  { %vm3510_vm6 = vcmp.eq.f32.partialorder %v18904_v25, %v12631_v22  ;;  %18905 = vst [vmem:[#allocation79_spill] sm:$0xff] %v12945_v39  ;;  %18907 = vst [vmem:[#allocation97_spill] sm:$0xff] %v12957_v4 }
0x1be8   :  { %v3558_v34 = vsel %vm3510_vm6, %v18796_v49, 12 }
0x1bea   :  { %3611 = vperm.xlu1 %10670, %v3556_v60   ;;  %4234 = vperm.xlu0 %10671, %v12933_v33   ;;  %v18906_v60 = vld [vmem:[#allocation63_spill] sm:$0xff] }
0x1beb   :  { %vm3512_vm7 = vcmp.eq.f32.partialorder %v18906_v60, %v12643_v27 }
0x1bec   :  { %v3560_v20 = vsel %vm3512_vm7, %v18796_v49, 12 }
0x1bed   :  { %v12947_v21 = vpop.permute.xlu1 %3725  ;;  %v12949_v6 = vpop.permute.xlu0 %3722 }
0x1bee   :  { %3617 = vperm.xlu1 %10670, %v3558_v34   ;;  %4240 = vperm.xlu0 %10671, %v12945_v39   ;;  %v18908_v34 = vld [vmem:[#allocation66_spill] sm:$0xff]  ;;  %v12969_v39 = vadd.f32 %v12929_v14, %v18870_v26 }
0x1bef   :  { %vm3514_vm8 = vcmp.eq.f32.partialorder %v18908_v34, %v12655_v37 }
0x1bf0   :  { %18909 = vst [vmem:[#allocation88_spill] sm:$0xff] %v12969_v39  ;;  %v3562_v0 = vsel %vm3514_vm8, %v18796_v49, 12 }
0x1bf1   :  { %v12959_v22 = vpop.permute.xlu1 %3731  ;;  %v12961_v25 = vpop.permute.xlu0 %3728 }
0x1bf2   :  { %3623 = vperm.xlu1 %10670, %v3560_v20   ;;  %4246 = vperm.xlu0 %10671, %v12957_v4   ;;  %v18910_v20 = vld [vmem:[#allocation68_spill] sm:$0xff]  ;;  %v12981_v4 = vadd.f32 %v12929_v14, %v18873_v1 }
0x1bf3   :  { %vm3516_vm9 = vcmp.eq.f32.partialorder %v18910_v20, %v12667_v56 }
0x1bf4   :  { %18911 = vst [vmem:[#allocation94_spill] sm:$0xff] %v12981_v4  ;;  %v3564_v26 = vsel %vm3516_vm9, %v18796_v49, 12 }
0x1bf5   :  { %v12971_v27 = vpop.permute.xlu1 %3737  ;;  %v12973_v60 = vpop.permute.xlu0 %3734 }
0x1bf6   :  { %3629 = vperm.xlu1 %10670, %v3562_v0   ;;  %4252 = vperm.xlu0 %10671, %v12969_v39   ;;  %v18912_v0 = vld [vmem:[#allocation70_spill] sm:$0xff]  ;;  %v12993_v39 = vadd.f32 %v12929_v14, %v18877_v59 }
0x1bf7   :  { %vm3518_vm10 = vcmp.eq.f32.partialorder %v18912_v0, %v12679_v7 }
0x1bf8   :  { %18913 = vst [vmem:[#allocation98_spill] sm:$0xff] %v12993_v39  ;;  %v3566_v1 = vsel %vm3518_vm10, %v18796_v49, 12 }
0x1bf9   :  { %v12983_v37 = vpop.permute.xlu1 %3743  ;;  %v12985_v34 = vpop.permute.xlu0 %3740 }
0x1bfa   :  { %3635 = vperm.xlu1 %10670, %v3564_v26   ;;  %4258 = vperm.xlu0 %10671, %v12981_v4   ;;  %v18914_v26 = vld [vmem:[#allocation72_spill] sm:$0xff]  ;;  %v13005_v4 = vadd.f32 %v12929_v14, %v18881_v28 }
0x1bfb   :  { %vm3520_vm11 = vcmp.eq.f32.partialorder %v18914_v26, %v12691_v32 }
0x1bfc   :  { %18915 = vst [vmem:[#allocation100_spill] sm:$0xff] %v13005_v4  ;;  %v3568_v59 = vsel %vm3520_vm11, %v18796_v49, 12 }
0x1bfd   :  { %v12995_v56 = vpop.permute.xlu1 %4171  ;;  %v12997_v20 = vpop.permute.xlu0 %3605 }
0x1bfe   :  { %3641 = vperm.xlu1 %10670, %v3566_v1   ;;  %4264 = vperm.xlu0 %10671, %v12993_v39   ;;  %v18916_v1 = vld [vmem:[#allocation82_spill] sm:$0xff]  ;;  %v13017_v39 = vadd.f32 %v12929_v14, %v18886_v16 }
0x1bff   :  { %vm3530_vm6 = vcmp.eq.f32.partialorder %v18916_v1, %v12705_v48 }
0x1c00   :  { %18917 = vst [vmem:[#allocation104_spill] sm:$0xff] %v13017_v39  ;;  %v3578_v28 = vsel %vm3530_vm6, %v18796_v49, 12 }
0x1c01   :  { %v13007_v7 = vpop.permute.xlu1 %4177  ;;  %v13009_v0 = vpop.permute.xlu0 %3614 }
0x1c02   :  { %3647 = vperm.xlu1 %10670, %v3568_v59   ;;  %4270 = vperm.xlu0 %10671, %v13005_v4   ;;  %v18918_v59 = vld [vmem:[#allocation84_spill] sm:$0xff]  ;;  %v13029_v4 = vadd.f32 %v12929_v14, %v18889_v47 }
0x1c03   :  { %vm3532_vm7 = vcmp.eq.f32.partialorder %v18918_v59, %v12717_v54 }
0x1c04   :  { %18919 = vst [vmem:[#allocation63_spill] sm:$0xff] %v13029_v4  ;;  %v3580_v16 = vsel %vm3532_vm7, %v18796_v49, 12 }
0x1c05   :  { %v13019_v32 = vpop.permute.xlu1 %4183  ;;  %v13021_v26 = vpop.permute.xlu0 %3620 }
0x1c06   :  { %3677 = vperm.xlu1 %10670, %v3578_v28   ;;  %4276 = vperm.xlu0 %10671, %v13017_v39   ;;  %v18920_v28 = vld [vmem:[#allocation86_spill] sm:$0xff]  ;;  %v13041_v39 = vadd.f32 %v12929_v14, %v18892_v5 }
0x1c07   :  { %vm3534_vm8 = vcmp.eq.f32.partialorder %v18920_v28, %v12729_v55 }
0x1c08   :  { %18921 = vst [vmem:[#allocation66_spill] sm:$0xff] %v13041_v39  ;;  %v3582_v47 = vsel %vm3534_vm8, %v18796_v49, 12  ;;  %vm2836_vm8 = vcmp.eq.f32.partialorder %v12556_v63, %v12866_v41  ;;  %v3955_v63 = vrot.slane %v12985_v34, %v11445_v8 }
0x1c09   :  { %v13031_v48 = vpop.permute.xlu1 %4189  ;;  %v13033_v1 = vpop.permute.xlu0 %3626 }
0x1c0a   :  { %3683 = vperm.xlu1 %10670, %v3580_v16   ;;  %4282 = vperm.xlu0 %10671, %v13029_v4   ;;  %v18922_v16 = vld [vmem:[#allocation96_spill] sm:$0xff]  ;;  %v13053_v4 = vadd.f32 %v12929_v14, %v18895_v42 }
0x1c0b   :  { %vm3536_vm9 = vcmp.eq.f32.partialorder %v18922_v16, %v12741_v50 }
0x1c0c   :  { %18923 = vst [vmem:[#allocation68_spill] sm:$0xff] %v13053_v4  ;;  %v3584_v5 = vsel %vm3536_vm9, %v18796_v49, 12  ;;  %vm2806_vm9 = vcmp.eq.f32.partialorder %v12558_v2, %v12844_v58 }
0x1c0d   :  { %v13043_v54 = vpop.permute.xlu1 %4195  ;;  %v13045_v59 = vpop.permute.xlu0 %3632 }
0x1c0e   :  { %3689 = vperm.xlu1 %10670, %v3582_v47   ;;  %4288 = vperm.xlu0 %10671, %v13041_v39   ;;  %v18925_v47 = vld [vmem:[#allocation91_spill] sm:$0xff]  ;;  %v13065_v39 = vadd.f32 %v12929_v14, %v18898_v44 }
0x1c0f   :  { %vm3538_vm10 = vcmp.eq.f32.partialorder %v18925_v47, %v12753_v3 }
0x1c10   :  { %18926 = vst [vmem:[#allocation72_spill] sm:$0xff] %v13065_v39  ;;  %v3586_v42 = vsel %vm3538_vm10, %v18796_v49, 12 }
0x1c11   :  { %v13055_v55 = vpop.permute.xlu1 %4201  ;;  %v13057_v28 = vpop.permute.xlu0 %3638 }
0x1c12   :  { %18924 = vst [vmem:[#allocation70_spill] sm:$0xff] %v13057_v28  ;;  %3695 = vperm.xlu1 %10670, %v3584_v5   ;;  %4294 = vperm.xlu0 %10671, %v13053_v4   ;;  %v18927_v5 = vld [vmem:[#allocation90_spill] sm:$0xff]  ;;  %v13077_v4 = vadd.f32 %v12929_v14, %v18902_v23  ;;  %v18931_v14 = vld [vmem:[#allocation111_spill] sm:$0xff] }
0x1c13   :  { %vm3540_vm11 = vcmp.eq.f32.partialorder %v18927_v5, %v12765_v30  ;;  %vm3544_vm7 = vcmp.eq.f32.partialorder %v18931_v14, %v12790_v57  ;;  %v3842_v57 = vrot.slane %v12916_v31, %v11448_v19  ;;  %v3838_v14 = vrot.slane %v12918_v62, %v11445_v8 }
0x1c14   :  { %18928 = vst [vmem:[#allocation82_spill] sm:$0xff] %v13077_v4  ;;  %v3588_v44 = vsel %vm3540_vm11, %v18796_v49, 12 }
0x1c15   :  { %v13067_v50 = vpop.permute.xlu1 %4207  ;;  %v13069_v16 = vpop.permute.xlu0 %3644  ;;  %v3843_v62 = vsel %vm1940_vm14, %v3842_v57, %v3838_v14  ;;  %v3950_v14 = vrot.slane %v12971_v27, %v11448_v19 }
0x1c16   :  { %3701 = vperm.xlu1 %10670, %v3586_v42   ;;  %4300 = vperm.xlu0 %10671, %v13065_v39   ;;  %v18930_v42 = vld [vmem:[#allocation109_spill] sm:$0xff] }
0x1c17   :  { %vm3542_vm6 = vcmp.eq.f32.partialorder %v18930_v42, %v12779_v38  ;;  %v3833_v42 = vrot.slane %v12899_v61, %v11448_v19  ;;  %v3847_v61 = vrot.slane %v12937_v15, %v11445_v8 }
0x1c18   :  { %v3590_v30 = vsel %vm3542_vm6, %v18796_v49, 12 }
0x1c19   :  { %v13079_v3 = vpop.permute.xlu1 %4213  ;;  %v13081_v47 = vpop.permute.xlu0 %3674  ;;  %v3852_v46 = vsel %vm1940_vm14, %v3851_v24, %v3847_v61  ;;  %v3941_v24 = vrot.slane %v12959_v22, %v11448_v19  ;;  %v3932_v22 = vrot.slane %v12947_v21, %v11448_v19  ;;  %v3959_v61 = vrot.slane %v12983_v37, %v11448_v19 }
0x1c1a   :  { %18929 = vst [vmem:[#allocation84_spill] sm:$0xff] %v13081_v47  ;;  %3707 = vperm.xlu1 %10670, %v3588_v44   ;;  %4306 = vperm.xlu0 %10671, %v13077_v4   ;;  %v3592_v44 = vsel %vm3544_vm7, %v18796_v49, 12 }
0x1c1d   :  { %v13087_v39 = vpop.permute.xlu1 %4219  ;;  %v13089_v33 = vpop.permute.xlu0 %3680 }
0x1c1e   :  { %3713 = vperm.xlu1 %10670, %v3590_v30   ;;  %v3829_v30 = vrot.slane %v12901_v18, %v11445_v8  ;;  %v4390_v51 = vrot.slane %v13087_v39, %v11448_v19 }
0x1c20   :  { %v3834_v31 = vsel %vm1940_vm14, %v3833_v42, %v3829_v30  ;;  %v2830_v42 = vand.u32 65535, %v12553_v13  ;;  %v3937_v30 = vrot.slane %v12961_v25, %v11445_v8  ;;  %v3946_v13 = vrot.slane %v12973_v60, %v11445_v8 }
0x1c21   :  { %v13094_v5 = vpop.permute.xlu1 %4225  ;;  %v13096_v23 = vpop.permute.xlu0 %3686  ;;  %v3928_v25 = vrot.slane %v12949_v6, %v11445_v8  ;;  %v3960_v6 = vsel %vm1940_vm14, %v3959_v61, %v3955_v63 }
0x1c22   :  { %3719 = vperm.xlu1 %10670, %v3592_v44   ;;  %v3820_v44 = vrot.slane %v12881_v10, %v11445_v8  ;;  %v3942_v27 = vsel %vm1940_vm14, %v3941_v24, %v3937_v30  ;;  %v2800_v30 = vand.u32 65535, %v12540_v11  ;;  %v4399_v49 = vrot.slane %v13094_v5, %v11448_v19 }
0x1c23   :  { %v3933_v21 = vsel %vm1940_vm14, %v3932_v22, %v3928_v25 }
0x1c24   :  { %v3825_v43 = vsel %vm1940_vm14, %v3824_v29, %v3820_v44  ;;  %v3978_v37 = vsel %vm2149_vm15, %v3942_v27, %v3933_v21 }
0x1c25   :  { %v13099_v4 = vpop.permute.xlu1 %4231  ;;  %v13101_v38 = vpop.permute.xlu0 %3692  ;;  %v3968_v17 = vsel %vm2149_vm15, %v3834_v31, %v3825_v43 }
0x1c26   :  { %v3969_v15 = vsel %vm2151_vm0, %v3843_v62, %v3968_v17  ;;  %v4408_v40 = vrot.slane %v13099_v4, %v11448_v19 }
0x1c27   :  { %v3970_v45 = vsel %vm2153_vm1, %v3852_v46, %v3969_v15  ;;  %v3951_v46 = vsel %vm1940_vm14, %v3950_v14, %v3946_v13 }
0x1c28   :  { %v13140_v29 = vsel %vm1492_vm13, %v3970_v45, 2147483647  ;;  %v2832_v45 = vcvt.s32.f32 %v2830_v42  ;;  %v3979_v34 = vsel %vm2151_vm0, %v3951_v46, %v3978_v37 }
0x1c29   :  { %v13119_v53 = vpop.permute.xlu1 %4237  ;;  %v13121_v18 = vpop.permute.xlu0 %3698  ;;  %18932 = vst [vmem:[#allocation86_spill] sm:$0xff] %v13140_v29  ;;  %v3998_v44 = vshra.s32 %v13140_v29, 16  ;;  %v3980_v24 = vsel %vm2153_vm1, %v3960_v6, %v3979_v34 }
0x1c2a   :  { %v2837_v31 = vsel %vm2836_vm8, %v2832_v45, inf  ;;  %v13189_v45 = vsel %vm1492_vm13, %v3980_v24, 2147483647  ;;  %v4417_v5 = vrot.slane %v13119_v53, %v11448_v19 }
0x1c2b   :  { %v13173_v17 = vcvt.s32.f32 %v3998_v44  ;;  %18934 = vst [vmem:[#allocation91_spill] sm:$0xff] %v13189_v45  ;;  %v2802_v44 = vcvt.s32.f32 %v2800_v30  ;;  %v4028_v22 = vshra.s32 %v13189_v45, 16 }
0x1c2d   :  { %v13127_v9 = vpop.permute.xlu1 %4243  ;;  %v13129_v10 = vpop.permute.xlu0 %3704  ;;  %18933 = vst [vmem:[#allocation96_spill] sm:$0xff] %v13173_v17  ;;  %v2807_v63 = vsel %vm2806_vm9, %v2802_v44, inf  ;;  %v13198_v11 = vcvt.s32.f32 %v4028_v22 }
0x1c2e   :  { %v3901_v47 = vrot.slane %v13129_v10, %v11445_v8 }
0x1c2f   :  { %18935 = vst [vmem:[#allocation90_spill] sm:$0xff] %v13198_v11 }
0x1c31   :  { %v13134_v36 = vpop.permute.xlu1 %4249  ;;  %v13136_v35 = vpop.permute.xlu0 %3710 }
0x1c35   :  { %v13146_v43 = vpop.permute.xlu1 %4255  ;;  %v13148_v57 = vpop.permute.xlu0 %3716 }
0x1c39   :  { %v13166_v62 = vpop.permute.xlu1 %4261  ;;  %2838 = vmin.xlane.f32.xlu0 %v2837_v31  ;;  %v13168_v60 = vpop.permute.xlu0 %4168 }
0x1c3d   :  { %v13177_v15 = vpop.permute.xlu1 %4267  ;;  %4001 = vmin.xlane.f32.xlu0 %v13173_v17  ;;  %v13180_v42 = vpop.permute.xlu0 %4174 }
0x1c41   :  { %v13184_v14 = vpop.permute.xlu1 %4273  ;;  %v13186_v13 = vpop.permute.xlu0 %4180 }
0x1c45   :  { %v13194_v25 = vpop.permute.xlu1 %4279  ;;  %v13196_v61 = vpop.permute.xlu0 %4186 }
0x1c46   :  { %2808 = vmin.xlane.f32.xlu1 %v2807_v63 }
0x1c49   :  { %v13200_v31 = vpop.permute.xlu1 %4285  ;;  %v13202_v27 = vpop.permute.xlu0 %4192 }
0x1c4a   :  { %4031 = vmin.xlane.f32.xlu1 %v13198_v11 }
0x1c4d   :  { %v13205_v46 = vpop.permute.xlu1 %4291  ;;  %v13207_v2 = vpop.permute.xlu0 %4198 }
0x1c51   :  { %v13209_v21 = vpop.permute.xlu1 %4297  ;;  %v13211_v6 = vpop.permute.xlu0 %4204 }
0x1c55   :  { %v13213_v37 = vpop.permute.xlu1 %4303  ;;  %v13215_v34 = vpop.permute.xlu0 %4210 }
0x1c56   :  { %18936 = vst [vmem:[#allocation109_spill] sm:$0xff] %v13213_v37  ;;  %v4332_v37 = vrot.slane %v13186_v13, %v11445_v8 }
0x1c59   :  { %v13217_v24 = vpop.permute.xlu1 %4309  ;;  %v4217_v30 = vpop.permute.xlu0 %4216 }
0x1c5a   :  { %18937 = vst [vmem:[#allocation111_spill] sm:$0xff] %v13217_v24  ;;  %v4386_v12 = vrot.slane %v4217_v30, %v11445_v8 }
0x1c5c   :  { %v4391_v30 = vsel %vm1940_vm14, %v4390_v51, %v4386_v12 }
0x1c5d   :  { %v13219_v44 = vpop.permute.xlu1 %3602  ;;  %v4223_v22 = vpop.permute.xlu0 %4222 }
0x1c5e   :  { %v4395_v63 = vrot.slane %v4223_v22, %v11445_v8 }
0x1c60   :  { %v4400_v11 = vsel %vm1940_vm14, %v4399_v49, %v4395_v63 }
0x1c61   :  { %v13222_v41 = vpop.permute.xlu1 %3608  ;;  %v4229_v58 = vpop.permute.xlu0 %4228  ;;  %v4534_v29 = vsel %vm2149_vm15, %v4400_v11, %v4391_v30  ;;  %v4372_v30 = vrot.slane %v13067_v50, %v11448_v19 }
0x1c62   :  { %v4404_v52 = vrot.slane %v4229_v58, %v11445_v8 }
0x1c64   :  { %v4409_v22 = vsel %vm1940_vm14, %v4408_v40, %v4404_v52 }
0x1c65   :  { %v13234_v45 = vpop.permute.xlu1 %3611  ;;  %v4235_v17 = vpop.permute.xlu0 %4234  ;;  %v4535_v39 = vsel %vm2151_vm0, %v4409_v22, %v4534_v29 }
0x1c66   :  { %v4413_v58 = vrot.slane %v4235_v17, %v11445_v8 }
0x1c68   :  { %v4418_v4 = vsel %vm1940_vm14, %v4417_v5, %v4413_v58  ;;  %v4318_v5 = vrot.slane %v12995_v56, %v11448_v19  ;;  %v4327_v58 = vrot.slane %v13007_v7, %v11448_v19  ;;  %v4345_v56 = vrot.slane %v13031_v48, %v11448_v19 }
0x1c69   :  { %v13243_v24 = vpop.permute.xlu1 %3617  ;;  %v13245_v49 = vpop.permute.xlu0 %4240  ;;  %v4536_v40 = vsel %vm2153_vm1, %v4418_v4, %v4535_v39  ;;  %v4336_v39 = vrot.slane %v13019_v32, %v11448_v19  ;;  %v4323_v7 = vrot.slane %v13180_v42, %v11445_v8  ;;  %v4354_v4 = vrot.slane %v13043_v54, %v11448_v19 }
0x1c6a   :  { %v4554_v52 = vsel %vm1492_vm13, %v4536_v40, -inf  ;;  %v4314_v42 = vrot.slane %v13168_v60, %v11445_v8  ;;  %v4341_v54 = vrot.slane %v13196_v61, %v11445_v8  ;;  %v4350_v48 = vrot.slane %v13202_v27, %v11445_v8 }
0x1c6b   :  { %4555 = vmax.xlane.f32.xlu1 %v4554_v52  ;;  %v4426_v27 = vrot.slane %v13127_v9, %v11448_v19  ;;  %v4435_v60 = vrot.slane %v13134_v36, %v11448_v19  ;;  %v3919_v61 = vrot.slane %v13148_v57, %v11445_v8 }
0x1c6c   :  { %v4319_v32 = vsel %vm1940_vm14, %v4318_v5, %v4314_v42  ;;  %v4355_v13 = vsel %vm1940_vm14, %v4354_v4, %v4350_v48  ;;  %v4453_v5 = vrot.slane %v13166_v62, %v11448_v19  ;;  %v4462_v4 = vrot.slane %v13177_v15, %v11448_v19 }
0x1c6d   :  { %v13249_v53 = vpop.permute.xlu1 %3623  ;;  %v13251_v51 = vpop.permute.xlu0 %4246  ;;  %v3761_v48 = vrot.slane %v13234_v45, %v11448_v19  ;;  %v4480_v42 = vrot.slane %v13194_v25, %v11448_v19  ;;  %v4489_v62 = vrot.slane %v13200_v31, %v11448_v19  ;;  %v3757_v45 = vrot.slane %v13222_v41, %v11445_v8 }
0x1c71   :  { %v13253_v12 = vpop.permute.xlu1 %3629  ;;  %v13255_v17 = vpop.permute.xlu0 %4252 }
0x1c72   :  { %v4440_v41 = vrot.slane %v13255_v17, %v11445_v8  ;;  %v18941_v17 = vrot.slane %v12997_v20, %v11448_v19 }
0x1c75   :  { %v13257_v11 = vpop.permute.xlu1 %3635  ;;  %v13259_v29 = vpop.permute.xlu0 %4258 }
0x1c79   :  { %v13261_v63 = vpop.permute.xlu1 %3641  ;;  %v13263_v22 = vpop.permute.xlu0 %4264 }
0x1c7d   :  { %v13275_v40 = vpop.permute.xlu1 %3647  ;;  %v13277_v52 = vpop.permute.xlu0 %4270 }
0x1c7e   :  { %18938 = vst [vmem:[#allocation128_spill] sm:$0xff] %v13277_v52  ;;  %v4363_v52 = vrot.slane %v13055_v55, %v11448_v19  ;;  %v4381_v55 = vrot.slane %v13079_v3, %v11448_v19  ;;  %v4328_v3 = vsel %vm1940_vm14, %v4327_v58, %v4323_v7  ;;  %v4346_v58 = vsel %vm1940_vm14, %v4345_v56, %v4341_v54 }
0x1c7f   :  { %v4444_v7 = vrot.slane %v13146_v43, %v11448_v19  ;;  %v4527_v9 = vsel %vm2149_vm15, %v4328_v3, %v4319_v32  ;;  %v4368_v43 = vrot.slane %v13211_v6, %v11445_v8  ;;  %v3770_v6 = vrot.slane %v13243_v24, %v11448_v19 }
0x1c80   :  { %v3748_v3 = vrot.slane %v13219_v44, %v11445_v8  ;;  %v3779_v24 = vrot.slane %v13249_v53, %v11448_v19  ;;  %v3788_v44 = vrot.slane %v13253_v12, %v11448_v19  ;;  %v18940_v53 = vrot.slane %v13009_v0, %v11445_v8 }
0x1c81   :  { %v13311_v28 = vpop.permute.xlu1 %3677  ;;  %v13313_v50 = vpop.permute.xlu0 %4276  ;;  %v4507_v12 = vrot.slane %v13209_v21, %v11448_v19 }
0x1c82   :  { %18939 = vst [vmem:[#allocation129_spill] sm:$0xff] %v13313_v50  ;;  %v4337_v50 = vsel %vm1940_vm14, %v4336_v39, %v4332_v37  ;;  %v4359_v37 = vrot.slane %v13207_v2, %v11445_v8  ;;  %v4471_v2 = vrot.slane %v13184_v14, %v11448_v19 }
0x1c83   :  { %v4528_v56 = vsel %vm2151_vm0, %v4337_v50, %v4527_v9  ;;  %v4377_v50 = vrot.slane %v13215_v34, %v11445_v8  ;;  %v4431_v34 = vrot.slane %v13251_v51, %v11445_v8  ;;  %v4449_v51 = vrot.slane %v13259_v29, %v11445_v8 }
0x1c84   :  { %v4529_v32 = vsel %vm2153_vm1, %v4346_v58, %v4528_v56  ;;  %v4364_v15 = vsel %vm1940_vm14, %v4363_v52, %v4359_v37  ;;  %v4373_v56 = vsel %vm1940_vm14, %v4372_v30, %v4368_v43  ;;  %v3762_v52 = vsel %vm1940_vm14, %v3761_v48, %v3757_v45 }
0x1c85   :  { %v13341_v39 = vpop.permute.xlu1 %3683  ;;  %v13343_v36 = vpop.permute.xlu0 %4282  ;;  %v4530_v54 = vsel %vm2155_vm2, %v4355_v13, %v4529_v32  ;;  %v4422_v13 = vrot.slane %v13245_v49, %v11445_v8  ;;  %v3797_v30 = vrot.slane %v13257_v11, %v11448_v19  ;;  %v4498_v49 = vrot.slane %v13205_v46, %v11448_v19 }
0x1c86   :  { %v3771_v37 = vsel %vm1940_vm14, %v3770_v6, %v18940_v53  ;;  %v4531_v43 = vsel %vm2157_vm3, %v4364_v15, %v4530_v54  ;;  %v3753_v11 = vsel %vm1940_vm14, %v18941_v17, %v3748_v3  ;;  %v4382_v48 = vsel %vm1940_vm14, %v4381_v55, %v4377_v50 }
0x1c87   :  { %v4532_v0 = vsel %vm2159_vm4, %v4373_v56, %v4531_v43  ;;  %v3961_v6 = vsel %vm2149_vm15, %v3762_v52, %v3753_v11  ;;  %v4427_v29 = vsel %vm1940_vm14, %v4426_v27, %v4422_v13  ;;  %v18942_v54 = vrot.slane %v13021_v26, %v11445_v8 }
0x1c88   :  { %v4436_v15 = vsel %vm1940_vm14, %v4435_v60, %v4431_v34  ;;  %v3962_v20 = vsel %vm2151_vm0, %v3771_v37, %v3961_v6  ;;  %v18943_v3 = vrot.slane %v13033_v1, %v11445_v8  ;;  %v4445_v50 = vsel %vm1940_vm14, %v4444_v7, %v4440_v41  ;;  %v18945_v1 = vld [vmem:[#allocation109_spill] sm:$0xff] }
0x1c89   :  { %v13373_v58 = vpop.permute.xlu1 %3689  ;;  %v4289_v9 = vpop.permute.xlu0 %4288  ;;  %v3780_v21 = vsel %vm1940_vm14, %v3779_v24, %v18942_v54  ;;  %v18944_v45 = vrot.slane %v13045_v59, %v11445_v8  ;;  %v4454_v26 = vsel %vm1940_vm14, %v4453_v5, %v4449_v51  ;;  %v3806_v56 = vrot.slane %v13261_v63, %v11448_v19 }
0x1c8a   :  { %v3789_v55 = vsel %vm1940_vm14, %v3788_v44, %v18943_v3  ;;  %v4458_v60 = vrot.slane %v13263_v22, %v11445_v8  ;;  %v4516_v24 = vrot.slane %v18945_v1, %v11448_v19  ;;  %v3963_v7 = vsel %vm2153_vm1, %v3780_v21, %v3962_v20  ;;  %v18950_v21 = vld [vmem:[#allocation128_spill] sm:$0xff] }
0x1c8b   :  { %v3798_v27 = vsel %vm1940_vm14, %v3797_v30, %v18944_v45  ;;  %v4537_v34 = vsel %vm2149_vm15, %v4436_v15, %v4427_v29  ;;  %v3815_v59 = vrot.slane %v13275_v40, %v11448_v19  ;;  %v3964_v44 = vsel %vm2155_vm2, %v3789_v55, %v3963_v7  ;;  %v18946_v30 = vld [vmem:[#allocation111_spill] sm:$0xff]  ;;  %v18947_v40 = vld [vmem:[#allocation70_spill] sm:$0xff]  ;;  %v18951_v55 = vld [vmem:[#allocation129_spill] sm:$0xff] }
0x1c8c   :  { %v4538_v63 = vsel %vm2151_vm0, %v4445_v50, %v4537_v34  ;;  %v4494_v22 = vrot.slane %v4289_v9, %v11445_v8  ;;  %v4525_v53 = vrot.slane %v18946_v30, %v11448_v19  ;;  %v3965_v37 = vsel %vm2157_vm3, %v3798_v27, %v3964_v44  ;;  %v18954_v7 = vld [vmem:[#allocation84_spill] sm:$0xff] }
0x1c8d   :  { %v3696_v32 = vpop.permute.xlu1 %3695  ;;  %v4295_v46 = vpop.permute.xlu0 %4294  ;;  %v4539_v51 = vsel %vm2153_vm1, %v4454_v26, %v4538_v63  ;;  %v4533_v43 = vsel %vm2161_vm5, %v4382_v48, %v4532_v0  ;;  %v18948_v17 = vrot.slane %v18947_v40, %v11445_v8  ;;  %v3869_v9 = vrot.slane %v13341_v39, %v11448_v19 }
0x1c8e   :  { %v4503_v13 = vrot.slane %v4295_v46, %v11445_v8  ;;  %v4463_v46 = vsel %vm1940_vm14, %v4462_v4, %v4458_v60  ;;  %v18949_v29 = vrot.slane %v13069_v16, %v11445_v8  ;;  %v4467_v48 = vrot.slane %v18950_v21, %v11445_v8 }
0x1c8f   :  { %v3807_v11 = vsel %vm1940_vm14, %v3806_v56, %v18948_v17  ;;  %v3878_v0 = vrot.slane %v13373_v58, %v11448_v19  ;;  %v3860_v39 = vrot.slane %v13311_v28, %v11448_v19  ;;  %v3887_v3 = vrot.slane %v3696_v32, %v11448_v19 }
0x1c90   :  { %v4508_v6 = vsel %vm1940_vm14, %v4507_v12, %v4503_v13  ;;  %v3816_v54 = vsel %vm1940_vm14, %v3815_v59, %v18949_v29  ;;  %v4499_v12 = vsel %vm1940_vm14, %v4498_v49, %v4494_v22  ;;  %v4476_v50 = vrot.slane %v18951_v55, %v11445_v8 }
0x1c91   :  { %v3702_v52 = vpop.permute.xlu1 %3701  ;;  %v4301_v5 = vpop.permute.xlu0 %4300  ;;  %v4485_v45 = vrot.slane %v13343_v36, %v11445_v8  ;;  %v4544_v27 = vsel %vm2149_vm15, %v4508_v6, %v4499_v12  ;;  %v18952_v26 = vrot.slane %v13089_v33, %v11445_v8  ;;  %v3966_v60 = vsel %vm2159_vm4, %v3807_v11, %v3965_v37 }
0x1c92   :  { %v4512_v41 = vrot.slane %v4301_v5, %v11445_v8  ;;  %v3896_v58 = vrot.slane %v3702_v52, %v11448_v19  ;;  %v4472_v36 = vsel %vm1940_vm14, %v4471_v2, %v4467_v48  ;;  %v18953_v13 = vrot.slane %v13096_v23, %v11445_v8 }
0x1c93   :  { %v3870_v28 = vsel %vm1940_vm14, %v3869_v9, %v18952_v26  ;;  %v18955_v34 = vrot.slane %v18954_v7, %v11445_v8  ;;  %v18956_v52 = vrot.slane %v13101_v38, %v11445_v8  ;;  %v4481_v23 = vsel %vm1940_vm14, %v4480_v42, %v4476_v50  ;;  %v18973_v7 = vld [vmem:[#allocation120_spill] sm:$0xff] }
0x1c94   :  { %v4517_v15 = vsel %vm1940_vm14, %v4516_v24, %v4512_v41  ;;  %v3879_v33 = vsel %vm1940_vm14, %v3878_v0, %v18953_v13  ;;  %v18957_v63 = vrot.slane %v13121_v18, %v11445_v8  ;;  %v3967_v38 = vsel %vm2161_vm5, %v3816_v54, %v3966_v60  ;;  %v18969_v60 = vld [vmem:[#allocation74_spill] sm:$0xff] }
0x1c95   :  { %v3708_v20 = vpop.permute.xlu1 %3707  ;;  %v4307_v4 = vpop.permute.xlu0 %4306  ;;  %v4545_v56 = vsel %vm2151_vm0, %v4517_v15, %v4544_v27  ;;  %v3861_v59 = vsel %vm1940_vm14, %v3860_v39, %v18955_v34  ;;  %v3888_v14 = vsel %vm1940_vm14, %v3887_v3, %v18956_v52  ;;  %v4540_v41 = vsel %vm2155_vm2, %v4463_v46, %v4539_v51  ;;  %v18962_v39 = vld [vmem:[#allocation96_spill] sm:$0xff]  ;;  %v18971_v13 = vld [vmem:[#allocation30_spill] sm:$0xff]  ;;  %v18974_v34 = vld [vmem:[#allocation101_spill] sm:$0xff] }
0x1c96   :  { %v4521_v16 = vrot.slane %v4307_v4, %v11445_v8  ;;  %v3905_v49 = vrot.slane %v3708_v20, %v11448_v19  ;;  %v3971_v44 = vsel %vm2149_vm15, %v3870_v28, %v3861_v59  ;;  %v3897_v22 = vsel %vm1940_vm14, %v3896_v58, %v18957_v63  ;;  %v18966_v58 = vld [vmem:[#allocation90_spill] sm:$0xff]  ;;  %v18975_v59 = vld [vmem:[#allocation12_spill] sm:$0xff] }
0x1c97   :  { %v3972_v30 = vsel %vm2151_vm0, %v3879_v33, %v3971_v44  ;;  %v4490_v42 = vsel %vm1940_vm14, %v4489_v62, %v4485_v45  ;;  %v4551_v40 = vsel %vm1488_vm12, %v4533_v43, -inf  ;;  %v4541_v17 = vsel %vm2157_vm3, %v4472_v36, %v4540_v41  ;;  %v18967_v28 = vld [vmem:[#allocation10_spill] sm:$0xff]  ;;  %v18970_v36 = vld [vmem:[#allocation73_spill] sm:$0xff] }
0x1c98   :  { %v4526_v32 = vsel %vm1940_vm14, %v4525_v53, %v4521_v16  ;;  %v3906_v25 = vsel %vm1940_vm14, %v3905_v49, %v3901_v47  ;;  %v3973_v18 = vsel %vm2153_vm1, %v3888_v14, %v3972_v30  ;;  %v18958_v53 = vrot.slane %v13136_v35, %v11445_v8  ;;  %v18964_v16 = vld [vmem:[#allocation91_spill] sm:$0xff]  ;;  %v18978_v44 = vld [vmem:[#allocation13_spill] sm:$0xff] }
0x1c99   :  { %v3714_v1 = vpop.permute.xlu1 %3713  ;;  %v4546_v24 = vsel %vm2153_vm1, %v4526_v32, %v4545_v56  ;;  %v3974_v10 = vsel %vm2155_vm2, %v3897_v22, %v3973_v18  ;;  %v4542_v31 = vsel %vm2159_vm4, %v4481_v23, %v4541_v17  ;;  %v13530_v62 = vsel %vm1488_vm12, %v3967_v38, 2147483647  ;;  %v18968_v32 = vld [vmem:[#allocation11_spill] sm:$0xff]  ;;  %v18979_v41 = vld [vmem:[#allocation61_spill] sm:$0xff] }
0x1c9a   :  { %v3914_v2 = vrot.slane %v3714_v1, %v11448_v19  ;;  %v4560_v5 = vsel %vm1492_vm13, %v4546_v24, -inf  ;;  %v3975_v11 = vsel %vm2157_vm3, %v3906_v25, %v3974_v10  ;;  %v4543_v35 = vsel %vm2161_vm5, %v4490_v42, %v4542_v31  ;;  %v18972_v1 = vld [vmem:[#allocation44_spill] sm:$0xff]  ;;  %v18977_v23 = vld [vmem:[#allocation75_spill] sm:$0xff]  ;;  %v18980_v30 = vld [vmem:[#allocation77_spill] sm:$0xff] }
0x1c9b   :  { %4561 = vmax.xlane.f32.xlu0 %v4560_v5  ;;  %v3983_v6 = vshra.s32 %v13530_v62, 16  ;;  %v4557_v29 = vsel %vm1488_vm12, %v4543_v35, -inf  ;;  %v4027_v55 = vand.u32 65535, %v18964_v16  ;;  %v18976_v5 = vld [vmem:[#allocation76_spill] sm:$0xff] }
0x1c9c   :  { %v3915_v37 = vsel %vm1940_vm14, %v3914_v2, %v18958_v53  ;;  %v18984_v31 = vld [vmem:[#allocation68_spill] sm:$0xff] }
0x1c9d   :  { %v3720_v51 = vpop.permute.xlu1 %3719  ;;  %v3976_v46 = vsel %vm2159_vm4, %v3915_v37, %v3975_v11  ;;  %v13548_v0 = vcvt.s32.f32 %v3983_v6  ;;  %v4029_v45 = vcvt.s32.f32 %v4027_v55 }
0x1c9e   :  { %v3923_v47 = vrot.slane %v3720_v51, %v11448_v19  ;;  %v18981_v51 = vld [vmem:[#allocation110_spill] sm:$0xff] }
0x1c9f   :  { %4552 = vmax.xlane.f32.xlu0 %v4551_v40  ;;  %v18982_v40 = vld [vmem:[#allocation66_spill] sm:$0xff] }
0x1ca0   :  { %v3924_v43 = vsel %vm1940_vm14, %v3923_v47, %v3919_v61  ;;  %v18960_v61 = vld [vmem:[#allocation86_spill] sm:$0xff] }
0x1ca1   :  { %v3977_v9 = vsel %vm2161_vm5, %v3924_v43, %v3976_v46  ;;  %v3997_v15 = vand.u32 65535, %v18960_v61  ;;  %v18983_v47 = vld [vmem:[#allocation118_spill] sm:$0xff]  ;;  %v18985_v43 = vld [vmem:[#allocation67_spill] sm:$0xff] }
0x1ca2   :  { %v13543_v54 = vsel %vm1488_vm12, %v3977_v9, 2147483647  ;;  %v18986_v9 = vld [vmem:[#allocation72_spill] sm:$0xff] }
0x1ca3   :  { %4558 = vmax.xlane.f32.xlu0 %v4557_v29  ;;  %v4013_v21 = vshra.s32 %v13543_v54, 16  ;;  %v3999_v4 = vcvt.s32.f32 %v3997_v15  ;;  %v18987_v15 = vld [vmem:[#allocation71_spill] sm:$0xff] }
0x1ca5   :  { %v13546_v48 = vcvt.s32.f32 %v4013_v21 }
0x1ca7   :  { %4016 = vmin.xlane.f32.xlu1 %v13546_v48  ;;  %3986 = vmin.xlane.f32.xlu0 %v13548_v0 }
0x1cc2   :  { %v13552_v57 = vpop.xlane.xlu0 %2838 }
0x1cc3   :  { %18959 = vst [vmem:[#allocation109_spill] sm:$0xff] %v13552_v57 }
0x1cc6   :  { %v13555_v20 = vpop.xlane.xlu0 %4001 }
0x1cc7   :  { %18961 = vst [vmem:[#allocation111_spill] sm:$0xff] %v13555_v20  ;;  %vm4003_vm10 = vcmp.eq.f32.partialorder %v18962_v39, %v13555_v20  ;;  %v19035_v20 = vld [vmem:[#allocation63_spill] sm:$0xff] }
0x1cc8   :  { %v4004_v12 = vsel %vm4003_vm10, %v3999_v4, inf  ;;  %v18988_v4 = vld [vmem:[#allocation82_spill] sm:$0xff] }
0x1cc9   :  { %4005 = vmin.xlane.f32.xlu0 %v4004_v12  ;;  %v18989_v12 = vld [vmem:[#allocation107_spill] sm:$0xff] }
0x1ccf   :  { %v13559_v3 = vpop.xlane.xlu1 %2808 }
0x1cd0   :  { %18963 = vst [vmem:[#allocation70_spill] sm:$0xff] %v13559_v3 }
0x1cd3   :  { %v13562_v50 = vpop.xlane.xlu1 %4031 }
0x1cd4   :  { %18965 = vst [vmem:[#allocation128_spill] sm:$0xff] %v13562_v50  ;;  %vm4033_vm11 = vcmp.eq.f32.partialorder %v18966_v58, %v13562_v50  ;;  %v18990_v58 = vld [vmem:[#allocation85_spill] sm:$0xff] }
0x1cd5   :  { %v4034_v27 = vsel %vm4033_vm11, %v4029_v45, inf }
0x1cd6   :  { %4035 = vmin.xlane.f32.xlu0 %v4034_v27 }
0x1cf4   :  { %v4556_v26 = vpop.xlane.xlu1 %4555 }
0x1cf5   :  { %v4602_v49 = vrot.slane %v4556_v26, %v18967_v28  ;;  %v4606_v56 = vrot.slane %v4556_v26, %v18968_v32  ;;  %v4610_v52 = vrot.slane %v4556_v26, %v18975_v59  ;;  %v4614_v63 = vrot.slane %v4556_v26, %v18978_v44 }
0x1cf6   :  { %v13617_v16 = vadd.f32 %v18989_v12, %v4556_v26 }
0x1cf7   :  { %vm4704_vm6 = vcmp.eq.f32.partialorder %v18969_v60, %v4602_v49  ;;  %vm4703_vm7 = vcmp.eq.f32.partialorder %v18970_v36, %v4602_v49  ;;  %vm4706_vm8 = vcmp.eq.f32.partialorder %v18973_v7, %v4606_v56  ;;  %vm4705_vm9 = vcmp.eq.f32.partialorder %v18974_v34, %v4606_v56  ;;  %v18991_v49 = vld [vmem:[#allocation18_spill] sm:$0xff]  ;;  %v18993_v60 = vld [vmem:[#allocation117_spill] sm:$0xff]  ;;  %v18996_v34 = vld [vmem:[#allocation119_spill] sm:$0xff] }
0x1cf8   :  { %v4752_v33 = vsel %vm4704_vm6, %v18971_v13, 12  ;;  %v4751_v24 = vsel %vm4703_vm7, %v18972_v1, 12  ;;  %v4754_v14 = vsel %vm4706_vm8, %v18971_v13, 12  ;;  %v4753_v2 = vsel %vm4705_vm9, %v18972_v1, 12 }
0x1cf9   :  { %4835 = vperm.xlu1 %10670, %v4752_v33   ;;  %4832 = vperm.xlu0 %10671, %v4751_v24   ;;  %vm4708_vm10 = vcmp.eq.f32.partialorder %v18976_v5, %v4610_v52  ;;  %vm4707_vm11 = vcmp.eq.f32.partialorder %v18977_v23, %v4610_v52  ;;  %vm4710_vm6 = vcmp.eq.f32.partialorder %v18979_v41, %v4614_v63  ;;  %v18994_v33 = vld [vmem:[#allocation19_spill] sm:$0xff]  ;;  %v18997_v52 = vld [vmem:[#allocation14_spill] sm:$0xff]  ;;  %v19002_v41 = vld [vmem:[#allocation21_spill] sm:$0xff] }
0x1cfa   :  { %v4756_v22 = vsel %vm4708_vm10, %v18971_v13, 12  ;;  %v4755_v38 = vsel %vm4707_vm11, %v18972_v1, 12  ;;  %vm4709_vm7 = vcmp.eq.f32.partialorder %v18980_v30, %v4614_v63  ;;  %v4758_v25 = vsel %vm4710_vm6, %v18971_v13, 12  ;;  %v19000_v63 = vld [vmem:[#allocation99_spill] sm:$0xff] }
0x1cfb   :  { %v4757_v42 = vsel %vm4709_vm7, %v18972_v1, 12  ;;  %v13629_v56 = vadd.f32 %v13617_v16, %v18991_v49  ;;  %v13641_v24 = vadd.f32 %v13617_v16, %v18994_v33  ;;  %v13665_v30 = vadd.f32 %v13617_v16, %v19002_v41 }
0x1cfd   :  { %4841 = vperm.xlu1 %10670, %v4754_v14   ;;  %4838 = vperm.xlu0 %10671, %v4753_v2   ;;  %18992 = vst [vmem:[#allocation129_spill] sm:$0xff] %v13629_v56  ;;  %18995 = vst [vmem:[#allocation84_spill] sm:$0xff] %v13641_v24  ;;  %v18998_v2 = vld [vmem:[#allocation20_spill] sm:$0xff] }
0x1cfe   :  { %v13653_v5 = vadd.f32 %v13617_v16, %v18998_v2  ;;  %19003 = vst [vmem:[#allocation96_spill] sm:$0xff] %v13665_v30 }
0x1d00   :  { %18999 = vst [vmem:[#allocation86_spill] sm:$0xff] %v13653_v5 }
0x1d01   :  { %4847 = vperm.xlu1 %10670, %v4756_v22   ;;  %4844 = vperm.xlu0 %10671, %v4755_v38   ;;  %v19001_v22 = vld [vmem:[#allocation15_spill] sm:$0xff] }
0x1d05   :  { %4853 = vperm.xlu1 %10670, %v4758_v25   ;;  %4850 = vperm.xlu0 %10671, %v4757_v42   ;;  %v19004_v42 = vld [vmem:[#allocation112_spill] sm:$0xff] }
0x1d24   :  { %v13586_v18 = vpop.xlane.xlu0 %4561 }
0x1d25   :  { %v4650_v53 = vrot.slane %v13586_v18, %v18967_v28  ;;  %v4654_v37 = vrot.slane %v13586_v18, %v18968_v32  ;;  %v4658_v11 = vrot.slane %v13586_v18, %v18975_v59  ;;  %v4662_v6 = vrot.slane %v13586_v18, %v18978_v44 }
0x1d27   :  { %vm4728_vm8 = vcmp.eq.f32.partialorder %v18981_v51, %v4650_v53  ;;  %vm4727_vm9 = vcmp.eq.f32.partialorder %v18982_v40, %v4650_v53  ;;  %vm4730_vm10 = vcmp.eq.f32.partialorder %v18983_v47, %v4654_v37  ;;  %vm4729_vm11 = vcmp.eq.f32.partialorder %v18984_v31, %v4654_v37  ;;  %v19005_v53 = vld [vmem:[#allocation16_spill] sm:$0xff]  ;;  %v19006_v51 = vld [vmem:[#allocation22_spill] sm:$0xff]  ;;  %v19009_v47 = vld [vmem:[#allocation17_spill] sm:$0xff] }
0x1d28   :  { %v4776_v17 = vsel %vm4728_vm8, %v18971_v13, 12  ;;  %v4775_v10 = vsel %vm4727_vm9, %v18972_v1, 12  ;;  %v4778_v35 = vsel %vm4730_vm10, %v18971_v13, 12  ;;  %v4777_v46 = vsel %vm4729_vm11, %v18972_v1, 12  ;;  %v13606_v29 = vpop.xlane.xlu0 %4552 }
0x1d29   :  { %4907 = vperm.xlu1 %10670, %v4776_v17   ;;  %4904 = vperm.xlu0 %10671, %v4775_v10   ;;  %vm4732_vm6 = vcmp.eq.f32.partialorder %v18985_v43, %v4658_v11  ;;  %vm4731_vm7 = vcmp.eq.f32.partialorder %v18986_v9, %v4658_v11  ;;  %vm4734_vm8 = vcmp.eq.f32.partialorder %v18987_v15, %v4662_v6  ;;  %v19008_v10 = vld [vmem:[#allocation93_spill] sm:$0xff] }
0x1d2a   :  { %v4780_v21 = vsel %vm4732_vm6, %v18971_v13, 12  ;;  %v4779_v61 = vsel %vm4731_vm7, %v18972_v1, 12  ;;  %vm4733_vm9 = vcmp.eq.f32.partialorder %v18988_v4, %v4662_v6  ;;  %v13614_v39 = vrot.slane %v13606_v29, %v18967_v28  ;;  %v19012_v9 = vld [vmem:[#allocation69_spill] sm:$0xff]  ;;  %v19015_v4 = vld [vmem:[#allocation79_spill] sm:$0xff] }
0x1d2b   :  { %v4782_v55 = vsel %vm4734_vm8, %v18971_v13, 12  ;;  %v4781_v45 = vsel %vm4733_vm9, %v18972_v1, 12  ;;  %v13625_v27 = vrot.slane %v13606_v29, %v18975_v59  ;;  %v13637_v36 = vrot.slane %v13606_v29, %v18978_v44 }
0x1d2c   :  { %vm4688_vm10 = vcmp.eq.f32.partialorder %v18990_v58, %v13614_v39  ;;  %v13649_v14 = vrot.slane %v13606_v29, %v18997_v52  ;;  %v13661_v38 = vrot.slane %v13606_v29, %v19001_v22  ;;  %v13673_v37 = vrot.slane %v13606_v29, %v19005_v53  ;;  %v13687_v11 = vpop.xlane.xlu0 %4558 }
0x1d2d   :  { %4913 = vperm.xlu1 %10670, %v4778_v35   ;;  %4910 = vperm.xlu0 %10671, %v4777_v46   ;;  %v4736_v26 = vsel %vm4688_vm10, %v18971_v13, 12  ;;  %vm4691_vm11 = vcmp.eq.f32.partialorder %v18993_v60, %v13625_v27  ;;  %vm4693_vm6 = vcmp.eq.f32.partialorder %v18996_v34, %v13637_v36  ;;  %v13677_v40 = vadd.f32 %v13617_v16, %v19006_v51  ;;  %v19010_v35 = vld [vmem:[#allocation23_spill] sm:$0xff] }
0x1d2e   :  { %v4739_v7 = vsel %vm4691_vm11, %v18972_v1, 12  ;;  %v4741_v23 = vsel %vm4693_vm6, %v18972_v1, 12  ;;  %vm4695_vm7 = vcmp.eq.f32.partialorder %v19000_v63, %v13649_v14  ;;  %vm4697_vm8 = vcmp.eq.f32.partialorder %v19004_v42, %v13661_v38  ;;  %v19021_v63 = vld [vmem:[#allocation88_spill] sm:$0xff]  ;;  %v19022_v42 = vld [vmem:[#allocation27_spill] sm:$0xff] }
0x1d2f   :  { %v4743_v25 = vsel %vm4695_vm7, %v18972_v1, 12  ;;  %19007 = vst [vmem:[#allocation91_spill] sm:$0xff] %v13677_v40  ;;  %v4745_v17 = vsel %vm4697_vm8, %v18972_v1, 12  ;;  %vm4699_vm9 = vcmp.eq.f32.partialorder %v19008_v10, %v13673_v37  ;;  %v13685_v31 = vrot.slane %v13606_v29, %v19009_v47 }
0x1d30   :  { %v13691_v46 = vadd.f32 %v13617_v16, %v19010_v35  ;;  %v4747_v43 = vsel %vm4699_vm9, %v18972_v1, 12  ;;  %v13699_v6 = vrot.slane %v13687_v11, %v18967_v28  ;;  %v13711_v12 = vrot.slane %v13687_v11, %v18968_v32 }
0x1d31   :  { %4919 = vperm.xlu1 %10670, %v4780_v21   ;;  %4916 = vperm.xlu0 %10671, %v4779_v61   ;;  %vm4701_vm10 = vcmp.eq.f32.partialorder %v19012_v9, %v13685_v31  ;;  %v19013_v21 = vld [vmem:[#allocation24_spill] sm:$0xff]  ;;  %v13723_v60 = vrot.slane %v13687_v11, %v18975_v59  ;;  %v13747_v9 = vrot.slane %v13687_v11, %v18997_v52 }
0x1d32   :  { %19011 = vst [vmem:[#allocation90_spill] sm:$0xff] %v13691_v46  ;;  %v13703_v61 = vadd.f32 %v13617_v16, %v19013_v21  ;;  %v4749_v15 = vsel %vm4701_vm10, %v18972_v1, 12  ;;  %vm4711_vm11 = vcmp.eq.f32.partialorder %v19015_v4, %v13699_v6 }
0x1d33   :  { %v4759_v58 = vsel %vm4711_vm11, %v18972_v1, 12  ;;  %vm4715_vm7 = vcmp.eq.f32.partialorder %v19021_v63, %v13723_v60  ;;  %v19028_v63 = vld [vmem:[#allocation105_spill] sm:$0xff] }
0x1d34   :  { %19014 = vst [vmem:[#allocation74_spill] sm:$0xff] %v13703_v61  ;;  %v4763_v10 = vsel %vm4715_vm7, %v18972_v1, 12 }
0x1d35   :  { %4925 = vperm.xlu1 %10670, %v4782_v55   ;;  %4922 = vperm.xlu0 %10671, %v4781_v45   ;;  %v19016_v55 = vld [vmem:[#allocation25_spill] sm:$0xff] }
0x1d36   :  { %v13715_v45 = vadd.f32 %v13617_v16, %v19016_v55 }
0x1d38   :  { %19017 = vst [vmem:[#allocation73_spill] sm:$0xff] %v13715_v45 }
0x1d39   :  { %5353 = vperm.xlu1 %10670, %v13629_v56   ;;  %4787 = vperm.xlu0 %10671, %v4736_v26   ;;  %v19018_v26 = vld [vmem:[#allocation97_spill] sm:$0xff]  ;;  %v19072_v56 = vld [vmem:[#allocation115_spill] sm:$0xff] }
0x1d3a   :  { %vm4713_vm6 = vcmp.eq.f32.partialorder %v19018_v26, %v13711_v12  ;;  %v19027_v26 = vld [vmem:[#allocation98_spill] sm:$0xff] }
0x1d3b   :  { %vm4719_vm9 = vcmp.eq.f32.partialorder %v19027_v26, %v13747_v9  ;;  %v13773_v26 = vrot.slane %v13687_v11, %v19005_v53 }
0x1d3c   :  { %v4767_v3 = vsel %vm4719_vm9, %v18972_v1, 12 }
0x1d3d   :  { %5359 = vperm.xlu1 %10670, %v13641_v24   ;;  %4796 = vperm.xlu0 %10671, %v4739_v7   ;;  %v19019_v7 = vld [vmem:[#allocation26_spill] sm:$0xff] }
0x1d3e   :  { %v13727_v34 = vadd.f32 %v13617_v16, %v19019_v7 }
0x1d40   :  { %19020 = vst [vmem:[#allocation120_spill] sm:$0xff] %v13727_v34 }
0x1d41   :  { %5365 = vperm.xlu1 %10670, %v13653_v5   ;;  %4802 = vperm.xlu0 %10671, %v4741_v23   ;;  %v4761_v23 = vsel %vm4713_vm6, %v18972_v1, 12 }
0x1d45   :  { %5371 = vperm.xlu1 %10670, %v13665_v30   ;;  %4808 = vperm.xlu0 %10671, %v4743_v25   ;;  %v13735_v25 = vrot.slane %v13687_v11, %v18978_v44  ;;  %v19048_v30 = vld [vmem:[#allocation35_spill] sm:$0xff] }
0x1d49   :  { %5377 = vperm.xlu1 %10670, %v13677_v40   ;;  %4814 = vperm.xlu0 %10671, %v4745_v17   ;;  %v13739_v17 = vadd.f32 %v13617_v16, %v19022_v42 }
0x1d4b   :  { %19023 = vst [vmem:[#allocation101_spill] sm:$0xff] %v13739_v17 }
0x1d4d   :  { %5383 = vperm.xlu1 %10670, %v13691_v46   ;;  %4820 = vperm.xlu0 %10671, %v4747_v43   ;;  %v19024_v43 = vld [vmem:[#allocation94_spill] sm:$0xff] }
0x1d4e   :  { %vm4717_vm8 = vcmp.eq.f32.partialorder %v19024_v43, %v13735_v25  ;;  %v19029_v43 = vld [vmem:[#allocation29_spill] sm:$0xff] }
0x1d4f   :  { %v13765_v57 = vadd.f32 %v13617_v16, %v19029_v43 }
0x1d51   :  { %5389 = vperm.xlu1 %10670, %v13703_v61   ;;  %4826 = vperm.xlu0 %10671, %v4749_v15   ;;  %v19025_v15 = vld [vmem:[#allocation28_spill] sm:$0xff]  ;;  %19030 = vst [vmem:[#allocation75_spill] sm:$0xff] %v13765_v57 }
0x1d52   :  { %v13751_v4 = vadd.f32 %v13617_v16, %v19025_v15  ;;  %v19033_v16 = vld [vmem:[#allocation104_spill] sm:$0xff] }
0x1d53   :  { %vm4723_vm11 = vcmp.eq.f32.partialorder %v19033_v16, %v13773_v26 }
0x1d54   :  { %19026 = vst [vmem:[#allocation76_spill] sm:$0xff] %v13751_v4 }
0x1d55   :  { %5395 = vperm.xlu1 %10670, %v13715_v45   ;;  %4856 = vperm.xlu0 %10671, %v4759_v58   ;;  %v4765_v58 = vsel %vm4717_vm8, %v18972_v1, 12 }
0x1d59   :  { %5401 = vperm.xlu1 %10670, %v13727_v34   ;;  %4862 = vperm.xlu0 %10671, %v4761_v23   ;;  %v13759_v23 = vrot.slane %v13687_v11, %v19001_v22 }
0x1d5d   :  { %5407 = vperm.xlu1 %10670, %v13739_v17   ;;  %4868 = vperm.xlu0 %10671, %v4763_v10   ;;  %v5252_v10 = vadd.f32 %v19028_v63, %v13586_v18 }
0x1d5f   :  { %v13776_v50 = vadd.f32 %v5252_v10, %v18991_v49  ;;  %v13787_v63 = vadd.f32 %v5252_v10, %v18994_v33  ;;  %v13798_v16 = vadd.f32 %v5252_v10, %v18998_v2  ;;  %v13803_v61 = vadd.f32 %v5252_v10, %v19002_v41 }
0x1d60   :  { %v13841_v24 = vadd.f32 %v5252_v10, %v19016_v55  ;;  %v13860_v55 = vpop.xlane.xlu1 %4016  ;;  %v13887_v52 = vadd.f32 %v5252_v10, %v19029_v43 }
0x1d61   :  { %5413 = vperm.xlu1 %10670, %v13751_v4   ;;  %4874 = vperm.xlu0 %10671, %v4765_v58   ;;  %v19031_v58 = vld [vmem:[#allocation100_spill] sm:$0xff]  ;;  %19032 = vst [vmem:[#allocation61_spill] sm:$0xff] %v13776_v50  ;;  %19034 = vst [vmem:[#allocation77_spill] sm:$0xff] %v13787_v63 }
0x1d62   :  { %vm4721_vm10 = vcmp.eq.f32.partialorder %v19031_v58, %v13759_v23  ;;  %v4771_v58 = vsel %vm4723_vm11, %v18972_v1, 12  ;;  %19037 = vst [vmem:[#allocation110_spill] sm:$0xff] %v13798_v16  ;;  %19038 = vst [vmem:[#allocation66_spill] sm:$0xff] %v13803_v61 }
0x1d63   :  { %v4769_v18 = vsel %vm4721_vm10, %v18972_v1, 12  ;;  %19051 = vst [vmem:[#allocation117_spill] sm:$0xff] %v13841_v24  ;;  %19058 = vst [vmem:[#allocation69_spill] sm:$0xff] %v13860_v55 }
0x1d64   :  { %19066 = vst [vmem:[#allocation105_spill] sm:$0xff] %v13887_v52 }
0x1d65   :  { %5419 = vperm.xlu1 %10670, %v13765_v57   ;;  %4880 = vperm.xlu0 %10671, %v4767_v3   ;;  %v13784_v3 = vrot.slane %v13687_v11, %v19009_v47  ;;  %v13852_v47 = vadd.f32 %v5252_v10, %v19019_v7  ;;  %v19073_v7 = vld [vmem:[#allocation42_spill] sm:$0xff] }
0x1d67   :  { %vm4725_vm6 = vcmp.eq.f32.partialorder %v19035_v20, %v13784_v3  ;;  %v13812_v20 = vadd.f32 %v5252_v10, %v19006_v51  ;;  %19055 = vst [vmem:[#allocation112_spill] sm:$0xff] %v13852_v47  ;;  %v19064_v51 = vld [vmem:[#allocation39_spill] sm:$0xff] }
0x1d68   :  { %v4773_v45 = vsel %vm4725_vm6, %v18972_v1, 12 }
0x1d69   :  { %5425 = vperm.xlu1 %10670, %v13776_v50   ;;  %4886 = vperm.xlu0 %10671, %v4769_v18   ;;  %v19036_v18 = vld [vmem:[#allocation102_spill] sm:$0xff]  ;;  %19041 = vst [vmem:[#allocation68_spill] sm:$0xff] %v13812_v20 }
0x1d6a   :  { %v13795_v50 = vadd.f32 %v19036_v18, %v13606_v29  ;;  %v19042_v18 = vld [vmem:[#allocation33_spill] sm:$0xff] }
0x1d6c   :  { %v13816_v46 = vadd.f32 %v13795_v50, %v19042_v18  ;;  %v13834_v5 = vadd.f32 %v13795_v50, %v19048_v30 }
0x1d6d   :  { %5431 = vperm.xlu1 %10670, %v13787_v63   ;;  %4892 = vperm.xlu0 %10671, %v4771_v58   ;;  %v19039_v63 = vld [vmem:[#allocation32_spill] sm:$0xff] }
0x1d6e   :  { %v13807_v58 = vadd.f32 %v13795_v50, %v19039_v63  ;;  %19043 = vst [vmem:[#allocation67_spill] sm:$0xff] %v13816_v46  ;;  %19049 = vst [vmem:[#allocation107_spill] sm:$0xff] %v13834_v5 }
0x1d70   :  { %19040 = vst [vmem:[#allocation118_spill] sm:$0xff] %v13807_v58 }
0x1d71   :  { %5437 = vperm.xlu1 %10670, %v13798_v16   ;;  %4898 = vperm.xlu0 %10671, %v4773_v45   ;;  %v13821_v45 = vadd.f32 %v5252_v10, %v19010_v35  ;;  %v19045_v16 = vld [vmem:[#allocation34_spill] sm:$0xff] }
0x1d72   :  { %v13825_v40 = vadd.f32 %v13795_v50, %v19045_v16  ;;  %v19061_v35 = vld [vmem:[#allocation38_spill] sm:$0xff] }
0x1d73   :  { %19044 = vst [vmem:[#allocation72_spill] sm:$0xff] %v13821_v45 }
0x1d74   :  { %19046 = vst [vmem:[#allocation71_spill] sm:$0xff] %v13825_v40  ;;  %v13873_v22 = vpop.permute.xlu1 %4835 }
0x1d75   :  { %5443 = vperm.xlu1 %10670, %v13803_v61   ;;  %5350 = vperm.xlu0 %10671, %v13807_v58   ;;  %v13830_v61 = vadd.f32 %v5252_v10, %v19013_v21  ;;  %v5006_v57 = vrot.slane %v13873_v22, %v11448_v19 }
0x1d77   :  { %19047 = vst [vmem:[#allocation82_spill] sm:$0xff] %v13830_v61 }
0x1d78   :  { %v13893_v41 = vpop.permute.xlu1 %4841 }
0x1d79   :  { %5449 = vperm.xlu1 %10670, %v13812_v20   ;;  %5356 = vperm.xlu0 %10671, %v13816_v46   ;;  %v13838_v20 = vpop.xlane.xlu0 %3986  ;;  %v19052_v46 = vld [vmem:[#allocation36_spill] sm:$0xff] }
0x1d7a   :  { %19050 = vst [vmem:[#allocation85_spill] sm:$0xff] %v13838_v20 }
0x1d7d   :  { %5455 = vperm.xlu1 %10670, %v13821_v45   ;;  %5362 = vperm.xlu0 %10671, %v13825_v40   ;;  %v13845_v45 = vadd.f32 %v13795_v50, %v19052_v46  ;;  %v13849_v58 = vpop.xlane.xlu0 %4005 }
0x1d7e   :  { %19054 = vst [vmem:[#allocation99_spill] sm:$0xff] %v13849_v58  ;;  %v13869_v58 = vadd.f32 %v13795_v50, %v19061_v35 }
0x1d7f   :  { %19053 = vst [vmem:[#allocation119_spill] sm:$0xff] %v13845_v45 }
0x1d80   :  { %19062 = vst [vmem:[#allocation88_spill] sm:$0xff] %v13869_v58 }
0x1d81   :  { %5461 = vperm.xlu1 %10670, %v13830_v61   ;;  %5368 = vperm.xlu0 %10671, %v13834_v5   ;;  %v19056_v61 = vld [vmem:[#allocation37_spill] sm:$0xff]  ;;  %v13862_v53 = vpop.xlane.xlu0 %4035  ;;  %v19067_v5 = vld [vmem:[#allocation40_spill] sm:$0xff] }
0x1d82   :  { %v13856_v21 = vadd.f32 %v13795_v50, %v19056_v61  ;;  %19059 = vst [vmem:[#allocation79_spill] sm:$0xff] %v13862_v53  ;;  %v13882_v53 = vadd.f32 %v13795_v50, %v19064_v51 }
0x1d84   :  { %19057 = vst [vmem:[#allocation93_spill] sm:$0xff] %v13856_v21  ;;  %19065 = vst [vmem:[#allocation98_spill] sm:$0xff] %v13882_v53 }
0x1d85   :  { %5467 = vperm.xlu1 %10670, %v13841_v24   ;;  %5374 = vperm.xlu0 %10671, %v13845_v45   ;;  %v13865_v24 = vadd.f32 %v5252_v10, %v19022_v42  ;;  %v13875_v45 = vpop.permute.xlu0 %4832  ;;  %v13910_v42 = vpop.permute.xlu1 %4847 }
0x1d87   :  { %19060 = vst [vmem:[#allocation97_spill] sm:$0xff] %v13865_v24 }
0x1d89   :  { %5473 = vperm.xlu1 %10670, %v13852_v47   ;;  %5380 = vperm.xlu0 %10671, %v13856_v21   ;;  %v13878_v21 = vadd.f32 %v5252_v10, %v19025_v15  ;;  %v13895_v40 = vpop.permute.xlu0 %4838  ;;  %v19069_v15 = vld [vmem:[#allocation113_spill] sm:$0xff] }
0x1d8a   :  { %vm4687_vm7 = vcmp.eq.f32.partialorder %v19069_v15, %v13614_v39  ;;  %v19070_v10 = vld [vmem:[#allocation41_spill] sm:$0xff]  ;;  %v13916_v39 = vadd.f32 %v13795_v50, %v19073_v7  ;;  %v19075_v15 = vld [vmem:[#allocation126_spill] sm:$0xff] }
0x1d8b   :  { %19063 = vst [vmem:[#allocation94_spill] sm:$0xff] %v13878_v21  ;;  %v13905_v43 = vadd.f32 %v13795_v50, %v19070_v10  ;;  %v4735_v2 = vsel %vm4687_vm7, %v18972_v1, 12 }
0x1d8c   :  { %19074 = vst [vmem:[#allocation63_spill] sm:$0xff] %v13916_v39 }
0x1d8d   :  { %5479 = vperm.xlu1 %10670, %v13865_v24   ;;  %5386 = vperm.xlu0 %10671, %v13869_v58   ;;  %v13891_v58 = vadd.f32 %v13795_v50, %v19067_v5  ;;  %19071 = vst [vmem:[#allocation104_spill] sm:$0xff] %v13905_v43  ;;  %v13912_v33 = vpop.permute.xlu0 %4844 }
0x1d8f   :  { %19068 = vst [vmem:[#allocation100_spill] sm:$0xff] %v13891_v58 }
0x1d91   :  { %5485 = vperm.xlu1 %10670, %v13878_v21   ;;  %5392 = vperm.xlu0 %10671, %v13882_v53   ;;  %v4574_v53 = vrot.slane %v13606_v29, %v18968_v32  ;;  %v13929_v21 = vpop.permute.xlu1 %4853  ;;  %v13931_v24 = vpop.permute.xlu0 %4850 }
0x1d92   :  { %v5033_v44 = vrot.slane %v13929_v21, %v11448_v19 }
0x1d93   :  { %vm4689_vm8 = vcmp.eq.f32.partialorder %v19072_v56, %v4574_v53  ;;  %vm4690_vm9 = vcmp.eq.f32.partialorder %v19075_v15, %v4574_v53  ;;  %v19077_v56 = vld [vmem:[#allocation43_spill] sm:$0xff] }
0x1d94   :  { %v4737_v29 = vsel %vm4689_vm8, %v18972_v1, 12  ;;  %v4738_v47 = vsel %vm4690_vm9, %v18971_v13, 12 }
0x1d95   :  { %5491 = vperm.xlu1 %10670, %v13887_v52   ;;  %5398 = vperm.xlu0 %10671, %v13891_v58   ;;  %v13927_v52 = vadd.f32 %v13795_v50, %v19077_v56 }
0x1d97   :  { %19078 = vst [vmem:[#allocation102_spill] sm:$0xff] %v13927_v52 }
0x1d99   :  { %4784 = vperm.xlu1 %10670, %v4735_v2   ;;  %5404 = vperm.xlu0 %10671, %v13905_v43   ;;  %v19076_v2 = vld [vmem:[#allocation103_spill] sm:$0xff] }
0x1d9a   :  { %v13923_v49 = vadd.f32 %v19076_v2, %v13687_v11 }
0x1d9c   :  { %v13939_v53 = vadd.f32 %v13923_v49, %v19039_v63  ;;  %v13951_v2 = vadd.f32 %v13923_v49, %v19042_v18 }
0x1d9d   :  { %4790 = vperm.xlu1 %10670, %v4737_v29   ;;  %5410 = vperm.xlu0 %10671, %v13916_v39   ;;  %v19079_v29 = vld [vmem:[#allocation127_spill] sm:$0xff] }
0x1d9e   :  { %vm4692_vm10 = vcmp.eq.f32.partialorder %v19079_v29, %v13625_v27  ;;  %19080 = vst [vmem:[#allocation113_spill] sm:$0xff] %v13939_v53  ;;  %19082 = vst [vmem:[#allocation115_spill] sm:$0xff] %v13951_v2 }
0x1d9f   :  { %v4740_v15 = vsel %vm4692_vm10, %v18971_v13, 12 }
0x1da1   :  { %4793 = vperm.xlu1 %10670, %v4738_v47   ;;  %5416 = vperm.xlu0 %10671, %v13927_v52   ;;  %v19081_v47 = vld [vmem:[#allocation121_spill] sm:$0xff] }
0x1da2   :  { %vm4694_vm11 = vcmp.eq.f32.partialorder %v19081_v47, %v13637_v36 }
0x1da3   :  { %v4742_v63 = vsel %vm4694_vm11, %v18971_v13, 12 }
0x1da4   :  { %v13941_v11 = vpop.permute.xlu1 %4907  ;;  %v13943_v50 = vpop.permute.xlu0 %4904 }
0x1da5   :  { %4799 = vperm.xlu1 %10670, %v4740_v15   ;;  %5422 = vperm.xlu0 %10671, %v13939_v53   ;;  %v19083_v15 = vld [vmem:[#allocation92_spill] sm:$0xff]  ;;  %v13963_v53 = vadd.f32 %v13923_v49, %v19045_v16 }
0x1da6   :  { %vm4696_vm6 = vcmp.eq.f32.partialorder %v19083_v15, %v13649_v14 }
0x1da7   :  { %19084 = vst [vmem:[#allocation126_spill] sm:$0xff] %v13963_v53  ;;  %v4744_v18 = vsel %vm4696_vm6, %v18971_v13, 12 }
0x1da8   :  { %v13953_v27 = vpop.permute.xlu1 %4913  ;;  %v13955_v29 = vpop.permute.xlu0 %4910 }
0x1da9   :  { %4805 = vperm.xlu1 %10670, %v4742_v63   ;;  %5428 = vperm.xlu0 %10671, %v13951_v2   ;;  %v19085_v63 = vld [vmem:[#allocation95_spill] sm:$0xff]  ;;  %v13975_v2 = vadd.f32 %v13923_v49, %v19048_v30 }
0x1daa   :  { %vm4698_vm7 = vcmp.eq.f32.partialorder %v19085_v63, %v13661_v38 }
0x1dab   :  { %19086 = vst [vmem:[#allocation103_spill] sm:$0xff] %v13975_v2  ;;  %v4746_v16 = vsel %vm4698_vm7, %v18971_v13, 12 }
0x1dac   :  { %v13965_v36 = vpop.permute.xlu1 %4919  ;;  %v13967_v47 = vpop.permute.xlu0 %4916 }
0x1dad   :  { %4811 = vperm.xlu1 %10670, %v4744_v18   ;;  %5434 = vperm.xlu0 %10671, %v13963_v53   ;;  %v19087_v18 = vld [vmem:[#allocation122_spill] sm:$0xff]  ;;  %v13987_v53 = vadd.f32 %v13923_v49, %v19052_v46 }
0x1dae   :  { %vm4700_vm8 = vcmp.eq.f32.partialorder %v19087_v18, %v13673_v37 }
0x1daf   :  { %19088 = vst [vmem:[#allocation127_spill] sm:$0xff] %v13987_v53  ;;  %v4748_v30 = vsel %vm4700_vm8, %v18971_v13, 12 }
0x1db0   :  { %v13977_v14 = vpop.permute.xlu1 %4925  ;;  %v13979_v15 = vpop.permute.xlu0 %4922 }
0x1db1   :  { %4817 = vperm.xlu1 %10670, %v4746_v16   ;;  %5440 = vperm.xlu0 %10671, %v13975_v2   ;;  %v19089_v16 = vld [vmem:[#allocation123_spill] sm:$0xff]  ;;  %v13999_v2 = vadd.f32 %v13923_v49, %v19056_v61 }
0x1db2   :  { %vm4702_vm9 = vcmp.eq.f32.partialorder %v19089_v16, %v13685_v31 }
0x1db3   :  { %19090 = vst [vmem:[#allocation121_spill] sm:$0xff] %v13999_v2  ;;  %v4750_v46 = vsel %vm4702_vm9, %v18971_v13, 12 }
0x1db4   :  { %v13989_v38 = vpop.permute.xlu1 %5353  ;;  %v13991_v63 = vpop.permute.xlu0 %4787 }
0x1db5   :  { %4823 = vperm.xlu1 %10670, %v4748_v30   ;;  %5446 = vperm.xlu0 %10671, %v13987_v53   ;;  %v19091_v30 = vld [vmem:[#allocation78_spill] sm:$0xff]  ;;  %v14011_v53 = vadd.f32 %v13923_v49, %v19061_v35 }
0x1db6   :  { %vm4712_vm10 = vcmp.eq.f32.partialorder %v19091_v30, %v13699_v6 }
0x1db7   :  { %19092 = vst [vmem:[#allocation92_spill] sm:$0xff] %v14011_v53  ;;  %v4760_v61 = vsel %vm4712_vm10, %v18971_v13, 12 }
0x1db8   :  { %v14001_v37 = vpop.permute.xlu1 %5359  ;;  %v14003_v18 = vpop.permute.xlu0 %4796 }
0x1db9   :  { %4829 = vperm.xlu1 %10670, %v4750_v46   ;;  %5452 = vperm.xlu0 %10671, %v13999_v2   ;;  %v19093_v46 = vld [vmem:[#allocation64_spill] sm:$0xff]  ;;  %v14023_v2 = vadd.f32 %v13923_v49, %v19064_v51 }
0x1dba   :  { %vm4714_vm11 = vcmp.eq.f32.partialorder %v19093_v46, %v13711_v12 }
0x1dbb   :  { %19094 = vst [vmem:[#allocation95_spill] sm:$0xff] %v14023_v2  ;;  %v4762_v35 = vsel %vm4714_vm11, %v18971_v13, 12 }
0x1dbc   :  { %v14013_v31 = vpop.permute.xlu1 %5365  ;;  %v14015_v16 = vpop.permute.xlu0 %4802 }
0x1dbd   :  { %4859 = vperm.xlu1 %10670, %v4760_v61   ;;  %5458 = vperm.xlu0 %10671, %v14011_v53   ;;  %v19095_v61 = vld [vmem:[#allocation80_spill] sm:$0xff]  ;;  %v14035_v53 = vadd.f32 %v13923_v49, %v19067_v5 }
0x1dbe   :  { %vm4716_vm6 = vcmp.eq.f32.partialorder %v19095_v61, %v13723_v60 }
0x1dbf   :  { %19096 = vst [vmem:[#allocation122_spill] sm:$0xff] %v14035_v53  ;;  %v4764_v51 = vsel %vm4716_vm6, %v18971_v13, 12  ;;  %vm4018_vm6 = vcmp.eq.f32.partialorder %v13546_v48, %v13860_v55  ;;  %v5137_v48 = vrot.slane %v13979_v15, %v11445_v8 }
0x1dc0   :  { %v14025_v6 = vpop.permute.xlu1 %5371  ;;  %v14027_v30 = vpop.permute.xlu0 %4808 }
0x1dc1   :  { %4865 = vperm.xlu1 %10670, %v4762_v35   ;;  %5464 = vperm.xlu0 %10671, %v14023_v2   ;;  %v19097_v35 = vld [vmem:[#allocation65_spill] sm:$0xff]  ;;  %v14047_v2 = vadd.f32 %v13923_v49, %v19070_v10 }
0x1dc2   :  { %vm4718_vm7 = vcmp.eq.f32.partialorder %v19097_v35, %v13735_v25 }
0x1dc3   :  { %19098 = vst [vmem:[#allocation123_spill] sm:$0xff] %v14047_v2  ;;  %v4766_v5 = vsel %vm4718_vm7, %v18971_v13, 12  ;;  %vm3988_vm7 = vcmp.eq.f32.partialorder %v13548_v0, %v13838_v20 }
0x1dc4   :  { %v14037_v12 = vpop.permute.xlu1 %5377  ;;  %v14039_v46 = vpop.permute.xlu0 %4814 }
0x1dc5   :  { %4871 = vperm.xlu1 %10670, %v4764_v51   ;;  %5470 = vperm.xlu0 %10671, %v14035_v53   ;;  %v19100_v51 = vld [vmem:[#allocation81_spill] sm:$0xff]  ;;  %v14059_v53 = vadd.f32 %v13923_v49, %v19073_v7 }
0x1dc6   :  { %vm4720_vm8 = vcmp.eq.f32.partialorder %v19100_v51, %v13747_v9 }
0x1dc7   :  { %19101 = vst [vmem:[#allocation64_spill] sm:$0xff] %v14059_v53  ;;  %v4768_v10 = vsel %vm4720_vm8, %v18971_v13, 12 }
0x1dc8   :  { %v14049_v60 = vpop.permute.xlu1 %5383  ;;  %v14051_v61 = vpop.permute.xlu0 %4820 }
0x1dc9   :  { %19099 = vst [vmem:[#allocation78_spill] sm:$0xff] %v14051_v61  ;;  %4877 = vperm.xlu1 %10670, %v4766_v5   ;;  %5476 = vperm.xlu0 %10671, %v14047_v2   ;;  %v19102_v5 = vld [vmem:[#allocation83_spill] sm:$0xff]  ;;  %v14071_v2 = vadd.f32 %v13923_v49, %v19077_v56  ;;  %v19106_v49 = vld [vmem:[#allocation106_spill] sm:$0xff] }
0x1dca   :  { %vm4722_vm9 = vcmp.eq.f32.partialorder %v19102_v5, %v13759_v23  ;;  %vm4726_vm11 = vcmp.eq.f32.partialorder %v19106_v49, %v13784_v3  ;;  %v5024_v3 = vrot.slane %v13910_v42, %v11448_v19  ;;  %v5020_v49 = vrot.slane %v13912_v33, %v11445_v8 }
0x1dcb   :  { %19103 = vst [vmem:[#allocation80_spill] sm:$0xff] %v14071_v2  ;;  %v4770_v7 = vsel %vm4722_vm9, %v18971_v13, 12 }
0x1dcc   :  { %v14061_v25 = vpop.permute.xlu1 %5389  ;;  %v14063_v35 = vpop.permute.xlu0 %4826  ;;  %v5025_v33 = vsel %vm1940_vm14, %v5024_v3, %v5020_v49  ;;  %v5132_v49 = vrot.slane %v13965_v36, %v11448_v19 }
0x1dcd   :  { %4883 = vperm.xlu1 %10670, %v4768_v10   ;;  %5482 = vperm.xlu0 %10671, %v14059_v53   ;;  %v19105_v10 = vld [vmem:[#allocation87_spill] sm:$0xff] }
0x1dce   :  { %vm4724_vm10 = vcmp.eq.f32.partialorder %v19105_v10, %v13773_v26  ;;  %v5015_v10 = vrot.slane %v13893_v41, %v11448_v19  ;;  %v5029_v41 = vrot.slane %v13931_v24, %v11445_v8 }
0x1dcf   :  { %v4772_v23 = vsel %vm4724_vm10, %v18971_v13, 12 }
0x1dd0   :  { %v14073_v9 = vpop.permute.xlu1 %5395  ;;  %v14075_v51 = vpop.permute.xlu0 %4856  ;;  %v5034_v22 = vsel %vm1940_vm14, %v5033_v44, %v5029_v41  ;;  %v5123_v44 = vrot.slane %v13953_v27, %v11448_v19  ;;  %v5114_v27 = vrot.slane %v13941_v11, %v11448_v19  ;;  %v5141_v41 = vrot.slane %v13977_v14, %v11448_v19 }
0x1dd1   :  { %19104 = vst [vmem:[#allocation65_spill] sm:$0xff] %v14075_v51  ;;  %4889 = vperm.xlu1 %10670, %v4770_v7   ;;  %5488 = vperm.xlu0 %10671, %v14071_v2   ;;  %v4774_v7 = vsel %vm4726_vm11, %v18971_v13, 12 }
0x1dd4   :  { %v14081_v53 = vpop.permute.xlu1 %5401  ;;  %v14083_v52 = vpop.permute.xlu0 %4862 }
0x1dd5   :  { %4895 = vperm.xlu1 %10670, %v4772_v23   ;;  %v5011_v23 = vrot.slane %v13895_v40, %v11445_v8  ;;  %v5572_v28 = vrot.slane %v14081_v53, %v11448_v19 }
0x1dd7   :  { %v5016_v42 = vsel %vm1940_vm14, %v5015_v10, %v5011_v23  ;;  %v4012_v10 = vand.u32 65535, %v13543_v54  ;;  %v5119_v23 = vrot.slane %v13955_v29, %v11445_v8  ;;  %v5128_v54 = vrot.slane %v13967_v47, %v11445_v8 }
0x1dd8   :  { %v14088_v5 = vpop.permute.xlu1 %5407  ;;  %v14090_v56 = vpop.permute.xlu0 %4868  ;;  %v5110_v29 = vrot.slane %v13943_v50, %v11445_v8  ;;  %v5142_v50 = vsel %vm1940_vm14, %v5141_v41, %v5137_v48 }
0x1dd9   :  { %4901 = vperm.xlu1 %10670, %v4774_v7   ;;  %v5002_v7 = vrot.slane %v13875_v45, %v11445_v8  ;;  %v5124_v36 = vsel %vm1940_vm14, %v5123_v44, %v5119_v23  ;;  %v3982_v23 = vand.u32 65535, %v13530_v62  ;;  %v5581_v13 = vrot.slane %v14088_v5, %v11448_v19 }
0x1dda   :  { %v5115_v11 = vsel %vm1940_vm14, %v5114_v27, %v5110_v29 }
0x1ddb   :  { %v5007_v4 = vsel %vm1940_vm14, %v5006_v57, %v5002_v7  ;;  %v5160_v14 = vsel %vm2149_vm15, %v5124_v36, %v5115_v11 }
0x1ddc   :  { %v14093_v2 = vpop.permute.xlu1 %5413  ;;  %v14095_v26 = vpop.permute.xlu0 %4874  ;;  %v5150_v21 = vsel %vm2149_vm15, %v5016_v42, %v5007_v4 }
0x1ddd   :  { %v5151_v24 = vsel %vm2151_vm0, %v5025_v33, %v5150_v21  ;;  %v5590_v32 = vrot.slane %v14093_v2, %v11448_v19 }
0x1dde   :  { %v5152_v43 = vsel %vm2153_vm1, %v5034_v22, %v5151_v24  ;;  %v5133_v22 = vsel %vm1940_vm14, %v5132_v49, %v5128_v54 }
0x1ddf   :  { %v14134_v57 = vsel %vm1492_vm13, %v5152_v43, 2147483647  ;;  %v4014_v43 = vcvt.s32.f32 %v4012_v10  ;;  %v5161_v15 = vsel %vm2151_vm0, %v5133_v22, %v5160_v14 }
0x1de0   :  { %v14113_v39 = vpop.permute.xlu1 %5419  ;;  %v14115_v40 = vpop.permute.xlu0 %4880  ;;  %19107 = vst [vmem:[#allocation81_spill] sm:$0xff] %v14134_v57  ;;  %v5180_v7 = vshra.s32 %v14134_v57, 16  ;;  %v5162_v44 = vsel %vm2153_vm1, %v5142_v50, %v5161_v15 }
0x1de1   :  { %v4019_v42 = vsel %vm4018_vm6, %v4014_v43, inf  ;;  %v14183_v43 = vsel %vm1492_vm13, %v5162_v44, 2147483647  ;;  %v5599_v5 = vrot.slane %v14113_v39, %v11448_v19 }
0x1de2   :  { %v14167_v21 = vcvt.s32.f32 %v5180_v7  ;;  %19109 = vst [vmem:[#allocation87_spill] sm:$0xff] %v14183_v43  ;;  %v3984_v7 = vcvt.s32.f32 %v3982_v23  ;;  %v5210_v27 = vshra.s32 %v14183_v43, 16 }
0x1de4   :  { %v14121_v59 = vpop.permute.xlu1 %5425  ;;  %v14123_v45 = vpop.permute.xlu0 %4886  ;;  %19108 = vst [vmem:[#allocation83_spill] sm:$0xff] %v14167_v21  ;;  %v3989_v48 = vsel %vm3988_vm7, %v3984_v7, inf  ;;  %v14192_v62 = vcvt.s32.f32 %v5210_v27 }
0x1de5   :  { %v5083_v51 = vrot.slane %v14123_v45, %v11445_v8 }
0x1de6   :  { %19110 = vst [vmem:[#allocation106_spill] sm:$0xff] %v14192_v62 }
0x1de8   :  { %v14128_v17 = vpop.permute.xlu1 %5431  ;;  %v14130_v1 = vpop.permute.xlu0 %4892 }
0x1dec   :  { %v14140_v4 = vpop.permute.xlu1 %5437  ;;  %v14142_v3 = vpop.permute.xlu0 %4898 }
0x1df0   :  { %v14160_v33 = vpop.permute.xlu1 %5443  ;;  %4020 = vmin.xlane.f32.xlu0 %v4019_v42  ;;  %v14162_v47 = vpop.permute.xlu0 %5350 }
0x1df4   :  { %v14171_v24 = vpop.permute.xlu1 %5449  ;;  %5183 = vmin.xlane.f32.xlu0 %v14167_v21  ;;  %v14174_v10 = vpop.permute.xlu0 %5356 }
0x1df8   :  { %v14178_v49 = vpop.permute.xlu1 %5455  ;;  %v14180_v54 = vpop.permute.xlu0 %5362 }
0x1dfc   :  { %v14188_v29 = vpop.permute.xlu1 %5461  ;;  %v14190_v41 = vpop.permute.xlu0 %5368 }
0x1dfd   :  { %3990 = vmin.xlane.f32.xlu1 %v3989_v48 }
0x1e00   :  { %v14194_v42 = vpop.permute.xlu1 %5467  ;;  %v14196_v36 = vpop.permute.xlu0 %5374 }
0x1e01   :  { %5213 = vmin.xlane.f32.xlu1 %v14192_v62 }
0x1e04   :  { %v14199_v22 = vpop.permute.xlu1 %5473  ;;  %v14201_v0 = vpop.permute.xlu0 %5380 }
0x1e08   :  { %v14203_v11 = vpop.permute.xlu1 %5479  ;;  %v14205_v50 = vpop.permute.xlu0 %5386 }
0x1e0c   :  { %v14207_v14 = vpop.permute.xlu1 %5485  ;;  %v14209_v15 = vpop.permute.xlu0 %5392 }
0x1e0d   :  { %19111 = vst [vmem:[#allocation130_spill] sm:$0xff] %v14207_v14  ;;  %v5514_v14 = vrot.slane %v14180_v54, %v11445_v8 }
0x1e10   :  { %v14211_v44 = vpop.permute.xlu1 %5491  ;;  %v5399_v23 = vpop.permute.xlu0 %5398 }
0x1e11   :  { %19112 = vst [vmem:[#allocation131_spill] sm:$0xff] %v14211_v44  ;;  %v5568_v58 = vrot.slane %v5399_v23, %v11445_v8 }
0x1e13   :  { %v5573_v23 = vsel %vm1940_vm14, %v5572_v28, %v5568_v58 }
0x1e14   :  { %v14213_v7 = vpop.permute.xlu1 %4784  ;;  %v5405_v27 = vpop.permute.xlu0 %5404 }
0x1e15   :  { %v5577_v48 = vrot.slane %v5405_v27, %v11445_v8 }
0x1e17   :  { %v5582_v62 = vsel %vm1940_vm14, %v5581_v13, %v5577_v48 }
0x1e18   :  { %v14216_v55 = vpop.permute.xlu1 %4790  ;;  %v5411_v20 = vpop.permute.xlu0 %5410  ;;  %v5716_v57 = vsel %vm2149_vm15, %v5582_v62, %v5573_v23  ;;  %v5554_v23 = vrot.slane %v14061_v25, %v11448_v19 }
0x1e19   :  { %v5586_v34 = vrot.slane %v5411_v20, %v11445_v8 }
0x1e1b   :  { %v5591_v27 = vsel %vm1940_vm14, %v5590_v32, %v5586_v34 }
0x1e1c   :  { %v14228_v43 = vpop.permute.xlu1 %4793  ;;  %v5417_v21 = vpop.permute.xlu0 %5416  ;;  %v5717_v53 = vsel %vm2151_vm0, %v5591_v27, %v5716_v57 }
0x1e1d   :  { %v5595_v20 = vrot.slane %v5417_v21, %v11445_v8 }
0x1e1f   :  { %v5600_v2 = vsel %vm1940_vm14, %v5599_v5, %v5595_v20  ;;  %v5500_v5 = vrot.slane %v13989_v38, %v11448_v19  ;;  %v5509_v20 = vrot.slane %v14001_v37, %v11448_v19  ;;  %v5527_v38 = vrot.slane %v14025_v6, %v11448_v19 }
0x1e20   :  { %v14237_v44 = vpop.permute.xlu1 %4799  ;;  %v14239_v13 = vpop.permute.xlu0 %5422  ;;  %v5718_v32 = vsel %vm2153_vm1, %v5600_v2, %v5717_v53  ;;  %v5518_v53 = vrot.slane %v14013_v31, %v11448_v19  ;;  %v5505_v37 = vrot.slane %v14174_v10, %v11445_v8  ;;  %v5536_v2 = vrot.slane %v14037_v12, %v11448_v19 }
0x1e21   :  { %v5736_v34 = vsel %vm1492_vm13, %v5718_v32, -inf  ;;  %v5496_v10 = vrot.slane %v14162_v47, %v11445_v8  ;;  %v5523_v12 = vrot.slane %v14190_v41, %v11445_v8  ;;  %v5532_v6 = vrot.slane %v14196_v36, %v11445_v8 }
0x1e22   :  { %5737 = vmax.xlane.f32.xlu1 %v5736_v34  ;;  %v5608_v36 = vrot.slane %v14121_v59, %v11448_v19  ;;  %v5617_v47 = vrot.slane %v14128_v17, %v11448_v19  ;;  %v5101_v41 = vrot.slane %v14142_v3, %v11445_v8 }
0x1e23   :  { %v5501_v31 = vsel %vm1940_vm14, %v5500_v5, %v5496_v10  ;;  %v5537_v54 = vsel %vm1940_vm14, %v5536_v2, %v5532_v6  ;;  %v5635_v5 = vrot.slane %v14160_v33, %v11448_v19  ;;  %v5644_v2 = vrot.slane %v14171_v24, %v11448_v19 }
0x1e24   :  { %v14243_v39 = vpop.permute.xlu1 %4805  ;;  %v14245_v28 = vpop.permute.xlu0 %5428  ;;  %v4943_v6 = vrot.slane %v14228_v43, %v11448_v19  ;;  %v5662_v10 = vrot.slane %v14188_v29, %v11448_v19  ;;  %v5671_v33 = vrot.slane %v14194_v42, %v11448_v19  ;;  %v4939_v43 = vrot.slane %v14216_v55, %v11445_v8 }
0x1e28   :  { %v14247_v58 = vpop.permute.xlu1 %4811  ;;  %v14249_v21 = vpop.permute.xlu0 %5434 }
0x1e29   :  { %v5622_v55 = vrot.slane %v14249_v21, %v11445_v8  ;;  %v19116_v21 = vrot.slane %v13991_v63, %v11448_v19 }
0x1e2c   :  { %v14251_v62 = vpop.permute.xlu1 %4817  ;;  %v14253_v57 = vpop.permute.xlu0 %5440 }
0x1e30   :  { %v14255_v48 = vpop.permute.xlu1 %4823  ;;  %v14257_v27 = vpop.permute.xlu0 %5446 }
0x1e34   :  { %v14269_v32 = vpop.permute.xlu1 %4829  ;;  %v14271_v34 = vpop.permute.xlu0 %5452 }
0x1e35   :  { %19113 = vst [vmem:[#allocation132_spill] sm:$0xff] %v14271_v34  ;;  %v5545_v34 = vrot.slane %v14049_v60, %v11448_v19  ;;  %v5563_v60 = vrot.slane %v14073_v9, %v11448_v19  ;;  %v5510_v9 = vsel %vm1940_vm14, %v5509_v20, %v5505_v37  ;;  %v5528_v20 = vsel %vm1940_vm14, %v5527_v38, %v5523_v12 }
0x1e36   :  { %v5626_v37 = vrot.slane %v14140_v4, %v11448_v19  ;;  %v5709_v59 = vsel %vm2149_vm15, %v5510_v9, %v5501_v31  ;;  %v5550_v4 = vrot.slane %v14205_v50, %v11445_v8  ;;  %v4952_v50 = vrot.slane %v14237_v44, %v11448_v19 }
0x1e37   :  { %v4930_v9 = vrot.slane %v14213_v7, %v11445_v8  ;;  %v4961_v44 = vrot.slane %v14243_v39, %v11448_v19  ;;  %v4970_v7 = vrot.slane %v14247_v58, %v11448_v19  ;;  %v19115_v39 = vrot.slane %v14003_v18, %v11445_v8 }
0x1e38   :  { %v14305_v61 = vpop.permute.xlu1 %4859  ;;  %v14307_v25 = vpop.permute.xlu0 %5458  ;;  %v5689_v58 = vrot.slane %v14203_v11, %v11448_v19 }
0x1e39   :  { %19114 = vst [vmem:[#allocation133_spill] sm:$0xff] %v14307_v25  ;;  %v5519_v25 = vsel %vm1940_vm14, %v5518_v53, %v5514_v14  ;;  %v5541_v14 = vrot.slane %v14201_v0, %v11445_v8  ;;  %v5653_v0 = vrot.slane %v14178_v49, %v11448_v19 }
0x1e3a   :  { %v5710_v38 = vsel %vm2151_vm0, %v5519_v25, %v5709_v59  ;;  %v5559_v25 = vrot.slane %v14209_v15, %v11445_v8  ;;  %v5613_v15 = vrot.slane %v14245_v28, %v11445_v8  ;;  %v5631_v28 = vrot.slane %v14253_v57, %v11445_v8 }
0x1e3b   :  { %v5711_v31 = vsel %vm2153_vm1, %v5528_v20, %v5710_v38  ;;  %v5546_v24 = vsel %vm1940_vm14, %v5545_v34, %v5541_v14  ;;  %v5555_v38 = vsel %vm1940_vm14, %v5554_v23, %v5550_v4  ;;  %v4944_v34 = vsel %vm1940_vm14, %v4943_v6, %v4939_v43 }
0x1e3c   :  { %v14335_v53 = vpop.permute.xlu1 %4865  ;;  %v14337_v17 = vpop.permute.xlu0 %5464  ;;  %v5712_v12 = vsel %vm2155_vm2, %v5537_v54, %v5711_v31  ;;  %v5604_v54 = vrot.slane %v14239_v13, %v11445_v8  ;;  %v4979_v23 = vrot.slane %v14251_v62, %v11448_v19  ;;  %v5680_v13 = vrot.slane %v14199_v22, %v11448_v19 }
0x1e3d   :  { %v4953_v14 = vsel %vm1940_vm14, %v4952_v50, %v19115_v39  ;;  %v5713_v4 = vsel %vm2157_vm3, %v5546_v24, %v5712_v12  ;;  %v4935_v62 = vsel %vm1940_vm14, %v19116_v21, %v4930_v9  ;;  %v5564_v6 = vsel %vm1940_vm14, %v5563_v60, %v5559_v25 }
0x1e3e   :  { %v5714_v18 = vsel %vm2159_vm4, %v5555_v38, %v5713_v4  ;;  %v5143_v50 = vsel %vm2149_vm15, %v4944_v34, %v4935_v62  ;;  %v5609_v57 = vsel %vm1940_vm14, %v5608_v36, %v5604_v54  ;;  %v19117_v12 = vrot.slane %v14015_v16, %v11445_v8 }
0x1e3f   :  { %v5618_v24 = vsel %vm1940_vm14, %v5617_v47, %v5613_v15  ;;  %v5144_v63 = vsel %vm2151_vm0, %v4953_v14, %v5143_v50  ;;  %v19118_v9 = vrot.slane %v14027_v30, %v11445_v8  ;;  %v5627_v25 = vsel %vm1940_vm14, %v5626_v37, %v5622_v55  ;;  %v19120_v30 = vld [vmem:[#allocation130_spill] sm:$0xff] }
0x1e40   :  { %v14367_v20 = vpop.permute.xlu1 %4871  ;;  %v5471_v59 = vpop.permute.xlu0 %5470  ;;  %v4962_v11 = vsel %vm1940_vm14, %v4961_v44, %v19117_v12  ;;  %v19119_v43 = vrot.slane %v14039_v46, %v11445_v8  ;;  %v5636_v16 = vsel %vm1940_vm14, %v5635_v5, %v5631_v28  ;;  %v4988_v38 = vrot.slane %v14255_v48, %v11448_v19 }
0x1e41   :  { %v4971_v60 = vsel %vm1940_vm14, %v4970_v7, %v19118_v9  ;;  %v5640_v47 = vrot.slane %v14257_v27, %v11445_v8  ;;  %v5698_v44 = vrot.slane %v19120_v30, %v11448_v19  ;;  %v5145_v37 = vsel %vm2153_vm1, %v4962_v11, %v5144_v63  ;;  %v19125_v11 = vld [vmem:[#allocation132_spill] sm:$0xff] }
0x1e42   :  { %v4980_v36 = vsel %vm1940_vm14, %v4979_v23, %v19119_v43  ;;  %v5719_v15 = vsel %vm2149_vm15, %v5618_v24, %v5609_v57  ;;  %v4997_v46 = vrot.slane %v14269_v32, %v11448_v19  ;;  %v5146_v7 = vsel %vm2155_vm2, %v4971_v60, %v5145_v37  ;;  %v19121_v23 = vld [vmem:[#allocation131_spill] sm:$0xff]  ;;  %v19122_v32 = vld [vmem:[#allocation78_spill] sm:$0xff]  ;;  %v19126_v60 = vld [vmem:[#allocation133_spill] sm:$0xff] }
0x1e43   :  { %v5720_v48 = vsel %vm2151_vm0, %v5627_v25, %v5719_v15  ;;  %v5676_v27 = vrot.slane %v5471_v59, %v11445_v8  ;;  %v5707_v39 = vrot.slane %v19121_v23, %v11448_v19  ;;  %v5147_v14 = vsel %vm2157_vm3, %v4980_v36, %v5146_v7  ;;  %v19129_v37 = vld [vmem:[#allocation65_spill] sm:$0xff] }
0x1e44   :  { %v4878_v31 = vpop.permute.xlu1 %4877  ;;  %v5477_v22 = vpop.permute.xlu0 %5476  ;;  %v5721_v28 = vsel %vm2153_vm1, %v5636_v16, %v5720_v48  ;;  %v5715_v4 = vsel %vm2161_vm5, %v5564_v6, %v5714_v18  ;;  %v19123_v21 = vrot.slane %v19122_v32, %v11445_v8  ;;  %v5051_v59 = vrot.slane %v14335_v53, %v11448_v19 }
0x1e45   :  { %v5685_v54 = vrot.slane %v5477_v22, %v11445_v8  ;;  %v5645_v22 = vsel %vm1940_vm14, %v5644_v2, %v5640_v47  ;;  %v19124_v57 = vrot.slane %v14063_v35, %v11445_v8  ;;  %v5649_v6 = vrot.slane %v19125_v11, %v11445_v8 }
0x1e46   :  { %v4989_v62 = vsel %vm1940_vm14, %v4988_v38, %v19123_v21  ;;  %v5060_v18 = vrot.slane %v14367_v20, %v11448_v19  ;;  %v5042_v53 = vrot.slane %v14305_v61, %v11448_v19  ;;  %v5069_v9 = vrot.slane %v4878_v31, %v11448_v19 }
0x1e47   :  { %v5690_v50 = vsel %vm1940_vm14, %v5689_v58, %v5685_v54  ;;  %v4998_v12 = vsel %vm1940_vm14, %v4997_v46, %v19124_v57  ;;  %v5681_v58 = vsel %vm1940_vm14, %v5680_v13, %v5676_v27  ;;  %v5658_v25 = vrot.slane %v19126_v60, %v11445_v8 }
0x1e48   :  { %v4884_v34 = vpop.permute.xlu1 %4883  ;;  %v5483_v5 = vpop.permute.xlu0 %5482  ;;  %v5667_v43 = vrot.slane %v14337_v17, %v11445_v8  ;;  %v5726_v36 = vsel %vm2149_vm15, %v5690_v50, %v5681_v58  ;;  %v19127_v16 = vrot.slane %v14083_v52, %v11445_v8  ;;  %v5148_v47 = vsel %vm2159_vm4, %v4989_v62, %v5147_v14 }
0x1e49   :  { %v5694_v55 = vrot.slane %v5483_v5, %v11445_v8  ;;  %v5078_v20 = vrot.slane %v4884_v34, %v11448_v19  ;;  %v5654_v17 = vsel %vm1940_vm14, %v5653_v0, %v5649_v6  ;;  %v19128_v54 = vrot.slane %v14090_v56, %v11445_v8 }
0x1e4a   :  { %v5052_v61 = vsel %vm1940_vm14, %v5051_v59, %v19127_v16  ;;  %v19130_v15 = vrot.slane %v19129_v37, %v11445_v8  ;;  %v19131_v34 = vrot.slane %v14095_v26, %v11445_v8  ;;  %v5663_v56 = vsel %vm1940_vm14, %v5662_v10, %v5658_v25  ;;  %v19148_v37 = vld [vmem:[#allocation101_spill] sm:$0xff] }
0x1e4b   :  { %v5699_v24 = vsel %vm1940_vm14, %v5698_v44, %v5694_v55  ;;  %v5061_v52 = vsel %vm1940_vm14, %v5060_v18, %v19128_v54  ;;  %v19132_v48 = vrot.slane %v14115_v40, %v11445_v8  ;;  %v5149_v26 = vsel %vm2161_vm5, %v4998_v12, %v5148_v47  ;;  %v19144_v47 = vld [vmem:[#allocation120_spill] sm:$0xff]  ;;  %v19146_v54 = vld [vmem:[#allocation30_spill] sm:$0xff] }
0x1e4c   :  { %v4890_v63 = vpop.permute.xlu1 %4889  ;;  %v5489_v2 = vpop.permute.xlu0 %5488  ;;  %v5727_v38 = vsel %vm2151_vm0, %v5699_v24, %v5726_v36  ;;  %v5043_v46 = vsel %vm1940_vm14, %v5042_v53, %v19130_v15  ;;  %v5070_v49 = vsel %vm1940_vm14, %v5069_v9, %v19131_v34  ;;  %v5722_v55 = vsel %vm2155_vm2, %v5645_v22, %v5721_v28  ;;  %v19137_v53 = vld [vmem:[#allocation83_spill] sm:$0xff]  ;;  %v19149_v15 = vld [vmem:[#allocation104_spill] sm:$0xff] }
0x1e4d   :  { %v5703_v35 = vrot.slane %v5489_v2, %v11445_v8  ;;  %v5087_v13 = vrot.slane %v4890_v63, %v11448_v19  ;;  %v5153_v7 = vsel %vm2149_vm15, %v5052_v61, %v5043_v46  ;;  %v5079_v27 = vsel %vm1940_vm14, %v5078_v20, %v19132_v48  ;;  %v19141_v20 = vld [vmem:[#allocation106_spill] sm:$0xff]  ;;  %v19150_v46 = vld [vmem:[#allocation12_spill] sm:$0xff] }
0x1e4e   :  { %v5154_v23 = vsel %vm2151_vm0, %v5061_v52, %v5153_v7  ;;  %v5672_v10 = vsel %vm1940_vm14, %v5671_v33, %v5667_v43  ;;  %v5733_v32 = vsel %vm1488_vm12, %v5715_v4, -inf  ;;  %v5723_v21 = vsel %vm2157_vm3, %v5654_v17, %v5722_v55  ;;  %v19142_v61 = vld [vmem:[#allocation10_spill] sm:$0xff]  ;;  %v19145_v17 = vld [vmem:[#allocation100_spill] sm:$0xff]  ;;  %v19153_v7 = vld [vmem:[#allocation13_spill] sm:$0xff] }
0x1e4f   :  { %v5708_v31 = vsel %vm1940_vm14, %v5707_v39, %v5703_v35  ;;  %v5088_v29 = vsel %vm1940_vm14, %v5087_v13, %v5083_v51  ;;  %v5155_v40 = vsel %vm2153_vm1, %v5070_v49, %v5154_v23  ;;  %v19133_v39 = vrot.slane %v14130_v1, %v11445_v8  ;;  %v19139_v35 = vld [vmem:[#allocation87_spill] sm:$0xff]  ;;  %v19155_v23 = vld [vmem:[#allocation102_spill] sm:$0xff] }
0x1e50   :  { %v4896_v30 = vpop.permute.xlu1 %4895  ;;  %v5728_v44 = vsel %vm2153_vm1, %v5708_v31, %v5727_v38  ;;  %v5156_v45 = vsel %vm2155_vm2, %v5079_v27, %v5155_v40  ;;  %v5724_v42 = vsel %vm2159_vm4, %v5663_v56, %v5723_v21  ;;  %v14524_v33 = vsel %vm1488_vm12, %v5149_v26, 2147483647  ;;  %v19143_v31 = vld [vmem:[#allocation11_spill] sm:$0xff] }
0x1e51   :  { %v5096_v0 = vrot.slane %v4896_v30, %v11448_v19  ;;  %v5742_v5 = vsel %vm1492_vm13, %v5728_v44, -inf  ;;  %v5157_v62 = vsel %vm2157_vm3, %v5088_v29, %v5156_v45  ;;  %v5725_v1 = vsel %vm2161_vm5, %v5672_v10, %v5724_v42  ;;  %v19147_v30 = vld [vmem:[#allocation44_spill] sm:$0xff]  ;;  %v19152_v56 = vld [vmem:[#allocation63_spill] sm:$0xff] }
0x1e52   :  { %5743 = vmax.xlane.f32.xlu0 %v5742_v5  ;;  %v5165_v50 = vshra.s32 %v14524_v33, 16  ;;  %v5739_v57 = vsel %vm1488_vm12, %v5725_v1, -inf  ;;  %v5209_v60 = vand.u32 65535, %v19139_v35  ;;  %v19151_v5 = vld [vmem:[#allocation76_spill] sm:$0xff]  ;;  %v19154_v55 = vld [vmem:[#allocation75_spill] sm:$0xff] }
0x1e53   :  { %v5097_v14 = vsel %vm1940_vm14, %v5096_v0, %v19133_v39  ;;  %v19159_v42 = vld [vmem:[#allocation123_spill] sm:$0xff] }
0x1e54   :  { %v4902_v28 = vpop.permute.xlu1 %4901  ;;  %v5158_v22 = vsel %vm2159_vm4, %v5097_v14, %v5157_v62  ;;  %v14542_v18 = vcvt.s32.f32 %v5165_v50  ;;  %v5211_v43 = vcvt.s32.f32 %v5209_v60 }
0x1e55   :  { %v5105_v51 = vrot.slane %v4902_v28, %v11448_v19  ;;  %v19156_v28 = vld [vmem:[#allocation112_spill] sm:$0xff] }
0x1e56   :  { %5734 = vmax.xlane.f32.xlu0 %v5733_v32  ;;  %v19157_v32 = vld [vmem:[#allocation122_spill] sm:$0xff] }
0x1e57   :  { %v5106_v4 = vsel %vm1940_vm14, %v5105_v51, %v5101_v41  ;;  %v19135_v41 = vld [vmem:[#allocation81_spill] sm:$0xff] }
0x1e58   :  { %v5159_v59 = vsel %vm2161_vm5, %v5106_v4, %v5158_v22  ;;  %v5179_v24 = vand.u32 65535, %v19135_v41  ;;  %v19158_v51 = vld [vmem:[#allocation97_spill] sm:$0xff]  ;;  %v19160_v4 = vld [vmem:[#allocation94_spill] sm:$0xff] }
0x1e59   :  { %v14537_v12 = vsel %vm1488_vm12, %v5159_v59, 2147483647  ;;  %v19161_v59 = vld [vmem:[#allocation64_spill] sm:$0xff]  ;;  %v19162_v41 = vld [vmem:[#allocation105_spill] sm:$0xff] }
0x1e5a   :  { %5740 = vmax.xlane.f32.xlu0 %v5739_v57  ;;  %v5195_v11 = vshra.s32 %v14537_v12, 16  ;;  %v5181_v2 = vcvt.s32.f32 %v5179_v24  ;;  %v19163_v24 = vld [vmem:[#allocation80_spill] sm:$0xff] }
0x1e5c   :  { %v14540_v6 = vcvt.s32.f32 %v5195_v11 }
0x1e5e   :  { %5198 = vmin.xlane.f32.xlu1 %v14540_v6  ;;  %5168 = vmin.xlane.f32.xlu0 %v14542_v18 }
0x1e79   :  { %v14546_v3 = vpop.xlane.xlu0 %4020 }
0x1e7a   :  { %19134 = vst [vmem:[#allocation130_spill] sm:$0xff] %v14546_v3  ;;  %v19206_v3 = vld [vmem:[#allocation103_spill] sm:$0xff] }
0x1e7d   :  { %v14549_v63 = vpop.xlane.xlu0 %5183 }
0x1e7e   :  { %19136 = vst [vmem:[#allocation131_spill] sm:$0xff] %v14549_v63  ;;  %vm5185_vm8 = vcmp.eq.f32.partialorder %v19137_v53, %v14549_v63  ;;  %v19210_v63 = vld [vmem:[#allocation121_spill] sm:$0xff] }
0x1e7f   :  { %v5186_v58 = vsel %vm5185_vm8, %v5181_v2, inf  ;;  %v19164_v2 = vld [vmem:[#allocation46_spill] sm:$0xff] }
0x1e80   :  { %5187 = vmin.xlane.f32.xlu0 %v5186_v58  ;;  %v19165_v58 = vld [vmem:[#allocation51_spill] sm:$0xff] }
0x1e86   :  { %v14553_v9 = vpop.xlane.xlu1 %3990 }
0x1e87   :  { %19138 = vst [vmem:[#allocation78_spill] sm:$0xff] %v14553_v9 }
0x1e8a   :  { %v14556_v25 = vpop.xlane.xlu1 %5213 }
0x1e8b   :  { %19140 = vst [vmem:[#allocation132_spill] sm:$0xff] %v14556_v25  ;;  %vm5215_vm9 = vcmp.eq.f32.partialorder %v19141_v20, %v14556_v25 }
0x1e8c   :  { %v5216_v36 = vsel %vm5215_vm9, %v5211_v43, inf }
0x1e8d   :  { %5217 = vmin.xlane.f32.xlu0 %v5216_v36  ;;  %v19166_v36 = vld [vmem:[#allocation18_spill] sm:$0xff] }
0x1eab   :  { %v5738_v16 = vpop.xlane.xlu1 %5737 }
0x1eac   :  { %v5784_v13 = vrot.slane %v5738_v16, %v19142_v61  ;;  %v5788_v38 = vrot.slane %v5738_v16, %v19143_v31  ;;  %v5792_v34 = vrot.slane %v5738_v16, %v19150_v46  ;;  %v5796_v48 = vrot.slane %v5738_v16, %v19153_v7 }
0x1ead   :  { %v14599_v53 = vadd.f32 %v19164_v2, %v5738_v16  ;;  %v19194_v2 = vld [vmem:[#allocation25_spill] sm:$0xff] }
0x1eae   :  { %vm5886_vm10 = vcmp.eq.f32.partialorder %v19144_v47, %v5784_v13  ;;  %vm5885_vm11 = vcmp.eq.f32.partialorder %v19145_v17, %v5784_v13  ;;  %vm5888_vm6 = vcmp.eq.f32.partialorder %v19148_v37, %v5788_v38  ;;  %vm5887_vm7 = vcmp.eq.f32.partialorder %v19149_v15, %v5788_v38  ;;  %v19168_v38 = vld [vmem:[#allocation26_spill] sm:$0xff]  ;;  %v19170_v17 = vld [vmem:[#allocation19_spill] sm:$0xff]  ;;  %v19174_v15 = vld [vmem:[#allocation129_spill] sm:$0xff] }
0x1eaf   :  { %v5934_v52 = vsel %vm5886_vm10, %v19146_v54, 12  ;;  %v5933_v44 = vsel %vm5885_vm11, %v19147_v30, 12  ;;  %v5936_v49 = vsel %vm5888_vm6, %v19146_v54, 12  ;;  %v5935_v0 = vsel %vm5887_vm7, %v19147_v30, 12 }
0x1eb0   :  { %6017 = vperm.xlu1 %10670, %v5934_v52   ;;  %6014 = vperm.xlu0 %10671, %v5933_v44   ;;  %vm5890_vm8 = vcmp.eq.f32.partialorder %v19151_v5, %v5792_v34  ;;  %vm5889_vm9 = vcmp.eq.f32.partialorder %v19152_v56, %v5792_v34  ;;  %vm5892_vm10 = vcmp.eq.f32.partialorder %v19154_v55, %v5796_v48  ;;  %v19172_v44 = vld [vmem:[#allocation27_spill] sm:$0xff] }
0x1eb1   :  { %v5938_v27 = vsel %vm5890_vm8, %v19146_v54, 12  ;;  %v5937_v26 = vsel %vm5889_vm9, %v19147_v30, 12  ;;  %vm5891_vm11 = vcmp.eq.f32.partialorder %v19155_v23, %v5796_v48  ;;  %v5940_v29 = vsel %vm5892_vm10, %v19146_v54, 12  ;;  %v19177_v56 = vld [vmem:[#allocation71_spill] sm:$0xff] }
0x1eb2   :  { %v5939_v10 = vsel %vm5891_vm11, %v19147_v30, 12  ;;  %v14610_v13 = vadd.f32 %v14599_v53, %v19166_v36  ;;  %v14624_v52 = vadd.f32 %v14599_v53, %v19170_v17  ;;  %v19180_v23 = vld [vmem:[#allocation107_spill] sm:$0xff] }
0x1eb4   :  { %6023 = vperm.xlu1 %10670, %v5936_v49   ;;  %6020 = vperm.xlu0 %10671, %v5935_v0   ;;  %19167 = vst [vmem:[#allocation133_spill] sm:$0xff] %v14610_v13  ;;  %19171 = vst [vmem:[#allocation81_spill] sm:$0xff] %v14624_v52  ;;  %v19175_v49 = vld [vmem:[#allocation20_spill] sm:$0xff] }
0x1eb5   :  { %v14640_v0 = vadd.f32 %v14599_v53, %v19175_v49 }
0x1eb7   :  { %19176 = vst [vmem:[#allocation87_spill] sm:$0xff] %v14640_v0 }
0x1eb8   :  { %6029 = vperm.xlu1 %10670, %v5938_v27   ;;  %6026 = vperm.xlu0 %10671, %v5937_v26   ;;  %v19178_v27 = vld [vmem:[#allocation21_spill] sm:$0xff] }
0x1eb9   :  { %v14652_v26 = vadd.f32 %v14599_v53, %v19178_v27 }
0x1ebb   :  { %19179 = vst [vmem:[#allocation106_spill] sm:$0xff] %v14652_v26 }
0x1ebc   :  { %6035 = vperm.xlu1 %10670, %v5940_v29   ;;  %6032 = vperm.xlu0 %10671, %v5939_v10   ;;  %v19181_v29 = vld [vmem:[#allocation14_spill] sm:$0xff] }
0x1edb   :  { %v5744_v40 = vpop.xlane.xlu0 %5743 }
0x1edc   :  { %v5832_v39 = vrot.slane %v5744_v40, %v19142_v61  ;;  %v5836_v14 = vrot.slane %v5744_v40, %v19143_v31  ;;  %v5840_v62 = vrot.slane %v5744_v40, %v19150_v46  ;;  %v5844_v50 = vrot.slane %v5744_v40, %v19153_v7 }
0x1edd   :  { %v14602_v35 = vadd.f32 %v19165_v58, %v5744_v40  ;;  %v19182_v40 = vld [vmem:[#allocation22_spill] sm:$0xff]  ;;  %v14702_v58 = vadd.f32 %v14599_v53, %v19194_v2 }
0x1ede   :  { %vm5910_vm6 = vcmp.eq.f32.partialorder %v19156_v28, %v5832_v39  ;;  %vm5909_vm7 = vcmp.eq.f32.partialorder %v19157_v32, %v5832_v39  ;;  %vm5912_vm8 = vcmp.eq.f32.partialorder %v19158_v51, %v5836_v14  ;;  %vm5911_vm9 = vcmp.eq.f32.partialorder %v19159_v42, %v5836_v14  ;;  %v19184_v28 = vld [vmem:[#allocation119_spill] sm:$0xff] }
0x1edf   :  { %v5958_v21 = vsel %vm5910_vm6, %v19146_v54, 12  ;;  %v5957_v45 = vsel %vm5909_vm7, %v19147_v30, 12  ;;  %v5960_v1 = vsel %vm5912_vm8, %v19146_v54, 12  ;;  %v5959_v22 = vsel %vm5911_vm9, %v19147_v30, 12  ;;  %v14606_v20 = vpop.xlane.xlu0 %5734  ;;  %v19185_v32 = vld [vmem:[#allocation15_spill] sm:$0xff]  ;;  %19195 = vst [vmem:[#allocation104_spill] sm:$0xff] %v14702_v58 }
0x1ee0   :  { %6089 = vperm.xlu1 %10670, %v5958_v21   ;;  %6086 = vperm.xlu0 %10671, %v5957_v45   ;;  %vm5914_vm10 = vcmp.eq.f32.partialorder %v19160_v4, %v5840_v62  ;;  %vm5913_vm11 = vcmp.eq.f32.partialorder %v19161_v59, %v5840_v62  ;;  %vm5916_vm6 = vcmp.eq.f32.partialorder %v19162_v41, %v5844_v50  ;;  %v19186_v45 = vld [vmem:[#allocation23_spill] sm:$0xff]  ;;  %v19188_v62 = vld [vmem:[#allocation93_spill] sm:$0xff]  ;;  %v19190_v4 = vld [vmem:[#allocation24_spill] sm:$0xff] }
0x1ee1   :  { %v5962_v57 = vsel %vm5914_vm10, %v19146_v54, 12  ;;  %v5961_v11 = vsel %vm5913_vm11, %v19147_v30, 12  ;;  %vm5915_vm7 = vcmp.eq.f32.partialorder %v19163_v24, %v5844_v50  ;;  %v5964_v60 = vsel %vm5916_vm6, %v19146_v54, 12 }
0x1ee2   :  { %v5963_v43 = vsel %vm5915_vm7, %v19147_v30, 12  ;;  %v14614_v47 = vadd.f32 %v14602_v35, %v19168_v38  ;;  %v14620_v16 = vrot.slane %v14606_v20, %v19142_v61  ;;  %v14628_v37 = vadd.f32 %v14602_v35, %v19172_v44 }
0x1ee3   :  { %v14636_v34 = vrot.slane %v14606_v20, %v19150_v46  ;;  %v14648_v48 = vrot.slane %v14606_v20, %v19153_v7  ;;  %v14660_v10 = vrot.slane %v14606_v20, %v19181_v29  ;;  %v14664_v39 = vadd.f32 %v14599_v53, %v19182_v40  ;;  %v14698_v24 = vpop.xlane.xlu0 %5740 }
0x1ee4   :  { %6095 = vperm.xlu1 %10670, %v5960_v1   ;;  %6092 = vperm.xlu0 %10671, %v5959_v22   ;;  %19169 = vst [vmem:[#allocation65_spill] sm:$0xff] %v14614_v47  ;;  %19173 = vst [vmem:[#allocation83_spill] sm:$0xff] %v14628_v37  ;;  %vm5870_vm8 = vcmp.eq.f32.partialorder %v19174_v15, %v14620_v16  ;;  %v14672_v21 = vrot.slane %v14606_v20, %v19185_v32  ;;  %v19189_v1 = vld [vmem:[#allocation16_spill] sm:$0xff] }
0x1ee5   :  { %v5918_v5 = vsel %vm5870_vm8, %v19146_v54, 12  ;;  %vm5873_vm9 = vcmp.eq.f32.partialorder %v19177_v56, %v14636_v34  ;;  %vm5875_vm10 = vcmp.eq.f32.partialorder %v19180_v23, %v14648_v48  ;;  %19183 = vst [vmem:[#allocation120_spill] sm:$0xff] %v14664_v39  ;;  %vm5877_vm11 = vcmp.eq.f32.partialorder %v19184_v28, %v14660_v10 }
0x1ee6   :  { %v5921_v55 = vsel %vm5873_vm9, %v19147_v30, 12  ;;  %v5923_v14 = vsel %vm5875_vm10, %v19147_v30, 12  ;;  %v14676_v51 = vadd.f32 %v14599_v53, %v19186_v45  ;;  %v5925_v42 = vsel %vm5877_vm11, %v19147_v30, 12 }
0x1ee7   :  { %vm5879_vm6 = vcmp.eq.f32.partialorder %v19188_v62, %v14672_v21  ;;  %v14684_v22 = vrot.slane %v14606_v20, %v19189_v1  ;;  %v14688_v59 = vadd.f32 %v14599_v53, %v19190_v4  ;;  %v14710_v15 = vrot.slane %v14698_v24, %v19142_v61 }
0x1ee8   :  { %6101 = vperm.xlu1 %10670, %v5962_v57   ;;  %6098 = vperm.xlu0 %10671, %v5961_v11   ;;  %19187 = vst [vmem:[#allocation100_spill] sm:$0xff] %v14676_v51  ;;  %v5927_v50 = vsel %vm5879_vm6, %v19147_v30, 12  ;;  %v19192_v57 = vld [vmem:[#allocation88_spill] sm:$0xff]  ;;  %v19193_v11 = vld [vmem:[#allocation17_spill] sm:$0xff]  ;;  %v14722_v23 = vrot.slane %v14698_v24, %v19143_v31  ;;  %v14734_v62 = vrot.slane %v14698_v24, %v19150_v46 }
0x1ee9   :  { %19191 = vst [vmem:[#allocation101_spill] sm:$0xff] %v14688_v59  ;;  %vm5881_vm7 = vcmp.eq.f32.partialorder %v19192_v57, %v14684_v22  ;;  %v14696_v41 = vrot.slane %v14606_v20, %v19193_v11 }
0x1eec   :  { %6107 = vperm.xlu1 %10670, %v5964_v60   ;;  %6104 = vperm.xlu0 %10671, %v5963_v43   ;;  %v5929_v60 = vsel %vm5881_vm7, %v19147_v30, 12  ;;  %v19196_v43 = vld [vmem:[#allocation98_spill] sm:$0xff] }
0x1eed   :  { %vm5883_vm8 = vcmp.eq.f32.partialorder %v19196_v43, %v14696_v41  ;;  %v19203_v43 = vld [vmem:[#allocation126_spill] sm:$0xff] }
0x1eee   :  { %v5931_v56 = vsel %vm5883_vm8, %v19147_v30, 12  ;;  %vm5897_vm11 = vcmp.eq.f32.partialorder %v19203_v43, %v14734_v62  ;;  %v14762_v43 = vadd.f32 %v14602_v35, %v19166_v36 }
0x1ef0   :  { %6536 = vperm.xlu1 %10670, %v14610_v13   ;;  %6656 = vperm.xlu0 %10671, %v14614_v47   ;;  %19207 = vst [vmem:[#allocation112_spill] sm:$0xff] %v14762_v43  ;;  %v14816_v47 = vadd.f32 %v14602_v35, %v19186_v45 }
0x1ef2   :  { %19217 = vst [vmem:[#allocation64_spill] sm:$0xff] %v14816_v47 }
0x1ef4   :  { %6542 = vperm.xlu1 %10670, %v14624_v52   ;;  %6662 = vperm.xlu0 %10671, %v14628_v37  }
0x1ef8   :  { %6548 = vperm.xlu1 %10670, %v14640_v0   ;;  %5969 = vperm.xlu0 %10671, %v5918_v5   ;;  %v14714_v5 = vadd.f32 %v14599_v53, %v19168_v38  ;;  %v19245_v38 = vld [vmem:[#allocation86_spill] sm:$0xff] }
0x1efa   :  { %19197 = vst [vmem:[#allocation76_spill] sm:$0xff] %v14714_v5 }
0x1efc   :  { %6554 = vperm.xlu1 %10670, %v14652_v26   ;;  %5978 = vperm.xlu0 %10671, %v5921_v55   ;;  %v19198_v55 = vld [vmem:[#allocation113_spill] sm:$0xff] }
0x1efd   :  { %vm5893_vm9 = vcmp.eq.f32.partialorder %v19198_v55, %v14710_v15  ;;  %v19204_v55 = vld [vmem:[#allocation29_spill] sm:$0xff] }
0x1efe   :  { %v5941_v28 = vsel %vm5893_vm9, %v19147_v30, 12 }
0x1f00   :  { %6560 = vperm.xlu1 %10670, %v14664_v39   ;;  %5984 = vperm.xlu0 %10671, %v5923_v14   ;;  %v14726_v14 = vadd.f32 %v14599_v53, %v19172_v44  ;;  %v19242_v44 = vld [vmem:[#allocation84_spill] sm:$0xff] }
0x1f02   :  { %19199 = vst [vmem:[#allocation63_spill] sm:$0xff] %v14726_v14 }
0x1f04   :  { %6566 = vperm.xlu1 %10670, %v14676_v51   ;;  %5990 = vperm.xlu0 %10671, %v5925_v42   ;;  %v19200_v42 = vld [vmem:[#allocation115_spill] sm:$0xff] }
0x1f05   :  { %vm5895_vm10 = vcmp.eq.f32.partialorder %v19200_v42, %v14722_v23  ;;  %v5945_v42 = vsel %vm5897_vm11, %v19147_v30, 12 }
0x1f08   :  { %6572 = vperm.xlu1 %10670, %v14688_v59   ;;  %5996 = vperm.xlu0 %10671, %v5927_v50   ;;  %v19201_v50 = vld [vmem:[#allocation28_spill] sm:$0xff]  ;;  %v19214_v59 = vld [vmem:[#allocation95_spill] sm:$0xff] }
0x1f09   :  { %v14738_v57 = vadd.f32 %v14599_v53, %v19201_v50 }
0x1f0b   :  { %19202 = vst [vmem:[#allocation75_spill] sm:$0xff] %v14738_v57 }
0x1f0c   :  { %6578 = vperm.xlu1 %10670, %v14702_v58   ;;  %6002 = vperm.xlu0 %10671, %v5929_v60   ;;  %v5943_v60 = vsel %vm5895_vm10, %v19147_v30, 12  ;;  %v19212_v58 = vld [vmem:[#allocation92_spill] sm:$0xff] }
0x1f10   :  { %6584 = vperm.xlu1 %10670, %v14714_v5   ;;  %6008 = vperm.xlu0 %10671, %v5931_v56   ;;  %v14746_v56 = vrot.slane %v14698_v24, %v19153_v7 }
0x1f12   :  { %vm5899_vm6 = vcmp.eq.f32.partialorder %v19206_v3, %v14746_v56  ;;  %v14774_v3 = vadd.f32 %v14602_v35, %v19170_v17 }
0x1f13   :  { %v5947_v9 = vsel %vm5899_vm6, %v19147_v30, 12 }
0x1f14   :  { %6590 = vperm.xlu1 %10670, %v14726_v14   ;;  %6038 = vperm.xlu0 %10671, %v5941_v28   ;;  %v14750_v28 = vadd.f32 %v14599_v53, %v19204_v55  ;;  %v19208_v53 = vld [vmem:[#allocation127_spill] sm:$0xff]  ;;  %19209 = vst [vmem:[#allocation122_spill] sm:$0xff] %v14774_v3  ;;  %v19221_v14 = vld [vmem:[#allocation33_spill] sm:$0xff] }
0x1f16   :  { %19205 = vst [vmem:[#allocation102_spill] sm:$0xff] %v14750_v28 }
0x1f18   :  { %6596 = vperm.xlu1 %10670, %v14738_v57   ;;  %6044 = vperm.xlu0 %10671, %v5943_v60   ;;  %v14758_v60 = vrot.slane %v14698_v24, %v19181_v29 }
0x1f1a   :  { %vm5901_vm7 = vcmp.eq.f32.partialorder %v19208_v53, %v14758_v60  ;;  %v14786_v53 = vadd.f32 %v14602_v35, %v19175_v49 }
0x1f1b   :  { %v5949_v25 = vsel %vm5901_vm7, %v19147_v30, 12 }
0x1f1c   :  { %6602 = vperm.xlu1 %10670, %v14750_v28   ;;  %6050 = vperm.xlu0 %10671, %v5945_v42   ;;  %v14770_v42 = vrot.slane %v14698_v24, %v19185_v32  ;;  %19211 = vst [vmem:[#allocation97_spill] sm:$0xff] %v14786_v53 }
0x1f1e   :  { %vm5903_vm8 = vcmp.eq.f32.partialorder %v19210_v63, %v14770_v42  ;;  %v14798_v63 = vadd.f32 %v14602_v35, %v19178_v27 }
0x1f1f   :  { %v5951_v28 = vsel %vm5903_vm8, %v19147_v30, 12  ;;  %vm5874_vm8 = vcmp.eq.f32.partialorder %v19245_v38, %v14636_v34 }
0x1f20   :  { %6608 = vperm.xlu1 %10670, %v14762_v43   ;;  %6056 = vperm.xlu0 %10671, %v5947_v9   ;;  %v14782_v9 = vrot.slane %v14698_v24, %v19189_v1  ;;  %19213 = vst [vmem:[#allocation123_spill] sm:$0xff] %v14798_v63  ;;  %v14858_v1 = vpop.xlane.xlu1 %5198 }
0x1f21   :  { %19231 = vst [vmem:[#allocation88_spill] sm:$0xff] %v14858_v1 }
0x1f22   :  { %vm5905_vm9 = vcmp.eq.f32.partialorder %v19212_v58, %v14782_v9  ;;  %v14810_v58 = vadd.f32 %v14602_v35, %v19182_v40 }
0x1f23   :  { %v5953_v57 = vsel %vm5905_vm9, %v19147_v30, 12 }
0x1f24   :  { %6614 = vperm.xlu1 %10670, %v14774_v3   ;;  %6062 = vperm.xlu0 %10671, %v5949_v25   ;;  %v14794_v25 = vrot.slane %v14698_v24, %v19193_v11  ;;  %19216 = vst [vmem:[#allocation94_spill] sm:$0xff] %v14810_v58  ;;  %v19229_v3 = vld [vmem:[#allocation35_spill] sm:$0xff] }
0x1f26   :  { %vm5907_vm10 = vcmp.eq.f32.partialorder %v19214_v59, %v14794_v25 }
0x1f27   :  { %v5955_v37 = vsel %vm5907_vm10, %v19147_v30, 12 }
0x1f28   :  { %6620 = vperm.xlu1 %10670, %v14786_v53   ;;  %6068 = vperm.xlu0 %10671, %v5951_v28   ;;  %v19215_v28 = vld [vmem:[#allocation47_spill] sm:$0xff] }
0x1f29   :  { %v14806_v43 = vadd.f32 %v19215_v28, %v14606_v20  ;;  %v14826_v28 = vadd.f32 %v14602_v35, %v19190_v4 }
0x1f2b   :  { %19220 = vst [vmem:[#allocation80_spill] sm:$0xff] %v14826_v28  ;;  %v14830_v5 = vadd.f32 %v14806_v43, %v19221_v14  ;;  %v14854_v11 = vadd.f32 %v14806_v43, %v19229_v3 }
0x1f2c   :  { %6626 = vperm.xlu1 %10670, %v14798_v63   ;;  %6074 = vperm.xlu0 %10671, %v5953_v57   ;;  %v19218_v57 = vld [vmem:[#allocation32_spill] sm:$0xff] }
0x1f2d   :  { %v14820_v59 = vadd.f32 %v14806_v43, %v19218_v57  ;;  %19222 = vst [vmem:[#allocation46_spill] sm:$0xff] %v14830_v5  ;;  %19230 = vst [vmem:[#allocation93_spill] sm:$0xff] %v14854_v11 }
0x1f2f   :  { %19219 = vst [vmem:[#allocation105_spill] sm:$0xff] %v14820_v59 }
0x1f30   :  { %6632 = vperm.xlu1 %10670, %v14810_v58   ;;  %6080 = vperm.xlu0 %10671, %v5955_v37   ;;  %v14834_v37 = vpop.xlane.xlu0 %5168  ;;  %v14838_v58 = vadd.f32 %v14602_v35, %v19201_v50 }
0x1f31   :  { %19223 = vst [vmem:[#allocation51_spill] sm:$0xff] %v14834_v37 }
0x1f32   :  { %19224 = vst [vmem:[#allocation129_spill] sm:$0xff] %v14838_v58 }
0x1f34   :  { %6638 = vperm.xlu1 %10670, %v14816_v47   ;;  %6533 = vperm.xlu0 %10671, %v14820_v59   ;;  %v19225_v47 = vld [vmem:[#allocation34_spill] sm:$0xff]  ;;  %v14846_v53 = vpop.xlane.xlu0 %5187 }
0x1f35   :  { %v14842_v63 = vadd.f32 %v14806_v43, %v19225_v47  ;;  %19227 = vst [vmem:[#allocation107_spill] sm:$0xff] %v14846_v53  ;;  %v19234_v53 = vld [vmem:[#allocation36_spill] sm:$0xff] }
0x1f37   :  { %19226 = vst [vmem:[#allocation71_spill] sm:$0xff] %v14842_v63 }
0x1f38   :  { %6644 = vperm.xlu1 %10670, %v14826_v28   ;;  %6539 = vperm.xlu0 %10671, %v14830_v5   ;;  %v14850_v28 = vadd.f32 %v14602_v35, %v19194_v2  ;;  %v14860_v5 = vpop.xlane.xlu0 %5217  ;;  %v14876_v2 = vpop.permute.xlu1 %6017 }
0x1f39   :  { %19232 = vst [vmem:[#allocation98_spill] sm:$0xff] %v14860_v5 }
0x1f3a   :  { %19228 = vst [vmem:[#allocation119_spill] sm:$0xff] %v14850_v28 }
0x1f3c   :  { %6668 = vperm.xlu1 %10670, %v14838_v58   ;;  %6545 = vperm.xlu0 %10671, %v14842_v63   ;;  %v14864_v58 = vadd.f32 %v14602_v35, %v19204_v55  ;;  %v14868_v63 = vadd.f32 %v14806_v43, %v19234_v53  ;;  %v14878_v5 = vpop.permute.xlu0 %6014  ;;  %v19237_v35 = vld [vmem:[#allocation37_spill] sm:$0xff] }
0x1f3d   :  { %v14882_v55 = vadd.f32 %v14806_v43, %v19237_v35 }
0x1f3e   :  { %19233 = vst [vmem:[#allocation113_spill] sm:$0xff] %v14864_v58  ;;  %19235 = vst [vmem:[#allocation115_spill] sm:$0xff] %v14868_v63 }
0x1f3f   :  { %19238 = vst [vmem:[#allocation126_spill] sm:$0xff] %v14882_v55 }
0x1f40   :  { %6650 = vperm.xlu1 %10670, %v14850_v28   ;;  %6551 = vperm.xlu0 %10671, %v14854_v11   ;;  %v19236_v28 = vld [vmem:[#allocation118_spill] sm:$0xff]  ;;  %v5756_v11 = vrot.slane %v14606_v20, %v19143_v31  ;;  %v14891_v20 = vpop.permute.xlu1 %6023 }
0x1f41   :  { %vm5869_vm11 = vcmp.eq.f32.partialorder %v19236_v28, %v14620_v16  ;;  %v14893_v28 = vpop.permute.xlu0 %6020 }
0x1f42   :  { %v5917_v50 = vsel %vm5869_vm11, %v19147_v30, 12  ;;  %vm5872_vm7 = vcmp.eq.f32.partialorder %v19242_v44, %v5756_v11  ;;  %v5922_v44 = vsel %vm5874_vm8, %v19146_v54, 12 }
0x1f44   :  { %6674 = vperm.xlu1 %10670, %v14864_v58   ;;  %6557 = vperm.xlu0 %10671, %v14868_v63   ;;  %v19239_v58 = vld [vmem:[#allocation67_spill] sm:$0xff]  ;;  %v19240_v63 = vld [vmem:[#allocation38_spill] sm:$0xff]  ;;  %v14906_v45 = vpop.permute.xlu1 %6029 }
0x1f45   :  { %vm5871_vm6 = vcmp.eq.f32.partialorder %v19239_v58, %v5756_v11  ;;  %v14889_v16 = vadd.f32 %v14806_v43, %v19240_v63  ;;  %v5920_v58 = vsel %vm5872_vm7, %v19146_v54, 12  ;;  %v14908_v51 = vpop.permute.xlu0 %6026  ;;  %v19248_v11 = vld [vmem:[#allocation96_spill] sm:$0xff] }
0x1f46   :  { %v5919_v4 = vsel %vm5871_vm6, %v19147_v30, 12  ;;  %vm5876_vm9 = vcmp.eq.f32.partialorder %v19248_v11, %v14648_v48 }
0x1f47   :  { %19241 = vst [vmem:[#allocation103_spill] sm:$0xff] %v14889_v16  ;;  %v5924_v40 = vsel %vm5876_vm9, %v19146_v54, 12 }
0x1f48   :  { %5966 = vperm.xlu1 %10670, %v5917_v50   ;;  %6563 = vperm.xlu0 %10671, %v14882_v55   ;;  %v19243_v50 = vld [vmem:[#allocation39_spill] sm:$0xff]  ;;  %v14922_v38 = vpop.permute.xlu1 %6035 }
0x1f49   :  { %v14900_v55 = vadd.f32 %v14806_v43, %v19243_v50  ;;  %v14924_v34 = vpop.permute.xlu0 %6032  ;;  %v6215_v0 = vrot.slane %v14922_v38, %v11448_v19 }
0x1f4b   :  { %19244 = vst [vmem:[#allocation127_spill] sm:$0xff] %v14900_v55 }
0x1f4c   :  { %5972 = vperm.xlu1 %10670, %v5919_v4   ;;  %6569 = vperm.xlu0 %10671, %v14889_v16   ;;  %v19246_v4 = vld [vmem:[#allocation40_spill] sm:$0xff] }
0x1f4d   :  { %v14912_v16 = vadd.f32 %v14806_v43, %v19246_v4 }
0x1f4f   :  { %19247 = vst [vmem:[#allocation121_spill] sm:$0xff] %v14912_v16 }
0x1f50   :  { %5975 = vperm.xlu1 %10670, %v5920_v58   ;;  %6575 = vperm.xlu0 %10671, %v14900_v55   ;;  %v19249_v58 = vld [vmem:[#allocation41_spill] sm:$0xff] }
0x1f51   :  { %v14920_v55 = vadd.f32 %v14806_v43, %v19249_v58 }
0x1f53   :  { %19250 = vst [vmem:[#allocation92_spill] sm:$0xff] %v14920_v55 }
0x1f54   :  { %5981 = vperm.xlu1 %10670, %v5922_v44   ;;  %6581 = vperm.xlu0 %10671, %v14912_v16   ;;  %v19251_v44 = vld [vmem:[#allocation91_spill] sm:$0xff]  ;;  %v19252_v16 = vld [vmem:[#allocation42_spill] sm:$0xff] }
0x1f55   :  { %vm5878_vm10 = vcmp.eq.f32.partialorder %v19251_v44, %v14660_v10  ;;  %v14932_v32 = vadd.f32 %v14806_v43, %v19252_v16  ;;  %v19256_v10 = vld [vmem:[#allocation43_spill] sm:$0xff] }
0x1f56   :  { %v5926_v39 = vsel %vm5878_vm10, %v19146_v54, 12  ;;  %v14948_v44 = vadd.f32 %v14806_v43, %v19256_v10 }
0x1f57   :  { %19253 = vst [vmem:[#allocation95_spill] sm:$0xff] %v14932_v32 }
0x1f58   :  { %5987 = vperm.xlu1 %10670, %v5924_v40   ;;  %6587 = vperm.xlu0 %10671, %v14920_v55   ;;  %v19254_v40 = vld [vmem:[#allocation90_spill] sm:$0xff]  ;;  %v19255_v55 = vld [vmem:[#allocation49_spill] sm:$0xff]  ;;  %19257 = vst [vmem:[#allocation47_spill] sm:$0xff] %v14948_v44 }
0x1f59   :  { %vm5880_vm11 = vcmp.eq.f32.partialorder %v19254_v40, %v14672_v21  ;;  %v14944_v29 = vadd.f32 %v19255_v55, %v14698_v24 }
0x1f5a   :  { %v5928_v7 = vsel %vm5880_vm11, %v19146_v54, 12 }
0x1f5b   :  { %v14934_v48 = vpop.permute.xlu1 %6089  ;;  %v14936_v11 = vpop.permute.xlu0 %6086  ;;  %v14960_v21 = vadd.f32 %v14944_v29, %v19218_v57  ;;  %v14972_v40 = vadd.f32 %v14944_v29, %v19221_v14  ;;  %v6188_v57 = vrot.slane %v14876_v2, %v11448_v19 }
0x1f5c   :  { %5993 = vperm.xlu1 %10670, %v5926_v39   ;;  %6593 = vperm.xlu0 %10671, %v14932_v32   ;;  %v19258_v39 = vld [vmem:[#allocation74_spill] sm:$0xff]  ;;  %v14984_v32 = vadd.f32 %v14944_v29, %v19225_v47 }
0x1f5d   :  { %vm5882_vm6 = vcmp.eq.f32.partialorder %v19258_v39, %v14684_v22  ;;  %19259 = vst [vmem:[#allocation118_spill] sm:$0xff] %v14960_v21  ;;  %19261 = vst [vmem:[#allocation67_spill] sm:$0xff] %v14972_v40 }
0x1f5e   :  { %v5930_v43 = vsel %vm5882_vm6, %v19146_v54, 12  ;;  %19263 = vst [vmem:[#allocation84_spill] sm:$0xff] %v14984_v32 }
0x1f5f   :  { %v14950_v26 = vpop.permute.xlu1 %6095  ;;  %v14952_v27 = vpop.permute.xlu0 %6092 }
0x1f60   :  { %5999 = vperm.xlu1 %10670, %v5928_v7   ;;  %6599 = vperm.xlu0 %10671, %v14948_v44   ;;  %v19260_v7 = vld [vmem:[#allocation73_spill] sm:$0xff] }
0x1f61   :  { %vm5884_vm7 = vcmp.eq.f32.partialorder %v19260_v7, %v14696_v41 }
0x1f62   :  { %v5932_v44 = vsel %vm5884_vm7, %v19146_v54, 12 }
0x1f63   :  { %v14962_v24 = vpop.permute.xlu1 %6101  ;;  %v14964_v55 = vpop.permute.xlu0 %6098 }
0x1f64   :  { %6005 = vperm.xlu1 %10670, %v5930_v43   ;;  %6605 = vperm.xlu0 %10671, %v14960_v21   ;;  %v19262_v43 = vld [vmem:[#allocation61_spill] sm:$0xff] }
0x1f65   :  { %vm5894_vm8 = vcmp.eq.f32.partialorder %v19262_v43, %v14710_v15 }
0x1f66   :  { %v5942_v21 = vsel %vm5894_vm8, %v19146_v54, 12 }
0x1f67   :  { %v14974_v22 = vpop.permute.xlu1 %6107  ;;  %v14976_v39 = vpop.permute.xlu0 %6104 }
0x1f68   :  { %6011 = vperm.xlu1 %10670, %v5932_v44   ;;  %6611 = vperm.xlu0 %10671, %v14972_v40   ;;  %v19265_v44 = vld [vmem:[#allocation77_spill] sm:$0xff]  ;;  %v14996_v40 = vadd.f32 %v14944_v29, %v19229_v3 }
0x1f69   :  { %vm5896_vm9 = vcmp.eq.f32.partialorder %v19265_v44, %v14722_v23 }
0x1f6a   :  { %19266 = vst [vmem:[#allocation96_spill] sm:$0xff] %v14996_v40  ;;  %v5944_v47 = vsel %vm5896_vm9, %v19146_v54, 12 }
0x1f6b   :  { %v14986_v41 = vpop.permute.xlu1 %6536  ;;  %v14988_v7 = vpop.permute.xlu0 %6656 }
0x1f6c   :  { %19264 = vst [vmem:[#allocation86_spill] sm:$0xff] %v14988_v7  ;;  %6041 = vperm.xlu1 %10670, %v5942_v21   ;;  %6617 = vperm.xlu0 %10671, %v14984_v32   ;;  %v19268_v21 = vld [vmem:[#allocation110_spill] sm:$0xff]  ;;  %v15008_v32 = vadd.f32 %v14944_v29, %v19234_v53 }
0x1f6d   :  { %vm5898_vm10 = vcmp.eq.f32.partialorder %v19268_v21, %v14734_v62 }
0x1f6e   :  { %19269 = vst [vmem:[#allocation90_spill] sm:$0xff] %v15008_v32  ;;  %v5946_v3 = vsel %vm5898_vm10, %v19146_v54, 12  ;;  %vm5200_vm10 = vcmp.eq.f32.partialorder %v14540_v6, %v14858_v1  ;;  %v6319_v6 = vrot.slane %v14976_v39, %v11445_v8 }
0x1f6f   :  { %v14998_v15 = vpop.permute.xlu1 %6542  ;;  %v15000_v43 = vpop.permute.xlu0 %6662 }
0x1f70   :  { %19267 = vst [vmem:[#allocation91_spill] sm:$0xff] %v15000_v43  ;;  %6047 = vperm.xlu1 %10670, %v5944_v47   ;;  %6623 = vperm.xlu0 %10671, %v14996_v40   ;;  %v19270_v47 = vld [vmem:[#allocation66_spill] sm:$0xff]  ;;  %v15020_v40 = vadd.f32 %v14944_v29, %v19237_v35 }
0x1f71   :  { %vm5900_vm11 = vcmp.eq.f32.partialorder %v19270_v47, %v14746_v56 }
0x1f72   :  { %19271 = vst [vmem:[#allocation49_spill] sm:$0xff] %v15020_v40  ;;  %v5948_v53 = vsel %vm5900_vm11, %v19146_v54, 12  ;;  %vm5170_vm11 = vcmp.eq.f32.partialorder %v14542_v18, %v14834_v37 }
0x1f73   :  { %v15010_v23 = vpop.permute.xlu1 %6548  ;;  %v15012_v44 = vpop.permute.xlu0 %5969 }
0x1f74   :  { %6053 = vperm.xlu1 %10670, %v5946_v3   ;;  %6629 = vperm.xlu0 %10671, %v15008_v32   ;;  %v19272_v3 = vld [vmem:[#allocation68_spill] sm:$0xff]  ;;  %v15032_v32 = vadd.f32 %v14944_v29, %v19240_v63 }
0x1f75   :  { %vm5902_vm6 = vcmp.eq.f32.partialorder %v19272_v3, %v14758_v60 }
0x1f76   :  { %19273 = vst [vmem:[#allocation74_spill] sm:$0xff] %v15032_v32  ;;  %v5950_v35 = vsel %vm5902_vm6, %v19146_v54, 12 }
0x1f77   :  { %v15022_v62 = vpop.permute.xlu1 %6554  ;;  %v15024_v21 = vpop.permute.xlu0 %5978 }
0x1f78   :  { %6059 = vperm.xlu1 %10670, %v5948_v53   ;;  %6635 = vperm.xlu0 %10671, %v15020_v40   ;;  %v19274_v53 = vld [vmem:[#allocation72_spill] sm:$0xff]  ;;  %v15044_v40 = vadd.f32 %v14944_v29, %v19252_v16 }
0x1f79   :  { %vm5904_vm7 = vcmp.eq.f32.partialorder %v19274_v53, %v14770_v42 }
0x1f7a   :  { %19275 = vst [vmem:[#allocation73_spill] sm:$0xff] %v15044_v40  ;;  %v5952_v63 = vsel %vm5904_vm7, %v19146_v54, 12 }
0x1f7b   :  { %v15034_v56 = vpop.permute.xlu1 %6560  ;;  %v15036_v47 = vpop.permute.xlu0 %5984 }
0x1f7c   :  { %6065 = vperm.xlu1 %10670, %v5950_v35   ;;  %6641 = vperm.xlu0 %10671, %v15032_v32   ;;  %v19276_v35 = vld [vmem:[#allocation82_spill] sm:$0xff]  ;;  %v15056_v32 = vadd.f32 %v14944_v29, %v19243_v50 }
0x1f7d   :  { %vm5906_vm8 = vcmp.eq.f32.partialorder %v19276_v35, %v14782_v9 }
0x1f7e   :  { %19277 = vst [vmem:[#allocation61_spill] sm:$0xff] %v15056_v32  ;;  %v5954_v16 = vsel %vm5906_vm8, %v19146_v54, 12 }
0x1f7f   :  { %v15046_v60 = vpop.permute.xlu1 %6566  ;;  %v15048_v3 = vpop.permute.xlu0 %5990 }
0x1f80   :  { %6071 = vperm.xlu1 %10670, %v5952_v63   ;;  %6665 = vperm.xlu0 %10671, %v15044_v40   ;;  %v19278_v63 = vld [vmem:[#allocation117_spill] sm:$0xff]  ;;  %v15068_v40 = vadd.f32 %v14944_v29, %v19256_v10 }
0x1f81   :  { %vm5908_vm9 = vcmp.eq.f32.partialorder %v19278_v63, %v14794_v25  ;;  %v15087_v63 = vadd.f32 %v14944_v29, %v19249_v58  ;;  %v6202_v58 = vrot.slane %v14908_v51, %v11445_v8 }
0x1f82   :  { %19279 = vst [vmem:[#allocation77_spill] sm:$0xff] %v15068_v40  ;;  %v5956_v50 = vsel %vm5908_vm9, %v19146_v54, 12 }
0x1f83   :  { %v15058_v42 = vpop.permute.xlu1 %6572  ;;  %v15060_v53 = vpop.permute.xlu0 %5996  ;;  %19281 = vst [vmem:[#allocation66_spill] sm:$0xff] %v15087_v63 }
0x1f84   :  { %6077 = vperm.xlu1 %10670, %v5954_v16   ;;  %6647 = vperm.xlu0 %10671, %v15056_v32   ;;  %v15078_v16 = vadd.f32 %v14944_v29, %v19246_v4  ;;  %v6197_v4 = vrot.slane %v14891_v20, %v11448_v19  ;;  %v6206_v29 = vrot.slane %v14906_v45, %v11448_v19 }
0x1f85   :  { %v6211_v20 = vrot.slane %v14924_v34, %v11445_v8 }
0x1f86   :  { %19280 = vst [vmem:[#allocation110_spill] sm:$0xff] %v15078_v16  ;;  %v6207_v51 = vsel %vm1940_vm14, %v6206_v29, %v6202_v58  ;;  %v6301_v58 = vrot.slane %v14952_v27, %v11445_v8  ;;  %v6292_v27 = vrot.slane %v14936_v11, %v11445_v8 }
0x1f87   :  { %v15070_v9 = vpop.permute.xlu1 %6578  ;;  %v15072_v35 = vpop.permute.xlu0 %6002  ;;  %v6216_v2 = vsel %vm1940_vm14, %v6215_v0, %v6211_v20  ;;  %v6305_v0 = vrot.slane %v14950_v26, %v11448_v19  ;;  %v6296_v26 = vrot.slane %v14934_v48, %v11448_v19  ;;  %v6323_v20 = vrot.slane %v14974_v22, %v11448_v19 }
0x1f88   :  { %6083 = vperm.xlu1 %10670, %v5956_v50   ;;  %6671 = vperm.xlu0 %10671, %v15068_v40  }
0x1f89   :  { %v6297_v48 = vsel %vm1940_vm14, %v6296_v26, %v6292_v27  ;;  %v6324_v11 = vsel %vm1940_vm14, %v6323_v20, %v6319_v6 }
0x1f8b   :  { %v15080_v32 = vpop.permute.xlu1 %6584  ;;  %v15082_v25 = vpop.permute.xlu0 %6008 }
0x1f8c   :  { %6653 = vperm.xlu1 %10670, %v15078_v16   ;;  %v6193_v16 = vrot.slane %v14893_v28, %v11445_v8 }
0x1f8e   :  { %v6198_v45 = vsel %vm1940_vm14, %v6197_v4, %v6193_v16  ;;  %v5194_v4 = vand.u32 65535, %v14537_v12  ;;  %v6310_v12 = vrot.slane %v14964_v55, %v11445_v8 }
0x1f8f   :  { %v15089_v10 = vpop.permute.xlu1 %6590  ;;  %v15091_v14 = vpop.permute.xlu0 %6038 }
0x1f90   :  { %6659 = vperm.xlu1 %10670, %v15087_v63   ;;  %v6184_v63 = vrot.slane %v14878_v5, %v11445_v8  ;;  %v6764_v36 = vrot.slane %v15089_v10, %v11448_v19 }
0x1f92   :  { %v6189_v52 = vsel %vm1940_vm14, %v6188_v57, %v6184_v63  ;;  %v6314_v63 = vrot.slane %v14962_v24, %v11448_v19  ;;  %v6306_v24 = vsel %vm1940_vm14, %v6305_v0, %v6301_v58  ;;  %v5164_v58 = vand.u32 65535, %v14524_v33 }
0x1f93   :  { %v15094_v50 = vpop.permute.xlu1 %6596  ;;  %v15096_v40 = vpop.permute.xlu0 %6044  ;;  %v6332_v38 = vsel %vm2149_vm15, %v6198_v45, %v6189_v52  ;;  %v6342_v22 = vsel %vm2149_vm15, %v6306_v24, %v6297_v48 }
0x1f94   :  { %v6333_v34 = vsel %vm2151_vm0, %v6207_v51, %v6332_v38 }
0x1f95   :  { %v6334_v49 = vsel %vm2153_vm1, %v6216_v2, %v6333_v34  ;;  %v6315_v2 = vsel %vm1940_vm14, %v6314_v63, %v6310_v12 }
0x1f96   :  { %v15135_v57 = vsel %vm1492_vm13, %v6334_v49, 2147483647  ;;  %v5196_v49 = vcvt.s32.f32 %v5194_v4  ;;  %v6343_v39 = vsel %vm2151_vm0, %v6315_v2, %v6342_v22 }
0x1f97   :  { %v15114_v46 = vpop.permute.xlu1 %6602  ;;  %v15116_v28 = vpop.permute.xlu0 %6050  ;;  %19282 = vst [vmem:[#allocation68_spill] sm:$0xff] %v15135_v57  ;;  %v6362_v29 = vshra.s32 %v15135_v57, 16  ;;  %v6344_v0 = vsel %vm2153_vm1, %v6324_v11, %v6343_v39  ;;  %v6755_v57 = vrot.slane %v15080_v32, %v11448_v19 }
0x1f98   :  { %v5201_v45 = vsel %vm5200_vm10, %v5196_v49, inf  ;;  %v15184_v49 = vsel %vm1492_vm13, %v6344_v0, 2147483647  ;;  %v6782_v10 = vrot.slane %v15114_v46, %v11448_v19 }
0x1f99   :  { %v15168_v38 = vcvt.s32.f32 %v6362_v29  ;;  %19285 = vst [vmem:[#allocation117_spill] sm:$0xff] %v15184_v49  ;;  %v5166_v29 = vcvt.s32.f32 %v5164_v58  ;;  %v6392_v26 = vshra.s32 %v15184_v49, 16 }
0x1f9b   :  { %v15122_v54 = vpop.permute.xlu1 %6608  ;;  %v15124_v5 = vpop.permute.xlu0 %6056  ;;  %19284 = vst [vmem:[#allocation82_spill] sm:$0xff] %v15168_v38  ;;  %v5171_v6 = vsel %vm5170_vm11, %v5166_v29, inf  ;;  %v15193_v33 = vcvt.s32.f32 %v6392_v26 }
0x1f9c   :  { %v6247_v43 = vrot.slane %v15124_v5, %v11445_v8 }
0x1f9d   :  { %19286 = vst [vmem:[#allocation134_spill] sm:$0xff] %v15193_v33 }
0x1f9f   :  { %v15129_v31 = vpop.permute.xlu1 %6614  ;;  %v15131_v13 = vpop.permute.xlu0 %6062 }
0x1fa3   :  { %v15141_v52 = vpop.permute.xlu1 %6620  ;;  %v15143_v16 = vpop.permute.xlu0 %6068 }
0x1fa4   :  { %19283 = vst [vmem:[#allocation72_spill] sm:$0xff] %v15141_v52  ;;  %v6265_v5 = vrot.slane %v15143_v16, %v11445_v8 }
0x1fa7   :  { %v15161_v51 = vpop.permute.xlu1 %6626  ;;  %5202 = vmin.xlane.f32.xlu0 %v5201_v45  ;;  %v15163_v55 = vpop.permute.xlu0 %6074 }
0x1fab   :  { %v15172_v34 = vpop.permute.xlu1 %6632  ;;  %6365 = vmin.xlane.f32.xlu0 %v15168_v38  ;;  %v15175_v4 = vpop.permute.xlu0 %6080  ;;  %v6773_v38 = vrot.slane %v15094_v50, %v11448_v19 }
0x1faf   :  { %v15179_v63 = vpop.permute.xlu1 %6638  ;;  %v15181_v12 = vpop.permute.xlu0 %6533 }
0x1fb3   :  { %v15189_v27 = vpop.permute.xlu1 %6644  ;;  %v15191_v20 = vpop.permute.xlu0 %6539 }
0x1fb4   :  { %5172 = vmin.xlane.f32.xlu1 %v5171_v6 }
0x1fb7   :  { %v15195_v45 = vpop.permute.xlu1 %6668  ;;  %v15197_v24 = vpop.permute.xlu0 %6545 }
0x1fb8   :  { %6395 = vmin.xlane.f32.xlu1 %v15193_v33 }
0x1fbb   :  { %v15200_v2 = vpop.permute.xlu1 %6650  ;;  %v15202_v18 = vpop.permute.xlu0 %6551 }
0x1fbf   :  { %v15204_v48 = vpop.permute.xlu1 %6674  ;;  %v15206_v11 = vpop.permute.xlu0 %6557 }
0x1fc3   :  { %v15208_v22 = vpop.permute.xlu1 %5966  ;;  %v15210_v39 = vpop.permute.xlu0 %6563 }
0x1fc7   :  { %v15212_v0 = vpop.permute.xlu1 %5972  ;;  %v15214_v58 = vpop.permute.xlu0 %6569 }
0x1fc8   :  { %19287 = vst [vmem:[#allocation135_spill] sm:$0xff] %v15212_v0 }
0x1fcb   :  { %v15216_v29 = vpop.permute.xlu1 %5975  ;;  %v15218_v26 = vpop.permute.xlu0 %6575 }
0x1fcc   :  { %19288 = vst [vmem:[#allocation136_spill] sm:$0xff] %v15218_v26 }
0x1fcf   :  { %v15220_v6 = vpop.permute.xlu1 %5981  ;;  %v6582_v1 = vpop.permute.xlu0 %6581 }
0x1fd0   :  { %19289 = vst [vmem:[#allocation137_spill] sm:$0xff] %v15220_v6  ;;  %v6751_v33 = vrot.slane %v6582_v1, %v11445_v8 }
0x1fd2   :  { %v6756_v1 = vsel %vm1940_vm14, %v6755_v57, %v6751_v33 }
0x1fd3   :  { %v15222_v37 = vpop.permute.xlu1 %5987  ;;  %v6588_v30 = vpop.permute.xlu0 %6587 }
0x1fd4   :  { %19290 = vst [vmem:[#allocation138_spill] sm:$0xff] %v15222_v37  ;;  %v6760_v59 = vrot.slane %v6588_v30, %v11445_v8 }
0x1fd6   :  { %v6765_v26 = vsel %vm1940_vm14, %v6764_v36, %v6760_v59 }
0x1fd7   :  { %v15225_v61 = vpop.permute.xlu1 %5993  ;;  %v6594_v17 = vpop.permute.xlu0 %6593  ;;  %v6899_v0 = vsel %vm2149_vm15, %v6765_v26, %v6756_v1  ;;  %v6719_v1 = vrot.slane %v15034_v56, %v11448_v19  ;;  %v6697_v56 = vrot.slane %v15197_v24, %v11445_v8  ;;  %v6256_v24 = vrot.slane %v15131_v13, %v11445_v8 }
0x1fd8   :  { %19291 = vst [vmem:[#allocation139_spill] sm:$0xff] %v15225_v61  ;;  %v6769_v49 = vrot.slane %v6594_v17, %v11445_v8  ;;  %v6283_v13 = vrot.slane %v15175_v4, %v11445_v8  ;;  %v6845_v4 = vrot.slane %v15189_v27, %v11448_v19 }
0x1fda   :  { %v6774_v30 = vsel %vm1940_vm14, %v6773_v38, %v6769_v49 }
0x1fdb   :  { %v15237_v37 = vpop.permute.xlu1 %5999  ;;  %v6600_v61 = vpop.permute.xlu0 %6599  ;;  %v6900_v32 = vsel %vm2151_vm0, %v6774_v30, %v6899_v0 }
0x1fdc   :  { %v6778_v17 = vrot.slane %v6600_v61, %v11445_v8 }
0x1fde   :  { %v6783_v50 = vsel %vm1940_vm14, %v6782_v10, %v6778_v17  ;;  %v6683_v10 = vrot.slane %v14986_v41, %v11448_v19  ;;  %v6692_v17 = vrot.slane %v14998_v15, %v11448_v19  ;;  %v6238_v41 = vrot.slane %v15116_v28, %v11445_v8 }
0x1fdf   :  { %v15246_v6 = vpop.permute.xlu1 %6005  ;;  %v15248_v36 = vpop.permute.xlu0 %6605  ;;  %v6901_v59 = vsel %vm2153_vm1, %v6783_v50, %v6900_v32  ;;  %v6701_v32 = vrot.slane %v15010_v23, %v11448_v19  ;;  %v6728_v23 = vrot.slane %v15046_v60, %v11448_v19  ;;  %v6688_v60 = vrot.slane %v15191_v20, %v11445_v8 }
0x1fe0   :  { %v6919_v38 = vsel %vm1492_vm13, %v6901_v59, -inf  ;;  %v6220_v59 = vrot.slane %v15091_v14, %v11445_v8  ;;  %v6679_v20 = vrot.slane %v15181_v12, %v11445_v8  ;;  %v6706_v14 = vrot.slane %v15202_v18, %v11445_v8 }
0x1fe1   :  { %6920 = vmax.xlane.f32.xlu1 %v6919_v38  ;;  %v6710_v38 = vrot.slane %v15022_v62, %v11448_v19  ;;  %v6229_v62 = vrot.slane %v15096_v40, %v11445_v8  ;;  %v6274_v18 = vrot.slane %v15163_v55, %v11445_v8  ;;  %v6693_v28 = vsel %vm1940_vm14, %v6692_v17, %v6688_v60 }
0x1fe2   :  { %v6702_v52 = vsel %vm1940_vm14, %v6701_v32, %v6697_v56  ;;  %v6684_v12 = vsel %vm1940_vm14, %v6683_v10, %v6679_v20  ;;  %v6881_v10 = vrot.slane %v15195_v45, %v11448_v19 }
0x1fe3   :  { %v15252_v46 = vpop.permute.xlu1 %6011  ;;  %v15254_v57 = vpop.permute.xlu0 %6611  ;;  %v6711_v55 = vsel %vm1940_vm14, %v6710_v38, %v6706_v14  ;;  %v6892_v15 = vsel %vm2149_vm15, %v6693_v28, %v6684_v12  ;;  %v6724_v14 = vrot.slane %v15210_v39, %v11445_v8  ;;  %v6890_v28 = vrot.slane %v15204_v48, %v11448_v19 }
0x1fe4   :  { %v6893_v38 = vsel %vm2151_vm0, %v6702_v52, %v6892_v15  ;;  %v6733_v15 = vrot.slane %v15214_v58, %v11445_v8  ;;  %v19320_v48 = vrot.slane %v15179_v63, %v11448_v19 }
0x1fe5   :  { %v6894_v20 = vsel %vm2153_vm1, %v6711_v55, %v6893_v38  ;;  %v6125_v55 = vrot.slane %v15216_v29, %v11448_v19  ;;  %v19295_v29 = vld [vmem:[#allocation135_spill] sm:$0xff] }
0x1fe6   :  { %v6121_v38 = vrot.slane %v19295_v29, %v11445_v8 }
0x1fe7   :  { %v15256_v61 = vpop.permute.xlu1 %6041  ;;  %v15258_v49 = vpop.permute.xlu0 %6617 }
0x1fe8   :  { %v6224_v32 = vrot.slane %v15256_v61, %v11448_v19 }
0x1fea   :  { %v6225_v39 = vsel %vm1940_vm14, %v6224_v32, %v6220_v59  ;;  %v19296_v32 = vrot.slane %v15058_v42, %v11448_v19 }
0x1feb   :  { %v15260_v33 = vpop.permute.xlu1 %6047  ;;  %v15262_v0 = vpop.permute.xlu0 %6623 }
0x1fec   :  { %v6233_v16 = vrot.slane %v15260_v33, %v11448_v19 }
0x1fee   :  { %v6234_v61 = vsel %vm1940_vm14, %v6233_v16, %v6229_v62 }
0x1fef   :  { %v15264_v26 = vpop.permute.xlu1 %6053  ;;  %v15266_v30 = vpop.permute.xlu0 %6629  ;;  %v6335_v58 = vsel %vm2149_vm15, %v6234_v61, %v6225_v39  ;;  %v19299_v39 = vrot.slane %v15012_v44, %v11448_v19 }
0x1ff0   :  { %v6242_v17 = vrot.slane %v15264_v26, %v11448_v19 }
0x1ff3   :  { %v6060_v7 = vpop.permute.xlu1 %6059  ;;  %v15288_v50 = vpop.permute.xlu0 %6635 }
0x1ff4   :  { %19292 = vst [vmem:[#allocation140_spill] sm:$0xff] %v15288_v50  ;;  %v6251_v33 = vrot.slane %v6060_v7, %v11448_v19 }
0x1ff6   :  { %v6252_v62 = vsel %vm1940_vm14, %v6251_v33, %v6247_v43  ;;  %v19297_v33 = vld [vmem:[#allocation138_spill] sm:$0xff] }
0x1ff7   :  { %v6066_v50 = vpop.permute.xlu1 %6065  ;;  %v15322_v40 = vpop.permute.xlu0 %6641 }
0x1ff8   :  { %19293 = vst [vmem:[#allocation141_spill] sm:$0xff] %v15322_v40  ;;  %v6715_v40 = vrot.slane %v15206_v11, %v11445_v8  ;;  %v6854_v11 = vrot.slane %v15200_v2, %v11448_v19  ;;  %v6260_v26 = vrot.slane %v6066_v50, %v11448_v19  ;;  %v6243_v50 = vsel %vm1940_vm14, %v6242_v17, %v6238_v41 }
0x1ff9   :  { %v6729_v17 = vsel %vm1940_vm14, %v6728_v23, %v6724_v14  ;;  %v6336_v59 = vsel %vm2151_vm0, %v6243_v50, %v6335_v58  ;;  %v6126_v14 = vsel %vm1940_vm14, %v6125_v55, %v6121_v38  ;;  %v19298_v50 = vld [vmem:[#allocation139_spill] sm:$0xff] }
0x1ffa   :  { %v6720_v52 = vsel %vm1940_vm14, %v6719_v1, %v6715_v40  ;;  %v19294_v1 = vld [vmem:[#allocation137_spill] sm:$0xff]  ;;  %v6261_v41 = vsel %vm1940_vm14, %v6260_v26, %v6256_v24  ;;  %v6337_v61 = vsel %vm2153_vm1, %v6252_v62, %v6336_v59 }
0x1ffb   :  { %v6072_v60 = vpop.permute.xlu1 %6071  ;;  %v15364_v56 = vpop.permute.xlu0 %6665  ;;  %v6134_v40 = vrot.slane %v19294_v1, %v11448_v19  ;;  %v19301_v1 = vld [vmem:[#allocation136_spill] sm:$0xff] }
0x1ffc   :  { %v6269_v7 = vrot.slane %v6072_v60, %v11448_v19  ;;  %v6112_v60 = vrot.slane %v15208_v22, %v11445_v8  ;;  %v6738_v22 = vsel %vm1940_vm14, %v19296_v32, %v6733_v15  ;;  %v6895_v15 = vsel %vm2155_vm2, %v6720_v52, %v6894_v20 }
0x1ffd   :  { %v6742_v58 = vrot.slane %v19301_v1, %v11445_v8  ;;  %v6896_v20 = vsel %vm2157_vm3, %v6729_v17, %v6895_v15  ;;  %v19302_v52 = vrot.slane %v15036_v47, %v11445_v8  ;;  %v6161_v17 = vrot.slane %v15237_v37, %v11448_v19  ;;  %v19311_v1 = vld [vmem:[#allocation86_spill] sm:$0xff] }
0x1ffe   :  { %v6270_v43 = vsel %vm1940_vm14, %v6269_v7, %v6265_v5  ;;  %v6152_v5 = vrot.slane %v19298_v50, %v11448_v19  ;;  %v6338_v7 = vsel %vm2155_vm2, %v6261_v41, %v6337_v61  ;;  %v6117_v62 = vsel %vm1940_vm14, %v19299_v39, %v6112_v60 }
0x1fff   :  { %v6078_v12 = vpop.permute.xlu1 %6077  ;;  %v15401_v23 = vpop.permute.xlu0 %6647  ;;  %v6339_v55 = vsel %vm2157_vm3, %v6270_v43, %v6338_v7  ;;  %v6325_v44 = vsel %vm2149_vm15, %v6126_v14, %v6117_v62  ;;  %v6897_v38 = vsel %vm2159_vm4, %v6738_v22, %v6896_v20  ;;  %v19303_v43 = vrot.slane %v15048_v3, %v11445_v8  ;;  %v19315_v20 = vld [vmem:[#allocation72_spill] sm:$0xff] }
0x2000   :  { %v6278_v16 = vrot.slane %v6078_v12, %v11448_v19  ;;  %v6143_v12 = vrot.slane %v19297_v33, %v11448_v19  ;;  %v6170_v47 = vrot.slane %v15246_v6, %v11448_v19  ;;  %v6787_v33 = vrot.slane %v15248_v36, %v11445_v8 }
0x2001   :  { %v6179_v22 = vrot.slane %v15252_v46, %v11448_v19  ;;  %v6796_v37 = vrot.slane %v15254_v57, %v11445_v8  ;;  %v6805_v46 = vrot.slane %v15258_v49, %v11445_v8  ;;  %v6877_v14 = vrot.slane %v15364_v56, %v11445_v8 }
0x2002   :  { %v6279_v24 = vsel %vm1940_vm14, %v6278_v16, %v6274_v18  ;;  %v19300_v18 = vrot.slane %v15024_v21, %v11445_v8  ;;  %v6144_v21 = vsel %vm1940_vm14, %v6143_v12, %v19302_v52  ;;  %v19305_v57 = vrot.slane %v15060_v53, %v11445_v8  ;;  %v19317_v52 = vld [vmem:[#allocation141_spill] sm:$0xff] }
0x2003   :  { %v6084_v26 = vpop.permute.xlu1 %6083  ;;  %v6340_v41 = vsel %vm2159_vm4, %v6279_v24, %v6339_v55  ;;  %v6672_v12 = vpop.permute.xlu0 %6671  ;;  %v19306_v49 = vrot.slane %v15072_v35, %v11445_v8  ;;  %v19307_v39 = vrot.slane %v15122_v54, %v11448_v19  ;;  %v19308_v53 = vrot.slane %v15082_v25, %v11445_v8  ;;  %v19310_v55 = vld [vmem:[#allocation140_spill] sm:$0xff] }
0x2004   :  { %v6287_v42 = vrot.slane %v6084_v26, %v11448_v19  ;;  %v6135_v16 = vsel %vm1940_vm14, %v6134_v40, %v19300_v18  ;;  %v19304_v26 = vrot.slane %v15070_v9, %v11448_v19  ;;  %v6162_v7 = vsel %vm1940_vm14, %v6161_v17, %v19305_v57 }
0x2005   :  { %v6326_v59 = vsel %vm2151_vm0, %v6135_v16, %v6325_v44  ;;  %v6814_v9 = vrot.slane %v15262_v0, %v11445_v8  ;;  %v6171_v56 = vsel %vm1940_vm14, %v6170_v47, %v19306_v49  ;;  %v6792_v62 = vsel %vm1940_vm14, %v19307_v39, %v6787_v33 }
0x2006   :  { %v6288_v29 = vsel %vm1940_vm14, %v6287_v42, %v6283_v13  ;;  %v6153_v13 = vsel %vm1940_vm14, %v6152_v5, %v19303_v43  ;;  %v6327_v61 = vsel %vm2153_vm1, %v6144_v21, %v6326_v59  ;;  %v6747_v6 = vsel %vm1940_vm14, %v19304_v26, %v6742_v58 }
0x2007   :  { %v6654_v60 = vpop.permute.xlu1 %6653  ;;  %v6341_v40 = vsel %vm2161_vm5, %v6288_v29, %v6340_v41  ;;  %v6328_v36 = vsel %vm2155_vm2, %v6153_v13, %v6327_v61  ;;  %v6886_v42 = vrot.slane %v6672_v12, %v11445_v8  ;;  %v6180_v18 = vsel %vm1940_vm14, %v6179_v22, %v19308_v53  ;;  %v19313_v41 = vld [vmem:[#allocation91_spill] sm:$0xff] }
0x2008   :  { %v15438_v32 = vsel %vm1488_vm12, %v6341_v40, 2147483647  ;;  %v6859_v24 = vrot.slane %v6654_v60, %v11445_v8  ;;  %v6823_v0 = vrot.slane %v15266_v30, %v11445_v8  ;;  %v19309_v35 = vrot.slane %v15129_v31, %v11448_v19 }
0x2009   :  { %v6377_v3 = vshra.s32 %v15438_v32, 16  ;;  %v6832_v54 = vrot.slane %v19310_v55, %v11445_v8  ;;  %v19312_v58 = vrot.slane %v19311_v1, %v11448_v19  ;;  %v19314_v29 = vrot.slane %v19313_v41, %v11448_v19 }
0x200a   :  { %v6801_v16 = vsel %vm1940_vm14, %v19309_v35, %v6796_v37  ;;  %v19316_v44 = vrot.slane %v19315_v20, %v11448_v19  ;;  %v6841_v21 = vrot.slane %v19317_v52, %v11445_v8  ;;  %v6882_v60 = vsel %vm1940_vm14, %v6881_v10, %v6877_v14 }
0x200b   :  { %v6660_v50 = vpop.permute.xlu1 %6659  ;;  %v15460_v5 = vcvt.s32.f32 %v6377_v3  ;;  %v6864_v25 = vsel %vm1940_vm14, %v19312_v58, %v6859_v24  ;;  %v19318_v59 = vrot.slane %v15161_v51, %v11448_v19  ;;  %v6850_v13 = vrot.slane %v15401_v23, %v11445_v8  ;;  %v19333_v58 = vld [vmem:[#allocation19_spill] sm:$0xff] }
0x200c   :  { %v6868_v15 = vrot.slane %v6660_v50, %v11445_v8  ;;  %v6810_v31 = vsel %vm1940_vm14, %v19316_v44, %v6805_v46  ;;  %v6891_v17 = vsel %vm1940_vm14, %v6890_v28, %v6886_v42  ;;  %v6329_v45 = vsel %vm2157_vm3, %v6162_v7, %v6328_v36  ;;  %v19322_v50 = vld [vmem:[#allocation68_spill] sm:$0xff]  ;;  %v19324_v42 = vld [vmem:[#allocation82_spill] sm:$0xff] }
0x200d   :  { %6380 = vmin.xlane.f32.xlu1 %v15460_v5  ;;  %v6819_v43 = vsel %vm1940_vm14, %v19318_v59, %v6814_v9  ;;  %v6902_v10 = vsel %vm2149_vm15, %v6801_v16, %v6792_v62  ;;  %v19319_v33 = vrot.slane %v15172_v34, %v11448_v19  ;;  %v6330_v23 = vsel %vm2159_vm4, %v6171_v56, %v6329_v45  ;;  %v19326_v56 = vld [vmem:[#allocation117_spill] sm:$0xff] }
0x200e   :  { %v6873_v30 = vsel %vm1940_vm14, %v19314_v29, %v6868_v15  ;;  %v6903_v12 = vsel %vm2151_vm0, %v6810_v31, %v6902_v10  ;;  %v6837_v28 = vsel %vm1940_vm14, %v19320_v48, %v6832_v54  ;;  %v6846_v34 = vsel %vm1940_vm14, %v6845_v4, %v6841_v21  ;;  %v19330_v16 = vld [vmem:[#allocation53_spill] sm:$0xff]  ;;  %v19331_v54 = vld [vmem:[#allocation18_spill] sm:$0xff] }
0x200f   :  { %v6909_v40 = vsel %vm2149_vm15, %v6873_v30, %v6864_v25  ;;  %v6828_v51 = vsel %vm1940_vm14, %v19319_v33, %v6823_v0  ;;  %v6904_v61 = vsel %vm2153_vm1, %v6819_v43, %v6903_v12  ;;  %v6898_v37 = vsel %vm2161_vm5, %v6747_v6, %v6897_v38  ;;  %v19336_v29 = vld [vmem:[#allocation50_spill] sm:$0xff]  ;;  %v19343_v43 = vld [vmem:[#allocation133_spill] sm:$0xff] }
0x2010   :  { %v6910_v47 = vsel %vm2151_vm0, %v6882_v60, %v6909_v40  ;;  %v6331_v24 = vsel %vm2161_vm5, %v6180_v18, %v6330_v23  ;;  %v6905_v26 = vsel %vm2155_vm2, %v6828_v51, %v6904_v61  ;;  %v6855_v63 = vsel %vm1940_vm14, %v6854_v11, %v6850_v13  ;;  %v19328_v18 = vld [vmem:[#allocation134_spill] sm:$0xff]  ;;  %v19341_v60 = vld [vmem:[#allocation105_spill] sm:$0xff]  ;;  %v19342_v40 = vld [vmem:[#allocation44_spill] sm:$0xff] }
0x2011   :  { %v6911_v22 = vsel %vm2153_vm1, %v6891_v17, %v6910_v47  ;;  %v6906_v36 = vsel %vm2157_vm3, %v6837_v28, %v6905_v26  ;;  %v6916_v46 = vsel %vm1488_vm12, %v6898_v37, -inf  ;;  %v15551_v4 = vsel %vm1488_vm12, %v6331_v24, 2147483647  ;;  %v19339_v31 = vld [vmem:[#allocation10_spill] sm:$0xff]  ;;  %v19344_v13 = vld [vmem:[#allocation11_spill] sm:$0xff]  ;;  %v19345_v47 = vld [vmem:[#allocation20_spill] sm:$0xff] }
0x2012   :  { %v6925_v3 = vsel %vm1492_vm13, %v6911_v22, -inf  ;;  %v6907_v27 = vsel %vm2159_vm4, %v6846_v34, %v6906_v36  ;;  %v6347_v6 = vshra.s32 %v15551_v4, 16  ;;  %v6361_v57 = vand.u32 65535, %v19322_v50  ;;  %v19347_v10 = vld [vmem:[#allocation30_spill] sm:$0xff]  ;;  %v19348_v51 = vld [vmem:[#allocation81_spill] sm:$0xff]  ;;  %v19349_v22 = vld [vmem:[#allocation12_spill] sm:$0xff] }
0x2013   :  { %6926 = vmax.xlane.f32.xlu0 %v6925_v3  ;;  %v6908_v38 = vsel %vm2161_vm5, %v6855_v63, %v6907_v27  ;;  %v6391_v39 = vand.u32 65535, %v19326_v56  ;;  %v19351_v28 = vld [vmem:[#allocation87_spill] sm:$0xff]  ;;  %v19352_v3 = vld [vmem:[#allocation13_spill] sm:$0xff]  ;;  %v19355_v26 = vld [vmem:[#allocation106_spill] sm:$0xff] }
0x2014   :  { %v6922_v14 = vsel %vm1488_vm12, %v6908_v38, -inf  ;;  %v15556_v2 = vcvt.s32.f32 %v6347_v6  ;;  %v6363_v9 = vcvt.s32.f32 %v6361_v57  ;;  %v19353_v34 = vld [vmem:[#allocation21_spill] sm:$0xff]  ;;  %v19356_v63 = vld [vmem:[#allocation14_spill] sm:$0xff]  ;;  %v19358_v38 = vld [vmem:[#allocation120_spill] sm:$0xff] }
0x2015   :  { %v6393_v53 = vcvt.s32.f32 %v6391_v39  ;;  %v19359_v6 = vld [vmem:[#allocation15_spill] sm:$0xff]  ;;  %v19360_v50 = vld [vmem:[#allocation22_spill] sm:$0xff] }
0x2017   :  { %6917 = vmax.xlane.f32.xlu0 %v6916_v46 }
0x201b   :  { %6923 = vmax.xlane.f32.xlu0 %v6922_v14 }
0x201f   :  { %6350 = vmin.xlane.f32.xlu0 %v15556_v2 }
0x2030   :  { %v15559_v11 = vpop.xlane.xlu0 %5202 }
0x2031   :  { %19321 = vst [vmem:[#allocation137_spill] sm:$0xff] %v15559_v11  ;;  %v19381_v11 = vld [vmem:[#allocation24_spill] sm:$0xff] }
0x2034   :  { %v15562_v7 = vpop.xlane.xlu0 %6365 }
0x2035   :  { %19323 = vst [vmem:[#allocation135_spill] sm:$0xff] %v15562_v7  ;;  %vm6367_vm6 = vcmp.eq.f32.partialorder %v19324_v42, %v15562_v7  ;;  %v19362_v42 = vld [vmem:[#allocation100_spill] sm:$0xff] }
0x2036   :  { %v6368_v15 = vsel %vm6367_vm6, %v6363_v9, inf }
0x2037   :  { %6369 = vmin.xlane.f32.xlu0 %v6368_v15  ;;  %v19363_v15 = vld [vmem:[#allocation48_spill] sm:$0xff] }
0x203d   :  { %v15566_v49 = vpop.xlane.xlu1 %5172 }
0x203e   :  { %19325 = vst [vmem:[#allocation138_spill] sm:$0xff] %v15566_v49 }
0x2041   :  { %v15569_v62 = vpop.xlane.xlu1 %6395 }
0x2042   :  { %19327 = vst [vmem:[#allocation139_spill] sm:$0xff] %v15569_v62  ;;  %vm6397_vm7 = vcmp.eq.f32.partialorder %v19328_v18, %v15569_v62  ;;  %v19365_v18 = vld [vmem:[#allocation23_spill] sm:$0xff] }
0x2043   :  { %v6398_v0 = vsel %vm6397_vm7, %v6393_v53, inf  ;;  %v19383_v62 = vld [vmem:[#allocation35_spill] sm:$0xff] }
0x2044   :  { %6399 = vmin.xlane.f32.xlu0 %v6398_v0 }
0x206a   :  { %v15573_v35 = vpop.xlane.xlu1 %6920 }
0x206b   :  { %19329 = vst [vmem:[#allocation136_spill] sm:$0xff] %v15573_v35  ;;  %v15577_v55 = vadd.f32 %v19330_v16, %v15573_v35  ;;  %v19367_v16 = vld [vmem:[#allocation32_spill] sm:$0xff] }
0x206d   :  { %v15581_v1 = vadd.f32 %v15577_v55, %v19331_v54  ;;  %v15586_v25 = vadd.f32 %v15577_v55, %v19333_v58  ;;  %v15618_v45 = vadd.f32 %v15577_v55, %v19345_v47  ;;  %v15642_v37 = vadd.f32 %v15577_v55, %v19353_v34 }
0x206e   :  { %v15666_v57 = vadd.f32 %v15577_v55, %v19360_v50  ;;  %v15684_v0 = vadd.f32 %v15577_v55, %v19365_v18  ;;  %v15750_v49 = vadd.f32 %v15577_v55, %v19381_v11 }
0x206f   :  { %19332 = vst [vmem:[#allocation140_spill] sm:$0xff] %v15581_v1  ;;  %7718 = vperm.xlu0 %10671, %v15581_v1   ;;  %19334 = vst [vmem:[#allocation86_spill] sm:$0xff] %v15586_v25 }
0x2070   :  { %19346 = vst [vmem:[#allocation82_spill] sm:$0xff] %v15618_v45  ;;  %19354 = vst [vmem:[#allocation134_spill] sm:$0xff] %v15642_v37 }
0x2071   :  { %19361 = vst [vmem:[#allocation18_spill] sm:$0xff] %v15666_v57  ;;  %19366 = vst [vmem:[#allocation50_spill] sm:$0xff] %v15684_v0 }
0x2072   :  { %19382 = vst [vmem:[#allocation120_spill] sm:$0xff] %v15750_v49 }
0x2073   :  { %7724 = vperm.xlu0 %10671, %v15586_v25  }
0x209c   :  { %v15589_v41 = vpop.xlane.xlu0 %6926 }
0x209d   :  { %19335 = vst [vmem:[#allocation91_spill] sm:$0xff] %v15589_v41  ;;  %v15593_v30 = vadd.f32 %v19336_v29, %v15589_v41  ;;  %v19385_v41 = vld [vmem:[#allocation28_spill] sm:$0xff] }
0x209e   :  { %v15760_v35 = vadd.f32 %v15577_v55, %v19385_v41 }
0x209f   :  { %v15597_v20 = vadd.f32 %v15593_v30, %v19331_v54  ;;  %v15606_v21 = vadd.f32 %v15593_v30, %v19333_v58  ;;  %v15630_v12 = vadd.f32 %v15593_v30, %v19345_v47  ;;  %v15654_v46 = vadd.f32 %v15593_v30, %v19353_v34 }
0x20a0   :  { %v15599_v44 = vpop.xlane.xlu0 %6917  ;;  %v15678_v39 = vadd.f32 %v15593_v30, %v19360_v50 }
0x20a1   :  { %19337 = vst [vmem:[#allocation72_spill] sm:$0xff] %v15597_v20  ;;  %19338 = vst [vmem:[#allocation141_spill] sm:$0xff] %v15599_v44  ;;  %7790 = vperm.xlu0 %10671, %v15597_v20   ;;  %v6935_v52 = vrot.slane %v15599_v44, %v19339_v31  ;;  %v15614_v17 = vrot.slane %v15599_v44, %v19344_v13  ;;  %v15626_v23 = vrot.slane %v15599_v44, %v19349_v22 }
0x20a2   :  { %19340 = vst [vmem:[#allocation68_spill] sm:$0xff] %v15606_v21  ;;  %19350 = vst [vmem:[#allocation117_spill] sm:$0xff] %v15630_v12  ;;  %v15638_v61 = vrot.slane %v15599_v44, %v19352_v3  ;;  %v15650_v36 = vrot.slane %v15599_v44, %v19356_v63  ;;  %v15662_v14 = vrot.slane %v15599_v44, %v19359_v6  ;;  %v19397_v63 = vld [vmem:[#allocation40_spill] sm:$0xff] }
0x20a3   :  { %vm7052_vm8 = vcmp.eq.f32.partialorder %v19341_v60, %v6935_v52  ;;  %vm7053_vm9 = vcmp.eq.f32.partialorder %v19343_v43, %v6935_v52  ;;  %vm7055_vm10 = vcmp.eq.f32.partialorder %v19348_v51, %v15614_v17  ;;  %vm7057_vm11 = vcmp.eq.f32.partialorder %v19351_v28, %v15626_v23  ;;  %19357 = vst [vmem:[#allocation53_spill] sm:$0xff] %v15654_v46  ;;  %v19370_v60 = vld [vmem:[#allocation55_spill] sm:$0xff]  ;;  %v19371_v43 = vld [vmem:[#allocation26_spill] sm:$0xff]  ;;  %v19372_v51 = vld [vmem:[#allocation33_spill] sm:$0xff] }
0x20a4   :  { %v7100_v59 = vsel %vm7052_vm8, %v19342_v40, 12  ;;  %v7101_v33 = vsel %vm7053_vm9, %v19347_v10, 12  ;;  %v7103_v48 = vsel %vm7055_vm10, %v19347_v10, 12  ;;  %v7105_v24 = vsel %vm7057_vm11, %v19347_v10, 12  ;;  %19364 = vst [vmem:[#allocation19_spill] sm:$0xff] %v15678_v39  ;;  %v15690_v52 = vpop.xlane.xlu0 %6923  ;;  %v19374_v28 = vld [vmem:[#allocation27_spill] sm:$0xff] }
0x20a5   :  { %7796 = vperm.xlu0 %10671, %v15606_v21   ;;  %7149 = vperm.xlu1 %10670, %v7100_v59   ;;  %vm7059_vm6 = vcmp.eq.f32.partialorder %v19355_v26, %v15638_v61  ;;  %vm7061_vm7 = vcmp.eq.f32.partialorder %v19358_v38, %v15650_v36  ;;  %vm7063_vm8 = vcmp.eq.f32.partialorder %v19362_v42, %v15662_v14  ;;  %v19378_v42 = vld [vmem:[#allocation34_spill] sm:$0xff] }
0x20a6   :  { %v7107_v27 = vsel %vm7059_vm6, %v19347_v10, 12  ;;  %v7109_v9 = vsel %vm7061_vm7, %v19347_v10, 12  ;;  %v15674_v56 = vadd.f32 %v19363_v15, %v15599_v44  ;;  %v7111_v53 = vsel %vm7063_vm8, %v19347_v10, 12  ;;  %19369 = vst [vmem:[#allocation105_spill] sm:$0xff] %v15690_v52 }
0x20a7   :  { %v15696_v59 = vadd.f32 %v19370_v60, %v15690_v52 }
0x20a8   :  { %v15688_v29 = vadd.f32 %v15674_v56, %v19367_v16  ;;  %v15734_v15 = vadd.f32 %v15674_v56, %v19378_v42  ;;  %v15754_v7 = vadd.f32 %v15674_v56, %v19383_v62 }
0x20a9   :  { %7730 = vperm.xlu0 %10671, %v15618_v45   ;;  %7152 = vperm.xlu1 %10670, %v7101_v33   ;;  %v15700_v33 = vadd.f32 %v15577_v55, %v19371_v43  ;;  %v15714_v26 = vadd.f32 %v15696_v59, %v19367_v16  ;;  %v15724_v38 = vadd.f32 %v15696_v59, %v19372_v51  ;;  %v19400_v45 = vld [vmem:[#allocation41_spill] sm:$0xff] }
0x20aa   :  { %19368 = vst [vmem:[#allocation10_spill] sm:$0xff] %v15688_v29  ;;  %19379 = vst [vmem:[#allocation87_spill] sm:$0xff] %v15734_v15  ;;  %v15744_v60 = vadd.f32 %v15696_v59, %v19378_v42  ;;  %v15764_v52 = vadd.f32 %v15696_v59, %v19383_v62 }
0x20ab   :  { %19375 = vst [vmem:[#allocation11_spill] sm:$0xff] %v15714_v26  ;;  %19377 = vst [vmem:[#allocation81_spill] sm:$0xff] %v15724_v38 }
0x20ac   :  { %19380 = vst [vmem:[#allocation106_spill] sm:$0xff] %v15744_v60  ;;  %19384 = vst [vmem:[#allocation100_spill] sm:$0xff] %v15754_v7 }
0x20ad   :  { %7802 = vperm.xlu0 %10671, %v15630_v12   ;;  %7158 = vperm.xlu1 %10670, %v7103_v48   ;;  %v15704_v48 = vadd.f32 %v15674_v56, %v19372_v51  ;;  %19386 = vst [vmem:[#allocation48_spill] sm:$0xff] %v15764_v52 }
0x20af   :  { %19373 = vst [vmem:[#allocation133_spill] sm:$0xff] %v15704_v48 }
0x20b1   :  { %7736 = vperm.xlu0 %10671, %v15642_v37   ;;  %7164 = vperm.xlu1 %10670, %v7105_v24   ;;  %v15710_v24 = vadd.f32 %v15577_v55, %v19374_v28  ;;  %v19393_v37 = vld [vmem:[#allocation37_spill] sm:$0xff] }
0x20b5   :  { %7808 = vperm.xlu0 %10671, %v15654_v46   ;;  %7170 = vperm.xlu1 %10670, %v7107_v27   ;;  %v15720_v27 = vadd.f32 %v15593_v30, %v19365_v18  ;;  %v19391_v46 = vld [vmem:[#allocation25_spill] sm:$0xff] }
0x20b6   :  { %v15790_v6 = vadd.f32 %v15577_v55, %v19391_v46 }
0x20b7   :  { %19376 = vst [vmem:[#allocation20_spill] sm:$0xff] %v15720_v27 }
0x20b8   :  { %19392 = vst [vmem:[#allocation144_spill] sm:$0xff] %v15790_v6 }
0x20b9   :  { %7742 = vperm.xlu0 %10671, %v15666_v57   ;;  %7176 = vperm.xlu1 %10670, %v7109_v9   ;;  %v15730_v9 = vadd.f32 %v15593_v30, %v19371_v43 }
0x20bd   :  { %7814 = vperm.xlu0 %10671, %v15678_v39   ;;  %7182 = vperm.xlu1 %10670, %v7111_v53   ;;  %v15740_v53 = vadd.f32 %v15593_v30, %v19374_v28  ;;  %v15780_v39 = vadd.f32 %v15593_v30, %v19385_v41 }
0x20c1   :  { %7748 = vperm.xlu0 %10671, %v15684_v0   ;;  %7715 = vperm.xlu1 %10670, %v15688_v29   ;;  %v19388_v0 = vld [vmem:[#allocation36_spill] sm:$0xff] }
0x20c2   :  { %v15784_v57 = vadd.f32 %v15696_v59, %v19388_v0 }
0x20c4   :  { %19390 = vst [vmem:[#allocation143_spill] sm:$0xff] %v15784_v57 }
0x20c5   :  { %7766 = vperm.xlu0 %10671, %v15700_v33   ;;  %7721 = vperm.xlu1 %10670, %v15704_v48  }
0x20c9   :  { %7772 = vperm.xlu0 %10671, %v15710_v24   ;;  %7787 = vperm.xlu1 %10670, %v15714_v26  }
0x20cd   :  { %7820 = vperm.xlu0 %10671, %v15720_v27   ;;  %7793 = vperm.xlu1 %10670, %v15724_v38   ;;  %v15770_v27 = vadd.f32 %v15593_v30, %v19381_v11 }
0x20cf   :  { %19387 = vst [vmem:[#allocation55_spill] sm:$0xff] %v15770_v27 }
0x20d1   :  { %7838 = vperm.xlu0 %10671, %v15730_v9   ;;  %7727 = vperm.xlu1 %10670, %v15734_v15  }
0x20d5   :  { %7844 = vperm.xlu0 %10671, %v15740_v53   ;;  %7799 = vperm.xlu1 %10670, %v15744_v60   ;;  %v15840_v60 = vadd.f32 %v15696_v59, %v19400_v45 }
0x20d9   :  { %7754 = vperm.xlu0 %10671, %v15750_v49   ;;  %7733 = vperm.xlu1 %10670, %v15754_v7   ;;  %v15774_v49 = vadd.f32 %v15674_v56, %v19388_v0  ;;  %v19404_v7 = vld [vmem:[#allocation46_spill] sm:$0xff] }
0x20da   :  { %vm7054_vm9 = vcmp.eq.f32.partialorder %v19404_v7, %v15614_v17  ;;  %v19408_v7 = vld [vmem:[#allocation93_spill] sm:$0xff]  ;;  %v19409_v17 = vld [vmem:[#allocation38_spill] sm:$0xff] }
0x20db   :  { %19389 = vst [vmem:[#allocation142_spill] sm:$0xff] %v15774_v49  ;;  %v7102_v21 = vsel %vm7054_vm9, %v19342_v40, 12  ;;  %vm7058_vm11 = vcmp.eq.f32.partialorder %v19408_v7, %v15638_v61  ;;  %v19414_v61 = vld [vmem:[#allocation126_spill] sm:$0xff]  ;;  %v19415_v7 = vld [vmem:[#allocation16_spill] sm:$0xff] }
0x20dc   :  { %v7106_v20 = vsel %vm7058_vm11, %v19342_v40, 12  ;;  %vm7062_vm7 = vcmp.eq.f32.partialorder %v19414_v61, %v15662_v14 }
0x20dd   :  { %7778 = vperm.xlu0 %10671, %v15760_v35   ;;  %7805 = vperm.xlu1 %10670, %v15764_v52   ;;  %v15804_v52 = vadd.f32 %v15674_v56, %v19397_v63 }
0x20df   :  { %19398 = vst [vmem:[#allocation147_spill] sm:$0xff] %v15804_v52 }
0x20e1   :  { %7826 = vperm.xlu0 %10671, %v15770_v27   ;;  %7739 = vperm.xlu1 %10670, %v15774_v49   ;;  %v15794_v27 = vadd.f32 %v15674_v56, %v19393_v37  ;;  %v19395_v49 = vld [vmem:[#allocation29_spill] sm:$0xff] }
0x20e2   :  { %v15800_v12 = vadd.f32 %v15577_v55, %v19395_v49  ;;  %v15820_v55 = vadd.f32 %v15593_v30, %v19395_v49 }
0x20e3   :  { %19394 = vst [vmem:[#allocation145_spill] sm:$0xff] %v15794_v27 }
0x20e4   :  { %19396 = vst [vmem:[#allocation146_spill] sm:$0xff] %v15800_v12  ;;  %19402 = vst [vmem:[#allocation150_spill] sm:$0xff] %v15820_v55 }
0x20e5   :  { %7850 = vperm.xlu0 %10671, %v15780_v39   ;;  %7811 = vperm.xlu1 %10670, %v15784_v57   ;;  %v15810_v57 = vadd.f32 %v15593_v30, %v19391_v46  ;;  %v19406_v30 = vld [vmem:[#allocation71_spill] sm:$0xff] }
0x20e6   :  { %vm7056_vm10 = vcmp.eq.f32.partialorder %v19406_v30, %v15626_v23  ;;  %19407 = vst [vmem:[#allocation71_spill] sm:$0xff] %v15840_v60  ;;  %v19411_v23 = vld [vmem:[#allocation115_spill] sm:$0xff]  ;;  %v19412_v30 = vld [vmem:[#allocation42_spill] sm:$0xff] }
0x20e7   :  { %19399 = vst [vmem:[#allocation148_spill] sm:$0xff] %v15810_v57  ;;  %vm7060_vm6 = vcmp.eq.f32.partialorder %v19411_v23, %v15650_v36  ;;  %v15870_v36 = vadd.f32 %v15696_v59, %v19409_v17  ;;  %v7110_v23 = vsel %vm7062_vm7, %v19342_v40, 12  ;;  %v15880_v14 = vadd.f32 %v15696_v59, %v19412_v30 }
0x20e8   :  { %v7108_v15 = vsel %vm7060_vm6, %v19342_v40, 12 }
0x20e9   :  { %7760 = vperm.xlu0 %10671, %v15790_v6   ;;  %7745 = vperm.xlu1 %10670, %v15794_v27   ;;  %v15814_v6 = vadd.f32 %v15674_v56, %v19400_v45  ;;  %v15824_v27 = vadd.f32 %v15696_v59, %v19393_v37  ;;  %19418 = vst [vmem:[#allocation153_spill] sm:$0xff] %v15870_v36  ;;  %19421 = vst [vmem:[#allocation154_spill] sm:$0xff] %v15880_v14 }
0x20eb   :  { %19401 = vst [vmem:[#allocation149_spill] sm:$0xff] %v15814_v6  ;;  %19403 = vst [vmem:[#allocation151_spill] sm:$0xff] %v15824_v27 }
0x20ed   :  { %7784 = vperm.xlu0 %10671, %v15800_v12   ;;  %7763 = vperm.xlu1 %10670, %v15804_v52  }
0x20f1   :  { %7832 = vperm.xlu0 %10671, %v15810_v57   ;;  %7769 = vperm.xlu1 %10670, %v15814_v6   ;;  %v15832_v57 = vadd.f32 %v15696_v59, %v19397_v63 }
0x20f3   :  { %19405 = vst [vmem:[#allocation46_spill] sm:$0xff] %v15832_v57 }
0x20f5   :  { %7856 = vperm.xlu0 %10671, %v15820_v55   ;;  %7817 = vperm.xlu1 %10670, %v15824_v27   ;;  %v7104_v27 = vsel %vm7056_vm10, %v19342_v40, 12 }
0x20f9   :  { %7155 = vperm.xlu0 %10671, %v7102_v21   ;;  %7835 = vperm.xlu1 %10670, %v15832_v57   ;;  %v15848_v21 = vadd.f32 %v15674_v56, %v19409_v17 }
0x20fb   :  { %19410 = vst [vmem:[#allocation93_spill] sm:$0xff] %v15848_v21 }
0x20fd   :  { %7161 = vperm.xlu0 %10671, %v7104_v27   ;;  %7841 = vperm.xlu1 %10670, %v15840_v60   ;;  %v15856_v27 = vadd.f32 %v15674_v56, %v19412_v30 }
0x20ff   :  { %19413 = vst [vmem:[#allocation115_spill] sm:$0xff] %v15856_v27 }
0x2101   :  { %7167 = vperm.xlu0 %10671, %v7106_v20   ;;  %7751 = vperm.xlu1 %10670, %v15848_v21   ;;  %v15864_v20 = vrot.slane %v15599_v44, %v19415_v7  ;;  %v15866_v21 = vpop.xlane.xlu0 %6350  ;;  %v19423_v7 = vld [vmem:[#allocation39_spill] sm:$0xff] }
0x2102   :  { %19417 = vst [vmem:[#allocation152_spill] sm:$0xff] %v15866_v21  ;;  %vm6352_vm10 = vcmp.eq.f32.partialorder %v15556_v2, %v15866_v21 }
0x2103   :  { %19416 = vst [vmem:[#allocation126_spill] sm:$0xff] %v15864_v20 }
0x2105   :  { %7173 = vperm.xlu0 %10671, %v7108_v15   ;;  %7775 = vperm.xlu1 %10670, %v15856_v27   ;;  %v19419_v15 = vld [vmem:[#allocation103_spill] sm:$0xff]  ;;  %v15876_v25 = vpop.xlane.xlu0 %6369 }
0x2106   :  { %vm7064_vm8 = vcmp.eq.f32.partialorder %v19419_v15, %v15864_v20  ;;  %19420 = vst [vmem:[#allocation103_spill] sm:$0xff] %v15876_v25  ;;  %v19425_v25 = vld [vmem:[#allocation43_spill] sm:$0xff] }
0x2107   :  { %v7112_v61 = vsel %vm7064_vm8, %v19342_v40, 12  ;;  %v15895_v20 = vadd.f32 %v15674_v56, %v19425_v25 }
0x2109   :  { %7179 = vperm.xlu0 %10671, %v7110_v23   ;;  %7823 = vperm.xlu1 %10670, %v15870_v36   ;;  %v15884_v44 = vpop.xlane.xlu0 %6399  ;;  %v15888_v23 = vadd.f32 %v15674_v56, %v19423_v7  ;;  %19426 = vst [vmem:[#allocation157_spill] sm:$0xff] %v15895_v20 }
0x210a   :  { %19422 = vst [vmem:[#allocation155_spill] sm:$0xff] %v15884_v44  ;;  %v15907_v44 = vadd.f32 %v15696_v59, %v19425_v25 }
0x210b   :  { %19424 = vst [vmem:[#allocation156_spill] sm:$0xff] %v15888_v23 }
0x210c   :  { %19428 = vst [vmem:[#allocation159_spill] sm:$0xff] %v15907_v44 }
0x210d   :  { %7185 = vperm.xlu0 %10671, %v7112_v61   ;;  %7847 = vperm.xlu1 %10670, %v15880_v14   ;;  %v15891_v15 = vpop.permute.xlu0 %7718  ;;  %v15900_v61 = vadd.f32 %v15696_v59, %v19423_v7 }
0x210e   :  { %v7865_v16 = vrot.slane %v15891_v15, %v11448_v19 }
0x210f   :  { %19427 = vst [vmem:[#allocation158_spill] sm:$0xff] %v15900_v61 }
0x2111   :  { %7757 = vperm.xlu1 %10670, %v15888_v23   ;;  %v15902_v36 = vpop.permute.xlu0 %7724  ;;  %v15909_v23 = vpop.xlane.xlu1 %6380 }
0x2112   :  { %19429 = vst [vmem:[#allocation160_spill] sm:$0xff] %v15909_v23  ;;  %vm6382_vm9 = vcmp.eq.f32.partialorder %v15460_v5, %v15909_v23  ;;  %v7874_v18 = vrot.slane %v15902_v36, %v11448_v19 }
0x2115   :  { %7781 = vperm.xlu1 %10670, %v15895_v20  }
0x2119   :  { %7829 = vperm.xlu1 %10670, %v15900_v61   ;;  %v6376_v61 = vand.u32 65535, %v15438_v32 }
0x211b   :  { %v6378_v59 = vcvt.s32.f32 %v6376_v61 }
0x211c   :  { %v15911_v38 = vpop.permute.xlu0 %7790 }
0x211d   :  { %7853 = vperm.xlu1 %10670, %v15907_v44   ;;  %v6383_v25 = vsel %vm6382_vm9, %v6378_v59, inf  ;;  %v7973_v50 = vrot.slane %v15911_v38, %v11448_v19 }
0x2120   :  { %v15914_v56 = vpop.permute.xlu1 %7149  ;;  %v15916_v48 = vpop.permute.xlu0 %7796 }
0x2121   :  { %19430 = vst [vmem:[#allocation161_spill] sm:$0xff] %v15914_v56  ;;  %v7982_v55 = vrot.slane %v15916_v48, %v11448_v19 }
0x2124   :  { %v15918_v26 = vpop.permute.xlu1 %7152  ;;  %v15920_v29 = vpop.permute.xlu0 %7730 }
0x2125   :  { %19431 = vst [vmem:[#allocation162_spill] sm:$0xff] %v15918_v26  ;;  %v7883_v34 = vrot.slane %v15920_v29, %v11448_v19 }
0x2128   :  { %v15923_v1 = vpop.permute.xlu1 %7158  ;;  %v15927_v20 = vpop.permute.xlu0 %7802 }
0x2129   :  { %19432 = vst [vmem:[#allocation163_spill] sm:$0xff] %v15923_v1  ;;  %v6346_v1 = vand.u32 65535, %v15551_v4  ;;  %v7991_v12 = vrot.slane %v15927_v20, %v11448_v19 }
0x212c   :  { %6384 = vmin.xlane.f32.xlu0 %v6383_v25  ;;  %v15929_v44 = vpop.permute.xlu1 %7164  ;;  %v15931_v56 = vpop.permute.xlu0 %7736  ;;  %v6348_v25 = vcvt.s32.f32 %v6346_v1 }
0x212d   :  { %19433 = vst [vmem:[#allocation164_spill] sm:$0xff] %v15929_v44  ;;  %v7892_v15 = vrot.slane %v15931_v56, %v11448_v19 }
0x212e   :  { %v6353_v23 = vsel %vm6352_vm10, %v6348_v25, inf }
0x2130   :  { %v15933_v14 = vpop.permute.xlu1 %7170  ;;  %v15937_v7 = vpop.permute.xlu0 %7808 }
0x2131   :  { %19434 = vst [vmem:[#allocation165_spill] sm:$0xff] %v15933_v14  ;;  %v8000_v38 = vrot.slane %v15937_v7, %v11448_v19 }
0x2134   :  { %v15935_v26 = vpop.permute.xlu1 %7176  ;;  %v15942_v5 = vpop.permute.xlu0 %7742 }
0x2135   :  { %19435 = vst [vmem:[#allocation166_spill] sm:$0xff] %v15935_v26  ;;  %v7901_v29 = vrot.slane %v15942_v5, %v11448_v19 }
0x2138   :  { %v15939_v32 = vpop.permute.xlu1 %7182  ;;  %v15946_v44 = vpop.permute.xlu0 %7814 }
0x2139   :  { %19436 = vst [vmem:[#allocation167_spill] sm:$0xff] %v15939_v32 }
0x213c   :  { %v7716_v61 = vpop.permute.xlu1 %7715  ;;  %v15948_v26 = vpop.permute.xlu0 %7748 }
0x213d   :  { %v7861_v51 = vrot.slane %v7716_v61, %v11445_v8 }
0x2140   :  { %v7722_v59 = vpop.permute.xlu1 %7721  ;;  %v15950_v32 = vpop.permute.xlu0 %7766 }
0x2141   :  { %6354 = vmin.xlane.f32.xlu1 %v6353_v23  ;;  %v7870_v42 = vrot.slane %v7722_v59, %v11445_v8  ;;  %v7937_v7 = vrot.slane %v15950_v32, %v11448_v19 }
0x2143   :  { %v7875_v36 = vsel %vm1940_vm14, %v7874_v18, %v7870_v42  ;;  %v8009_v18 = vrot.slane %v15946_v44, %v11448_v19  ;;  %v7866_v42 = vsel %vm1940_vm14, %v7865_v16, %v7861_v51 }
0x2144   :  { %v7788_v14 = vpop.permute.xlu1 %7787  ;;  %v15952_v57 = vpop.permute.xlu0 %7772  ;;  %v8074_v20 = vsel %vm2149_vm15, %v7875_v36, %v7866_v42 }
0x2145   :  { %v7969_v48 = vrot.slane %v7788_v14, %v11445_v8  ;;  %v7946_v5 = vrot.slane %v15952_v57, %v11448_v19 }
0x2148   :  { %v7794_v27 = vpop.permute.xlu1 %7793  ;;  %v15956_v2 = vpop.permute.xlu0 %7820 }
0x2149   :  { %v7978_v59 = vrot.slane %v7794_v27, %v11445_v8 }
0x214b   :  { %v7983_v14 = vsel %vm1940_vm14, %v7982_v55, %v7978_v59 }
0x214c   :  { %v7728_v60 = vpop.permute.xlu1 %7727  ;;  %v15960_v23 = vpop.permute.xlu0 %7838 }
0x214d   :  { %v7879_v61 = vrot.slane %v7728_v60, %v11445_v8  ;;  %v7974_v60 = vsel %vm1940_vm14, %v7973_v50, %v7969_v48  ;;  %v8045_v57 = vrot.slane %v15960_v23, %v11448_v19 }
0x214e   :  { %v8084_v59 = vsel %vm2149_vm15, %v7983_v14, %v7974_v60 }
0x214f   :  { %v7884_v44 = vsel %vm1940_vm14, %v7883_v34, %v7879_v61  ;;  %v8018_v34 = vrot.slane %v15956_v2, %v11448_v19 }
0x2150   :  { %v7800_v4 = vpop.permute.xlu1 %7799  ;;  %v15964_v40 = vpop.permute.xlu0 %7844 }
0x2151   :  { %v7987_v27 = vrot.slane %v7800_v4, %v11445_v8  ;;  %v8054_v50 = vrot.slane %v15964_v40, %v11448_v19 }
0x2153   :  { %v7992_v36 = vsel %vm1940_vm14, %v7991_v12, %v7987_v27  ;;  %v8075_v12 = vsel %vm2151_vm0, %v7884_v44, %v8074_v20 }
0x2154   :  { %v15954_v30 = vpop.permute.xlu1 %7733  ;;  %v15968_v52 = vpop.permute.xlu0 %7754 }
0x2155   :  { %v7888_v32 = vrot.slane %v15954_v30, %v11445_v8  ;;  %v7919_v48 = vrot.slane %v15968_v52, %v11448_v19 }
0x2158   :  { %v7806_v6 = vpop.permute.xlu1 %7805  ;;  %v7779_v46 = vpop.permute.xlu0 %7778 }
0x2159   :  { %v7996_v56 = vrot.slane %v7806_v6, %v11445_v8  ;;  %v7955_v30 = vrot.slane %v7779_v46, %v11448_v19 }
0x215c   :  { %v15958_v1 = vpop.permute.xlu1 %7739  ;;  %v15974_v37 = vpop.permute.xlu0 %7826 }
0x215d   :  { %v8027_v52 = vrot.slane %v15974_v37, %v11448_v19 }
0x2160   :  { %v7812_v25 = vpop.permute.xlu1 %7811  ;;  %v15980_v11 = vpop.permute.xlu0 %7850 }
0x2161   :  { %v8005_v16 = vrot.slane %v7812_v25, %v11445_v8  ;;  %v8085_v25 = vsel %vm2151_vm0, %v7992_v36, %v8084_v59 }
0x2163   :  { %v8010_v61 = vsel %vm1940_vm14, %v8009_v18, %v8005_v16 }
0x2164   :  { %v15962_v21 = vpop.permute.xlu1 %7745  ;;  %v15983_v28 = vpop.permute.xlu0 %7760 }
0x2168   :  { %v15966_v17 = vpop.permute.xlu1 %7763  ;;  %v7785_v4 = vpop.permute.xlu0 %7784 }
0x2169   :  { %v7964_v60 = vrot.slane %v7785_v4, %v11448_v19 }
0x216c   :  { %v7770_v49 = vpop.permute.xlu1 %7769  ;;  %v7833_v27 = vpop.permute.xlu0 %7832 }
0x216d   :  { %v7942_v51 = vrot.slane %v7770_v49, %v11445_v8  ;;  %v7933_v49 = vrot.slane %v15966_v17, %v11445_v8  ;;  %v7893_v17 = vsel %vm1940_vm14, %v7892_v15, %v7888_v32  ;;  %v7897_v15 = vrot.slane %v15958_v1, %v11445_v8 }
0x216f   :  { %v7947_v2 = vsel %vm1940_vm14, %v7946_v5, %v7942_v51  ;;  %v7938_v18 = vsel %vm1940_vm14, %v7937_v7, %v7933_v49  ;;  %v7906_v5 = vrot.slane %v15962_v21, %v11445_v8  ;;  %v8036_v51 = vrot.slane %v7833_v27, %v11448_v19 }
0x2170   :  { %v15970_v45 = vpop.permute.xlu1 %7817  ;;  %v8081_v14 = vsel %vm2149_vm15, %v7947_v2, %v7938_v18  ;;  %v8063_v21 = vrot.slane %v15980_v11, %v11448_v19  ;;  %v7857_v59 = vpop.permute.xlu0 %7856 }
0x2171   :  { %v8014_v23 = vrot.slane %v15970_v45, %v11445_v8  ;;  %v8072_v2 = vrot.slane %v7857_v59, %v11448_v19 }
0x2174   :  { %v15972_v63 = vpop.permute.xlu1 %7835 }
0x2178   :  { %v15976_v41 = vpop.permute.xlu1 %7841 }
0x217c   :  { %v15978_v0 = vpop.permute.xlu1 %7751 }
0x2180   :  { %v7776_v62 = vpop.permute.xlu1 %7775 }
0x2181   :  { %v7951_v55 = vrot.slane %v7776_v62, %v11445_v8  ;;  %v8001_v62 = vsel %vm1940_vm14, %v8000_v38, %v7996_v56  ;;  %v8050_v56 = vrot.slane %v15976_v41, %v11445_v8  ;;  %v8041_v41 = vrot.slane %v15972_v63, %v11445_v8 }
0x2182   :  { %v8086_v42 = vsel %vm2153_vm1, %v8001_v62, %v8085_v25 }
0x2183   :  { %v7956_v40 = vsel %vm1940_vm14, %v7955_v30, %v7951_v55  ;;  %v8087_v20 = vsel %vm2155_vm2, %v8010_v61, %v8086_v42  ;;  %v7902_v55 = vsel %vm1940_vm14, %v7901_v29, %v7897_v15  ;;  %v8055_v49 = vsel %vm1940_vm14, %v8054_v50, %v8050_v56  ;;  %v16120_v15 = vpop.permute.xlu0 %7155 }
0x2184   :  { %v15985_v43 = vpop.permute.xlu1 %7823  ;;  %v8082_v4 = vsel %vm2151_vm0, %v7956_v40, %v8081_v14  ;;  %v19437_v29 = vrot.slane %v15948_v26, %v11448_v19  ;;  %v8076_v26 = vsel %vm2153_vm1, %v7893_v17, %v8075_v12  ;;  %19438 = vst [vmem:[#allocation168_spill] sm:$0xff] %v16120_v15 }
0x2185   :  { %v8023_v46 = vrot.slane %v15985_v43, %v11445_v8  ;;  %v8019_v43 = vsel %vm1940_vm14, %v8018_v34, %v8014_v23 }
0x2186   :  { %v8088_v34 = vsel %vm2157_vm3, %v8019_v43, %v8087_v20  ;;  %v7911_v11 = vsel %vm1940_vm14, %v19437_v29, %v7906_v5  ;;  %v19445_v5 = vld [vmem:[#allocation57_spill] sm:$0xff] }
0x2187   :  { %v8028_v1 = vsel %vm1940_vm14, %v8027_v52, %v8023_v46  ;;  %v8077_v46 = vsel %vm2155_vm2, %v7902_v55, %v8076_v26  ;;  %v16122_v52 = vpop.permute.xlu0 %7161  ;;  %v19462_v26 = vld [vmem:[#allocation22_spill] sm:$0xff] }
0x2188   :  { %v16009_v3 = vpop.permute.xlu1 %7847  ;;  %v8089_v30 = vsel %vm2159_vm4, %v8028_v1, %v8088_v34  ;;  %19439 = vst [vmem:[#allocation169_spill] sm:$0xff] %v16122_v52 }
0x2189   :  { %v8059_v37 = vrot.slane %v16009_v3, %v11445_v8  ;;  %v7915_v3 = vrot.slane %v15978_v0, %v11445_v8  ;;  %v7928_v0 = vrot.slane %v15983_v28, %v11448_v19 }
0x218b   :  { %v8064_v25 = vsel %vm1940_vm14, %v8063_v21, %v8059_v37  ;;  %v7920_v40 = vsel %vm1940_vm14, %v7919_v48, %v7915_v3  ;;  %v16124_v20 = vpop.permute.xlu0 %7167  ;;  %v19449_v21 = vld [vmem:[#allocation54_spill] sm:$0xff] }
0x218c   :  { %v16033_v6 = vpop.permute.xlu1 %7757  ;;  %19440 = vst [vmem:[#allocation170_spill] sm:$0xff] %v16124_v20 }
0x218d   :  { %v7924_v63 = vrot.slane %v16033_v6, %v11445_v8  ;;  %v8046_v6 = vsel %vm1940_vm14, %v8045_v57, %v8041_v41 }
0x218e   :  { %v8091_v28 = vsel %vm2149_vm15, %v8055_v49, %v8046_v6 }
0x218f   :  { %v8092_v42 = vsel %vm2151_vm0, %v8064_v25, %v8091_v28  ;;  %v7929_v18 = vsel %vm1940_vm14, %v7928_v0, %v7924_v63  ;;  %v16126_v14 = vpop.permute.xlu0 %7173  ;;  %v19457_v25 = vld [vmem:[#allocation21_spill] sm:$0xff]  ;;  %v19464_v28 = vld [vmem:[#allocation32_spill] sm:$0xff] }
0x2190   :  { %v7782_v38 = vpop.permute.xlu1 %7781  ;;  %19441 = vst [vmem:[#allocation171_spill] sm:$0xff] %v16126_v14 }
0x2191   :  { %v7960_v45 = vrot.slane %v7782_v38, %v11445_v8 }
0x2193   :  { %v7965_v7 = vsel %vm1940_vm14, %v7964_v60, %v7960_v45  ;;  %v8078_v60 = vsel %vm2157_vm3, %v7911_v11, %v8077_v46  ;;  %v16128_v43 = vpop.permute.xlu0 %7179  ;;  %v19455_v11 = vld [vmem:[#allocation146_spill] sm:$0xff] }
0x2194   :  { %v7830_v44 = vpop.permute.xlu1 %7829  ;;  %v8083_v16 = vsel %vm2153_vm1, %v7965_v7, %v8082_v4  ;;  %v8079_v12 = vsel %vm2159_vm4, %v7920_v40, %v8078_v60  ;;  %19442 = vst [vmem:[#allocation172_spill] sm:$0xff] %v16128_v43  ;;  %v19468_v60 = vld [vmem:[#allocation33_spill] sm:$0xff] }
0x2195   :  { %v8032_v36 = vrot.slane %v7830_v44, %v11445_v8  ;;  %v8101_v32 = vsel %vm1492_vm13, %v8083_v16, -inf  ;;  %v8080_v17 = vsel %vm2161_vm5, %v7929_v18, %v8079_v12  ;;  %v19470_v12 = vld [vmem:[#allocation23_spill] sm:$0xff] }
0x2196   :  { %8102 = vmax.xlane.f32.xlu0 %v8101_v32  ;;  %v8098_v48 = vsel %vm1488_vm12, %v8080_v17, -inf }
0x2197   :  { %v8037_v62 = vsel %vm1940_vm14, %v8036_v51, %v8032_v36  ;;  %v16130_v56 = vpop.permute.xlu0 %7185 }
0x2198   :  { %v7854_v61 = vpop.permute.xlu1 %7853  ;;  %v8090_v50 = vsel %vm2161_vm5, %v8037_v62, %v8089_v30  ;;  %19443 = vst [vmem:[#allocation173_spill] sm:$0xff] %v16130_v56  ;;  %v19501_v56 = vld [vmem:[#allocation41_spill] sm:$0xff] }
0x2199   :  { %v8068_v23 = vrot.slane %v7854_v61, %v11445_v8  ;;  %v8104_v27 = vsel %vm1488_vm12, %v8090_v50, -inf  ;;  %v19459_v50 = vld [vmem:[#allocation150_spill] sm:$0xff] }
0x219a   :  { %8105 = vmax.xlane.f32.xlu0 %v8104_v27 }
0x219b   :  { %v8073_v38 = vsel %vm1940_vm14, %v8072_v2, %v8068_v23  ;;  %v19460_v2 = vld [vmem:[#allocation52_spill] sm:$0xff] }
0x219c   :  { %v8093_v57 = vsel %vm2153_vm1, %v8073_v38, %v8092_v42  ;;  %v19466_v42 = vld [vmem:[#allocation59_spill] sm:$0xff] }
0x219d   :  { %v8107_v45 = vsel %vm1492_vm13, %v8093_v57, -inf }
0x219e   :  { %8108 = vmax.xlane.f32.xlu1 %v8107_v45 }
0x21a2   :  { %8099 = vmax.xlane.f32.xlu1 %v8098_v48 }
0x21b5   :  { %v16132_v7 = vpop.xlane.xlu0 %6384 }
0x21b6   :  { %19444 = vst [vmem:[#allocation174_spill] sm:$0xff] %v16132_v7 }
0x21ca   :  { %v16149_v51 = vpop.xlane.xlu1 %6354 }
0x21cb   :  { %19447 = vst [vmem:[#allocation175_spill] sm:$0xff] %v16149_v51 }
0x221f   :  { %v8103_v4 = vpop.xlane.xlu0 %8102 }
0x2220   :  { %v16135_v1 = vadd.f32 %v19445_v5, %v8103_v4  ;;  %v16138_v37 = vrot.slane %v8103_v4, %v19339_v31  ;;  %v16141_v44 = vrot.slane %v8103_v4, %v19344_v13  ;;  %v16181_v49 = vrot.slane %v8103_v4, %v19349_v22 }
0x2222   :  { %v16145_v16 = vadd.f32 %v16135_v1, %v19331_v54  ;;  %vm8251_vm11 = vcmp.eq.f32.partialorder %v15700_v33, %v16138_v37  ;;  %vm8253_vm6 = vcmp.eq.f32.partialorder %v15710_v24, %v16141_v44  ;;  %v16157_v36 = vadd.f32 %v16135_v1, %v19333_v58 }
0x2223   :  { %v8299_v41 = vsel %vm8251_vm11, %v19347_v10, 12  ;;  %v8301_v55 = vsel %vm8253_vm6, %v19347_v10, 12  ;;  %vm8255_vm9 = vcmp.eq.f32.partialorder %v15760_v35, %v16181_v49  ;;  %v16238_v40 = vadd.f32 %v16135_v1, %v19462_v26  ;;  %v16244_v38 = vpop.xlane.xlu0 %8105 }
0x2224   :  { %19446 = vst [vmem:[#allocation57_spill] sm:$0xff] %v16145_v16  ;;  %8900 = vperm.xlu0 %10671, %v16145_v16   ;;  %8382 = vperm.xlu1 %10670, %v8299_v41   ;;  %19448 = vst [vmem:[#allocation176_spill] sm:$0xff] %v16157_v36  ;;  %v8303_v62 = vsel %vm8255_vm9, %v19347_v10, 12  ;;  %v16250_v18 = vadd.f32 %v19466_v42, %v16244_v38  ;;  %v16264_v17 = vadd.f32 %v16135_v1, %v19470_v12  ;;  %v19491_v42 = vld [vmem:[#allocation28_spill] sm:$0xff] }
0x2225   :  { %19463 = vst [vmem:[#allocation52_spill] sm:$0xff] %v16238_v40 }
0x2226   :  { %19471 = vst [vmem:[#allocation33_spill] sm:$0xff] %v16264_v17  ;;  %v16268_v48 = vadd.f32 %v16250_v18, %v19464_v28  ;;  %v16278_v41 = vadd.f32 %v16250_v18, %v19468_v60 }
0x2227   :  { %v8109_v32 = vpop.xlane.xlu1 %8108 }
0x2228   :  { %v16161_v59 = vadd.f32 %v19449_v21, %v8109_v32  ;;  %8906 = vperm.xlu0 %10671, %v16157_v36   ;;  %8388 = vperm.xlu1 %10670, %v8301_v55   ;;  %v16165_v33 = vrot.slane %v8109_v32, %v19339_v31  ;;  %v16168_v3 = vrot.slane %v8109_v32, %v19344_v13  ;;  %v19478_v21 = vld [vmem:[#allocation34_spill] sm:$0xff] }
0x2229   :  { %19472 = vst [vmem:[#allocation23_spill] sm:$0xff] %v16268_v48  ;;  %19475 = vst [vmem:[#allocation180_spill] sm:$0xff] %v16278_v41 }
0x222a   :  { %v16172_v24 = vadd.f32 %v16161_v59, %v19331_v54  ;;  %vm8275_vm7 = vcmp.eq.f32.partialorder %v15730_v9, %v16165_v33  ;;  %vm8277_vm8 = vcmp.eq.f32.partialorder %v15740_v53, %v16168_v3  ;;  %v16185_v63 = vadd.f32 %v16161_v59, %v19333_v58  ;;  %v19453_v58 = vld [vmem:[#allocation13_spill] sm:$0xff] }
0x222b   :  { %v8323_v34 = vsel %vm8275_vm7, %v19347_v10, 12  ;;  %v8325_v54 = vsel %vm8277_vm8, %v19347_v10, 12  ;;  %v16192_v9 = vrot.slane %v8109_v32, %v19349_v22  ;;  %v16196_v53 = vadd.f32 %v16135_v1, %v19345_v47  ;;  %v16220_v61 = vpop.xlane.xlu1 %8099 }
0x222c   :  { %19450 = vst [vmem:[#allocation54_spill] sm:$0xff] %v16172_v24  ;;  %8972 = vperm.xlu0 %10671, %v16172_v24   ;;  %8454 = vperm.xlu1 %10670, %v8323_v34   ;;  %19451 = vst [vmem:[#allocation177_spill] sm:$0xff] %v16185_v63  ;;  %v16203_v30 = vrot.slane %v8103_v4, %v19453_v58  ;;  %v16207_v35 = vadd.f32 %v16161_v59, %v19345_v47  ;;  %v19473_v4 = vld [vmem:[#allocation26_spill] sm:$0xff] }
0x222d   :  { %19452 = vst [vmem:[#allocation178_spill] sm:$0xff] %v16196_v53  ;;  %vm8279_vm10 = vcmp.eq.f32.partialorder %v15780_v39, %v16192_v9  ;;  %v16214_v0 = vrot.slane %v8109_v32, %v19453_v58  ;;  %v16218_v39 = vadd.f32 %v16135_v1, %v19457_v25  ;;  %v16228_v6 = vadd.f32 %v19460_v2, %v16220_v61  ;;  %v19476_v32 = vld [vmem:[#allocation27_spill] sm:$0xff]  ;;  %v19487_v2 = vld [vmem:[#allocation24_spill] sm:$0xff]  ;;  %v19550_v24 = vld [vmem:[#allocation134_spill] sm:$0xff] }
0x222e   :  { %19454 = vst [vmem:[#allocation179_spill] sm:$0xff] %v16207_v35  ;;  %v8327_v29 = vsel %vm8279_vm10, %v19347_v10, 12  ;;  %vm8257_vm11 = vcmp.eq.f32.partialorder %v19455_v11, %v16203_v30  ;;  %v16232_v23 = vadd.f32 %v16161_v59, %v19457_v25  ;;  %v16254_v57 = vadd.f32 %v16161_v59, %v19462_v26  ;;  %v19483_v11 = vld [vmem:[#allocation35_spill] sm:$0xff]  ;;  %v19489_v26 = vld [vmem:[#allocation36_spill] sm:$0xff] }
0x222f   :  { %19456 = vst [vmem:[#allocation146_spill] sm:$0xff] %v16214_v0  ;;  %19458 = vst [vmem:[#allocation21_spill] sm:$0xff] %v16218_v39  ;;  %v8305_v47 = vsel %vm8257_vm11, %v19347_v10, 12  ;;  %vm8281_vm6 = vcmp.eq.f32.partialorder %v19459_v50, %v16214_v0  ;;  %v16242_v46 = vadd.f32 %v16228_v6, %v19464_v28  ;;  %v16258_v45 = vadd.f32 %v16228_v6, %v19468_v60 }
0x2230   :  { %8978 = vperm.xlu0 %10671, %v16185_v63   ;;  %8460 = vperm.xlu1 %10670, %v8325_v54   ;;  %19461 = vst [vmem:[#allocation150_spill] sm:$0xff] %v16232_v23  ;;  %v8329_v27 = vsel %vm8281_vm6, %v19347_v10, 12  ;;  %19467 = vst [vmem:[#allocation32_spill] sm:$0xff] %v16254_v57  ;;  %v16274_v5 = vadd.f32 %v16135_v1, %v19473_v4  ;;  %v16284_v55 = vadd.f32 %v16135_v1, %v19476_v32  ;;  %v19544_v63 = vld [vmem:[#allocation82_spill] sm:$0xff] }
0x2231   :  { %19465 = vst [vmem:[#allocation22_spill] sm:$0xff] %v16242_v46  ;;  %19469 = vst [vmem:[#allocation59_spill] sm:$0xff] %v16258_v45  ;;  %v16288_v34 = vadd.f32 %v16228_v6, %v19478_v21  ;;  %v16294_v54 = vadd.f32 %v16161_v59, %v19470_v12  ;;  %v16308_v25 = vadd.f32 %v16228_v6, %v19483_v11 }
0x2232   :  { %19474 = vst [vmem:[#allocation26_spill] sm:$0xff] %v16274_v5  ;;  %19477 = vst [vmem:[#allocation27_spill] sm:$0xff] %v16284_v55  ;;  %v16318_v50 = vadd.f32 %v16250_v18, %v19483_v11  ;;  %v16328_v28 = vadd.f32 %v16228_v6, %v19489_v26  ;;  %v16334_v60 = vadd.f32 %v16135_v1, %v19491_v42 }
0x2233   :  { %19479 = vst [vmem:[#allocation34_spill] sm:$0xff] %v16288_v34  ;;  %19480 = vst [vmem:[#allocation181_spill] sm:$0xff] %v16294_v54  ;;  %v16338_v12 = vadd.f32 %v16250_v18, %v19489_v26  ;;  %v16354_v11 = vadd.f32 %v16161_v59, %v19491_v42  ;;  %v19498_v26 = vld [vmem:[#allocation40_spill] sm:$0xff]  ;;  %v16368_v43 = vadd.f32 %v16228_v6, %v19501_v56  ;;  %v19503_v42 = vld [vmem:[#allocation29_spill] sm:$0xff] }
0x2234   :  { %8912 = vperm.xlu0 %10671, %v16196_v53   ;;  %8394 = vperm.xlu1 %10670, %v8303_v62   ;;  %v16298_v62 = vadd.f32 %v16250_v18, %v19478_v21  ;;  %19484 = vst [vmem:[#allocation35_spill] sm:$0xff] %v16308_v25  ;;  %19486 = vst [vmem:[#allocation185_spill] sm:$0xff] %v16318_v50  ;;  %v16358_v7 = vadd.f32 %v16228_v6, %v19498_v26 }
0x2235   :  { %19490 = vst [vmem:[#allocation36_spill] sm:$0xff] %v16328_v28  ;;  %19492 = vst [vmem:[#allocation28_spill] sm:$0xff] %v16334_v60  ;;  %v16374_v14 = vadd.f32 %v16135_v1, %v19503_v42  ;;  %v16388_v15 = vadd.f32 %v16250_v18, %v19498_v26  ;;  %v19511_v26 = vld [vmem:[#allocation38_spill] sm:$0xff] }
0x2236   :  { %19481 = vst [vmem:[#allocation182_spill] sm:$0xff] %v16298_v62  ;;  %19493 = vst [vmem:[#allocation186_spill] sm:$0xff] %v16338_v12  ;;  %v16406_v0 = vadd.f32 %v16228_v6, %v19511_v26 }
0x2237   :  { %19497 = vst [vmem:[#allocation188_spill] sm:$0xff] %v16354_v11  ;;  %19504 = vst [vmem:[#allocation41_spill] sm:$0xff] %v16374_v14 }
0x2238   :  { %8984 = vperm.xlu0 %10671, %v16207_v35   ;;  %8466 = vperm.xlu1 %10670, %v8327_v29   ;;  %v16304_v29 = vadd.f32 %v16161_v59, %v19473_v4  ;;  %v16344_v4 = vadd.f32 %v16161_v59, %v19487_v2  ;;  %19507 = vst [vmem:[#allocation190_spill] sm:$0xff] %v16388_v15 }
0x223a   :  { %19482 = vst [vmem:[#allocation183_spill] sm:$0xff] %v16304_v29  ;;  %19494 = vst [vmem:[#allocation187_spill] sm:$0xff] %v16344_v4 }
0x223c   :  { %8918 = vperm.xlu0 %10671, %v16218_v39   ;;  %8400 = vperm.xlu1 %10670, %v8305_v47   ;;  %v16314_v47 = vadd.f32 %v16161_v59, %v19476_v32  ;;  %v19495_v32 = vld [vmem:[#allocation37_spill] sm:$0xff] }
0x223d   :  { %v16348_v21 = vadd.f32 %v16228_v6, %v19495_v32  ;;  %v16378_v20 = vadd.f32 %v16250_v18, %v19495_v32  ;;  %v16398_v32 = vadd.f32 %v16250_v18, %v19501_v56  ;;  %v19515_v56 = vld [vmem:[#allocation42_spill] sm:$0xff] }
0x223e   :  { %19485 = vst [vmem:[#allocation184_spill] sm:$0xff] %v16314_v47 }
0x223f   :  { %19496 = vst [vmem:[#allocation37_spill] sm:$0xff] %v16348_v21  ;;  %19505 = vst [vmem:[#allocation29_spill] sm:$0xff] %v16378_v20 }
0x2240   :  { %8990 = vperm.xlu0 %10671, %v16232_v23   ;;  %8472 = vperm.xlu1 %10670, %v8329_v27   ;;  %v16324_v27 = vadd.f32 %v16135_v1, %v19487_v2  ;;  %v19499_v2 = vld [vmem:[#allocation25_spill] sm:$0xff]  ;;  %19509 = vst [vmem:[#allocation192_spill] sm:$0xff] %v16398_v32 }
0x2241   :  { %v16364_v51 = vadd.f32 %v16135_v1, %v19499_v2  ;;  %19502 = vst [vmem:[#allocation25_spill] sm:$0xff] %v16368_v43  ;;  %v16384_v52 = vadd.f32 %v16161_v59, %v19499_v2  ;;  %v16394_v1 = vadd.f32 %v16161_v59, %v19503_v42  ;;  %v19510_v2 = vld [vmem:[#allocation147_spill] sm:$0xff]  ;;  %v19514_v59 = vld [vmem:[#allocation149_spill] sm:$0xff]  ;;  %v16414_v42 = vadd.f32 %v16228_v6, %v19515_v56 }
0x2242   :  { %19488 = vst [vmem:[#allocation24_spill] sm:$0xff] %v16324_v27  ;;  %vm8250_vm7 = vcmp.eq.f32.partialorder %v19510_v2, %v16138_v37  ;;  %19512 = vst [vmem:[#allocation147_spill] sm:$0xff] %v16406_v0  ;;  %vm8252_vm8 = vcmp.eq.f32.partialorder %v19514_v59, %v16141_v44  ;;  %v19517_v37 = vld [vmem:[#allocation46_spill] sm:$0xff]  ;;  %v19519_v44 = vld [vmem:[#allocation71_spill] sm:$0xff] }
0x2243   :  { %19500 = vst [vmem:[#allocation40_spill] sm:$0xff] %v16364_v51  ;;  %19506 = vst [vmem:[#allocation189_spill] sm:$0xff] %v16384_v52  ;;  %vm8274_vm9 = vcmp.eq.f32.partialorder %v19517_v37, %v16165_v33  ;;  %vm8276_vm10 = vcmp.eq.f32.partialorder %v19519_v44, %v16168_v3  ;;  %v19521_v33 = vld [vmem:[#allocation115_spill] sm:$0xff]  ;;  %v19524_v3 = vld [vmem:[#allocation154_spill] sm:$0xff] }
0x2244   :  { %8924 = vperm.xlu0 %10671, %v16238_v40   ;;  %8897 = vperm.xlu1 %10670, %v16242_v46   ;;  %19508 = vst [vmem:[#allocation191_spill] sm:$0xff] %v16394_v1  ;;  %19516 = vst [vmem:[#allocation38_spill] sm:$0xff] %v16414_v42  ;;  %vm8254_vm11 = vcmp.eq.f32.partialorder %v19521_v33, %v16181_v49  ;;  %vm8278_vm6 = vcmp.eq.f32.partialorder %v19524_v3, %v16192_v9  ;;  %v19527_v49 = vld [vmem:[#allocation157_spill] sm:$0xff] }
0x2245   :  { %v8117_v33 = vrot.slane %v16220_v61, %v19339_v31  ;;  %v8165_v3 = vrot.slane %v16244_v38, %v19339_v31  ;;  %v19534_v40 = vld [vmem:[#allocation81_spill] sm:$0xff] }
0x2248   :  { %8996 = vperm.xlu0 %10671, %v16254_v57   ;;  %8903 = vperm.xlu1 %10670, %v16258_v45  }
0x224c   :  { %8930 = vperm.xlu0 %10671, %v16264_v17   ;;  %8969 = vperm.xlu1 %10670, %v16268_v48   ;;  %v19553_v48 = vld [vmem:[#allocation53_spill] sm:$0xff] }
0x2250   :  { %8948 = vperm.xlu0 %10671, %v16274_v5   ;;  %8975 = vperm.xlu1 %10670, %v16278_v41   ;;  %v19547_v41 = vld [vmem:[#allocation117_spill] sm:$0xff] }
0x2254   :  { %8954 = vperm.xlu0 %10671, %v16284_v55   ;;  %8909 = vperm.xlu1 %10670, %v16288_v34   ;;  %v19541_v34 = vld [vmem:[#allocation68_spill] sm:$0xff] }
0x2258   :  { %9002 = vperm.xlu0 %10671, %v16294_v54   ;;  %8981 = vperm.xlu1 %10670, %v16298_v62   ;;  %v19539_v62 = vld [vmem:[#allocation72_spill] sm:$0xff] }
0x225c   :  { %9020 = vperm.xlu0 %10671, %v16304_v29   ;;  %8915 = vperm.xlu1 %10670, %v16308_v25   ;;  %v19536_v25 = vld [vmem:[#allocation86_spill] sm:$0xff] }
0x2260   :  { %9026 = vperm.xlu0 %10671, %v16314_v47   ;;  %8987 = vperm.xlu1 %10670, %v16318_v50   ;;  %v19565_v50 = vld [vmem:[#allocation120_spill] sm:$0xff] }
0x2264   :  { %8936 = vperm.xlu0 %10671, %v16324_v27   ;;  %8921 = vperm.xlu1 %10670, %v16328_v28   ;;  %v19532_v27 = vld [vmem:[#allocation11_spill] sm:$0xff]  ;;  %v19560_v28 = vld [vmem:[#allocation50_spill] sm:$0xff] }
0x2268   :  { %8960 = vperm.xlu0 %10671, %v16334_v60   ;;  %8993 = vperm.xlu1 %10670, %v16338_v12   ;;  %v19558_v12 = vld [vmem:[#allocation19_spill] sm:$0xff] }
0x226c   :  { %9008 = vperm.xlu0 %10671, %v16344_v4   ;;  %8927 = vperm.xlu1 %10670, %v16348_v21   ;;  %v19555_v21 = vld [vmem:[#allocation18_spill] sm:$0xff] }
0x2270   :  { %9032 = vperm.xlu0 %10671, %v16354_v11   ;;  %8945 = vperm.xlu1 %10670, %v16358_v7  }
0x2274   :  { %8942 = vperm.xlu0 %10671, %v16364_v51   ;;  %8951 = vperm.xlu1 %10670, %v16368_v43  }
0x2278   :  { %8966 = vperm.xlu0 %10671, %v16374_v14   ;;  %8999 = vperm.xlu1 %10670, %v16378_v20  }
0x227c   :  { %9014 = vperm.xlu0 %10671, %v16384_v52   ;;  %9017 = vperm.xlu1 %10670, %v16388_v15   ;;  %v19513_v52 = vld [vmem:[#allocation44_spill] sm:$0xff] }
0x227d   :  { %v8298_v51 = vsel %vm8250_vm7, %v19513_v52, 12  ;;  %v8300_v4 = vsel %vm8252_vm8, %v19513_v52, 12  ;;  %v8322_v2 = vsel %vm8274_vm9, %v19513_v52, 12  ;;  %v8324_v59 = vsel %vm8276_vm10, %v19513_v52, 12 }
0x227e   :  { %vm8256_vm7 = vcmp.eq.f32.partialorder %v19527_v49, %v16203_v30  ;;  %vm8258_vm10 = vcmp.eq.f32.partialorder %v19532_v27, %v8165_v3  ;;  %v8125_v27 = vrot.slane %v16220_v61, %v19349_v22 }
0x227f   :  { %v8304_v9 = vsel %vm8256_vm7, %v19513_v52, 12  ;;  %v8306_v57 = vsel %vm8258_vm10, %v19513_v52, 12 }
0x2280   :  { %9038 = vperm.xlu0 %10671, %v16394_v1   ;;  %9023 = vperm.xlu1 %10670, %v16398_v32  }
0x2284   :  { %8379 = vperm.xlu0 %10671, %v8298_v51   ;;  %8933 = vperm.xlu1 %10670, %v16406_v0   ;;  %v16422_v51 = vadd.f32 %v16250_v18, %v19511_v26  ;;  %v19522_v26 = vld [vmem:[#allocation39_spill] sm:$0xff] }
0x2285   :  { %v16438_v37 = vadd.f32 %v16228_v6, %v19522_v26 }
0x2286   :  { %19518 = vst [vmem:[#allocation44_spill] sm:$0xff] %v16422_v51 }
0x2287   :  { %19523 = vst [vmem:[#allocation42_spill] sm:$0xff] %v16438_v37 }
0x2288   :  { %8385 = vperm.xlu0 %10671, %v8300_v4   ;;  %8957 = vperm.xlu1 %10670, %v16414_v42   ;;  %v16430_v4 = vadd.f32 %v16250_v18, %v19515_v56  ;;  %v19525_v56 = vld [vmem:[#allocation43_spill] sm:$0xff] }
0x2289   :  { %v16446_v44 = vadd.f32 %v16228_v6, %v19525_v56  ;;  %v19529_v6 = vld [vmem:[#allocation140_spill] sm:$0xff]  ;;  %v16465_v30 = vadd.f32 %v16250_v18, %v19525_v56 }
0x228a   :  { %19520 = vst [vmem:[#allocation149_spill] sm:$0xff] %v16430_v4  ;;  %vm8235_vm8 = vcmp.eq.f32.partialorder %v19529_v6, %v8117_v33  ;;  %v19531_v6 = vld [vmem:[#allocation10_spill] sm:$0xff] }
0x228b   :  { %19526 = vst [vmem:[#allocation46_spill] sm:$0xff] %v16446_v44  ;;  %19530 = vst [vmem:[#allocation115_spill] sm:$0xff] %v16465_v30  ;;  %vm8234_vm9 = vcmp.eq.f32.partialorder %v19531_v6, %v8117_v33 }
0x228c   :  { %8451 = vperm.xlu0 %10671, %v8322_v2   ;;  %9005 = vperm.xlu1 %10670, %v16422_v51   ;;  %v8302_v2 = vsel %vm8254_vm11, %v19513_v52, 12  ;;  %v8282_v17 = vsel %vm8234_vm9, %v19513_v52, 12  ;;  %vm8259_vm9 = vcmp.eq.f32.partialorder %v19539_v62, %v8165_v3  ;;  %v8177_v62 = vrot.slane %v16244_v38, %v19453_v58 }
0x2290   :  { %8457 = vperm.xlu0 %10671, %v8324_v59   ;;  %9029 = vperm.xlu1 %10670, %v16430_v4   ;;  %v8326_v59 = vsel %vm8278_vm6, %v19513_v52, 12 }
0x2294   :  { %8391 = vperm.xlu0 %10671, %v8302_v2   ;;  %8939 = vperm.xlu1 %10670, %v16438_v37   ;;  %v16456_v2 = vadd.f32 %v16250_v18, %v19522_v26  ;;  %v8283_v26 = vsel %vm8235_vm8, %v19347_v10, 12  ;;  %v8169_v18 = vrot.slane %v16244_v38, %v19344_v13 }
0x2296   :  { %19528 = vst [vmem:[#allocation71_spill] sm:$0xff] %v16456_v2  ;;  %vm8260_vm6 = vcmp.eq.f32.partialorder %v19534_v40, %v8169_v18  ;;  %v8173_v40 = vrot.slane %v16244_v38, %v19349_v22 }
0x2297   :  { %v8308_v39 = vsel %vm8260_vm6, %v19513_v52, 12 }
0x2298   :  { %8463 = vperm.xlu0 %10671, %v8326_v59   ;;  %8963 = vperm.xlu1 %10670, %v16446_v44  }
0x229c   :  { %8397 = vperm.xlu0 %10671, %v8304_v9   ;;  %9011 = vperm.xlu1 %10670, %v16456_v2   ;;  %v8121_v9 = vrot.slane %v16220_v61, %v19344_v13 }
0x229e   :  { %vm8237_vm7 = vcmp.eq.f32.partialorder %v19536_v25, %v8121_v9 }
0x229f   :  { %v16467_v59 = vpop.permute.xlu1 %8382  ;;  %v16469_v49 = vpop.permute.xlu0 %8900 }
0x22a0   :  { %8334 = vperm.xlu0 %10671, %v8283_v26   ;;  %9035 = vperm.xlu1 %10670, %v16465_v30   ;;  %v19533_v26 = vld [vmem:[#allocation133_spill] sm:$0xff]  ;;  %v9047_v55 = vrot.slane %v16469_v49, %v11448_v19 }
0x22a1   :  { %vm8236_vm11 = vcmp.eq.f32.partialorder %v19533_v26, %v8121_v9 }
0x22a2   :  { %v8284_v23 = vsel %vm8236_vm11, %v19513_v52, 12  ;;  %vm8261_vm11 = vcmp.eq.f32.partialorder %v19541_v34, %v8169_v18  ;;  %v19546_v34 = vld [vmem:[#allocation14_spill] sm:$0xff] }
0x22a3   :  { %v16479_v56 = vpop.permute.xlu1 %8388  ;;  %v16481_v54 = vpop.permute.xlu0 %8906  ;;  %v8133_v18 = vrot.slane %v16220_v61, %v19546_v34 }
0x22a4   :  { %8331 = vperm.xlu1 %10670, %v8282_v17   ;;  %8403 = vperm.xlu0 %10671, %v8306_v57   ;;  %v19537_v57 = vld [vmem:[#allocation87_spill] sm:$0xff]  ;;  %v8562_v49 = vrot.slane %v16479_v56, %v11448_v19 }
0x22a5   :  { %vm8238_vm8 = vcmp.eq.f32.partialorder %v19537_v57, %v8125_v27  ;;  %v8307_v57 = vsel %vm8259_vm9, %v19347_v10, 12  ;;  %vm8263_vm9 = vcmp.eq.f32.partialorder %v19547_v41, %v8173_v40  ;;  %v19552_v41 = vld [vmem:[#allocation15_spill] sm:$0xff] }
0x22a6   :  { %v8286_v35 = vsel %vm8238_vm8, %v19513_v52, 12 }
0x22a7   :  { %v16489_v33 = vpop.permute.xlu1 %8454  ;;  %v16491_v6 = vpop.permute.xlu0 %8972 }
0x22a8   :  { %19535 = vst [vmem:[#allocation39_spill] sm:$0xff] %v16489_v33  ;;  %8337 = vperm.xlu1 %10670, %v8284_v23   ;;  %8409 = vperm.xlu0 %10671, %v8308_v39   ;;  %v8285_v33 = vsel %vm8237_vm7, %v19347_v10, 12  ;;  %v19540_v39 = vld [vmem:[#allocation106_spill] sm:$0xff]  ;;  %v8129_v23 = vrot.slane %v16220_v61, %v19453_v58  ;;  %vm8239_vm7 = vcmp.eq.f32.partialorder %v19544_v63, %v8125_v27 }
0x22a9   :  { %vm8262_vm10 = vcmp.eq.f32.partialorder %v19540_v39, %v8173_v40  ;;  %v8309_v39 = vsel %vm8261_vm11, %v19347_v10, 12  ;;  %v8181_v63 = vrot.slane %v16244_v38, %v19546_v34  ;;  %v8137_v40 = vrot.slane %v16220_v61, %v19552_v41  ;;  %v19563_v34 = vld [vmem:[#allocation20_spill] sm:$0xff] }
0x22aa   :  { %vm8241_vm11 = vcmp.eq.f32.partialorder %v19550_v24, %v8129_v23  ;;  %v8185_v24 = vrot.slane %v16244_v38, %v19552_v41 }
0x22ab   :  { %v16499_v17 = vpop.permute.xlu1 %8460  ;;  %v16501_v26 = vpop.permute.xlu0 %8978 }
0x22ac   :  { %19538 = vst [vmem:[#allocation154_spill] sm:$0xff] %v16499_v17  ;;  %8340 = vperm.xlu1 %10670, %v8285_v33   ;;  %8343 = vperm.xlu0 %10671, %v8286_v35   ;;  %v8310_v17 = vsel %vm8262_vm10, %v19513_v52, 12  ;;  %v19542_v35 = vld [vmem:[#allocation100_spill] sm:$0xff]  ;;  %v9164_v5 = vrot.slane %v16501_v26, %v11448_v19 }
0x22ad   :  { %vm8240_vm6 = vcmp.eq.f32.partialorder %v19542_v35, %v8129_v23 }
0x22ae   :  { %v8288_v2 = vsel %vm8240_vm6, %v19513_v52, 12 }
0x22af   :  { %v16509_v25 = vpop.permute.xlu1 %8394  ;;  %v16511_v9 = vpop.permute.xlu0 %8912 }
0x22b0   :  { %8406 = vperm.xlu1 %10670, %v8307_v57   ;;  %8415 = vperm.xlu0 %10671, %v8310_v17   ;;  %v19545_v17 = vld [vmem:[#allocation48_spill] sm:$0xff] }
0x22b1   :  { %vm8264_vm8 = vcmp.eq.f32.partialorder %v19545_v17, %v8177_v62  ;;  %v8311_v17 = vsel %vm8263_vm9, %v19347_v10, 12  ;;  %vm8243_vm9 = vcmp.eq.f32.partialorder %v19555_v21, %v8133_v18 }
0x22b2   :  { %v8312_v37 = vsel %vm8264_vm8, %v19513_v52, 12  ;;  %v8291_v36 = vsel %vm8243_vm9, %v19347_v10, 12  ;;  %vm8269_vm9 = vcmp.eq.f32.partialorder %v19563_v34, %v8185_v24 }
0x22b3   :  { %v16519_v3 = vpop.permute.xlu1 %8466  ;;  %v16521_v33 = vpop.permute.xlu0 %8984 }
0x22b4   :  { %19543 = vst [vmem:[#allocation43_spill] sm:$0xff] %v16519_v3  ;;  %8412 = vperm.xlu1 %10670, %v8309_v39   ;;  %8349 = vperm.xlu0 %10671, %v8288_v2   ;;  %v8287_v3 = vsel %vm8239_vm7, %v19347_v10, 12  ;;  %v19548_v2 = vld [vmem:[#allocation142_spill] sm:$0xff]  ;;  %vm8265_vm7 = vcmp.eq.f32.partialorder %v19553_v48, %v8177_v62  ;;  %v19557_v48 = vld [vmem:[#allocation16_spill] sm:$0xff] }
0x22b5   :  { %vm8242_vm10 = vcmp.eq.f32.partialorder %v19548_v2, %v8133_v18  ;;  %v8141_v62 = vrot.slane %v16220_v61, %v19557_v48  ;;  %v8189_v21 = vrot.slane %v16244_v38, %v19557_v48 }
0x22b6   :  { %v8290_v51 = vsel %vm8242_vm10, %v19513_v52, 12 }
0x22b7   :  { %v16529_v57 = vpop.permute.xlu1 %8400  ;;  %v16531_v35 = vpop.permute.xlu0 %8918 }
0x22b8   :  { %8346 = vperm.xlu1 %10670, %v8287_v3   ;;  %8421 = vperm.xlu0 %10671, %v8312_v37   ;;  %v19551_v37 = vld [vmem:[#allocation143_spill] sm:$0xff]  ;;  %v8580_v56 = vrot.slane %v16529_v57, %v11448_v19 }
0x22b9   :  { %vm8266_vm6 = vcmp.eq.f32.partialorder %v19551_v37, %v8181_v63  ;;  %v8313_v37 = vsel %vm8265_vm7, %v19347_v10, 12  ;;  %vm8245_vm7 = vcmp.eq.f32.partialorder %v19560_v28, %v8137_v40 }
0x22ba   :  { %v8314_v0 = vsel %vm8266_vm6, %v19513_v52, 12  ;;  %v8293_v48 = vsel %vm8245_vm7, %v19347_v10, 12 }
0x22bb   :  { %v16539_v27 = vpop.permute.xlu1 %8472  ;;  %v16541_v39 = vpop.permute.xlu0 %8990 }
0x22bc   :  { %19549 = vst [vmem:[#allocation157_spill] sm:$0xff] %v16539_v27  ;;  %8418 = vperm.xlu1 %10670, %v8311_v17   ;;  %8355 = vperm.xlu0 %10671, %v8290_v51   ;;  %v8289_v27 = vsel %vm8241_vm11, %v19347_v10, 12  ;;  %v19554_v51 = vld [vmem:[#allocation145_spill] sm:$0xff]  ;;  %vm8267_vm11 = vcmp.eq.f32.partialorder %v19558_v12, %v8181_v63 }
0x22bd   :  { %vm8244_vm8 = vcmp.eq.f32.partialorder %v19554_v51, %v8137_v40  ;;  %v19562_v12 = vld [vmem:[#allocation17_spill] sm:$0xff] }
0x22be   :  { %v8292_v20 = vsel %vm8244_vm8, %v19513_v52, 12  ;;  %v8145_v63 = vrot.slane %v16220_v61, %v19562_v12  ;;  %v8193_v28 = vrot.slane %v16244_v38, %v19562_v12 }
0x22bf   :  { %v16549_v3 = vpop.permute.xlu1 %8897  ;;  %v16551_v2 = vpop.permute.xlu0 %8924 }
0x22c0   :  { %8352 = vperm.xlu1 %10670, %v8289_v27   ;;  %8427 = vperm.xlu0 %10671, %v8314_v0   ;;  %v19556_v0 = vld [vmem:[#allocation151_spill] sm:$0xff] }
0x22c1   :  { %vm8268_vm10 = vcmp.eq.f32.partialorder %v19556_v0, %v8185_v24  ;;  %v8315_v0 = vsel %vm8267_vm11, %v19347_v10, 12  ;;  %vm8247_vm11 = vcmp.eq.f32.partialorder %v19565_v50, %v8141_v62 }
0x22c2   :  { %v8316_v41 = vsel %vm8268_vm10, %v19513_v52, 12  ;;  %v8295_v38 = vsel %vm8247_vm11, %v19347_v10, 12 }
0x22c3   :  { %v16559_v23 = vpop.permute.xlu1 %8903  ;;  %v16561_v17 = vpop.permute.xlu0 %8996 }
0x22c4   :  { %8424 = vperm.xlu1 %10670, %v8313_v37   ;;  %8361 = vperm.xlu0 %10671, %v8292_v20   ;;  %v19559_v20 = vld [vmem:[#allocation93_spill] sm:$0xff]  ;;  %v9052_v4 = vrot.slane %v16559_v23, %v11445_v8  ;;  %v9043_v23 = vrot.slane %v16549_v3, %v11445_v8  ;;  %v9173_v3 = vrot.slane %v16521_v33, %v11448_v19 }
0x22c5   :  { %vm8246_vm6 = vcmp.eq.f32.partialorder %v19559_v20, %v8141_v62  ;;  %v19568_v62 = vld [vmem:[#allocation144_spill] sm:$0xff] }
0x22c6   :  { %v8294_v45 = vsel %vm8246_vm6, %v19513_v52, 12 }
0x22c7   :  { %v16569_v27 = vpop.permute.xlu1 %8969  ;;  %v16571_v51 = vpop.permute.xlu0 %8930 }
0x22c8   :  { %8358 = vperm.xlu1 %10670, %v8291_v36   ;;  %8433 = vperm.xlu0 %10671, %v8316_v41   ;;  %v19561_v36 = vld [vmem:[#allocation153_spill] sm:$0xff] }
0x22c9   :  { %vm8270_vm8 = vcmp.eq.f32.partialorder %v19561_v36, %v8189_v21 }
0x22ca   :  { %v8318_v16 = vsel %vm8270_vm8, %v19513_v52, 12  ;;  %vm8249_vm8 = vcmp.eq.f32.partialorder %v19568_v62, %v8145_v63 }
0x22cb   :  { %v16579_v18 = vpop.permute.xlu1 %8975  ;;  %v16581_v37 = vpop.permute.xlu0 %8948  ;;  %v8297_v46 = vsel %vm8249_vm8, %v19347_v10, 12 }
0x22cc   :  { %8430 = vperm.xlu1 %10670, %v8315_v0   ;;  %8367 = vperm.xlu0 %10671, %v8294_v45   ;;  %v19564_v45 = vld [vmem:[#allocation156_spill] sm:$0xff]  ;;  %v8317_v0 = vsel %vm8269_vm9, %v19347_v10, 12  ;;  %v9160_v29 = vrot.slane %v16579_v18, %v11445_v8  ;;  %v9151_v18 = vrot.slane %v16569_v27, %v11445_v8 }
0x22cd   :  { %vm8248_vm10 = vcmp.eq.f32.partialorder %v19564_v45, %v8145_v63  ;;  %v19567_v45 = vld [vmem:[#allocation55_spill] sm:$0xff] }
0x22ce   :  { %v8296_v36 = vsel %vm8248_vm10, %v19513_v52, 12  ;;  %vm8271_vm7 = vcmp.eq.f32.partialorder %v19567_v45, %v8189_v21  ;;  %v9165_v15 = vsel %vm1940_vm14, %v9164_v5, %v9160_v29  ;;  %v9083_v5 = vrot.slane %v16551_v2, %v11448_v19 }
0x22cf   :  { %v16589_v41 = vpop.permute.xlu1 %8909  ;;  %v16591_v20 = vpop.permute.xlu0 %8954  ;;  %v8319_v50 = vsel %vm8271_vm7, %v19347_v10, 12 }
0x22d0   :  { %8364 = vperm.xlu1 %10670, %v8293_v48   ;;  %8439 = vperm.xlu0 %10671, %v8318_v16   ;;  %v19566_v16 = vld [vmem:[#allocation158_spill] sm:$0xff] }
0x22d1   :  { %vm8272_vm6 = vcmp.eq.f32.partialorder %v19566_v16, %v8193_v28 }
0x22d2   :  { %v8320_v48 = vsel %vm8272_vm6, %v19513_v52, 12 }
0x22d3   :  { %v16599_v40 = vpop.permute.xlu1 %8981  ;;  %v16601_v61 = vpop.permute.xlu0 %9002 }
0x22d4   :  { %8436 = vperm.xlu1 %10670, %v8317_v0   ;;  %8373 = vperm.xlu0 %10671, %v8296_v36   ;;  %v9169_v42 = vrot.slane %v16599_v40, %v11445_v8 }
0x22d7   :  { %v16607_v34 = vpop.permute.xlu1 %8915  ;;  %v16609_v24 = vpop.permute.xlu0 %9020 }
0x22d8   :  { %8370 = vperm.xlu1 %10670, %v8295_v38   ;;  %8445 = vperm.xlu0 %10671, %v8320_v48   ;;  %v19569_v38 = vld [vmem:[#allocation148_spill] sm:$0xff] }
0x22d9   :  { %vm8273_vm9 = vcmp.eq.f32.partialorder %v19569_v38, %v8193_v28 }
0x22da   :  { %v8321_v45 = vsel %vm8273_vm9, %v19347_v10, 12  ;;  %v9056_v10 = vrot.slane %v16481_v54, %v11448_v19  ;;  %v9155_v54 = vrot.slane %v16491_v6, %v11448_v19  ;;  %v9119_v6 = vrot.slane %v16581_v37, %v11448_v19 }
0x22db   :  { %v16614_v12 = vpop.permute.xlu1 %8987  ;;  %v16616_v0 = vpop.permute.xlu0 %9026 }
0x22dc   :  { %8442 = vperm.xlu1 %10670, %v8319_v50   ;;  %v9057_v27 = vsel %vm1940_vm14, %v9056_v10, %v9052_v4  ;;  %v9178_v40 = vrot.slane %v16614_v12, %v11445_v8  ;;  %v9048_v10 = vsel %vm1940_vm14, %v9047_v55, %v9043_v23  ;;  %v9156_v29 = vsel %vm1940_vm14, %v9155_v54, %v9151_v18 }
0x22dd   :  { %v9174_v4 = vsel %vm1940_vm14, %v9173_v3, %v9169_v42  ;;  %v16712_v12 = vsel %vm2149_vm15, %v9057_v27, %v9048_v10  ;;  %v9061_v55 = vrot.slane %v16589_v41, %v11445_v8  ;;  %v9128_v23 = vrot.slane %v16591_v20, %v11448_v19 }
0x22de   :  { %v9070_v20 = vrot.slane %v16607_v34, %v11445_v8 }
0x22df   :  { %v16620_v36 = vpop.permute.xlu1 %8921  ;;  %v16622_v16 = vpop.permute.xlu0 %8936 }
0x22e0   :  { %8376 = vperm.xlu1 %10670, %v8297_v46  }
0x22e3   :  { %v8994_v48 = vpop.permute.xlu1 %8993  ;;  %v16626_v21 = vpop.permute.xlu0 %8960 }
0x22e4   :  { %8448 = vperm.xlu1 %10670, %v8321_v45   ;;  %v9187_v26 = vrot.slane %v8994_v48, %v11445_v8  ;;  %v9266_v48 = vsel %vm2149_vm15, %v9165_v15, %v9156_v29 }
0x22e5   :  { %v9267_v54 = vsel %vm2151_vm0, %v9174_v4, %v9266_v48 }
0x22e7   :  { %v16629_v53 = vpop.permute.xlu1 %8927  ;;  %v16631_v50 = vpop.permute.xlu0 %9008 }
0x22e8   :  { %v9209_v4 = vrot.slane %v16631_v50, %v11448_v19 }
0x22eb   :  { %v16633_v63 = vpop.permute.xlu1 %8945  ;;  %v16635_v62 = vpop.permute.xlu0 %9032 }
0x22ef   :  { %v16637_v1 = vpop.permute.xlu1 %8951  ;;  %v16639_v14 = vpop.permute.xlu0 %8942 }
0x22f0   :  { %v9124_v42 = vrot.slane %v16637_v1, %v11445_v8  ;;  %v9236_v1 = vrot.slane %v16616_v0, %v11448_v19 }
0x22f2   :  { %v9129_v0 = vsel %vm1940_vm14, %v9128_v23, %v9124_v42 }
0x22f3   :  { %v16641_v46 = vpop.permute.xlu1 %8999  ;;  %v16643_v28 = vpop.permute.xlu0 %8966 }
0x22f4   :  { %v9196_v10 = vrot.slane %v16641_v46, %v11445_v8  ;;  %v9146_v23 = vrot.slane %v16643_v28, %v11448_v19 }
0x22f7   :  { %v16645_v38 = vpop.permute.xlu1 %9017  ;;  %v16647_v11 = vpop.permute.xlu0 %9014 }
0x22fb   :  { %v16649_v45 = vpop.permute.xlu1 %9023  ;;  %v16651_v30 = vpop.permute.xlu0 %9038 }
0x22fc   :  { %v9254_v57 = vrot.slane %v16651_v30, %v11448_v19 }
0x22ff   :  { %v16653_v60 = vpop.permute.xlu1 %8933  ;;  %v16655_v44 = vpop.permute.xlu0 %8379 }
0x2300   :  { %v9097_v30 = vrot.slane %v16653_v60, %v11445_v8 }
0x2303   :  { %v8958_v47 = vpop.permute.xlu1 %8957  ;;  %v16657_v58 = vpop.permute.xlu0 %8385 }
0x2304   :  { %v9133_v37 = vrot.slane %v8958_v47, %v11445_v8  ;;  %v9079_v47 = vrot.slane %v16620_v36, %v11445_v8  ;;  %v9110_v36 = vrot.slane %v16639_v14, %v11448_v19 }
0x2306   :  { %v9084_v60 = vsel %vm1940_vm14, %v9083_v5, %v9079_v47 }
0x2307   :  { %v16669_v22 = vpop.permute.xlu1 %9005  ;;  %v16671_v32 = vpop.permute.xlu0 %8451 }
0x2308   :  { %19570 = vst [vmem:[#allocation140_spill] sm:$0xff] %v16671_v32  ;;  %v9182_v32 = vrot.slane %v16541_v39, %v11448_v19  ;;  %v9191_v39 = vrot.slane %v16561_v17, %v11448_v19  ;;  %v9200_v17 = vrot.slane %v16601_v61, %v11448_v19 }
0x230a   :  { %v9183_v18 = vsel %vm1940_vm14, %v9182_v32, %v9178_v40  ;;  %v9192_v15 = vsel %vm1940_vm14, %v9191_v39, %v9187_v26  ;;  %v9227_v32 = vrot.slane %v16609_v24, %v11448_v19  ;;  %v9115_v40 = vrot.slane %v16633_v63, %v11445_v8 }
0x230b   :  { %v16702_v43 = vpop.permute.xlu1 %9029  ;;  %v16704_v33 = vpop.permute.xlu0 %8457  ;;  %v9268_v61 = vsel %vm2153_vm1, %v9183_v18, %v9267_v54  ;;  %v9137_v26 = vrot.slane %v16626_v21, %v11448_v19  ;;  %v9088_v24 = vrot.slane %v16629_v53, %v11445_v8  ;;  %v8558_v63 = vrot.slane %v16657_v58, %v11445_v8 }
0x230c   :  { %19571 = vst [vmem:[#allocation10_spill] sm:$0xff] %v16704_v33  ;;  %v9269_v29 = vsel %vm2155_vm2, %v9192_v15, %v9268_v61  ;;  %v9205_v21 = vrot.slane %v16669_v22, %v11445_v8  ;;  %v9120_v54 = vsel %vm1940_vm14, %v9119_v6, %v9115_v40  ;;  %v8549_v58 = vrot.slane %v16655_v44, %v11445_v8 }
0x230d   :  { %v9138_v39 = vsel %vm1940_vm14, %v9137_v26, %v9133_v37  ;;  %v9201_v42 = vsel %vm1940_vm14, %v9200_v17, %v9196_v10  ;;  %v9223_v22 = vrot.slane %v16645_v38, %v11445_v8  ;;  %v9232_v15 = vrot.slane %v16649_v45, %v11445_v8 }
0x230e   :  { %v9263_v37 = vsel %vm2149_vm15, %v9129_v0, %v9120_v54  ;;  %v9218_v6 = vrot.slane %v16647_v11, %v11448_v19  ;;  %v8563_v28 = vsel %vm1940_vm14, %v8562_v49, %v8558_v63  ;;  %v9210_v40 = vsel %vm1940_vm14, %v9209_v4, %v9205_v21 }
0x230f   :  { %v16731_v3 = vpop.permute.xlu1 %8939  ;;  %v8392_v27 = vpop.permute.xlu0 %8391  ;;  %v9264_v44 = vsel %vm2151_vm0, %v9138_v39, %v9263_v37  ;;  %v9241_v17 = vrot.slane %v16702_v43, %v11445_v8  ;;  %v19573_v38 = vrot.slane %v16509_v25, %v11448_v19  ;;  %v19574_v49 = vrot.slane %v16467_v59, %v11448_v19 }
0x2310   :  { %v8567_v46 = vrot.slane %v8392_v27, %v11445_v8  ;;  %v9245_v25 = vrot.slane %v16635_v62, %v11448_v19  ;;  %v9237_v4 = vsel %vm1940_vm14, %v9236_v1, %v9232_v15  ;;  %v9270_v21 = vsel %vm2157_vm3, %v9201_v42, %v9269_v29 }
0x2311   :  { %v8554_v10 = vsel %vm1940_vm14, %v19574_v49, %v8549_v58  ;;  %v9271_v54 = vsel %vm2159_vm4, %v9210_v40, %v9270_v21  ;;  %v9228_v62 = vsel %vm1940_vm14, %v9227_v32, %v9223_v22  ;;  %v9092_v32 = vrot.slane %v16571_v51, %v11448_v19 }
0x2312   :  { %v8572_v45 = vsel %vm1940_vm14, %v19573_v38, %v8567_v46  ;;  %v8697_v39 = vsel %vm2149_vm15, %v8563_v28, %v8554_v10  ;;  %v9246_v1 = vsel %vm1940_vm14, %v9245_v25, %v9241_v17  ;;  %v19576_v22 = vrot.slane %v16511_v9, %v11448_v19 }
0x2313   :  { %v8964_v48 = vpop.permute.xlu1 %8963  ;;  %v16760_v18 = vpop.permute.xlu0 %8463  ;;  %v8698_v59 = vsel %vm2151_vm0, %v8572_v45, %v8697_v39  ;;  %v19577_v51 = vrot.slane %v16531_v35, %v11448_v19  ;;  %v9106_v41 = vrot.slane %v16731_v3, %v11445_v8  ;;  %v9101_v35 = vrot.slane %v16622_v16, %v11448_v19 }
0x2314   :  { %19572 = vst [vmem:[#allocation11_spill] sm:$0xff] %v16760_v18  ;;  %v9142_v50 = vrot.slane %v8964_v48, %v11445_v8  ;;  %v9066_v37 = vsel %vm1940_vm14, %v19576_v22, %v9061_v55  ;;  %v9093_v2 = vsel %vm1940_vm14, %v9092_v32, %v9088_v24 }
0x2315   :  { %v9075_v28 = vsel %vm1940_vm14, %v19577_v51, %v9070_v20  ;;  %v9102_v47 = vsel %vm1940_vm14, %v9101_v35, %v9097_v30  ;;  %v9111_v17 = vsel %vm1940_vm14, %v9110_v36, %v9106_v41 }
0x2316   :  { %v9147_v27 = vsel %vm1940_vm14, %v9146_v23, %v9142_v50 }
0x2317   :  { %v9012_v61 = vpop.permute.xlu1 %9011  ;;  %v8398_v26 = vpop.permute.xlu0 %8397  ;;  %v9265_v11 = vsel %vm2153_vm1, %v9147_v27, %v9264_v44  ;;  %v9257_v44 = vsel %vm2151_vm0, %v9066_v37, %v16712_v12 }
0x2318   :  { %v9214_v0 = vrot.slane %v9012_v61, %v11445_v8  ;;  %v8576_v63 = vrot.slane %v8398_v26, %v11445_v8  ;;  %v9283_v43 = vsel %vm1492_vm13, %v9265_v11, -inf  ;;  %v9258_v5 = vsel %vm2153_vm1, %v9075_v28, %v9257_v44 }
0x2319   :  { %9284 = vmax.xlane.f32.xlu0 %v9283_v43  ;;  %v9259_v40 = vsel %vm2155_vm2, %v9084_v60, %v9258_v5 }
0x231a   :  { %v8581_v46 = vsel %vm1940_vm14, %v8580_v56, %v8576_v63  ;;  %v9219_v48 = vsel %vm1940_vm14, %v9218_v6, %v9214_v0  ;;  %v9273_v6 = vsel %vm2149_vm15, %v9237_v4, %v9228_v62  ;;  %v9260_v24 = vsel %vm2157_vm3, %v9093_v2, %v9259_v40 }
0x231b   :  { %v9036_v23 = vpop.permute.xlu1 %9035  ;;  %v16808_v58 = vpop.permute.xlu0 %8334  ;;  %v9272_v29 = vsel %vm2161_vm5, %v9219_v48, %v9271_v54  ;;  %v8699_v50 = vsel %vm2153_vm1, %v8581_v46, %v8698_v59  ;;  %v9274_v55 = vsel %vm2151_vm0, %v9246_v1, %v9273_v6  ;;  %v9261_v14 = vsel %vm2159_vm4, %v9102_v47, %v9260_v24 }
0x231c   :  { %v9250_v56 = vrot.slane %v9036_v23, %v11445_v8  ;;  %v9286_v42 = vsel %vm1488_vm12, %v9272_v29, -inf  ;;  %v16817_v15 = vsel %vm1492_vm13, %v8699_v50, 2147483647  ;;  %v9262_v45 = vsel %vm2161_vm5, %v9111_v17, %v9261_v14 }
0x231d   :  { %19575 = vst [vmem:[#allocation133_spill] sm:$0xff] %v16817_v15  ;;  %9287 = vmax.xlane.f32.xlu0 %v9286_v42  ;;  %v8727_v27 = vshra.s32 %v16817_v15, 16  ;;  %v9280_v11 = vsel %vm1488_vm12, %v9262_v45, -inf  ;;  %v8481_v28 = vrot.slane %v16808_v58, %v11448_v19 }
0x231e   :  { %v9255_v9 = vsel %vm1940_vm14, %v9254_v57, %v9250_v56 }
0x231f   :  { %v8332_v34 = vpop.permute.xlu1 %8331  ;;  %v16851_v20 = vpop.permute.xlu0 %8403  ;;  %v9275_v3 = vsel %vm2153_vm1, %v9255_v9, %v9274_v55  ;;  %v16870_v53 = vcvt.s32.f32 %v8727_v27 }
0x2320   :  { %v9289_v16 = vsel %vm1492_vm13, %v9275_v3, -inf  ;;  %v8477_v22 = vrot.slane %v8332_v34, %v11445_v8 }
0x2321   :  { %9290 = vmax.xlane.f32.xlu1 %v9289_v16  ;;  %19578 = vst [vmem:[#allocation81_spill] sm:$0xff] %v16870_v53 }
0x2322   :  { %v8482_v27 = vsel %vm1940_vm14, %v8481_v28, %v8477_v22  ;;  %v19582_v22 = vld [vmem:[#allocation31_spill] sm:$0xff] }
0x2323   :  { %v8338_v12 = vpop.permute.xlu1 %8337  ;;  %v16868_v38 = vpop.permute.xlu0 %8409 }
0x2324   :  { %v8486_v37 = vrot.slane %v8338_v12, %v11445_v8 }
0x2325   :  { %8730 = vmin.xlane.f32.xlu1 %v16870_v53 }
0x2327   :  { %v8341_v61 = vpop.permute.xlu1 %8340  ;;  %v8344_v26 = vpop.permute.xlu0 %8343 }
0x2328   :  { %v8490_v57 = vrot.slane %v8341_v61, %v11448_v19  ;;  %v8495_v6 = vrot.slane %v8344_v26, %v11445_v8 }
0x2329   :  { %9281 = vmax.xlane.f32.xlu1 %v9280_v11 }
0x232a   :  { %v8491_v41 = vsel %vm1940_vm14, %v8490_v57, %v8486_v37 }
0x232b   :  { %v16877_v49 = vpop.permute.xlu1 %8406  ;;  %v16879_v10 = vpop.permute.xlu0 %8415  ;;  %v8690_v2 = vsel %vm2149_vm15, %v8491_v41, %v8482_v27 }
0x232f   :  { %v16881_v0 = vpop.permute.xlu1 %8412  ;;  %v8350_v63 = vpop.permute.xlu0 %8349 }
0x2330   :  { %v8504_v9 = vrot.slane %v8350_v63, %v11445_v8 }
0x2333   :  { %v8347_v43 = vpop.permute.xlu1 %8346  ;;  %v16883_v25 = vpop.permute.xlu0 %8421 }
0x2334   :  { %v8499_v56 = vrot.slane %v8347_v43, %v11448_v19 }
0x2336   :  { %v8500_v60 = vsel %vm1940_vm14, %v8499_v56, %v8495_v6 }
0x2337   :  { %v16885_v4 = vpop.permute.xlu1 %8418  ;;  %v8356_v39 = vpop.permute.xlu0 %8355  ;;  %v8691_v47 = vsel %vm2151_vm0, %v8500_v60, %v8690_v2  ;;  %v19588_v2 = vld [vmem:[#allocation12_spill] sm:$0xff] }
0x2338   :  { %v8513_v35 = vrot.slane %v8356_v39, %v11445_v8 }
0x233b   :  { %v8353_v21 = vpop.permute.xlu1 %8352  ;;  %v16887_v59 = vpop.permute.xlu0 %8427 }
0x233c   :  { %v8508_v30 = vrot.slane %v8353_v21, %v11448_v19 }
0x233e   :  { %v8509_v44 = vsel %vm1940_vm14, %v8508_v30, %v8504_v9  ;;  %v19584_v9 = vld [vmem:[#allocation58_spill] sm:$0xff] }
0x233f   :  { %v16889_v46 = vpop.permute.xlu1 %8424  ;;  %v8362_v48 = vpop.permute.xlu0 %8361  ;;  %v8692_v17 = vsel %vm2153_vm1, %v8509_v44, %v8691_v47  ;;  %v19586_v44 = vld [vmem:[#allocation26_spill] sm:$0xff] }
0x2340   :  { %v8522_v58 = vrot.slane %v8362_v48, %v11445_v8 }
0x2343   :  { %v8359_v54 = vpop.permute.xlu1 %8358  ;;  %v16891_v62 = vpop.permute.xlu0 %8433 }
0x2344   :  { %v8517_v51 = vrot.slane %v8359_v54, %v11448_v19 }
0x2346   :  { %v8518_v36 = vsel %vm1940_vm14, %v8517_v51, %v8513_v35  ;;  %v19583_v51 = vld [vmem:[#allocation25_spill] sm:$0xff] }
0x2347   :  { %v16893_v1 = vpop.permute.xlu1 %8430  ;;  %v8368_v29 = vpop.permute.xlu0 %8367  ;;  %v8693_v14 = vsel %vm2155_vm2, %v8518_v36, %v8692_v17  ;;  %v19591_v17 = vld [vmem:[#allocation38_spill] sm:$0xff] }
0x2348   :  { %v8531_v16 = vrot.slane %v8368_v29, %v11445_v8  ;;  %v19581_v29 = vld [vmem:[#allocation60_spill] sm:$0xff] }
0x234b   :  { %v8365_v23 = vpop.permute.xlu1 %8364  ;;  %v16899_v42 = vpop.permute.xlu0 %8439 }
0x234c   :  { %v8526_v55 = vrot.slane %v8365_v23, %v11448_v19 }
0x234e   :  { %v8527_v40 = vsel %vm1940_vm14, %v8526_v55, %v8522_v58  ;;  %v19587_v58 = vld [vmem:[#allocation192_spill] sm:$0xff] }
0x234f   :  { %v16895_v50 = vpop.permute.xlu1 %8436  ;;  %v8374_v5 = vpop.permute.xlu0 %8373  ;;  %v8694_v26 = vsel %vm2157_vm3, %v8527_v40, %v8693_v14  ;;  %v19590_v40 = vld [vmem:[#allocation27_spill] sm:$0xff] }
0x2350   :  { %v8540_v45 = vrot.slane %v8374_v5, %v11445_v8 }
0x2353   :  { %v8371_v32 = vpop.permute.xlu1 %8370  ;;  %v16940_v54 = vpop.permute.xlu0 %8445 }
0x2354   :  { %v8535_v34 = vrot.slane %v8371_v32, %v11448_v19 }
0x2356   :  { %v8536_v12 = vsel %vm1940_vm14, %v8535_v34, %v8531_v16  ;;  %v19585_v34 = vld [vmem:[#allocation190_spill] sm:$0xff] }
0x2357   :  { %v16914_v3 = vpop.permute.xlu1 %8442  ;;  %v8695_v11 = vsel %vm2159_vm4, %v8536_v12, %v8694_v26  ;;  %v19589_v16 = vld [vmem:[#allocation30_spill] sm:$0xff]  ;;  %v19594_v26 = vld [vmem:[#allocation13_spill] sm:$0xff] }
0x235b   :  { %v8377_v24 = vpop.permute.xlu1 %8376 }
0x235c   :  { %v8544_v61 = vrot.slane %v8377_v24, %v11448_v19 }
0x235e   :  { %v8545_v63 = vsel %vm1940_vm14, %v8544_v61, %v8540_v45  ;;  %v19592_v45 = vld [vmem:[#allocation183_spill] sm:$0xff]  ;;  %v19593_v61 = vld [vmem:[#allocation149_spill] sm:$0xff] }
0x235f   :  { %v8696_v43 = vsel %vm2161_vm5, %v8545_v63, %v8695_v11  ;;  %v16949_v30 = vpop.permute.xlu1 %8448 }
0x2360   :  { %v16934_v39 = vsel %vm1488_vm12, %v8696_v43, 2147483647 }
0x2361   :  { %19579 = vst [vmem:[#allocation86_spill] sm:$0xff] %v16934_v39  ;;  %v8712_v21 = vshra.s32 %v16934_v39, 16 }
0x2363   :  { %v16937_v48 = vcvt.s32.f32 %v8712_v21 }
0x2365   :  { %19580 = vst [vmem:[#allocation87_spill] sm:$0xff] %v16937_v48  ;;  %8715 = vmin.xlane.f32.xlu0 %v16937_v48 }
0x23a2   :  { %v9285_v23 = vpop.xlane.xlu0 %9284 }
0x23a3   :  { %v9979_v57 = vadd.f32 %v19581_v29, %v9285_v23  ;;  %v9331_v56 = vrot.slane %v9285_v23, %v19339_v31  ;;  %v9335_v32 = vrot.slane %v9285_v23, %v19344_v13  ;;  %v9339_v36 = vrot.slane %v9285_v23, %v19588_v2  ;;  %v19596_v29 = vld [vmem:[#allocation184_spill] sm:$0xff] }
0x23a4   :  { %v9343_v11 = vrot.slane %v9285_v23, %v19594_v26 }
0x23a5   :  { %v16946_v37 = vadd.f32 %v19582_v22, %v9979_v57  ;;  %vm9432_vm10 = vcmp.eq.f32.partialorder %v16358_v7, %v9331_v56  ;;  %vm9434_vm11 = vcmp.eq.f32.partialorder %v19583_v51, %v9335_v32  ;;  %vm9433_vm7 = vcmp.eq.f32.partialorder %v19586_v44, %v9331_v56  ;;  %v19597_v57 = vld [vmem:[#allocation46_spill] sm:$0xff]  ;;  %v19599_v51 = vld [vmem:[#allocation115_spill] sm:$0xff] }
0x23a6   :  { %v9480_v6 = vsel %vm9432_vm10, %v19513_v52, 12  ;;  %v9482_v41 = vsel %vm9434_vm11, %v19513_v52, 12  ;;  %v9481_v5 = vsel %vm9433_vm7, %v19589_v16, 12  ;;  %vm9435_vm9 = vcmp.eq.f32.partialorder %v19590_v40, %v9335_v32  ;;  %v19603_v44 = vld [vmem:[#allocation62_spill] sm:$0xff] }
0x23a7   :  { %10008 = vperm.xlu0 %10671, %v16946_v37   ;;  %9561 = vperm.xlu1 %10670, %v9480_v6   ;;  %vm9436_vm10 = vcmp.eq.f32.partialorder %v19591_v17, %v9339_v36  ;;  %v9483_v24 = vsel %vm9435_vm9, %v19589_v16, 12  ;;  %v19598_v6 = vld [vmem:[#allocation28_spill] sm:$0xff] }
0x23a8   :  { %v9484_v14 = vsel %vm9436_vm10, %v19513_v52, 12  ;;  %vm9437_vm9 = vcmp.eq.f32.partialorder %v19598_v6, %v9339_v36  ;;  %v19610_v6 = vld [vmem:[#allocation57_spill] sm:$0xff] }
0x23aa   :  { %v9291_v28 = vpop.xlane.xlu1 %9290 }
0x23ab   :  { %9567 = vperm.xlu1 %10670, %v9482_v41   ;;  %v9981_v55 = vadd.f32 %v19584_v9, %v9291_v28  ;;  %v9379_v60 = vrot.slane %v9291_v28, %v19339_v31  ;;  %v9383_v35 = vrot.slane %v9291_v28, %v19344_v13  ;;  %v9387_v12 = vrot.slane %v9291_v28, %v19588_v2  ;;  %v19600_v41 = vld [vmem:[#allocation56_spill] sm:$0xff] }
0x23ac   :  { %v9391_v56 = vrot.slane %v9291_v28, %v19594_v26 }
0x23ad   :  { %v16959_v7 = vadd.f32 %v19582_v22, %v9981_v55  ;;  %vm9456_vm6 = vcmp.eq.f32.partialorder %v19585_v34, %v9379_v60  ;;  %vm9458_vm8 = vcmp.eq.f32.partialorder %v19587_v58, %v9383_v35  ;;  %vm9457_vm11 = vcmp.eq.f32.partialorder %v19592_v45, %v9379_v60  ;;  %v16992_v55 = vpop.xlane.xlu0 %9287  ;;  %v19602_v34 = vld [vmem:[#allocation45_spill] sm:$0xff] }
0x23ae   :  { %v9504_v27 = vsel %vm9456_vm6, %v19513_v52, 12  ;;  %v9506_v47 = vsel %vm9458_vm8, %v19513_v52, 12  ;;  %vm9460_vm6 = vcmp.eq.f32.partialorder %v19593_v61, %v9387_v12  ;;  %v16977_v63 = vpop.xlane.xlu1 %8730  ;;  %v9505_v43 = vsel %vm9457_vm11, %v19589_v16, 12 }
0x23af   :  { %10014 = vperm.xlu0 %10671, %v16959_v7   ;;  %9633 = vperm.xlu1 %10670, %v9504_v27   ;;  %19595 = vst [vmem:[#allocation72_spill] sm:$0xff] %v16977_v63  ;;  %v9508_v21 = vsel %vm9460_vm6, %v19513_v52, 12  ;;  %vm9459_vm7 = vcmp.eq.f32.partialorder %v19596_v29, %v9383_v35  ;;  %vm9438_vm8 = vcmp.eq.f32.partialorder %v19597_v57, %v9343_v11  ;;  %v9485_v60 = vsel %vm9437_vm9, %v19589_v16, 12  ;;  %v19601_v35 = vld [vmem:[#allocation188_spill] sm:$0xff]  ;;  %v19609_v29 = vld [vmem:[#allocation14_spill] sm:$0xff] }
0x23b0   :  { %v9507_v22 = vsel %vm9459_vm7, %v19589_v16, 12  ;;  %v9486_v23 = vsel %vm9438_vm8, %v19513_v52, 12  ;;  %vm9462_vm10 = vcmp.eq.f32.partialorder %v19599_v51, %v9391_v56  ;;  %vm9461_vm11 = vcmp.eq.f32.partialorder %v19601_v35, %v9387_v12  ;;  %v19611_v51 = vld [vmem:[#allocation36_spill] sm:$0xff]  ;;  %v19613_v35 = vld [vmem:[#allocation186_spill] sm:$0xff] }
0x23b1   :  { %v9510_v28 = vsel %vm9462_vm10, %v19513_v52, 12  ;;  %v9980_v58 = vadd.f32 %v19603_v44, %v16992_v55  ;;  %v9509_v36 = vsel %vm9461_vm11, %v19589_v16, 12  ;;  %v17015_v12 = vrot.slane %v16992_v55, %v19594_v26 }
0x23b2   :  { %v16984_v32 = vpop.xlane.xlu1 %9281 }
0x23b3   :  { %9564 = vperm.xlu0 %10671, %v9481_v5   ;;  %9639 = vperm.xlu1 %10670, %v9506_v47   ;;  %v9978_v9 = vadd.f32 %v19600_v41, %v16984_v32  ;;  %v19604_v5 = vld [vmem:[#allocation41_spill] sm:$0xff]  ;;  %v17007_v47 = vrot.slane %v16984_v32, %v19588_v2  ;;  %v17010_v40 = vadd.f32 %v19602_v34, %v9980_v58 }
0x23b4   :  { %vm9439_vm6 = vcmp.eq.f32.partialorder %v19604_v5, %v9343_v11  ;;  %v9299_v45 = vrot.slane %v16984_v32, %v19339_v31  ;;  %v17030_v57 = vrot.slane %v16984_v32, %v19609_v29  ;;  %v9303_v41 = vrot.slane %v16984_v32, %v19344_v13 }
0x23b5   :  { %v16998_v27 = vadd.f32 %v19602_v34, %v9978_v9  ;;  %v9487_v17 = vsel %vm9439_vm6, %v19589_v16, 12  ;;  %v19614_v34 = vld [vmem:[#allocation15_spill] sm:$0xff] }
0x23b6   :  { %vm9417_vm11 = vcmp.eq.f32.partialorder %v19610_v6, %v9299_v45  ;;  %vm9424_vm6 = vcmp.eq.f32.partialorder %v19611_v51, %v17030_v57  ;;  %v17050_v44 = vrot.slane %v16984_v32, %v19614_v34  ;;  %v17056_v5 = vrot.slane %v16992_v55, %v19614_v34 }
0x23b7   :  { %9570 = vperm.xlu0 %10671, %v9483_v24   ;;  %9573 = vperm.xlu1 %10670, %v9484_v14   ;;  %v19605_v24 = vld [vmem:[#allocation191_spill] sm:$0xff]  ;;  %v19606_v14 = vld [vmem:[#allocation178_spill] sm:$0xff]  ;;  %v9465_v9 = vsel %vm9417_vm11, %v19589_v16, 12 }
0x23b8   :  { %vm9463_vm7 = vcmp.eq.f32.partialorder %v19605_v24, %v9391_v56  ;;  %vm9421_vm8 = vcmp.eq.f32.partialorder %v19606_v14, %v17007_v47  ;;  %v19616_v24 = vld [vmem:[#allocation37_spill] sm:$0xff]  ;;  %v9347_v14 = vrot.slane %v16992_v55, %v19339_v31 }
0x23b9   :  { %v9511_v61 = vsel %vm9463_vm7, %v19589_v16, 12  ;;  %v9469_v11 = vsel %vm9421_vm8, %v19589_v16, 12 }
0x23bb   :  { %9636 = vperm.xlu0 %10671, %v9505_v43   ;;  %9645 = vperm.xlu1 %10670, %v9508_v21   ;;  %v19607_v43 = vld [vmem:[#allocation22_spill] sm:$0xff]  ;;  %v19608_v21 = vld [vmem:[#allocation185_spill] sm:$0xff] }
0x23bc   :  { %vm9416_vm9 = vcmp.eq.f32.partialorder %v19607_v43, %v9299_v45  ;;  %vm9446_vm10 = vcmp.eq.f32.partialorder %v19608_v21, %v17015_v12  ;;  %v19618_v43 = vld [vmem:[#allocation23_spill] sm:$0xff]  ;;  %v19619_v21 = vld [vmem:[#allocation16_spill] sm:$0xff] }
0x23bd   :  { %v9464_v56 = vsel %vm9416_vm9, %v19513_v52, 12  ;;  %v17076_v51 = vrot.slane %v16992_v55, %v19619_v21 }
0x23bf   :  { %9642 = vperm.xlu0 %10671, %v9507_v22   ;;  %9579 = vperm.xlu1 %10670, %v9486_v23   ;;  %v9494_v22 = vsel %vm9446_vm10, %v19513_v52, 12  ;;  %v17036_v23 = vrot.slane %v16992_v55, %v19609_v29  ;;  %vm9426_vm10 = vcmp.eq.f32.partialorder %v19616_v24, %v17050_v44 }
0x23c1   :  { %vm9448_vm8 = vcmp.eq.f32.partialorder %v19613_v35, %v17036_v23 }
0x23c3   :  { %9576 = vperm.xlu0 %10671, %v9485_v60   ;;  %9651 = vperm.xlu1 %10670, %v9510_v28   ;;  %v9472_v60 = vsel %vm9424_vm6, %v19513_v52, 12  ;;  %v19612_v28 = vld [vmem:[#allocation59_spill] sm:$0xff]  ;;  %vm9440_vm6 = vcmp.eq.f32.partialorder %v19618_v43, %v9347_v14 }
0x23c4   :  { %vm9418_vm7 = vcmp.eq.f32.partialorder %v19612_v28, %v9303_v41  ;;  %v9488_v6 = vsel %vm9440_vm6, %v19513_v52, 12 }
0x23c5   :  { %v9466_v58 = vsel %vm9418_vm7, %v19513_v52, 12 }
0x23c7   :  { %9648 = vperm.xlu0 %10671, %v9509_v36   ;;  %10005 = vperm.xlu1 %10670, %v16998_v27   ;;  %v9496_v36 = vsel %vm9448_vm8, %v19513_v52, 12 }
0x23cb   :  { %9582 = vperm.xlu0 %10671, %v9487_v17   ;;  %10011 = vperm.xlu1 %10670, %v17010_v40   ;;  %v19615_v17 = vld [vmem:[#allocation176_spill] sm:$0xff] }
0x23cc   :  { %vm9419_vm9 = vcmp.eq.f32.partialorder %v19615_v17, %v9303_v41  ;;  %v19620_v41 = vld [vmem:[#allocation147_spill] sm:$0xff]  ;;  %v19624_v17 = vld [vmem:[#allocation17_spill] sm:$0xff] }
0x23cd   :  { %v9467_v45 = vsel %vm9419_vm9, %v19589_v16, 12  ;;  %v9327_v24 = vrot.slane %v16984_v32, %v19624_v17  ;;  %v9375_v43 = vrot.slane %v16992_v55, %v19624_v17 }
0x23cf   :  { %9654 = vperm.xlu0 %10671, %v9511_v61   ;;  %9528 = vperm.xlu1 %10670, %v9469_v11   ;;  %v9474_v61 = vsel %vm9426_vm10, %v19513_v52, 12  ;;  %v19617_v11 = vld [vmem:[#allocation29_spill] sm:$0xff] }
0x23d0   :  { %vm9450_vm11 = vcmp.eq.f32.partialorder %v19617_v11, %v17056_v5  ;;  %v19626_v11 = vld [vmem:[#allocation177_spill] sm:$0xff] }
0x23d3   :  { %9513 = vperm.xlu0 %10671, %v9464_v56   ;;  %9603 = vperm.xlu1 %10670, %v9494_v22   ;;  %v17070_v56 = vrot.slane %v16984_v32, %v19619_v21  ;;  %v9498_v22 = vsel %vm9450_vm11, %v19513_v52, 12 }
0x23d5   :  { %vm9428_vm7 = vcmp.eq.f32.partialorder %v19620_v41, %v17070_v56  ;;  %v19627_v41 = vld [vmem:[#allocation71_spill] sm:$0xff] }
0x23d6   :  { %v9476_v28 = vsel %vm9428_vm7, %v19513_v52, 12  ;;  %vm9454_vm7 = vcmp.eq.f32.partialorder %v19627_v41, %v9375_v43 }
0x23d7   :  { %9516 = vperm.xlu0 %10671, %v9465_v9   ;;  %9537 = vperm.xlu1 %10670, %v9472_v60   ;;  %v19621_v9 = vld [vmem:[#allocation54_spill] sm:$0xff]  ;;  %v9351_v60 = vrot.slane %v16992_v55, %v19344_v13 }
0x23d8   :  { %vm9441_vm8 = vcmp.eq.f32.partialorder %v19621_v9, %v9347_v14  ;;  %v19628_v9 = vld [vmem:[#allocation34_spill] sm:$0xff] }
0x23d9   :  { %v9489_v35 = vsel %vm9441_vm8, %v19589_v16, 12  ;;  %vm9443_vm6 = vcmp.eq.f32.partialorder %v19626_v11, %v9351_v60  ;;  %vm9420_vm8 = vcmp.eq.f32.partialorder %v19628_v9, %v17007_v47  ;;  %v19632_v11 = vld [vmem:[#allocation21_spill] sm:$0xff] }
0x23db   :  { %9519 = vperm.xlu0 %10671, %v9466_v58   ;;  %9609 = vperm.xlu1 %10670, %v9496_v36   ;;  %v19622_v58 = vld [vmem:[#allocation44_spill] sm:$0xff] }
0x23dc   :  { %vm9452_vm9 = vcmp.eq.f32.partialorder %v19622_v58, %v17076_v51  ;;  %v19623_v36 = vld [vmem:[#allocation180_spill] sm:$0xff]  ;;  %v19629_v58 = vld [vmem:[#allocation182_spill] sm:$0xff] }
0x23dd   :  { %vm9442_vm10 = vcmp.eq.f32.partialorder %v19623_v36, %v9351_v60  ;;  %v9468_v60 = vsel %vm9420_vm8, %v19513_v52, 12 }
0x23de   :  { %v9490_v14 = vsel %vm9442_vm10, %v19513_v52, 12 }
0x23df   :  { %9522 = vperm.xlu0 %10671, %v9467_v45   ;;  %9543 = vperm.xlu1 %10670, %v9474_v61   ;;  %v9500_v45 = vsel %vm9452_vm9, %v19513_v52, 12  ;;  %v19625_v61 = vld [vmem:[#allocation42_spill] sm:$0xff] }
0x23e0   :  { %vm9430_vm11 = vcmp.eq.f32.partialorder %v19625_v61, %v9327_v24 }
0x23e3   :  { %9615 = vperm.xlu1 %10670, %v9498_v22   ;;  %9585 = vperm.xlu0 %10671, %v9488_v6   ;;  %v9478_v22 = vsel %vm9430_vm11, %v19513_v52, 12  ;;  %v9491_v6 = vsel %vm9443_vm6, %v19589_v16, 12 }
0x23e7   :  { %9549 = vperm.xlu1 %10670, %v9476_v28   ;;  %9588 = vperm.xlu0 %10671, %v9489_v35   ;;  %v9355_v28 = vrot.slane %v16992_v55, %v19588_v2  ;;  %v9502_v35 = vsel %vm9454_vm7, %v19513_v52, 12  ;;  %v19631_v55 = vld [vmem:[#allocation35_spill] sm:$0xff] }
0x23e9   :  { %vm9444_vm9 = vcmp.eq.f32.partialorder %v19629_v58, %v9355_v28  ;;  %v19637_v58 = vld [vmem:[#allocation181_spill] sm:$0xff] }
0x23ea   :  { %v9492_v36 = vsel %vm9444_vm9, %v19513_v52, 12 }
0x23eb   :  { %9621 = vperm.xlu1 %10670, %v9500_v45   ;;  %9591 = vperm.xlu0 %10671, %v9490_v14   ;;  %v19630_v45 = vld [vmem:[#allocation179_spill] sm:$0xff]  ;;  %v9311_v14 = vrot.slane %v16984_v32, %v19594_v26  ;;  %v19634_v32 = vld [vmem:[#allocation52_spill] sm:$0xff] }
0x23ec   :  { %vm9445_vm10 = vcmp.eq.f32.partialorder %v19630_v45, %v9355_v28  ;;  %vm9425_vm8 = vcmp.eq.f32.partialorder %v19634_v32, %v17030_v57  ;;  %v19635_v28 = vld [vmem:[#allocation32_spill] sm:$0xff]  ;;  %v19639_v45 = vld [vmem:[#allocation187_spill] sm:$0xff] }
0x23ed   :  { %v9493_v47 = vsel %vm9445_vm10, %v19589_v16, 12  ;;  %vm9422_vm11 = vcmp.eq.f32.partialorder %v19631_v55, %v9311_v14  ;;  %vm9423_vm6 = vcmp.eq.f32.partialorder %v19632_v11, %v9311_v14  ;;  %v9473_v9 = vsel %vm9425_vm8, %v19589_v16, 12  ;;  %v19640_v14 = vld [vmem:[#allocation40_spill] sm:$0xff] }
0x23ee   :  { %v9470_v61 = vsel %vm9422_vm11, %v19513_v52, 12  ;;  %vm9449_vm9 = vcmp.eq.f32.partialorder %v19635_v28, %v17036_v23  ;;  %vm9451_vm11 = vcmp.eq.f32.partialorder %v19637_v58, %v17056_v5  ;;  %vm9431_vm8 = vcmp.eq.f32.partialorder %v19640_v14, %v9327_v24 }
0x23ef   :  { %9555 = vperm.xlu1 %10670, %v9478_v22   ;;  %9594 = vperm.xlu0 %10671, %v9491_v6   ;;  %v9471_v22 = vsel %vm9423_vm6, %v19589_v16, 12  ;;  %v19633_v6 = vld [vmem:[#allocation150_spill] sm:$0xff]  ;;  %v9499_v57 = vsel %vm9451_vm11, %v19589_v16, 12  ;;  %v9479_v55 = vsel %vm9431_vm8, %v19589_v16, 12  ;;  %vm10359_vm11 = vcmask 1024  }
0x23f0   :  { %vm9447_vm7 = vcmp.eq.f32.partialorder %v19633_v6, %v17015_v12 }
0x23f1   :  { %v9495_v41 = vsel %vm9447_vm7, %v19589_v16, 12  ;;  %vm9453_vm7 = vcmp.eq.f32.partialorder %v19639_v45, %v17076_v51 }
0x23f3   :  { %9627 = vperm.xlu1 %10670, %v9502_v35   ;;  %9525 = vperm.xlu0 %10671, %v9468_v60   ;;  %v9497_v35 = vsel %vm9449_vm9, %v19589_v16, 12  ;;  %v19636_v60 = vld [vmem:[#allocation33_spill] sm:$0xff] }
0x23f4   :  { %vm9427_vm10 = vcmp.eq.f32.partialorder %v19636_v60, %v17050_v44  ;;  %v9501_v44 = vsel %vm9453_vm7, %v19589_v16, 12 }
0x23f5   :  { %v9475_v12 = vsel %vm9427_vm10, %v19589_v16, 12  ;;  %vm10036_vm10 = vcmask 91136  }
0x23f7   :  { %9597 = vperm.xlu0 %10671, %v9492_v36   ;;  %v19638_v36 = vld [vmem:[#allocation24_spill] sm:$0xff] }
0x23f8   :  { %vm9429_vm6 = vcmp.eq.f32.partialorder %v19638_v36, %v17070_v56 }
0x23f9   :  { %v9477_v23 = vsel %vm9429_vm6, %v19589_v16, 12 }
0x23fb   :  { %9600 = vperm.xlu0 %10671, %v9493_v47   ;;  %v17137_v47 = vpop.xlane.xlu0 %8715 }
0x23fc   :  { %19641 = vst [vmem:[#allocation106_spill] sm:$0xff] %v17137_v47 }
0x23ff   :  { %9531 = vperm.xlu0 %10671, %v9470_v61   ;;  %v19642_v61 = vld [vmem:[#allocation189_spill] sm:$0xff] }
0x2400   :  { %vm9455_vm9 = vcmp.eq.f32.partialorder %v19642_v61, %v9375_v43 }
0x2403   :  { %9534 = vperm.xlu0 %10671, %v9471_v22   ;;  %v9503_v22 = vsel %vm9455_vm9, %v19589_v16, 12 }
0x2407   :  { %9606 = vperm.xlu0 %10671, %v9495_v41  }
0x240b   :  { %9540 = vperm.xlu0 %10671, %v9473_v9  }
0x240f   :  { %9612 = vperm.xlu0 %10671, %v9497_v35  }
0x2413   :  { %9546 = vperm.xlu0 %10671, %v9475_v12  }
0x2417   :  { %9618 = vperm.xlu0 %10671, %v9499_v57  }
0x241b   :  { %9552 = vperm.xlu0 %10671, %v9477_v23  }
0x241f   :  { %9624 = vperm.xlu0 %10671, %v9501_v44  }
0x2422   :  { %v9562_v5 = vpop.permute.xlu1 %9561  ;;  %v10009_v56 = vpop.permute.xlu0 %10008 }
0x2423   :  { %9558 = vperm.xlu0 %10671, %v9479_v55   ;;  %v9731_v55 = vrot.slane %v9562_v5, %v11445_v8  ;;  %v10023_v53 = vrot.slane %v10009_v56, %v11448_v19 }
0x2426   :  { %v9568_v11 = vpop.permute.xlu1 %9567 }
0x2427   :  { %9630 = vperm.xlu0 %10671, %v9503_v22   ;;  %v9740_v44 = vrot.slane %v9568_v11, %v11445_v8 }
0x242a   :  { %v9634_v6 = vpop.permute.xlu1 %9633  ;;  %v10015_v51 = vpop.permute.xlu0 %10014 }
0x242b   :  { %v10032_v63 = vrot.slane %v10015_v51, %v11448_v19 }
0x242e   :  { %v9640_v41 = vpop.permute.xlu1 %9639  ;;  %v9565_v32 = vpop.permute.xlu0 %9564 }
0x242f   :  { %v9735_v14 = vrot.slane %v9565_v32, %v11448_v19  ;;  %v9848_v15 = vrot.slane %v9640_v41, %v11445_v8 }
0x2432   :  { %v9574_v9 = vpop.permute.xlu1 %9573  ;;  %v9571_v28 = vpop.permute.xlu0 %9570 }
0x2433   :  { %v9744_v36 = vrot.slane %v9571_v28, %v11448_v19  ;;  %v9749_v61 = vrot.slane %v9574_v9, %v11445_v8 }
0x2435   :  { %v9745_v28 = vsel %vm1940_vm14, %v9744_v36, %v9740_v44 }
0x2436   :  { %v9646_v24 = vpop.permute.xlu1 %9645  ;;  %v9637_v35 = vpop.permute.xlu0 %9636 }
0x2437   :  { %v9843_v11 = vrot.slane %v9637_v35, %v11448_v19  ;;  %v9857_v35 = vrot.slane %v9646_v24, %v11445_v8 }
0x243a   :  { %v9580_v60 = vpop.permute.xlu1 %9579  ;;  %v9643_v12 = vpop.permute.xlu0 %9642 }
0x243b   :  { %v9852_v22 = vrot.slane %v9643_v12, %v11448_v19  ;;  %v9736_v12 = vsel %vm1940_vm14, %v9735_v14, %v9731_v55  ;;  %v9758_v56 = vrot.slane %v9580_v60, %v11445_v8 }
0x243c   :  { %v9879_v41 = vsel %vm2149_vm15, %v9745_v28, %v9736_v12 }
0x243e   :  { %v9652_v58 = vpop.permute.xlu1 %9651  ;;  %v9577_v57 = vpop.permute.xlu0 %9576 }
0x243f   :  { %v9753_v43 = vrot.slane %v9577_v57, %v11448_v19  ;;  %v9866_v24 = vrot.slane %v9652_v58, %v11445_v8 }
0x2441   :  { %v9754_v32 = vsel %vm1940_vm14, %v9753_v43, %v9749_v61  ;;  %v9853_v43 = vsel %vm1940_vm14, %v9852_v22, %v9848_v15 }
0x2442   :  { %v10006_v23 = vpop.permute.xlu1 %10005  ;;  %v9649_v45 = vpop.permute.xlu0 %9648 }
0x2443   :  { %v10019_v57 = vrot.slane %v10006_v23, %v11445_v8  ;;  %v9861_v5 = vrot.slane %v9649_v45, %v11448_v19  ;;  %v9839_v23 = vrot.slane %v9634_v6, %v11445_v8  ;;  %v9880_v45 = vsel %vm2151_vm0, %v9754_v32, %v9879_v41 }
0x2445   :  { %v10024_v14 = vsel %vm1940_vm14, %v10023_v53, %v10019_v57  ;;  %v9844_v55 = vsel %vm1940_vm14, %v9843_v11, %v9839_v23 }
0x2446   :  { %v10012_v9 = vpop.permute.xlu1 %10011  ;;  %v9583_v48 = vpop.permute.xlu0 %9582  ;;  %v9889_v53 = vsel %vm2149_vm15, %v9853_v43, %v9844_v55 }
0x2447   :  { %v10028_v51 = vrot.slane %v10012_v9, %v11445_v8  ;;  %v9762_v36 = vrot.slane %v9583_v48, %v11448_v19  ;;  %v9862_v48 = vsel %vm1940_vm14, %v9861_v5, %v9857_v35 }
0x2448   :  { %v9890_v57 = vsel %vm2151_vm0, %v9862_v48, %v9889_v53 }
0x2449   :  { %v9763_v44 = vsel %vm1940_vm14, %v9762_v36, %v9758_v56  ;;  %v10033_v60 = vsel %vm1940_vm14, %v10032_v63, %v10028_v51 }
0x244a   :  { %v9655_v61 = vpop.permute.xlu0 %9654  ;;  %v10034_v6 = vsel %vm2149_vm15, %v10033_v60, %v10024_v14  ;;  %v9881_v28 = vsel %vm2153_vm1, %v9763_v44, %v9880_v45  ;;  %v9529_v44 = vpop.permute.xlu1 %9528 }
0x244b   :  { %v9870_v15 = vrot.slane %v9655_v61, %v11448_v19  ;;  %v10037_v22 = vsel %vm10036_vm10, %v10034_v6, -inf  ;;  %v17177_v32 = vsel %vm1492_vm13, %v9881_v28, 2147483647  ;;  %v9681_v34 = vrot.slane %v9529_v44, %v11448_v19 }
0x244c   :  { %19643 = vst [vmem:[#allocation68_spill] sm:$0xff] %v17177_v32  ;;  %10038 = vmax.xlane.f32.xlu1 %v10037_v22  ;;  %v9909_v63 = vshra.s32 %v17177_v32, 16 }
0x244d   :  { %v9871_v11 = vsel %vm1940_vm14, %v9870_v15, %v9866_v24 }
0x244e   :  { %v9514_v5 = vpop.permute.xlu0 %9513  ;;  %v17183_v9 = vcvt.s32.f32 %v9909_v63  ;;  %v9891_v58 = vsel %vm2153_vm1, %v9871_v11, %v9890_v57  ;;  %v17194_v55 = vpop.permute.xlu1 %9603 }
0x244f   :  { %v17187_v12 = vsel %vm1492_vm13, %v9891_v58, 2147483647  ;;  %v9659_v21 = vrot.slane %v9514_v5, %v11445_v8  ;;  %v9794_v33 = vrot.slane %v17194_v55, %v11445_v8 }
0x2450   :  { %19644 = vst [vmem:[#allocation100_spill] sm:$0xff] %v17183_v9  ;;  %9912 = vmin.xlane.f32.xlu0 %v17183_v9  ;;  %v9939_v56 = vshra.s32 %v17187_v12, 16 }
0x2452   :  { %v9517_v51 = vpop.permute.xlu0 %9516  ;;  %v17191_v36 = vcvt.s32.f32 %v9939_v56  ;;  %v9538_v61 = vpop.permute.xlu1 %9537 }
0x2453   :  { %v9663_v9 = vrot.slane %v9517_v51, %v11448_v19 }
0x2454   :  { %9942 = vmin.xlane.f32.xlu1 %v17191_v36 }
0x2455   :  { %v9664_v2 = vsel %vm1940_vm14, %v9663_v9, %v9659_v21 }
0x2456   :  { %v9520_v23 = vpop.permute.xlu0 %9519  ;;  %v17196_v24 = vpop.permute.xlu1 %9609 }
0x2457   :  { %v9668_v32 = vrot.slane %v9520_v23, %v11445_v8  ;;  %v9803_v51 = vrot.slane %v17196_v24, %v11445_v8 }
0x245a   :  { %v9523_v41 = vpop.permute.xlu0 %9522  ;;  %v9544_v22 = vpop.permute.xlu1 %9543 }
0x245b   :  { %v9672_v47 = vrot.slane %v9523_v41, %v11448_v19  ;;  %v9695_v41 = vrot.slane %v9538_v61, %v11445_v8  ;;  %v9704_v5 = vrot.slane %v9544_v22, %v11445_v8 }
0x245d   :  { %v9673_v18 = vsel %vm1940_vm14, %v9672_v47, %v9668_v32 }
0x245e   :  { %v9586_v35 = vpop.permute.xlu0 %9585  ;;  %v9616_v57 = vpop.permute.xlu1 %9615  ;;  %v9872_v47 = vsel %vm2149_vm15, %v9673_v18, %v9664_v2 }
0x245f   :  { %v9767_v9 = vrot.slane %v9586_v35, %v11445_v8 }
0x2462   :  { %v9589_v43 = vpop.permute.xlu0 %9588  ;;  %v9550_v58 = vpop.permute.xlu1 %9549 }
0x2463   :  { %v9771_v32 = vrot.slane %v9589_v43, %v11448_v19  ;;  %v9713_v43 = vrot.slane %v9550_v58, %v11445_v8 }
0x2466   :  { %v9592_v45 = vpop.permute.xlu0 %9591  ;;  %v9622_v17 = vpop.permute.xlu1 %9621 }
0x246a   :  { %v9595_v14 = vpop.permute.xlu0 %9594  ;;  %v9556_v24 = vpop.permute.xlu1 %9555 }
0x246b   :  { %v9780_v55 = vrot.slane %v9595_v14, %v11448_v19 }
0x246e   :  { %v9526_v60 = vpop.permute.xlu0 %9525 }
0x246f   :  { %v9677_v29 = vrot.slane %v9526_v60, %v11445_v8  ;;  %v9812_v60 = vrot.slane %v9616_v57, %v11445_v8  ;;  %v9772_v57 = vsel %vm1940_vm14, %v9771_v32, %v9767_v9 }
0x2472   :  { %v9598_v48 = vpop.permute.xlu0 %9597 }
0x2473   :  { %v9785_v35 = vrot.slane %v9598_v48, %v11445_v8 }
0x2476   :  { %v9601_v6 = vpop.permute.xlu0 %9600 }
0x2477   :  { %v9789_v22 = vrot.slane %v9601_v6, %v11448_v19 }
0x2479   :  { %v9790_v58 = vsel %vm1940_vm14, %v9789_v22, %v9785_v35 }
0x247a   :  { %v9532_v28 = vpop.permute.xlu0 %9531 }
0x247b   :  { %v9686_v61 = vrot.slane %v9532_v28, %v11445_v8 }
0x247e   :  { %v9535_v15 = vpop.permute.xlu0 %9534 }
0x247f   :  { %v9690_v23 = vrot.slane %v9535_v15, %v11448_v19  ;;  %v9682_v15 = vsel %vm1940_vm14, %v9681_v34, %v9677_v29 }
0x2481   :  { %v9691_v14 = vsel %vm1940_vm14, %v9690_v23, %v9686_v61 }
0x2482   :  { %v9607_v53 = vpop.permute.xlu0 %9606 }
0x2483   :  { %v9798_v28 = vrot.slane %v9607_v53, %v11448_v19 }
0x2486   :  { %v9541_v63 = vpop.permute.xlu0 %9540 }
0x2487   :  { %v9699_v44 = vrot.slane %v9541_v63, %v11448_v19  ;;  %v9776_v63 = vrot.slane %v9592_v45, %v11445_v8 }
0x2489   :  { %v9781_v34 = vsel %vm1940_vm14, %v9780_v55, %v9776_v63  ;;  %v9628_v55 = vpop.permute.xlu1 %9627 }
0x248a   :  { %v9613_v11 = vpop.permute.xlu0 %9612 }
0x248b   :  { %v9807_v29 = vrot.slane %v9613_v11, %v11448_v19  ;;  %v9799_v11 = vsel %vm1940_vm14, %v9798_v28, %v9794_v33 }
0x248d   :  { %v9808_v61 = vsel %vm1940_vm14, %v9807_v29, %v9803_v51 }
0x248e   :  { %v9547_v56 = vpop.permute.xlu0 %9546 }
0x248f   :  { %v9708_v21 = vrot.slane %v9547_v56, %v11448_v19  ;;  %v9700_v56 = vsel %vm1940_vm14, %v9699_v44, %v9695_v41  ;;  %v9722_v41 = vrot.slane %v9556_v24, %v11445_v8 }
0x2491   :  { %v9709_v6 = vsel %vm1940_vm14, %v9708_v21, %v9704_v5  ;;  %v9821_v5 = vrot.slane %v9622_v17, %v11445_v8 }
0x2492   :  { %v9619_v39 = vpop.permute.xlu0 %9618 }
0x2493   :  { %v9816_v45 = vrot.slane %v9619_v39, %v11448_v19  ;;  %v9882_v39 = vsel %vm2149_vm15, %v9781_v34, %v9772_v57 }
0x2494   :  { %v9883_v9 = vsel %vm2151_vm0, %v9790_v58, %v9882_v39  ;;  %v8630_v39 = vrot.slane %v16891_v62, %v11445_v8 }
0x2495   :  { %v9884_v22 = vsel %vm2153_vm1, %v9799_v11, %v9883_v9  ;;  %v8594_v11 = vrot.slane %v16868_v38, %v11445_v8  ;;  %v8612_v38 = vrot.slane %v16883_v25, %v11445_v8  ;;  %v8652_v25 = vrot.slane %v16949_v30, %v11448_v19 }
0x2496   :  { %v9553_v26 = vpop.permute.xlu0 %9552  ;;  %v9885_v51 = vsel %vm2155_vm2, %v9808_v61, %v9884_v22 }
0x2497   :  { %v9717_v18 = vrot.slane %v9553_v26, %v11448_v19  ;;  %v9873_v26 = vsel %vm2151_vm0, %v9682_v15, %v9872_v47  ;;  %v9817_v15 = vsel %vm1940_vm14, %v9816_v45, %v9812_v60 }
0x2498   :  { %v9874_v53 = vsel %vm2153_vm1, %v9691_v14, %v9873_v26  ;;  %v9886_v60 = vsel %vm2157_vm3, %v9817_v15, %v9885_v51 }
0x2499   :  { %v9718_v23 = vsel %vm1940_vm14, %v9717_v18, %v9713_v43  ;;  %v9875_v44 = vsel %vm2155_vm2, %v9700_v56, %v9874_v53  ;;  %v9830_v43 = vrot.slane %v9628_v55, %v11445_v8 }
0x249a   :  { %v9625_v2 = vpop.permute.xlu0 %9624  ;;  %v9876_v21 = vsel %vm2157_vm3, %v9709_v6, %v9875_v44  ;;  %v8603_v44 = vrot.slane %v16879_v10, %v11445_v8  ;;  %v8643_v10 = vrot.slane %v16914_v3, %v11448_v19 }
0x249b   :  { %v9825_v48 = vrot.slane %v9625_v2, %v11448_v19  ;;  %v9877_v24 = vsel %vm2159_vm4, %v9718_v23, %v9876_v21  ;;  %v8648_v21 = vrot.slane %v16940_v54, %v11445_v8 }
0x249d   :  { %v9826_v18 = vsel %vm1940_vm14, %v9825_v48, %v9821_v5  ;;  %v8653_v15 = vsel %vm1940_vm14, %v8652_v25, %v8648_v21  ;;  %v19655_v21 = vld [vmem:[#allocation94_spill] sm:$0xff] }
0x249e   :  { %v9559_v32 = vpop.permute.xlu0 %9558  ;;  %v9887_v57 = vsel %vm2159_vm4, %v9826_v18, %v9886_v60  ;;  %v19648_v60 = vld [vmem:[#allocation118_spill] sm:$0xff] }
0x249f   :  { %v9726_v47 = vrot.slane %v9559_v32, %v11448_v19 }
0x24a1   :  { %v9727_v33 = vsel %vm1940_vm14, %v9726_v47, %v9722_v41  ;;  %v8625_v47 = vrot.slane %v16893_v1, %v11448_v19 }
0x24a2   :  { %v9631_v17 = vpop.permute.xlu0 %9630  ;;  %v9878_v2 = vsel %vm2161_vm5, %v9727_v33, %v9877_v24 }
0x24a3   :  { %v9834_v63 = vrot.slane %v9631_v17, %v11448_v19  ;;  %v17259_v14 = vsel %vm1488_vm12, %v9878_v2, 2147483647  ;;  %v19645_v17 = vld [vmem:[#allocation146_spill] sm:$0xff]  ;;  %v19646_v2 = vld [vmem:[#allocation159_spill] sm:$0xff] }
0x24a4   :  { %v9894_v28 = vshra.s32 %v17259_v14, 16 }
0x24a5   :  { %v9835_v35 = vsel %vm1940_vm14, %v9834_v63, %v9830_v43  ;;  %v19647_v43 = vld [vmem:[#allocation105_spill] sm:$0xff] }
0x24a6   :  { %v17265_v56 = vcvt.s32.f32 %v9894_v28  ;;  %v9888_v29 = vsel %vm2161_vm5, %v9835_v35, %v9887_v57  ;;  %v17347_v51 = vrot.slane %v19647_v43, %v19339_v31  ;;  %v9938_v35 = vand.u32 65535, %v17187_v12 }
0x24a7   :  { %v17269_v34 = vsel %vm1488_vm12, %v9888_v29, 2147483647 }
0x24a8   :  { %9897 = vmin.xlane.f32.xlu1 %v17265_v56  ;;  %v9924_v26 = vshra.s32 %v17269_v34, 16  ;;  %v9923_v12 = vand.u32 65535, %v17269_v34 }
0x24aa   :  { %v17273_v6 = vcvt.s32.f32 %v9924_v26 }
0x24ac   :  { %9927 = vmin.xlane.f32.xlu0 %v17273_v6 }
0x24d5   :  { %v10039_v45 = vpop.xlane.xlu1 %10038 }
0x24d6   :  { %v10044_v58 = vrot.slane %v10039_v45, %v19339_v31  ;;  %v10048_v53 = vrot.slane %v10039_v45, %v19344_v13  ;;  %10360 = vst.msk [vmem:[%s17932_s2] sm:$0x3] %vm10359_vm11, %v10039_v45  ;;  %vm8280_vm11 = vcmp.eq.f32.partialorder %v19646_v2, %v19645_v17  ;;  %v9940_v45 = vcvt.s32.f32 %v9938_v35  ;;  %s10791_s2 = smov [#allocation6]  }
0x24d7   :  { %v8328_v63 = vsel %vm8280_vm11, %v19513_v52, 12  ;;  %s10371_s25 = sshll.u32 %s10791_s2, 4  ;;  %s10372_s25 = int_to_ptr.vmem [resolvable:$true] %s10371_s25 }
0x24d8   :  { %vm10051_vm6 = vcmp.eq.f32.partialorder %v16998_v27, %v10044_v58  ;;  %vm10052_vm7 = vcmp.eq.f32.partialorder %v16946_v37, %v10044_v58  ;;  %vm10053_vm8 = vcmp.eq.f32.partialorder %v17010_v40, %v10048_v53  ;;  %vm10054_vm9 = vcmp.eq.f32.partialorder %v16959_v7, %v10048_v53  ;;  %s10756_s26 = scalar_lea.vmem %s10372_s25, 32  ;;  %p10761_p6 = scmp.lt.s32.totalorder %s10372_s25, %s10372_s25 }
0x24d9   :  { %v10055_v23 = vsel %vm10051_vm6, %v19513_v52, 12  ;;  %v10056_v48 = vsel %vm10052_vm7, %v19589_v16, 12  ;;  %v10057_v32 = vsel %vm10053_vm8, %v19513_v52, 12  ;;  %v10058_v41 = vsel %vm10054_vm9, %v19589_v16, 12  ;;  %v17358_v29 = vpop.xlane.xlu0 %9912  ;;  %p10757_p5 = scmp.ne.s32.totalorder %s10372_s25, %s10756_s26  ;;  %p10762_p7 = scmp.lt.s32.totalorder %s10756_s26, %s10756_s26 }
0x24da   :  { %10060 = vperm.xlu1 %10670, %v10055_v23   ;;  %10063 = vperm.xlu0 %10671, %v10056_v48   ;;  %v8598_v27 = vrot.slane %v16881_v0, %v11448_v19  ;;  %v8607_v37 = vrot.slane %v16885_v4, %v11448_v19  ;;  %v8589_v40 = vrot.slane %v16877_v49, %v11448_v19  ;;  %v9893_v58 = vand.u32 65535, %v17259_v14 }
0x24db   :  { %v8616_v7 = vrot.slane %v16889_v46, %v11448_v19  ;;  %v8585_v0 = vrot.slane %v16851_v20, %v11445_v8  ;;  %v8634_v49 = vrot.slane %v16895_v50, %v11448_v19  ;;  %v8621_v46 = vrot.slane %v16887_v59, %v11445_v8  ;;  %p10763_p8 = por %p10762_p7, %p10761_p6 }
0x24dc   :  { %v8599_v4 = vsel %vm1940_vm14, %v8598_v27, %v8594_v11  ;;  %v8608_v5 = vsel %vm1940_vm14, %v8607_v37, %v8603_v44  ;;  %v8639_v59 = vrot.slane %v16899_v42, %v11445_v8  ;;  %vm7076_vm6 = vcmp.eq.f32.partialorder %v19648_v60, %v17347_v51  ;;  %v19659_v60 = vld [vmem:[#allocation63_spill] sm:$0xff] }
0x24dd   :  { %v8590_v1 = vsel %vm1940_vm14, %v8589_v40, %v8585_v0  ;;  %v8617_v20 = vsel %vm1940_vm14, %v8616_v7, %v8612_v38  ;;  %v8626_v55 = vsel %vm1940_vm14, %v8625_v47, %v8621_v46  ;;  %v8635_v3 = vsel %vm1940_vm14, %v8634_v49, %v8630_v39  ;;  %v17353_v57 = vpop.xlane.xlu1 %9942  ;;  %v19650_v46 = vld [vmem:[#allocation12_spill] sm:$0xff]  ;;  %v19652_v39 = vld [vmem:[#allocation13_spill] sm:$0xff]  ;;  %p10764_p9 = pnand %p10763_p8, %p10757_p5 }
0x24de   :  { %10066 = vperm.xlu1 %10670, %v10057_v32   ;;  %10069 = vperm.xlu0 %10671, %v10058_v41   ;;  %v8700_v50 = vsel %vm2149_vm15, %v8599_v4, %v8590_v1  ;;  %v8644_v62 = vsel %vm1940_vm14, %v8643_v10, %v8639_v59  ;;  %v7124_v28 = vsel %vm7076_vm6, %v19513_v52, 12  ;;  %vm9944_vm7 = vcmp.eq.f32.partialorder %v17191_v36, %v17353_v57  ;;  %v19654_v59 = vld [vmem:[#allocation14_spill] sm:$0xff] }
0x24df   :  { %v8701_v61 = vsel %vm2151_vm0, %v8608_v5, %v8700_v50  ;;  %v9945_v53 = vsel %vm9944_vm7, %v9940_v45, inf  ;;  %v9895_v48 = vcvt.s32.f32 %v9893_v58  ;;  %v9925_v36 = vcvt.s32.f32 %v9923_v12  ;;  %v19649_v5 = vld [vmem:[#allocation122_spill] sm:$0xff]  ;;  %v19661_v45 = vld [vmem:[#allocation11_spill] sm:$0xff] }
0x24e0   :  { %v8702_v9 = vsel %vm2153_vm1, %v8617_v20, %v8701_v61  ;;  %v17386_v49 = vrot.slane %v19647_v43, %v19344_v13  ;;  %v17392_v10 = vrot.slane %v19647_v43, %v19650_v46  ;;  %v19651_v20 = vld [vmem:[#allocation97_spill] sm:$0xff]  ;;  %v17399_v25 = vrot.slane %v19647_v43, %v19652_v39 }
0x24e1   :  { %v8703_v30 = vsel %vm2155_vm2, %v8626_v55, %v8702_v9  ;;  %v19653_v55 = vld [vmem:[#allocation123_spill] sm:$0xff]  ;;  %v17406_v61 = vrot.slane %v19647_v43, %v19654_v59  ;;  %v19656_v9 = vld [vmem:[#allocation136_spill] sm:$0xff]  ;;  %v8675_v58 = vrot.slane %v19661_v45, %v11445_v8 }
0x24e2   :  { %v8704_v24 = vsel %vm2157_vm3, %v8635_v3, %v8703_v30  ;;  %vm7079_vm11 = vcmp.eq.f32.partialorder %v19649_v5, %v17386_v49  ;;  %vm7081_vm6 = vcmp.eq.f32.partialorder %v19651_v20, %v17392_v10  ;;  %vm7083_vm7 = vcmp.eq.f32.partialorder %v19653_v55, %v17399_v25 }
0x24e3   :  { %v8705_v33 = vsel %vm2159_vm4, %v8644_v62, %v8704_v24  ;;  %v7127_v1 = vsel %vm7079_vm11, %v19589_v16, 12  ;;  %v7129_v50 = vsel %vm7081_vm6, %v19589_v16, 12  ;;  %v7131_v3 = vsel %vm7083_vm7, %v19589_v16, 12  ;;  %v19657_v24 = vld [vmem:[#allocation76_spill] sm:$0xff] }
0x24e4   :  { %v8706_v42 = vsel %vm2161_vm5, %v8653_v15, %v8705_v33  ;;  %v17413_v62 = vrot.slane %v19656_v9, %v19339_v31  ;;  %v17421_v33 = vrot.slane %v19656_v9, %v19344_v13 }
0x24e5   :  { %v17337_v22 = vsel %vm1488_vm12, %v8706_v42, 2147483647 }
0x24e6   :  { %v8742_v18 = vshra.s32 %v17337_v22, 16  ;;  %v8741_v30 = vand.u32 65535, %v17337_v22  ;;  %v19658_v22 = vld [vmem:[#allocation10_spill] sm:$0xff]  ;;  %vm7071_vm6 = vcmp.eq.f32.partialorder %v19659_v60, %v17421_v33 }
0x24e8   :  { %v17340_v54 = vcvt.s32.f32 %v8742_v18  ;;  %v8743_v18 = vcvt.s32.f32 %v8741_v30 }
0x24fd   :  { %8745 = vmin.xlane.f32.xlu0 %v17340_v54 }
0x2513   :  { %8469 = vperm.xlu0 %10671, %v8328_v63   ;;  %v8666_v63 = vrot.slane %v19658_v22, %v11445_v8  ;;  %v19672_v22 = vld [vmem:[#allocation16_spill] sm:$0xff] }
0x2517   :  { %7221 = vperm.xlu0 %10671, %v7124_v28   ;;  %v19660_v28 = vld [vmem:[#allocation15_spill] sm:$0xff] }
0x2518   :  { %v17436_v35 = vrot.slane %v19647_v43, %v19660_v28  ;;  %v19673_v28 = vld [vmem:[#allocation74_spill] sm:$0xff] }
0x2531   :  { %v17360_v26 = vpop.xlane.xlu1 %9897 }
0x2532   :  { %vm9899_vm8 = vcmp.eq.f32.partialorder %v17265_v56, %v17360_v26 }
0x2533   :  { %v9900_v32 = vsel %vm9899_vm8, %v9895_v48, inf  ;;  %vm7085_vm8 = vcmp.eq.f32.partialorder %v19655_v21, %v17406_v61  ;;  %v19663_v48 = vld [vmem:[#allocation140_spill] sm:$0xff] }
0x2534   :  { %v7133_v15 = vsel %vm7085_vm8, %v19589_v16, 12  ;;  %v8657_v12 = vrot.slane %v19663_v48, %v11445_v8  ;;  %v19676_v48 = vld [vmem:[#allocation141_spill] sm:$0xff] }
0x2535   :  { %v17365_v23 = vpop.xlane.xlu0 %9927 }
0x2536   :  { %9946 = vmin.xlane.f32.xlu0 %v9945_v53  ;;  %vm9929_vm9 = vcmp.eq.f32.partialorder %v17273_v6, %v17365_v23 }
0x2537   :  { %v9930_v41 = vsel %vm9929_vm9, %v9925_v36, inf  ;;  %vm7069_vm9 = vcmp.eq.f32.partialorder %v19657_v24, %v17413_v62  ;;  %v17481_v24 = vrot.slane %v19656_v9, %v19650_v46 }
0x2538   :  { %v7117_v17 = vsel %vm7069_vm9, %v19589_v16, 12 }
0x253a   :  { %9901 = vmin.xlane.f32.xlu0 %v9900_v32  ;;  %v19664_v32 = vld [vmem:[#allocation43_spill] sm:$0xff] }
0x253b   :  { %v8679_v36 = vrot.slane %v19664_v32, %v11448_v19 }
0x253e   :  { %9931 = vmin.xlane.f32.xlu0 %v9930_v41  ;;  %v7119_v41 = vsel %vm7071_vm6, %v19589_v16, 12 }
0x2555   :  { %v10061_v27 = vpop.permute.xlu1 %10060  ;;  %v10064_v14 = vpop.permute.xlu0 %10063 }
0x2556   :  { %v10074_v37 = vrot.slane %v10061_v27, %v11445_v8  ;;  %v10078_v56 = vrot.slane %v10064_v14, %v11448_v19  ;;  %v19665_v27 = vld [vmem:[#allocation39_spill] sm:$0xff] }
0x2557   :  { %v8661_v14 = vrot.slane %v19665_v27, %v11448_v19 }
0x2558   :  { %v10079_v44 = vsel %vm1940_vm14, %v10078_v56, %v10074_v37  ;;  %v19666_v56 = vld [vmem:[#allocation64_spill] sm:$0xff] }
0x2559   :  { %v10067_v11 = vpop.permute.xlu1 %10066  ;;  %v10070_v40 = vpop.permute.xlu0 %10069  ;;  %vm7087_vm7 = vcmp.eq.f32.partialorder %v19666_v56, %v17436_v35  ;;  %v19680_v56 = vld [vmem:[#allocation67_spill] sm:$0xff] }
0x255a   :  { %v10083_v7 = vrot.slane %v10067_v11, %v11445_v8  ;;  %v10087_v34 = vrot.slane %v10070_v40, %v11448_v19  ;;  %v19667_v11 = vld [vmem:[#allocation91_spill] sm:$0xff] }
0x255b   :  { %v17454_v40 = vrot.slane %v19667_v11, %v19339_v31  ;;  %v19669_v31 = vld [vmem:[#allocation65_spill] sm:$0xff]  ;;  %v17469_v55 = vrot.slane %v19667_v11, %v19344_v13  ;;  %v17498_v45 = vrot.slane %v19667_v11, %v19650_v46  ;;  %v17514_v46 = vrot.slane %v19656_v9, %v19652_v39 }
0x255c   :  { %v10088_v6 = vsel %vm1940_vm14, %v10087_v34, %v10083_v7  ;;  %v8680_v7 = vsel %vm1940_vm14, %v8679_v36, %v8675_v58  ;;  %v19677_v36 = vld [vmem:[#allocation127_spill] sm:$0xff] }
0x255d   :  { %v10089_v47 = vsel %vm2149_vm15, %v10088_v6, %v10079_v44  ;;  %v19668_v44 = vld [vmem:[#allocation157_spill] sm:$0xff]  ;;  %vm7093_vm8 = vcmp.eq.f32.partialorder %v19669_v31, %v17454_v40 }
0x255e   :  { %v17378_v0 = vsel %vm10036_vm10, %v10089_v47, 2147483647  ;;  %v8688_v6 = vrot.slane %v19668_v44, %v11448_v19  ;;  %v8662_v47 = vsel %vm1940_vm14, %v8661_v14, %v8657_v12  ;;  %v7141_v21 = vsel %vm7093_vm8, %v19589_v16, 12 }
0x255f   :  { %v10092_v4 = vshra.s32 %v17378_v0, 16  ;;  %v17532_v44 = vrot.slane %v19667_v11, %v19652_v39  ;;  %v9934_v39 = vcvt.f32.s32 %v17365_v23  ;;  %v19685_v23 = vld [vmem:[#allocation86_spill] sm:$0xff] }
0x2561   :  { %v17381_v38 = vcvt.s32.f32 %v10092_v4 }
0x2563   :  { %10095 = vmin.xlane.f32.xlu0 %v17381_v38 }
0x2579   :  { %7230 = vperm.xlu0 %10671, %v7127_v1   ;;  %v7135_v1 = vsel %vm7087_vm7, %v19589_v16, 12 }
0x257d   :  { %7236 = vperm.xlu0 %10671, %v7129_v50  }
0x2581   :  { %7242 = vperm.xlu0 %10671, %v7131_v3  }
0x2585   :  { %7248 = vperm.xlu0 %10671, %v7133_v15   ;;  %v19670_v15 = vld [vmem:[#allocation83_spill] sm:$0xff] }
0x2586   :  { %v17423_v42 = vpop.xlane.xlu0 %8745  ;;  %vm7095_vm9 = vcmp.eq.f32.partialorder %v19670_v15, %v17469_v55  ;;  %v9935_v15 = vshll.u32 %v9934_v39, 16  ;;  %v19699_v39 = vld [vmem:[#allocation80_spill] sm:$0xff] }
0x2587   :  { %vm8747_vm11 = vcmp.eq.f32.partialorder %v17340_v54, %v17423_v42  ;;  %v19662_v54 = vld [vmem:[#allocation154_spill] sm:$0xff]  ;;  %v7143_v13 = vsel %vm7095_vm9, %v19589_v16, 12 }
0x2588   :  { %v17428_v2 = vsel %vm8747_vm11, %v8743_v18, inf  ;;  %v8670_v53 = vrot.slane %v19662_v54, %v11448_v19  ;;  %v19674_v54 = vld [vmem:[#allocation73_spill] sm:$0xff] }
0x2589   :  { %7200 = vperm.xlu0 %10671, %v7117_v17   ;;  %v19671_v17 = vld [vmem:[#allocation95_spill] sm:$0xff]  ;;  %vm7096_vm7 = vcmp.eq.f32.partialorder %v19674_v54, %v17498_v45  ;;  %v8711_v54 = vand.u32 65535, %v19685_v23 }
0x258a   :  { %v8671_v37 = vsel %vm1940_vm14, %v8670_v53, %v8666_v63  ;;  %vm7072_vm11 = vcmp.eq.f32.partialorder %v19671_v17, %v17481_v24  ;;  %v17491_v63 = vrot.slane %v19647_v43, %v19672_v22  ;;  %v19675_v53 = vld [vmem:[#allocation17_spill] sm:$0xff]  ;;  %v7144_v32 = vsel %vm7096_vm7, %v19513_v52, 12 }
0x258b   :  { %v8707_v5 = vsel %vm2149_vm15, %v8671_v37, %v8662_v47  ;;  %v7120_v60 = vsel %vm7072_vm11, %v19513_v52, 12  ;;  %v17505_v12 = vrot.slane %v19676_v48, %v19675_v53  ;;  %v19679_v37 = vld [vmem:[#allocation47_spill] sm:$0xff] }
0x258c   :  { %v8708_v20 = vsel %vm2151_vm0, %v8680_v7, %v8707_v5  ;;  %vm7088_vm6 = vcmp.eq.f32.partialorder %v19673_v28, %v17491_v63  ;;  %vm7074_vm11 = vcmp.eq.f32.partialorder %v19679_v37, %v17514_v46  ;;  %v17524_v7 = vrot.slane %v19647_v43, %v19675_v53  ;;  %v19688_v37 = vld [vmem:[#allocation84_spill] sm:$0xff] }
0x258d   :  { %7206 = vperm.xlu0 %10671, %v7119_v41   ;;  %v7136_v58 = vsel %vm7088_vm6, %v19513_v52, 12  ;;  %vm7066_vm8 = vcmp.eq.f32.partialorder %v19677_v36, %v17505_v12  ;;  %v19678_v41 = vld [vmem:[#allocation112_spill] sm:$0xff]  ;;  %vm7078_vm6 = vcmp.eq.f32.partialorder %v19680_v56, %v17386_v49  ;;  %v19682_v49 = vld [vmem:[#allocation77_spill] sm:$0xff]  ;;  %v9904_v5 = vcvt.f32.s32 %v17360_v26  ;;  %v19686_v36 = vld [vmem:[#allocation106_spill] sm:$0xff] }
0x258e   :  { %v8470_v34 = vpop.permute.xlu0 %8469  ;;  %vm7077_vm9 = vcmp.eq.f32.partialorder %v19678_v41, %v17347_v51  ;;  %v7114_v27 = vsel %vm7066_vm8, %v19513_v52, 12  ;;  %v7122_v51 = vsel %vm7074_vm11, %v19513_v52, 12  ;;  %v7126_v9 = vsel %vm7078_vm6, %v19513_v52, 12  ;;  %v19687_v41 = vld [vmem:[#allocation87_spill] sm:$0xff] }
0x258f   :  { %v8684_v4 = vrot.slane %v8470_v34, %v11445_v8  ;;  %v7125_v14 = vsel %vm7077_vm9, %v19589_v16, 12  ;;  %v19681_v34 = vld [vmem:[#allocation61_spill] sm:$0xff]  ;;  %vm7098_vm8 = vcmp.eq.f32.partialorder %v19682_v49, %v17532_v44  ;;  %vm8717_vm11 = vcmp.eq.f32.partialorder %v19687_v41, %v19686_v36  ;;  %v19692_v49 = vld [vmem:[#allocation92_spill] sm:$0xff] }
0x2590   :  { %vm7090_vm7 = vcmp.eq.f32.partialorder %v19681_v34, %v17524_v7  ;;  %v7146_v43 = vsel %vm7098_vm8, %v19513_v52, 12  ;;  %vm7080_vm6 = vcmp.eq.f32.partialorder %v19688_v37, %v17392_v10  ;;  %v19690_v34 = vld [vmem:[#allocation90_spill] sm:$0xff]  ;;  %v19704_v41 = vld [vmem:[#allocation113_spill] sm:$0xff] }
0x2591   :  { %v8689_v50 = vsel %vm1940_vm14, %v8688_v6, %v8684_v4  ;;  %7254 = vperm.xlu0 %10671, %v7135_v1   ;;  %v7138_v6 = vsel %vm7090_vm7, %v19513_v52, 12  ;;  %v9949_v1 = vcvt.f32.s32 %v17353_v57  ;;  %v7128_v56 = vsel %vm7080_vm6, %v19513_v52, 12 }
0x2592   :  { %v8709_v59 = vsel %vm2153_vm1, %v8689_v50, %v8708_v20  ;;  %v17538_v47 = vpop.permute.xlu0 %7221  ;;  %v9905_v50 = vshll.u32 %v9904_v5, 16  ;;  %vm7084_vm8 = vcmp.eq.f32.partialorder %v19690_v34, %v17406_v61  ;;  %v19695_v5 = vld [vmem:[#allocation66_spill] sm:$0xff] }
0x2593   :  { %v17473_v3 = vsel %vm1492_vm13, %v8709_v59, 2147483647  ;;  %v9950_v59 = vshll.u32 %v9949_v1, 16  ;;  %v19696_v1 = vld [vmem:[#allocation126_spill] sm:$0xff] }
0x2594   :  { %v8757_v30 = vshra.s32 %v17473_v3, 16 }
0x2595   :  { %7272 = vperm.xlu0 %10671, %v7141_v21  }
0x2596   :  { %v17483_v18 = vcvt.s32.f32 %v8757_v30 }
0x2598   :  { %8760 = vmin.xlane.f32.xlu1 %v17483_v18 }
0x2599   :  { %7278 = vperm.xlu0 %10671, %v7143_v13  }
0x259d   :  { %7209 = vperm.xlu0 %10671, %v7120_v60   ;;  %v19683_v60 = vld [vmem:[#allocation68_spill] sm:$0xff] }
0x259e   :  { %v9908_v28 = vand.u32 65535, %v19683_v60  ;;  %v7403_v60 = vrot.slane %v17538_v47, %v11445_v8 }
0x25a0   :  { %v9910_v53 = vcvt.s32.f32 %v9908_v28 }
0x25a1   :  { %7257 = vperm.xlu0 %10671, %v7136_v58   ;;  %v19684_v58 = vld [vmem:[#allocation100_spill] sm:$0xff] }
0x25a2   :  { %vm9914_vm9 = vcmp.eq.f32.partialorder %v19684_v58, %v17358_v29 }
0x25a5   :  { %7281 = vperm.xlu0 %10671, %v7144_v32   ;;  %v9915_v32 = vsel %vm9914_vm9, %v9910_v53, inf }
0x25a9   :  { %7191 = vperm.xlu0 %10671, %v7114_v27   ;;  %7224 = vperm.xlu1 %10670, %v7125_v14   ;;  %v8713_v27 = vcvt.s32.f32 %v8711_v54  ;;  %v10091_v54 = vand.u32 65535, %v17378_v0 }
0x25ab   :  { %v8718_v14 = vsel %vm8717_vm11, %v8713_v27, inf  ;;  %vm7070_vm11 = vcmp.eq.f32.partialorder %v19692_v49, %v17421_v33  ;;  %v10093_v47 = vcvt.s32.f32 %v10091_v54 }
0x25ad   :  { %7215 = vperm.xlu0 %10671, %v7122_v51   ;;  %7227 = vperm.xlu1 %10670, %v7126_v9   ;;  %v19689_v51 = vld [vmem:[#allocation96_spill] sm:$0xff] }
0x25ae   :  { %vm7082_vm7 = vcmp.eq.f32.partialorder %v19689_v51, %v17399_v25  ;;  %v7118_v25 = vsel %vm7070_vm11, %v19513_v52, 12 }
0x25af   :  { %v7130_v9 = vsel %vm7082_vm7, %v19513_v52, 12 }
0x25b1   :  { %7263 = vperm.xlu0 %10671, %v7138_v6   ;;  %v7132_v6 = vsel %vm7084_vm8, %v19513_v52, 12  ;;  %vm7094_vm8 = vcmp.eq.f32.partialorder %v19695_v5, %v17469_v55 }
0x25b2   :  { %v7142_v33 = vsel %vm7094_vm8, %v19513_v52, 12 }
0x25b5   :  { %7287 = vperm.xlu0 %10671, %v7146_v43   ;;  %v19693_v43 = vld [vmem:[#allocation49_spill] sm:$0xff] }
0x25b6   :  { %vm7086_vm6 = vcmp.eq.f32.partialorder %v19693_v43, %v17436_v35 }
0x25b7   :  { %v7134_v61 = vsel %vm7086_vm6, %v19513_v52, 12  ;;  %vm7089_vm6 = vcmp.eq.f32.partialorder %v19699_v39, %v17491_v63 }
0x25b8   :  { %v7137_v55 = vsel %vm7089_vm6, %v19589_v16, 12 }
0x25bf   :  { %v9947_v4 = vpop.xlane.xlu0 %9946 }
0x25c0   :  { %v9948_v11 = vcvt.f32.s32 %v9947_v4  ;;  %v19694_v4 = vld [vmem:[#allocation110_spill] sm:$0xff] }
0x25c1   :  { %vm7092_vm7 = vcmp.eq.f32.partialorder %v19694_v4, %v17454_v40  ;;  %v19705_v4 = vld [vmem:[#allocation133_spill] sm:$0xff] }
0x25c2   :  { %v9951_v13 = vadd.s32 %v9950_v59, %v9948_v11  ;;  %v19702_v59 = vld [vmem:[#allocation102_spill] sm:$0xff] }
0x25c3   :  { %v9902_v20 = vpop.xlane.xlu0 %9901 }
0x25c4   :  { %v9903_v31 = vcvt.f32.s32 %v9902_v20  ;;  %v10124_v26 = vrot.slane %v9951_v13, %v11448_v19  ;;  %v19697_v20 = vld [vmem:[#allocation101_spill] sm:$0xff] }
0x25c6   :  { %v17543_v21 = vadd.s32 %v9905_v50, %v9903_v31  ;;  %v19698_v50 = vld [vmem:[#allocation75_spill] sm:$0xff]  ;;  %v19701_v31 = vld [vmem:[#allocation104_spill] sm:$0xff] }
0x25c7   :  { %v9932_v30 = vpop.xlane.xlu0 %9931  ;;  %vm7073_vm11 = vcmp.eq.f32.partialorder %v19698_v50, %v17481_v24  ;;  %vm7067_vm8 = vcmp.eq.f32.partialorder %v19701_v31, %v17505_v12 }
0x25c8   :  { %v9933_v17 = vcvt.f32.s32 %v9932_v30  ;;  %v7121_v40 = vsel %vm7073_vm11, %v19589_v16, 12  ;;  %v7115_v24 = vsel %vm7067_vm8, %v19589_v16, 12  ;;  %v19703_v30 = vld [vmem:[#allocation119_spill] sm:$0xff]  ;;  %vm7099_vm8 = vcmp.eq.f32.partialorder %v19704_v41, %v17532_v44 }
0x25c9   :  { %vm7091_vm11 = vcmp.eq.f32.partialorder %v19703_v30, %v17524_v7  ;;  %v7147_v27 = vsel %vm7099_vm8, %v19589_v16, 12 }
0x25ca   :  { %v9936_v22 = vadd.s32 %v9935_v15, %v9933_v17  ;;  %v8756_v15 = vand.u32 65535, %v17473_v3 }
0x25cc   :  { %v10120_v57 = vrot.slane %v9936_v22, %v11445_v8  ;;  %v8758_v12 = vcvt.s32.f32 %v8756_v15 }
0x25ce   :  { %v17552_v48 = vsel %vm1940_vm14, %v10124_v26, %v10120_v57 }
0x25d1   :  { %9916 = vmin.xlane.f32.xlu1 %v9915_v32 }
0x25d4   :  { %8719 = vmin.xlane.f32.xlu0 %v8718_v14 }
0x25d8   :  { %8749 = vmin.xlane.f32.xlu0 %v17428_v2  ;;  %v19691_v2 = vld [vmem:[#allocation121_spill] sm:$0xff] }
0x25d9   :  { %vm7068_vm9 = vcmp.eq.f32.partialorder %v19691_v2, %v17413_v62  ;;  %v7140_v62 = vsel %vm7092_vm7, %v19513_v52, 12  ;;  %v10111_v2 = vrot.slane %v17543_v21, %v11445_v8 }
0x25da   :  { %v7116_v10 = vsel %vm7068_vm9, %v19513_v52, 12  ;;  %vm7065_vm9 = vcmp.eq.f32.partialorder %v19697_v20, %v19696_v1  ;;  %v19700_v52 = vld [vmem:[#allocation129_spill] sm:$0xff] }
0x25db   :  { %v7113_v35 = vsel %vm7065_vm9, %v19589_v16, 12  ;;  %vm7097_vm7 = vcmp.eq.f32.partialorder %v19700_v52, %v17498_v45  ;;  %vm7075_vm9 = vcmp.eq.f32.partialorder %v19702_v59, %v17514_v46  ;;  %v7139_v45 = vsel %vm7091_vm11, %v19589_v16, 12  ;;  %v19707_v1 = vld [vmem:[#allocation81_spill] sm:$0xff] }
0x25dc   :  { %v7145_v11 = vsel %vm7097_vm7, %v19589_v16, 12  ;;  %v7123_v63 = vsel %vm7075_vm9, %v19589_v16, 12 }
0x25e2   :  { %7233 = vperm.xlu1 %10670, %v7128_v56   ;;  %v9919_v56 = vcvt.f32.s32 %v17358_v29 }
0x25e4   :  { %v9920_v51 = vshll.u32 %v9919_v56, 16  ;;  %v19708_v56 = vld [vmem:[#allocation168_spill] sm:$0xff] }
0x25e6   :  { %7239 = vperm.xlu1 %10670, %v7130_v9  }
0x25ea   :  { %7245 = vperm.xlu1 %10670, %v7132_v6  }
0x25ec   :  { %v17607_v17 = vpop.xlane.xlu0 %10095 }
0x25ed   :  { %vm10097_vm7 = vcmp.eq.f32.partialorder %v17381_v38, %v17607_v17 }
0x25ee   :  { %7197 = vperm.xlu1 %10670, %v7116_v10   ;;  %v10098_v53 = vsel %vm10097_vm7, %v10093_v47, inf }
0x25f2   :  { %7203 = vperm.xlu1 %10670, %v7118_v25  }
0x25f4   :  { %v7231_v28 = vpop.permute.xlu0 %7230 }
0x25f5   :  { %v7416_v57 = vrot.slane %v7231_v28, %v11448_v19  ;;  %v8752_v28 = vcvt.f32.s32 %v17423_v42  ;;  %v7304_v42 = vrot.slane %v19708_v56, %v11445_v8 }
0x25f6   :  { %7251 = vperm.xlu1 %10670, %v7134_v61  }
0x25f8   :  { %v7237_v32 = vpop.permute.xlu0 %7236 }
0x25f9   :  { %v7425_v44 = vrot.slane %v7237_v32, %v11448_v19 }
0x25fa   :  { %7269 = vperm.xlu1 %10670, %v7140_v62   ;;  %v8726_v62 = vand.u32 65535, %v19705_v4 }
0x25fc   :  { %v17623_v14 = vpop.permute.xlu0 %7242  ;;  %v8728_v20 = vcvt.s32.f32 %v8726_v62  ;;  %v19715_v62 = vld [vmem:[#allocation161_spill] sm:$0xff] }
0x25fe   :  { %7275 = vperm.xlu1 %10670, %v7142_v33   ;;  %v19706_v33 = vld [vmem:[#allocation72_spill] sm:$0xff] }
0x25ff   :  { %vm8732_vm9 = vcmp.eq.f32.partialorder %v19707_v1, %v19706_v33  ;;  %v7295_v1 = vrot.slane %v19715_v62, %v11445_v8 }
0x2600   :  { %v17625_v37 = vpop.permute.xlu0 %7248 }
0x2602   :  { %7188 = vperm.xlu1 %10670, %v7113_v35   ;;  %v8733_v35 = vsel %vm8732_vm9, %v8728_v20, inf  ;;  %v19716_v20 = vld [vmem:[#allocation165_spill] sm:$0xff] }
0x2604   :  { %v17628_v9 = vpop.permute.xlu0 %7200 }
0x2606   :  { %7212 = vperm.xlu1 %10670, %v7121_v40  }
0x2608   :  { %v17635_v49 = vpop.permute.xlu0 %7206 }
0x2609   :  { %v7380_v62 = vrot.slane %v17635_v49, %v11448_v19 }
0x260a   :  { %7260 = vperm.xlu1 %10670, %v7137_v55  }
0x260c   :  { %v17646_v21 = vpop.permute.xlu0 %7254 }
0x260e   :  { %7284 = vperm.xlu1 %10670, %v7145_v11  }
0x2610   :  { %v17649_v5 = vpop.permute.xlu0 %7272 }
0x2612   :  { %7194 = vperm.xlu1 %10670, %v7115_v24  }
0x2614   :  { %v17653_v50 = vpop.permute.xlu0 %7278 }
0x2616   :  { %7218 = vperm.xlu1 %10670, %v7123_v63  }
0x2618   :  { %v17657_v39 = vpop.permute.xlu0 %7209 }
0x261a   :  { %7266 = vperm.xlu1 %10670, %v7139_v45  }
0x261c   :  { %v17661_v55 = vpop.permute.xlu0 %7257 }
0x2620   :  { %v17665_v11 = vpop.permute.xlu0 %7281 }
0x2621   :  { %v17603_v13 = vpop.xlane.xlu1 %8760  ;;  %v7493_v49 = vrot.slane %v17665_v11, %v11445_v8 }
0x2622   :  { %vm8762_vm6 = vcmp.eq.f32.partialorder %v17483_v18, %v17603_v13 }
0x2623   :  { %v8763_v46 = vsel %vm8762_vm6, %v8758_v12, inf }
0x2624   :  { %8764 = vmin.xlane.f32.xlu0 %v8763_v46  ;;  %v17669_v24 = vpop.permute.xlu0 %7191 }
0x2625   :  { %v7225_v22 = vpop.permute.xlu1 %7224 }
0x2626   :  { %v7407_v7 = vrot.slane %v7225_v22, %v11448_v19 }
0x2628   :  { %v7408_v26 = vsel %vm1940_vm14, %v7407_v7, %v7403_v60  ;;  %v17673_v63 = vpop.permute.xlu0 %7215 }
0x2629   :  { %v7228_v3 = vpop.permute.xlu1 %7227 }
0x262a   :  { %v7412_v58 = vrot.slane %v7228_v3, %v11445_v8 }
0x262c   :  { %v7417_v18 = vsel %vm1940_vm14, %v7416_v57, %v7412_v58  ;;  %v17677_v45 = vpop.permute.xlu0 %7263  ;;  %v8753_v58 = vshll.u32 %v8752_v28, 16  ;;  %v19717_v28 = vld [vmem:[#allocation172_spill] sm:$0xff] }
0x262d   :  { %v7518_v23 = vsel %vm2149_vm15, %v7417_v18, %v7408_v26  ;;  %v8767_v26 = vcvt.f32.s32 %v17603_v13  ;;  %v19709_v13 = vld [vmem:[#allocation169_spill] sm:$0xff] }
0x2630   :  { %v17681_v12 = vpop.permute.xlu0 %7287 }
0x263e   :  { %10099 = vmin.xlane.f32.xlu1 %v10098_v53 }
0x264f   :  { %7290 = vperm.xlu1 %10670, %v7147_v27  }
0x265a   :  { %v9917_v0 = vpop.xlane.xlu1 %9916 }
0x265b   :  { %v9918_v38 = vcvt.f32.s32 %v9917_v0  ;;  %v7313_v0 = vrot.slane %v19709_v13, %v11445_v8 }
0x265d   :  { %v9921_v34 = vadd.s32 %v9920_v51, %v9918_v38  ;;  %v17685_v22 = vpop.xlane.xlu0 %8719  ;;  %v19710_v38 = vld [vmem:[#allocation162_spill] sm:$0xff] }
0x265e   :  { %v7234_v6 = vpop.permute.xlu1 %7233 }
0x265f   :  { %v10115_v16 = vrot.slane %v9921_v34, %v11448_v19  ;;  %v7421_v10 = vrot.slane %v7234_v6, %v11445_v8  ;;  %v7299_v34 = vrot.slane %v19710_v38, %v11448_v19  ;;  %v19711_v6 = vld [vmem:[#allocation163_spill] sm:$0xff]  ;;  %v10102_v38 = vcvt.f32.s32 %v17607_v17 }
0x2660   :  { %v7443_v17 = vrot.slane %v17625_v37, %v11448_v19  ;;  %v7457_v37 = vrot.slane %v17661_v55, %v11445_v8 }
0x2661   :  { %v7426_v29 = vsel %vm1940_vm14, %v7425_v44, %v7421_v10  ;;  %v10116_v25 = vsel %vm1940_vm14, %v10115_v16, %v10111_v2  ;;  %v8750_v7 = vpop.xlane.xlu0 %8749  ;;  %v7308_v2 = vrot.slane %v19711_v6, %v11448_v19  ;;  %v19712_v44 = vld [vmem:[#allocation170_spill] sm:$0xff]  ;;  %v19713_v10 = vld [vmem:[#allocation164_spill] sm:$0xff] }
0x2662   :  { %v17640_v43 = vsel %vm2151_vm0, %v7426_v29, %v7518_v23  ;;  %v17644_v61 = vsel %vm2149_vm15, %v17552_v48, %v10116_v25  ;;  %v17655_v40 = vpop.permute.xlu1 %7239  ;;  %v8751_v3 = vcvt.f32.s32 %v8750_v7  ;;  %v8768_v23 = vshll.u32 %v8767_v26, 16  ;;  %v19714_v25 = vld [vmem:[#allocation171_spill] sm:$0xff] }
0x2663   :  { %v7322_v16 = vrot.slane %v19712_v44, %v11445_v8  ;;  %v7317_v29 = vrot.slane %v19713_v10, %v11448_v19  ;;  %v7331_v4 = vrot.slane %v19714_v25, %v11445_v8  ;;  %v7309_v7 = vsel %vm1940_vm14, %v7308_v2, %v7304_v42 }
0x2664   :  { %v8754_v54 = vadd.s32 %v8753_v58, %v8751_v3  ;;  %v7340_v26 = vrot.slane %v19717_v28, %v11445_v8  ;;  %v19718_v58 = vld [vmem:[#allocation166_spill] sm:$0xff]  ;;  %v7430_v44 = vrot.slane %v17655_v40, %v11445_v8  ;;  %v7434_v25 = vrot.slane %v17623_v14, %v11448_v19 }
0x2665   :  { %v7479_v40 = vrot.slane %v17649_v5, %v11448_v19  ;;  %v7385_v14 = vrot.slane %v17657_v39, %v11445_v8  ;;  %v7358_v39 = vrot.slane %v17669_v24, %v11445_v8 }
0x2666   :  { %v17659_v48 = vpop.permute.xlu1 %7245  ;;  %v10156_v41 = vrot.slane %v8754_v54, %v11445_v8  ;;  %v7300_v54 = vsel %vm1940_vm14, %v7299_v34, %v7295_v1  ;;  %v7452_v1 = vrot.slane %v17646_v21, %v11448_v19  ;;  %v7435_v21 = vsel %vm1940_vm14, %v7434_v25, %v7430_v44 }
0x266a   :  { %v17663_v52 = vpop.permute.xlu1 %7197 }
0x266b   :  { %v7367_v55 = vrot.slane %v17663_v52, %v11445_v8  ;;  %v7502_v52 = vrot.slane %v17681_v12, %v11445_v8 }
0x266e   :  { %v17667_v31 = vpop.permute.xlu1 %7203 }
0x266f   :  { %v7376_v5 = vrot.slane %v17667_v31, %v11445_v8  ;;  %v7466_v31 = vrot.slane %v17677_v45, %v11445_v8 }
0x2672   :  { %v17671_v59 = vpop.permute.xlu1 %7251 }
0x2673   :  { %8734 = vmin.xlane.f32.xlu1 %v8733_v35  ;;  %v7326_v35 = vrot.slane %v19716_v20, %v11448_v19  ;;  %v7488_v20 = vrot.slane %v17653_v50, %v11448_v19 }
0x2676   :  { %v17675_v30 = vpop.permute.xlu1 %7269 }
0x267a   :  { %v17679_v15 = vpop.permute.xlu1 %7275 }
0x267e   :  { %v17683_v46 = vpop.permute.xlu1 %7188 }
0x267f   :  { %v7353_v50 = vrot.slane %v17683_v46, %v11448_v19 }
0x2682   :  { %v17687_v60 = vpop.permute.xlu1 %7212 }
0x2683   :  { %v7389_v11 = vrot.slane %v17687_v60, %v11448_v19  ;;  %v7484_v60 = vrot.slane %v17679_v15, %v11445_v8 }
0x2686   :  { %v17691_v57 = vpop.permute.xlu1 %7260 }
0x2687   :  { %v7461_v45 = vrot.slane %v17691_v57, %v11448_v19 }
0x268a   :  { %v17693_v32 = vpop.permute.xlu1 %7284 }
0x268e   :  { %v7195_v3 = vpop.permute.xlu1 %7194 }
0x268f   :  { %v7362_v46 = vrot.slane %v7195_v3, %v11448_v19  ;;  %v7497_v3 = vrot.slane %v17693_v32, %v11448_v19 }
0x2692   :  { %v7219_v34 = vpop.permute.xlu1 %7218 }
0x2693   :  { %v7398_v24 = vrot.slane %v7219_v34, %v11448_v19 }
0x26ad   :  { %v8765_v18 = vpop.xlane.xlu0 %8764 }
0x26ae   :  { %v8766_v47 = vcvt.f32.s32 %v8765_v18  ;;  %v7335_v18 = vrot.slane %v19718_v58, %v11448_v19 }
0x26b0   :  { %v8769_v53 = vadd.s32 %v8768_v23, %v8766_v47  ;;  %v7318_v23 = vsel %vm1940_vm14, %v7317_v29, %v7313_v0  ;;  %v19719_v47 = vld [vmem:[#allocation167_spill] sm:$0xff]  ;;  %v7336_v56 = vsel %vm1940_vm14, %v7335_v18, %v7331_v4  ;;  %v10103_v29 = vshll.u32 %v10102_v38, 16 }
0x26b1   :  { %v7371_v4 = vrot.slane %v17628_v9, %v11448_v19  ;;  %v7439_v9 = vrot.slane %v17659_v48, %v11445_v8  ;;  %v7448_v48 = vrot.slane %v17671_v59, %v11445_v8  ;;  %v7520_v59 = vsel %vm2153_vm1, %v7435_v21, %v17640_v43 }
0x26b2   :  { %v10160_v27 = vrot.slane %v8769_v53, %v11448_v19  ;;  %v7344_v53 = vrot.slane %v19719_v47, %v11448_v19  ;;  %v7475_v43 = vrot.slane %v17675_v30, %v11445_v8  ;;  %v7390_v18 = vsel %vm1940_vm14, %v7389_v11, %v7385_v14 }
0x26b3   :  { %v7444_v28 = vsel %vm1940_vm14, %v7443_v17, %v7439_v9  ;;  %v7372_v12 = vsel %vm1940_vm14, %v7371_v4, %v7367_v55  ;;  %v7453_v58 = vsel %vm1940_vm14, %v7452_v1, %v7448_v48 }
0x26b4   :  { %v17702_v51 = vsel %vm1940_vm14, %v10160_v27, %v10156_v41  ;;  %v7327_v41 = vsel %vm1940_vm14, %v7326_v35, %v7322_v16  ;;  %v7508_v27 = vsel %vm2149_vm15, %v7309_v7, %v7300_v54  ;;  %v7345_v13 = vsel %vm1940_vm14, %v7344_v53, %v7340_v26  ;;  %v19720_v16 = vld [vmem:[#allocation173_spill] sm:$0xff]  ;;  %v7267_v35 = vpop.permute.xlu1 %7266 }
0x26b5   :  { %v7509_v42 = vsel %vm2151_vm0, %v7318_v23, %v7508_v27  ;;  %v7349_v10 = vrot.slane %v19720_v16, %v11445_v8  ;;  %v7394_v7 = vrot.slane %v17673_v63, %v11445_v8  ;;  %v7381_v63 = vsel %vm1940_vm14, %v7380_v62, %v7376_v5 }
0x26b6   :  { %v7510_v6 = vsel %vm2153_vm1, %v7327_v41, %v7509_v42  ;;  %v7363_v23 = vsel %vm1940_vm14, %v7362_v46, %v7358_v39  ;;  %v7470_v47 = vrot.slane %v7267_v35, %v11448_v19  ;;  %v7521_v53 = vsel %vm2155_vm2, %v7444_v28, %v7520_v59 }
0x26b7   :  { %v7511_v0 = vsel %vm2155_vm2, %v7336_v56, %v7510_v6  ;;  %v7354_v26 = vsel %vm1940_vm14, %v7353_v50, %v7349_v10  ;;  %v7399_v54 = vsel %vm1940_vm14, %v7398_v24, %v7394_v7  ;;  %v7515_v32 = vsel %vm2149_vm15, %v7381_v63, %v7372_v12  ;;  %v19721_v10 = vld [vmem:[#allocation9_spill] sm:$0xff] }
0x26b8   :  { %v7512_v2 = vsel %vm2157_vm3, %v7345_v13, %v7511_v0  ;;  %v7489_v41 = vsel %vm1940_vm14, %v7488_v20, %v7484_v60  ;;  %v7516_v30 = vsel %vm2151_vm0, %v7390_v18, %v7515_v32  ;;  %v7462_v56 = vsel %vm1940_vm14, %v7461_v45, %v7457_v37 }
0x26b9   :  { %v7513_v27 = vsel %vm2159_vm4, %v7354_v26, %v7512_v2  ;;  %v7498_v42 = vsel %vm1940_vm14, %v7497_v3, %v7493_v49  ;;  %v7522_v38 = vsel %vm2157_vm3, %v7453_v58, %v7521_v53  ;;  %v7480_v6 = vsel %vm1940_vm14, %v7479_v40, %v7475_v43 }
0x26ba   :  { %v7514_v34 = vsel %vm2161_vm5, %v7363_v23, %v7513_v27  ;;  %v7517_v44 = vsel %vm2153_vm1, %v7399_v54, %v7516_v30  ;;  %v7525_v16 = vsel %vm2149_vm15, %v7489_v41, %v7480_v6  ;;  %v7471_v2 = vsel %vm1940_vm14, %v7470_v47, %v7466_v31 }
0x26bb   :  { %v7526_v17 = vsel %vm2151_vm0, %v7498_v42, %v7525_v16  ;;  %v7528_v40 = vsel %vm1488_vm12, %v7514_v34, 2147483647  ;;  %v7543_v20 = vsel %vm1492_vm13, %v7517_v44, 2147483647  ;;  %v8722_v59 = vcvt.f32.s32 %v19686_v36 }
0x26bc   :  { %v7530_v50 = vshra.s32 %v7528_v40, 16  ;;  %v7545_v39 = vshra.s32 %v7543_v20, 16  ;;  %v8721_v63 = vcvt.f32.s32 %v17685_v22  ;;  %v7529_v12 = vand.u32 65535, %v7528_v40 }
0x26bd   :  { %v8723_v26 = vshll.u32 %v8722_v59, 16  ;;  %v7544_v58 = vand.u32 65535, %v7543_v20  ;;  %vm10177_vm11 = vcmp.eq.s32.totalorder %v19721_v10, 5  ;;  %vm10213_vm7 = vcmp.eq.s32.totalorder %v19721_v10, 4 }
0x26be   :  { %v7532_v48 = vcvt.s32.f32 %v7530_v50  ;;  %v7547_v11 = vcvt.s32.f32 %v7545_v39  ;;  %v7531_v47 = vcvt.s32.f32 %v7529_v12  ;;  %vm10249_vm9 = vcmp.eq.s32.totalorder %v19721_v10, 3 }
0x26bf   :  { %v8724_v3 = vadd.s32 %v8723_v26, %v8721_v63 }
0x26c1   :  { %v10147_v54 = vrot.slane %v8724_v3, %v11445_v8 }
0x26c7   :  { %v10100_v15 = vpop.xlane.xlu1 %10099 }
0x26c8   :  { %v10101_v57 = vcvt.f32.s32 %v10100_v15 }
0x26ca   :  { %v17809_v13 = vadd.s32 %v10103_v29, %v10101_v57  ;;  %v7523_v29 = vsel %vm2159_vm4, %v7462_v56, %v7522_v38  ;;  %v7546_v57 = vcvt.s32.f32 %v7544_v58 }
0x26cb   :  { %v7291_v0 = vpop.permute.xlu1 %7290  ;;  %v7524_v9 = vsel %vm2161_vm5, %v7471_v2, %v7523_v29 }
0x26cc   :  { %vm10107_vm2 = vcmp.eq.s32.totalorder %v19721_v10, %v17809_v13  ;;  %v7506_v25 = vrot.slane %v7291_v0, %v11448_v19 }
0x26cd   :  { %v10127_v4 = vsel %vm10107_vm2, %v17644_v61, 0  ;;  %v7558_v61 = vsel %vm1488_vm12, %v7524_v9, 2147483647  ;;  %vm10105_vm12 = vcmp.eq.s32.totalorder %v19721_v10, 7 }
0x26ce   :  { %v7507_v62 = vsel %vm1940_vm14, %v7506_v25, %v7502_v52  ;;  %v10128_v1 = vsel %vm10036_vm10, %v10127_v4, 0  ;;  %v7560_v35 = vshra.s32 %v7558_v61, 16  ;;  %v8737_v52 = vcvt.f32.s32 %v19706_v33 }
0x26cf   :  { %v10130_v14 = vshrl.u32 %v10128_v1, 16  ;;  %v10129_v37 = vand.u32 65535, %v10128_v1  ;;  %v7527_v49 = vsel %vm2153_vm1, %v7507_v62, %v7526_v17  ;;  %v7559_v41 = vand.u32 65535, %v7558_v61 }
0x26d0   :  { %v7573_v55 = vsel %vm1492_vm13, %v7527_v49, 2147483647  ;;  %v7562_v31 = vcvt.s32.f32 %v7560_v35  ;;  %v8738_v60 = vshll.u32 %v8737_v52, 16  ;;  %vm10141_vm13 = vcmp.eq.s32.totalorder %v19721_v10, 6 }
0x26d1   :  { %v10132_v21 = vcvt.s32.f32 %v10130_v14  ;;  %v10131_v5 = vcvt.s32.f32 %v10129_v37  ;;  %v7575_v7 = vshra.s32 %v7573_v55, 16  ;;  %v7574_v27 = vand.u32 65535, %v7573_v55 }
0x26d2   :  { %v10106_v56 = vsel %vm10105_vm12, %v17809_v13, 4294967295  ;;  %v7561_v2 = vcvt.s32.f32 %v7559_v41  ;;  %vm10285_vm12 = vcmp.eq.s32.totalorder %v19721_v10, 2 }
0x26d3   :  { %10135 = vadd.xlane.f32.xlu1 %v10132_v21  ;;  %10133 = vadd.xlane.f32.xlu0 %v10131_v5  ;;  %v7577_v46 = vcvt.s32.f32 %v7575_v7  ;;  %v7576_v25 = vcvt.s32.f32 %v7574_v27  ;;  %v19723_v27 = vld [vmem:[#allocation135_spill] sm:$0xff] }
0x26d7   :  { %7533 = vmin.xlane.f32.xlu1 %v7532_v48  ;;  %7548 = vmin.xlane.f32.xlu0 %v7547_v11 }
0x26db   :  { %7563 = vmin.xlane.f32.xlu1 %v7562_v31  ;;  %7578 = vmin.xlane.f32.xlu0 %v7577_v46 }
0x26fc   :  { %v8735_v24 = vpop.xlane.xlu1 %8734 }
0x26fd   :  { %v8736_v28 = vcvt.f32.s32 %v8735_v24 }
0x26ff   :  { %v8739_v45 = vadd.s32 %v8738_v60, %v8736_v28 }
0x2701   :  { %v10151_v43 = vrot.slane %v8739_v45, %v11448_v19 }
0x2703   :  { %v10152_v22 = vsel %vm1940_vm14, %v10151_v43, %v10147_v54 }
0x2704   :  { %v10162_v6 = vsel %vm2149_vm15, %v17702_v51, %v10152_v22 }
0x275c   :  { %v10136_v18 = vpop.xlane.xlu1 %10135  ;;  %v10134_v15 = vpop.xlane.xlu0 %10133 }
0x275d   :  { %v10138_v23 = vcvt.f32.s32 %v10136_v18  ;;  %v10137_v36 = vcvt.f32.s32 %v10134_v15 }
0x275f   :  { %v10139_v33 = vshll.u32 %v10138_v23, 16 }
0x2760   :  { %v7534_v53 = vpop.xlane.xlu1 %7533  ;;  %v7549_v32 = vpop.xlane.xlu0 %7548 }
0x2761   :  { %v10140_v30 = vadd.s32 %v10139_v33, %v10137_v36  ;;  %vm7535_vm0 = vcmp.eq.f32.partialorder %v7532_v48, %v7534_v53  ;;  %vm7550_vm1 = vcmp.eq.f32.partialorder %v7547_v11, %v7549_v32  ;;  %v7540_v40 = vcvt.f32.s32 %v7534_v53 }
0x2762   :  { %v7536_v42 = vsel %vm7535_vm0, %v7531_v47, inf  ;;  %v7551_v38 = vsel %vm7550_vm1, %v7546_v57, inf  ;;  %v7555_v20 = vcvt.f32.s32 %v7549_v32  ;;  %v19722_v32 = vld [vmem:[#allocation152_spill] sm:$0xff]  ;;  %vm10321_vm0 = vcmp.eq.s32.totalorder %v19721_v10, 1 }
0x2763   :  { %v10142_v0 = vsel %vm10141_vm13, %v10140_v30, %v10106_v56  ;;  %vm10143_vm3 = vcmp.eq.s32.totalorder %v19721_v10, %v10140_v30  ;;  %7537 = vmin.xlane.f32.xlu1 %v7536_v42  ;;  %7552 = vmin.xlane.f32.xlu0 %v7551_v38  ;;  %v7541_v21 = vshll.u32 %v7540_v40, 16  ;;  %v6357_v41 = vcvt.f32.s32 %v19722_v32  ;;  %v19724_v56 = vld [vmem:[#allocation160_spill] sm:$0xff]  ;;  %v19725_v38 = vld [vmem:[#allocation175_spill] sm:$0xff]  ;;  %v19737_v32 = vld [vmem:[#allocation98_spill] sm:$0xff] }
0x2764   :  { %v10163_v34 = vsel %vm10143_vm3, %v10162_v6, 0  ;;  %v7564_v44 = vpop.xlane.xlu1 %7563  ;;  %v7579_v16 = vpop.xlane.xlu0 %7578  ;;  %v7556_v5 = vshll.u32 %v7555_v20, 16  ;;  %v6372_v30 = vcvt.f32.s32 %v19723_v27  ;;  %v6387_v42 = vcvt.f32.s32 %v19724_v56 }
0x2765   :  { %vm7565_vm4 = vcmp.eq.f32.partialorder %v7562_v31, %v7564_v44  ;;  %vm7580_vm5 = vcmp.eq.f32.partialorder %v7577_v46, %v7579_v16  ;;  %v10164_v13 = vsel %vm10036_vm10, %v10163_v34, 0  ;;  %v7570_v14 = vcvt.f32.s32 %v7564_v44 }
0x2766   :  { %v7566_v29 = vsel %vm7565_vm4, %v7561_v2, inf  ;;  %v7581_v17 = vsel %vm7580_vm5, %v7576_v25, inf  ;;  %v10166_v4 = vshrl.u32 %v10164_v13, 16  ;;  %v10165_v51 = vand.u32 65535, %v10164_v13  ;;  %v19728_v25 = vld [vmem:[#allocation174_spill] sm:$0xff] }
0x2767   :  { %7567 = vmin.xlane.f32.xlu1 %v7566_v29  ;;  %7582 = vmin.xlane.f32.xlu0 %v7581_v17  ;;  %v7585_v37 = vcvt.f32.s32 %v7579_v16  ;;  %v7571_v48 = vshll.u32 %v7570_v14, 16  ;;  %v6356_v6 = vcvt.f32.s32 %v19725_v38  ;;  %v6358_v44 = vshll.u32 %v6357_v41, 16  ;;  %v19727_v16 = vld [vmem:[#allocation103_spill] sm:$0xff] }
0x2768   :  { %v10168_v62 = vcvt.s32.f32 %v10166_v4  ;;  %v10167_v1 = vcvt.s32.f32 %v10165_v51  ;;  %v6371_v2 = vcvt.f32.s32 %v19727_v16  ;;  %v6386_v29 = vcvt.f32.s32 %v19728_v25  ;;  %v19729_v4 = vld [vmem:[#allocation155_spill] sm:$0xff] }
0x2769   :  { %v7586_v11 = vshll.u32 %v7585_v37, 16  ;;  %v6373_v17 = vshll.u32 %v6372_v30, 16  ;;  %v6388_v13 = vshll.u32 %v6387_v42, 16  ;;  %v6401_v51 = vcvt.f32.s32 %v19729_v4 }
0x276a   :  { %v5219_v41 = vcvt.f32.s32 %v19737_v32 }
0x276b   :  { %10171 = vadd.xlane.f32.xlu1 %v10168_v62  ;;  %10169 = vadd.xlane.f32.xlu0 %v10167_v1  ;;  %v6359_v62 = vadd.s32 %v6358_v44, %v6356_v6  ;;  %v6374_v40 = vadd.s32 %v6373_v17, %v6371_v2  ;;  %v6389_v20 = vadd.s32 %v6388_v13, %v6386_v29 }
0x276d   :  { %v10219_v37 = vrot.slane %v6359_v62, %v11445_v8 }
0x27ec   :  { %v7538_v9 = vpop.xlane.xlu1 %7537  ;;  %v7553_v49 = vpop.xlane.xlu0 %7552 }
0x27ed   :  { %v7539_v50 = vcvt.f32.s32 %v7538_v9  ;;  %v7554_v39 = vcvt.f32.s32 %v7553_v49 }
0x27ef   :  { %v7542_v61 = vadd.s32 %v7541_v21, %v7539_v50  ;;  %v7557_v55 = vadd.s32 %v7556_v5, %v7554_v39  ;;  %v10223_v5 = vrot.slane %v6374_v40, %v11448_v19  ;;  %v10228_v50 = vrot.slane %v6389_v20, %v11445_v8 }
0x27f0   :  { %v7568_v35 = vpop.xlane.xlu1 %7567  ;;  %v7583_v7 = vpop.xlane.xlu0 %7582 }
0x27f1   :  { %v10183_v31 = vrot.slane %v7542_v61, %v11445_v8  ;;  %v10187_v46 = vrot.slane %v7557_v55, %v11448_v19  ;;  %v7569_v24 = vcvt.f32.s32 %v7568_v35  ;;  %v7584_v52 = vcvt.f32.s32 %v7583_v7 }
0x27f3   :  { %v7572_v59 = vadd.s32 %v7571_v48, %v7569_v24  ;;  %v7587_v28 = vadd.s32 %v7586_v11, %v7584_v52  ;;  %v10188_v60 = vsel %vm1940_vm14, %v10187_v46, %v10183_v31  ;;  %v10224_v48 = vsel %vm1940_vm14, %v10223_v5, %v10219_v37 }
0x27f4   :  { %v10172_v63 = vpop.xlane.xlu1 %10171  ;;  %v10170_v26 = vpop.xlane.xlu0 %10169 }
0x27f5   :  { %v10192_v45 = vrot.slane %v7572_v59, %v11445_v8  ;;  %v10196_v3 = vrot.slane %v7587_v28, %v11448_v19  ;;  %v10174_v12 = vcvt.f32.s32 %v10172_v63  ;;  %v10173_v43 = vcvt.f32.s32 %v10170_v26  ;;  %v19730_v63 = vld [vmem:[#allocation51_spill] sm:$0xff] }
0x27f6   :  { %v5175_v26 = vcvt.f32.s32 %v19730_v63  ;;  %v19745_v63 = vld [vmem:[#allocation79_spill] sm:$0xff] }
0x27f7   :  { %v10175_v58 = vshll.u32 %v10174_v12, 16  ;;  %v10197_v18 = vsel %vm1940_vm14, %v10196_v3, %v10192_v45  ;;  %v19731_v45 = vld [vmem:[#allocation131_spill] sm:$0xff]  ;;  %v19732_v12 = vld [vmem:[#allocation88_spill] sm:$0xff] }
0x27f8   :  { %v10198_v23 = vsel %vm2149_vm15, %v10197_v18, %v10188_v60  ;;  %v5190_v3 = vcvt.f32.s32 %v19731_v45 }
0x27f9   :  { %v10176_v15 = vadd.s32 %v10175_v58, %v10173_v43  ;;  %v5205_v58 = vcvt.f32.s32 %v19732_v12  ;;  %v19733_v43 = vld [vmem:[#allocation138_spill] sm:$0xff] }
0x27fa   :  { %v5174_v18 = vcvt.f32.s32 %v19733_v43 }
0x27fb   :  { %v10178_v54 = vsel %vm10177_vm11, %v10176_v15, %v10142_v0  ;;  %vm10179_vm6 = vcmp.eq.s32.totalorder %v19721_v10, %v10176_v15  ;;  %v19726_v0 = vld [vmem:[#allocation139_spill] sm:$0xff]  ;;  %v19734_v15 = vld [vmem:[#allocation132_spill] sm:$0xff] }
0x27fc   :  { %v10199_v33 = vsel %vm10179_vm6, %v10198_v23, 0  ;;  %v6402_v34 = vcvt.f32.s32 %v19726_v0  ;;  %v5220_v23 = vcvt.f32.s32 %v19734_v15 }
0x27fd   :  { %v10200_v36 = vsel %vm10036_vm10, %v10199_v33, 0  ;;  %v19735_v33 = vld [vmem:[#allocation107_spill] sm:$0xff] }
0x27fe   :  { %v10202_v47 = vshrl.u32 %v10200_v36, 16  ;;  %v10201_v57 = vand.u32 65535, %v10200_v36  ;;  %v6403_v1 = vshll.u32 %v6402_v34, 16  ;;  %v5189_v36 = vcvt.f32.s32 %v19735_v33 }
0x27ff   :  { %v5221_v30 = vshll.u32 %v5220_v23, 16 }
0x2800   :  { %v10204_v22 = vcvt.s32.f32 %v10202_v47  ;;  %v10203_v53 = vcvt.s32.f32 %v10201_v57  ;;  %v6404_v14 = vadd.s32 %v6403_v1, %v6401_v51  ;;  %v19736_v47 = vld [vmem:[#allocation137_spill] sm:$0xff] }
0x2801   :  { %v5204_v57 = vcvt.f32.s32 %v19736_v47  ;;  %v5222_v38 = vadd.s32 %v5221_v30, %v5219_v41 }
0x2802   :  { %10207 = vadd.xlane.f32.xlu1 %v10204_v22  ;;  %10205 = vadd.xlane.f32.xlu0 %v10203_v53  ;;  %v10232_v55 = vrot.slane %v6404_v14, %v11448_v19  ;;  %v5191_v22 = vshll.u32 %v5190_v3, 16  ;;  %v5206_v53 = vshll.u32 %v5205_v58, 16 }
0x2803   :  { %v10268_v17 = vrot.slane %v5222_v38, %v11448_v19 }
0x2804   :  { %v10233_v35 = vsel %vm1940_vm14, %v10232_v55, %v10228_v50  ;;  %v5192_v56 = vadd.s32 %v5191_v22, %v5189_v36  ;;  %v5207_v42 = vadd.s32 %v5206_v53, %v5204_v57  ;;  %v19739_v50 = vld [vmem:[#allocation111_spill] sm:$0xff] }
0x2805   :  { %v10234_v7 = vsel %vm2149_vm15, %v10233_v35, %v10224_v48  ;;  %v19741_v48 = vld [vmem:[#allocation78_spill] sm:$0xff]  ;;  %v19742_v35 = vld [vmem:[#allocation128_spill] sm:$0xff] }
0x2806   :  { %v10259_v16 = vrot.slane %v5192_v56, %v11448_v19  ;;  %v10264_v2 = vrot.slane %v5207_v42, %v11445_v8 }
0x2808   :  { %v10269_v51 = vsel %vm1940_vm14, %v10268_v17, %v10264_v2  ;;  %v19747_v2 = vld [vmem:[#allocation124_spill] sm:$0xff] }
0x288b   :  { %v10208_v9 = vpop.xlane.xlu1 %10207  ;;  %v10206_v49 = vpop.xlane.xlu0 %10205 }
0x288c   :  { %v10210_v21 = vcvt.f32.s32 %v10208_v9  ;;  %v10209_v61 = vcvt.f32.s32 %v10206_v49 }
0x288e   :  { %v10211_v39 = vshll.u32 %v10210_v21, 16  ;;  %v19738_v21 = vld [vmem:[#allocation85_spill] sm:$0xff] }
0x288f   :  { %v3993_v5 = vcvt.f32.s32 %v19738_v21  ;;  %v19753_v21 = vld [vmem:[#allocation116_spill] sm:$0xff] }
0x2890   :  { %v10212_v11 = vadd.s32 %v10211_v39, %v10209_v61  ;;  %v4008_v39 = vcvt.f32.s32 %v19739_v50  ;;  %v19740_v61 = vld [vmem:[#allocation69_spill] sm:$0xff] }
0x2891   :  { %v4023_v55 = vcvt.f32.s32 %v19740_v61 }
0x2892   :  { %v10214_v31 = vsel %vm10213_vm7, %v10212_v11, %v10178_v54  ;;  %vm10215_vm8 = vcmp.eq.s32.totalorder %v19721_v10, %v10212_v11  ;;  %v5176_v54 = vshll.u32 %v5175_v26, 16  ;;  %v3992_v11 = vcvt.f32.s32 %v19741_v48 }
0x2893   :  { %v10235_v46 = vsel %vm10215_vm8, %v10234_v7, 0  ;;  %v4038_v7 = vcvt.f32.s32 %v19742_v35  ;;  %v4037_v26 = vcvt.f32.s32 %v19745_v63 }
0x2894   :  { %v10236_v24 = vsel %vm10036_vm10, %v10235_v46, 0  ;;  %v5177_v27 = vadd.s32 %v5176_v54, %v5174_v18  ;;  %v19743_v46 = vld [vmem:[#allocation99_spill] sm:$0xff] }
0x2895   :  { %v10238_v52 = vshrl.u32 %v10236_v24, 16  ;;  %v10237_v59 = vand.u32 65535, %v10236_v24  ;;  %v4007_v24 = vcvt.f32.s32 %v19743_v46  ;;  %v4039_v3 = vshll.u32 %v4038_v7, 16 }
0x2896   :  { %v10255_v6 = vrot.slane %v5177_v27, %v11445_v8 }
0x2897   :  { %v10240_v28 = vcvt.s32.f32 %v10238_v52  ;;  %v10239_v60 = vcvt.s32.f32 %v10237_v59  ;;  %v19744_v52 = vld [vmem:[#allocation130_spill] sm:$0xff]  ;;  %v4040_v43 = vadd.s32 %v4039_v3, %v4037_v26 }
0x2898   :  { %v10260_v13 = vsel %vm1940_vm14, %v10259_v16, %v10255_v6  ;;  %v4022_v59 = vcvt.f32.s32 %v19744_v52 }
0x2899   :  { %10243 = vadd.xlane.f32.xlu1 %v10240_v28  ;;  %10241 = vadd.xlane.f32.xlu0 %v10239_v60  ;;  %v10270_v62 = vsel %vm2149_vm15, %v10269_v51, %v10260_v13  ;;  %v4009_v28 = vshll.u32 %v4008_v39, 16  ;;  %v4024_v60 = vshll.u32 %v4023_v55, 16  ;;  %v10304_v22 = vrot.slane %v4040_v43, %v11448_v19  ;;  %v19749_v13 = vld [vmem:[#allocation70_spill] sm:$0xff]  ;;  %v19750_v51 = vld [vmem:[#allocation125_spill] sm:$0xff] }
0x289b   :  { %v4010_v12 = vadd.s32 %v4009_v28, %v4007_v24  ;;  %v4025_v58 = vadd.s32 %v4024_v60, %v4022_v59 }
0x289d   :  { %v10295_v33 = vrot.slane %v4010_v12, %v11448_v19  ;;  %v10300_v36 = vrot.slane %v4025_v58, %v11445_v8 }
0x289f   :  { %v10305_v41 = vsel %vm1940_vm14, %v10304_v22, %v10300_v36 }
0x2922   :  { %v10244_v0 = vpop.xlane.xlu1 %10243  ;;  %v10242_v34 = vpop.xlane.xlu0 %10241 }
0x2923   :  { %v10246_v44 = vcvt.f32.s32 %v10244_v0  ;;  %v10245_v29 = vcvt.f32.s32 %v10242_v34 }
0x2925   :  { %v10247_v25 = vshll.u32 %v10246_v44, 16  ;;  %v19746_v44 = vld [vmem:[#allocation89_spill] sm:$0xff] }
0x2926   :  { %v2811_v16 = vcvt.f32.s32 %v19746_v44 }
0x2927   :  { %v10248_v4 = vadd.s32 %v10247_v25, %v10245_v29  ;;  %v2826_v25 = vcvt.f32.s32 %v19747_v2  ;;  %v19748_v29 = vld [vmem:[#allocation114_spill] sm:$0xff] }
0x2928   :  { %v2841_v17 = vcvt.f32.s32 %v19748_v29 }
0x2929   :  { %v10250_v1 = vsel %vm10249_vm9, %v10248_v4, %v10214_v31  ;;  %vm10251_vm2 = vcmp.eq.s32.totalorder %v19721_v10, %v10248_v4  ;;  %v3994_v31 = vshll.u32 %v3993_v5, 16  ;;  %v2810_v4 = vcvt.f32.s32 %v19749_v13 }
0x292a   :  { %v10271_v40 = vsel %vm10251_vm2, %v10270_v62, 0  ;;  %v2856_v62 = vcvt.f32.s32 %v19750_v51  ;;  %v2855_v5 = vcvt.f32.s32 %v19753_v21 }
0x292b   :  { %v10272_v20 = vsel %vm10036_vm10, %v10271_v40, 0  ;;  %v3995_v45 = vadd.s32 %v3994_v31, %v3992_v11  ;;  %v19751_v40 = vld [vmem:[#allocation108_spill] sm:$0xff] }
0x292c   :  { %v10274_v14 = vshrl.u32 %v10272_v20, 16  ;;  %v10273_v37 = vand.u32 65535, %v10272_v20  ;;  %v2825_v20 = vcvt.f32.s32 %v19751_v40  ;;  %v2857_v39 = vshll.u32 %v2856_v62, 16 }
0x292d   :  { %v10291_v18 = vrot.slane %v3995_v45, %v11445_v8 }
0x292e   :  { %v10276_v9 = vcvt.s32.f32 %v10274_v14  ;;  %v10275_v49 = vcvt.s32.f32 %v10273_v37  ;;  %v19752_v14 = vld [vmem:[#allocation109_spill] sm:$0xff]  ;;  %v2858_v48 = vadd.s32 %v2857_v39, %v2855_v5 }
0x292f   :  { %v10296_v53 = vsel %vm1940_vm14, %v10295_v33, %v10291_v18  ;;  %v2840_v37 = vcvt.f32.s32 %v19752_v14 }
0x2930   :  { %10279 = vadd.xlane.f32.xlu1 %v10276_v9  ;;  %10277 = vadd.xlane.f32.xlu0 %v10275_v49  ;;  %v10306_v27 = vsel %vm2149_vm15, %v10305_v41, %v10296_v53  ;;  %v2827_v9 = vshll.u32 %v2826_v25, 16  ;;  %v2842_v49 = vshll.u32 %v2841_v17, 16  ;;  %v10340_v28 = vrot.slane %v2858_v48, %v11448_v19 }
0x2932   :  { %v2828_v61 = vadd.s32 %v2827_v9, %v2825_v20  ;;  %v2843_v55 = vadd.s32 %v2842_v49, %v2840_v37 }
0x2934   :  { %v10331_v46 = vrot.slane %v2828_v61, %v11448_v19  ;;  %v10336_v24 = vrot.slane %v2843_v55, %v11445_v8 }
0x2936   :  { %v10341_v26 = vsel %vm1940_vm14, %v10340_v28, %v10336_v24 }
0x29b9   :  { %v10280_v15 = vpop.xlane.xlu1 %10279  ;;  %v10278_v23 = vpop.xlane.xlu0 %10277 }
0x29ba   :  { %v10282_v54 = vcvt.f32.s32 %v10280_v15  ;;  %v10281_v57 = vcvt.f32.s32 %v10278_v23 }
0x29bc   :  { %v10283_v47 = vshll.u32 %v10282_v54, 16 }
0x29be   :  { %v10284_v32 = vadd.s32 %v10283_v47, %v10281_v57 }
0x29c0   :  { %v10286_v30 = vsel %vm10285_vm12, %v10284_v32, %v10250_v1  ;;  %vm10287_vm13 = vcmp.eq.s32.totalorder %v19721_v10, %v10284_v32  ;;  %v2812_v1 = vshll.u32 %v2811_v16, 16 }
0x29c1   :  { %v10307_v56 = vsel %vm10287_vm13, %v10306_v27, 0 }
0x29c2   :  { %v10308_v42 = vsel %vm10036_vm10, %v10307_v56, 0  ;;  %v2813_v50 = vadd.s32 %v2812_v1, %v2810_v4 }
0x29c3   :  { %v10310_v38 = vshrl.u32 %v10308_v42, 16  ;;  %v10309_v6 = vand.u32 65535, %v10308_v42 }
0x29c4   :  { %v10327_v11 = vrot.slane %v2813_v50, %v11445_v8 }
0x29c5   :  { %v10312_v0 = vcvt.s32.f32 %v10310_v38  ;;  %v10311_v34 = vcvt.s32.f32 %v10309_v6 }
0x29c6   :  { %v10332_v60 = vsel %vm1940_vm14, %v10331_v46, %v10327_v11  ;;  %vm10357_vm14 = vcmp.eq.s32.totalorder %v19721_v10, 0 }
0x29c7   :  { %10315 = vadd.xlane.f32.xlu1 %v10312_v0  ;;  %10313 = vadd.xlane.f32.xlu0 %v10311_v34  ;;  %v10342_v45 = vsel %vm2149_vm15, %v10341_v26, %v10332_v60  ;;  %vm10361_vm15 = vcmask 58368  }
0x2a50   :  { %v10316_v35 = vpop.xlane.xlu1 %10315  ;;  %v10314_v7 = vpop.xlane.xlu0 %10313 }
0x2a51   :  { %v10318_v31 = vcvt.f32.s32 %v10316_v35  ;;  %v10317_v59 = vcvt.f32.s32 %v10314_v7 }
0x2a53   :  { %v10319_v52 = vshll.u32 %v10318_v31, 16 }
0x2a55   :  { %v10320_v63 = vadd.s32 %v10319_v52, %v10317_v59 }
0x2a57   :  { %vm10323_vm1 = vcmp.eq.s32.totalorder %v19721_v10, %v10320_v63  ;;  %v10322_v3 = vsel %vm10321_vm0, %v10320_v63, %v10286_v30 }
0x2a58   :  { %v10343_v12 = vsel %vm10323_vm1, %v10342_v45, 0 }
0x2a59   :  { %v10344_v58 = vsel %vm10036_vm10, %v10343_v12, 0 }
0x2a5a   :  { %v10346_v8 = vshrl.u32 %v10344_v58, 16  ;;  %v10345_v43 = vand.u32 65535, %v10344_v58 }
0x2a5c   :  { %v10348_v18 = vcvt.s32.f32 %v10346_v8  ;;  %v10347_v15 = vcvt.s32.f32 %v10345_v43 }
0x2a5e   :  { %10351 = vadd.xlane.f32.xlu1 %v10348_v18  ;;  %10349 = vadd.xlane.f32.xlu0 %v10347_v15 }
0x2ae7   :  { %v10352_v19 = vpop.xlane.xlu1 %10351  ;;  %v10350_v23 = vpop.xlane.xlu0 %10349 }
0x2ae8   :  { %v10354_v54 = vcvt.f32.s32 %v10352_v19  ;;  %v10353_v36 = vcvt.f32.s32 %v10350_v23 }
0x2aea   :  { %v10355_v33 = vshll.u32 %v10354_v54, 16 }
0x2aec   :  { %v10356_v47 = vadd.s32 %v10355_v33, %v10353_v36 }
0x2aee   :  { %v10358_v57 = vsel %vm10357_vm14, %v10356_v47, %v10322_v3 }
0x2aef   :  { %10362 = vst.msk [vmem:[#allocation6] sm:$0x3] %vm10361_vm15, %v10358_v57 }
0x2af0   :  { %10767 = shalt.err (!%p10764_p9)
}
0x2af1   :  { %10374 = dma.vmem_to_hbm [thread:$0]  %s10372_s25, 32, %s17933_s3, [#allocation5]  }
0x2af2   :  { %10778 = dma.done.wait [#allocation5], 32  }
0x2af3   :  { %10779 = vsyncadd [#allocation5], 4294967264 }
0x2af4   :  { %10380 = vsyncpa [#allocation4], 1 }
0x2af5   :  { %10381 = vsyncpa [#allocation5], 1 }

</bundles_post_ra>
